<compile_context>
chip_gen: v5e
topology: v5e:2x2
jax: 0.10.0
libtpu: 0.0.40
codegen_flags: <defaults>
</compile_context>

<pallas_src>
import functools

import jax
import jax.numpy as jnp
import numpy as np
from jax import lax
from jax.experimental import pallas as pl
from jax.experimental.pallas import tpu as pltpu


# ---------------------------------------------------------------------------
# Pallas kernel: one (batch, time-tile) grid step.
# ---------------------------------------------------------------------------
def shuffle_tdnn_kernel(x_ref, xh_ref, w1t_ref, b1_ref, wdw_ref, b2_ref,
                        w2t_ref, b3_ref, o_ref, *,
                        T, TT, bf, K, dil, pad, mm_dtype, ragged):
    """
    x_ref   : (TT, 2*bf)   input tile (channels on lanes, time on sublanes)
    xh_ref  : (2*pad, bf)  branch-half halo rows (pad above + pad below), or None
    w1t/w2t : (bf, bf)     1x1 convs, BN scale folded, pre-transposed to (K, N)
    wdw_ref : (K, bf)      depthwise taps, BN2 scale folded
    b*_ref  : (1, bf)      folded BN biases
    o_ref   : (TT, 2*bf)   channel-shuffled (groups=2) output tile
    """
    t = pl.program_id(1)
    w1t = w1t_ref[...]
    w2t = w2t_ref[...]
    b1 = b1_ref[...]
    b2 = b2_ref[...]
    b3 = b3_ref[...]
    wdw = wdw_ref[...]

    x1 = x_ref[:, pl.ds(0, bf)]          # passthrough half
    x2 = x_ref[:, pl.ds(bf, bf)]         # branch2 input half

    # --- 1x1 conv (+folded BN) + ReLU on the aligned (TT, bf) tile ---------------
    y = jnp.dot(x2.astype(mm_dtype), w1t, preferred_element_type=jnp.float32)
    y = jnp.maximum(y + b1, 0.0)

    if ragged:
        # Only when T % TT != 0: rows past the true length behave as conv zero pad.
        row = lax.broadcasted_iota(jnp.int32, (TT, 1), 0)
        y = jnp.where(t * TT + row < T, y, 0.0)

    # --- depthwise conv along time: interior rows via XLU rolls ------------------
    z = jnp.zeros((TT, bf), jnp.float32)
    for k in range(K):                                  # K small & static -> unrolled
        off = k * dil - pad
        term = y if off == 0 else pltpu.roll(y, shift=(-off) % TT, axis=0)
        z = z + term * wdw[k:k + 1, :]
    z = z + b2                                          # no activation after BN2

    # --- second 1x1 conv (+folded BN) + ReLU, fused channel_shuffle(groups=2) ----
    #     out[:, 2i] = x1[:, i], out[:, 2i+1] = branch2[:, i]  (static interleave)
    w = jnp.dot(z.astype(mm_dtype), w2t, preferred_element_type=jnp.float32)
    w = jnp.maximum(w + b3, 0.0).astype(o_ref.dtype)
    o_ref[...] = jnp.stack([x1.astype(o_ref.dtype), w], axis=-1).reshape(TT, 2 * bf)

    if pad > 0:
        # Boundary fix-up: the roll wrap-around is wrong on the first/last `pad`
        # rows of the tile.  Recompute just those rows from the 2*pad halo rows
        # and overwrite the corresponding output-ref slabs (no full-tile selects).
        xh = xh_ref[...]                                                  # (2*pad, bf)
        yh = jnp.dot(xh.astype(mm_dtype), w1t, preferred_element_type=jnp.float32)
        yh = jnp.maximum(yh + b1, 0.0)
        hrow = lax.broadcasted_iota(jnp.int32, (2 * pad, 1), 0)
        g = jnp.where(hrow < pad, t * TT - pad + hrow, t * TT + TT - pad + hrow)
        yh = jnp.where((g >= 0) & (g < T), yh, 0.0)       # Conv1d 'same' zero padding

        ytop = jnp.concatenate([yh[:pad], y[:2 * pad]], axis=0)           # (3*pad, bf)
        ybot = jnp.concatenate([y[TT - 2 * pad:], yh[pad:]], axis=0)      # (3*pad, bf)
        zb = jnp.zeros((2 * pad, bf), jnp.float32)
        for k in range(K):
            yk = jnp.concatenate([ytop[k * dil:k * dil + pad],
                                  ybot[k * dil:k * dil + pad]], axis=0)
            zb = zb + yk * wdw[k:k + 1, :]
        zb = zb + b2
        wb = jnp.dot(zb.astype(mm_dtype), w2t, preferred_element_type=jnp.float32)
        wb = jnp.maximum(wb + b3, 0.0).astype(o_ref.dtype)
        x1b = jnp.concatenate([x1[:pad], x1[TT - pad:]], axis=0).astype(o_ref.dtype)
        ob = jnp.stack([x1b, wb], axis=-1).reshape(2 * pad, 2 * bf)
        o_ref[pl.ds(0, pad), :] = ob[:pad]
        o_ref[pl.ds(TT - pad, pad), :] = ob[pad:]


# ---------------------------------------------------------------------------
# Wrapper helpers
# ---------------------------------------------------------------------------
def fold_bn(gamma, beta, mean, var, eps=1e-5):
    scale = gamma / jnp.sqrt(var + eps)
    return scale, beta - mean * scale


def _round_up(v, m):
    return ((v + m - 1) // m) * m


def _vmem_capacity_bytes():
    try:
        return int(pltpu.get_tpu_info().vmem_capacity_bytes)
    except Exception:  # capability probe only — conservative v7x per-core default
        return 64 * 1024 * 1024


def _pick_time_tile(T, C, itemsize, K, pad, time_tile, vmem_cap):
    """Largest 8-aligned time tile that fits the per-generation VMEM budget."""
    bf = C // 2
    min_tt = max(8, _round_up(max(2 * pad, 1), 8))
    # Live VMEM per tile row: double-buffered in/out tiles + f32 intermediates
    # (y, rolled terms, z, w, interleave) — intermediates included per review.
    per_row = 4 * C * itemsize + (K + 6) * bf * 4
    tt_budget = max(min_tt, (int(0.45 * vmem_cap) // per_row) // 8 * 8)
    if time_tile is None:
        # Auto: aim for a ~2 MiB (TT, C) input tile, at least 512 rows.
        tt_target = max(512, min(4096, (2 * 1024 * 1024 // (C * itemsize)) // 8 * 8))
    else:
        tt_target = max(min_tt, (time_tile // 8) * 8)
    tt_cap = max(min_tt, min(tt_target, tt_budget))
    if T <= tt_cap:
        TT = max(min_tt, _round_up(T, 8))
    else:
        TT = 0
        for cand in range(tt_cap, min_tt - 1, -8):       # prefer exact divisors of T
            if T % cand == 0:
                TT = cand
                break
        if TT == 0:
            TT = tt_cap                   # ragged tail: wrapper pads + kernel masks
    T_eff = _round_up(max(T, TT), TT)
    return TT, T_eff


def shuffle_tdnn_block(x, params, *, context_size=3, dilation=1, time_tile=None,
                       matmul_dtype=jnp.float32, pipeline_buffers=None):
    """ShuffleTDNNBlock (stride=1) forward on (B, T, C) input, eval-mode BN.

    matmul_dtype   : MXU operand dtype. float32 (default) matches the PyTorch module;
                     pass jnp.bfloat16 explicitly for the faster, slightly lossy path.
    pipeline_buffers: optional pipeline depth for the activation tiles (e.g. 3 on
                     v5e if a trace shows exposed DMA); None keeps the default.
    """
    B, T, C = x.shape
    bf = C // 2
    assert C == 2 * bf, "input_dim must equal 2 * branch_features (stride=1 path)"
    assert context_size == 1 or context_size % 2 == 1, \
        "'same' depthwise padding assumes an odd context_size"
    K, dil = context_size, dilation
    pad = ((K - 1) * dil) // 2

    # Fold eval-mode BN into per-channel scale/bias; fold scales into conv weights
    # (host side, free); pre-transpose the 1x1 weights to the MXU (K, N) layout.
    s1, b1 = fold_bn(params["bn1_g"], params["bn1_b"], params["bn1_m"], params["bn1_v"])
    s2, b2 = fold_bn(params["bn2_g"], params["bn2_b"], params["bn2_m"], params["bn2_v"])
    s3, b3 = fold_bn(params["bn3_g"], params["bn3_b"], params["bn3_m"], params["bn3_v"])
    w1t = (params["w1"] * s1[:, None]).T.astype(matmul_dtype)   # (bf_in, bf_out)
    w2t = (params["w2"] * s3[:, None]).T.astype(matmul_dtype)
    wdwf = (params["wdw"] * s2[None, :]).astype(jnp.float32)    # (K, bf) stays on VPU
    b1f = b1.reshape(1, bf).astype(jnp.float32)
    b2f = b2.reshape(1, bf).astype(jnp.float32)
    b3f = b3.reshape(1, bf).astype(jnp.float32)

    itemsize = jnp.dtype(x.dtype).itemsize
    vmem_cap = _vmem_capacity_bytes()
    TT, T_eff = _pick_time_tile(T, C, itemsize, K, pad, time_tile, vmem_cap)
    nt = T_eff // TT
    ragged = T_eff != T
    x_eff = jnp.pad(x, ((0, 0), (0, T_eff - T), (0, 0))) if ragged else x

    kernel = functools.partial(
        shuffle_tdnn_kernel, T=T, TT=TT, bf=bf, K=K, dil=dil, pad=pad,
        mm_dtype=matmul_dtype, ragged=ragged)

    tile_kw = ({} if pipeline_buffers is None
               else dict(pipeline_mode=pl.Buffered(pipeline_buffers)))
    x_spec = pl.BlockSpec((None, TT, C), lambda b, t: (b, t, 0), **tile_kw)
    out_spec = pl.BlockSpec((None, TT, C), lambda b, t: (b, t, 0), **tile_kw)
    const = lambda shape: pl.BlockSpec(shape, lambda b, t: (0, 0))

    in_specs = [x_spec]
    args = [x_eff]
    if pad > 0:
        # Halo rows for the depthwise conv: branch-half channels only, `pad` rows
        # above + below every time tile, gathered once here (tiny: 2*pad*nt rows).
        # Out-of-range slots are clamped here and zero-masked in-kernel.
        g_top = jnp.arange(nt)[:, None] * TT - pad + jnp.arange(pad)[None, :]
        g_bot = (jnp.arange(nt)[:, None] + 1) * TT + jnp.arange(pad)[None, :]
        g = jnp.clip(jnp.concatenate([g_top, g_bot], axis=1), 0, T_eff - 1)
        x_halo = x_eff[:, g, bf:]                                  # (B, nt, 2*pad, bf)
        in_specs.append(pl.BlockSpec((None, None, 2 * pad, bf),
                                     lambda b, t: (b, t, 0, 0)))
        args.append(x_halo)
        body = kernel
    else:
        body = lambda x_ref, *rest: kernel(x_ref, None, *rest)    # no halo input at all

    in_specs += [const((bf, bf)), const((1, bf)), const((K, bf)),
                 const((1, bf)), const((bf, bf)), const((1, bf))]
    args += [w1t, b1f, wdwf, b2f, w2t, b3f]

    # Scoped-VMEM request: double-buffered tiles + halo + constants + in-kernel
    # f32 intermediates, kept well under the physical per-core capacity.
    mm_itemsize = jnp.dtype(matmul_dtype).itemsize
    est = (4 * TT * C * itemsize                            # in/out tiles (x2 buffers)
           + (K + 6) * TT * bf * 4                          # y/z/w/rolled/interleave
           + 4 * max(2 * pad, 1) * bf * itemsize            # halo tiles
           + 2 * (2 * bf * bf * mm_itemsize + (K + 3) * bf * 4))   # constants
    vmem_limit = min(int(0.9 * vmem_cap), max(32 * 1024 * 1024, 2 * est))

    out = pl.pallas_call(
        body,
        out_shape=jax.ShapeDtypeStruct((B, T_eff, C), x.dtype),
        grid=(B, nt),
        in_specs=in_specs,
        out_specs=out_spec,
        compiler_params=pltpu.CompilerParams(
            dimension_semantics=("parallel", "parallel"),
            vmem_limit_bytes=vmem_limit),
    )(*args)
    # NOTE: if this block is hot and bf is small, folding the groups=2 shuffle into
    # the *next* layer's 1x1 weights (graph-level) removes even this fused interleave.
    return out[:, :T] if ragged else out


# ---------------------------------------------------------------------------
# Pure-JAX reference (mirrors PyTorch eval-mode forward, f32)
# ---------------------------------------------------------------------------
def reference_forward(x, params, *, context_size=3, dilation=1):
    B, T, C = x.shape
    bf = C // 2
    pad = ((context_size - 1) * dilation) // 2
    s1, b1 = fold_bn(params["bn1_g"], params["bn1_b"], params["bn1_m"], params["bn1_v"])
    s2, b2 = fold_bn(params["bn2_g"], params["bn2_b"], params["bn2_m"], params["bn2_v"])
    s3, b3 = fold_bn(params["bn3_g"], params["bn3_b"], params["bn3_m"], params["bn3_v"])
    hi = jax.lax.Precision.HIGHEST

    x1, x2 = x[..., :bf], x[..., bf:]
    y = jnp.einsum("bti,oi->bto", x2, params["w1"], precision=hi)
    y = jax.nn.relu(y * s1 + b1)
    yp = jnp.pad(y, ((0, 0), (pad, pad), (0, 0)))
    z = jnp.zeros_like(y)
    for k in range(context_size):
        z = z + yp[:, k * dilation:k * dilation + T, :] * params["wdw"][k][None, None, :]
    z = z * s2 + b2
    w = jnp.einsum("bti,oi->bto", z, params["w2"], precision=hi)
    w = jax.nn.relu(w * s3 + b3)
    out = jnp.concatenate([x1, w], axis=-1)
    return out.reshape(B, T, 2, bf).transpose(0, 1, 3, 2).reshape(B, T, C)


# ---------------------------------------------------------------------------
# Deterministic parameter construction
# ---------------------------------------------------------------------------
def make_params(key, bf, context_size):
    ks = jax.random.split(key, 15)
    u = lambda k, shape, lo, hi: jax.random.uniform(k, shape, jnp.float32, lo, hi)
    return {
        "w1": u(ks[0], (bf, bf), -0.5, 0.5),
        "bn1_g": u(ks[1], (bf,), 0.5, 1.5), "bn1_b": u(ks[2], (bf,), -0.1, 0.1),
        "bn1_m": u(ks[3], (bf,), -0.2, 0.2), "bn1_v": u(ks[4], (bf,), 0.5, 1.5),
        "wdw": u(ks[5], (context_size, bf), -0.5, 0.5),
        "bn2_g": u(ks[6], (bf,), 0.5, 1.5), "bn2_b": u(ks[7], (bf,), -0.1, 0.1),
        "bn2_m": u(ks[8], (bf,), -0.2, 0.2), "bn2_v": u(ks[9], (bf,), 0.5, 1.5),
        "w2": u(ks[10], (bf, bf), -0.5, 0.5),
        "bn3_g": u(ks[11], (bf,), 0.5, 1.5), "bn3_b": u(ks[12], (bf,), -0.1, 0.1),
        "bn3_m": u(ks[13], (bf,), -0.2, 0.2), "bn3_v": u(ks[14], (bf,), 0.5, 1.5),
    }


if __name__ == "__main__":
    # inplanes = planes = 128 (branch_features = 64), T = 64 frames, batch 2.
    B, T, C = 2, 64, 128
    context_size, dilation = 3, 1
    bf = C // 2

    key = jax.random.PRNGKey(0)
    kx, kp = jax.random.split(key)
    x = jax.random.normal(kx, (B, T, C), jnp.float32)
    params = make_params(kp, bf, context_size)

    ref = reference_forward(x, params, context_size=context_size, dilation=dilation)

    # 1) f32 MXU, multi-tile (time_tile=32): exercises halo + roll + boundary paths.
    out = jax.block_until_ready(
        shuffle_tdnn_block(x, params, context_size=context_size, dilation=dilation,
                           time_tile=32))
    np.testing.assert_allclose(np.asarray(out), np.asarray(ref), rtol=1e-4, atol=1e-4)

    # 2) f32 MXU, auto tile sizing (single tile at this T).
    out = jax.block_until_ready(
        shuffle_tdnn_block(x, params, context_size=context_size, dilation=dilation))
    np.testing.assert_allclose(np.asarray(out), np.asarray(ref), rtol=1e-4, atol=1e-4)

    # 3) ragged time length (T not a multiple of the tile): padded + masked tail.
    xr = x[:, :60]
    ref_r = reference_forward(xr, params, context_size=context_size, dilation=dilation)
    out_r = jax.block_until_ready(
        shuffle_tdnn_block(xr, params, context_size=context_size, dilation=dilation,
                           time_tile=32))
    np.testing.assert_allclose(np.asarray(out_r), np.asarray(ref_r),
                               rtol=1e-4, atol=1e-4)

    # 4) perf mode (explicit opt-in): bf16 activations in HBM + bf16 MXU operands.
    out_b = jax.block_until_ready(
        shuffle_tdnn_block(x.astype(jnp.bfloat16), params, context_size=context_size,
                           dilation=dilation, time_tile=32,
                           matmul_dtype=jnp.bfloat16))
    np.testing.assert_allclose(np.asarray(out_b, dtype=np.float32), np.asarray(ref),
                               rtol=1e-1, atol=2e-1)

    print("KERNEL_OK")
</pallas_src>

<mosaic_0001>
module attributes {stable_mosaic.version = 11 : i64} {
  func.func @shuffle_tdnn_kernel(%arg0: i32, %arg1: i32, %arg2: memref<1x32x128xf32, #tpu.memory_space<vmem>>, %arg3: memref<1x1x2x64xf32, #tpu.memory_space<vmem>>, %arg4: memref<64x64xf32, #tpu.memory_space<vmem>>, %arg5: memref<1x64xf32, #tpu.memory_space<vmem>>, %arg6: memref<3x64xf32, #tpu.memory_space<vmem>>, %arg7: memref<1x64xf32, #tpu.memory_space<vmem>>, %arg8: memref<64x64xf32, #tpu.memory_space<vmem>>, %arg9: memref<1x64xf32, #tpu.memory_space<vmem>>, %arg10: memref<1x32x128xf32, #tpu.memory_space<vmem>>) attributes {dimension_semantics = [#tpu.dimension_semantics<parallel>, #tpu.dimension_semantics<parallel>], iteration_bounds = array<i64: 2, 2>, scalar_prefetch = 0 : i64, scratch_operands = 0 : i64, tpu.core_type = #tpu.core_type<tc>, window_params = [{transform_indices = @transform_0, window_bounds = array<i64: 1, 32, 128>}, {transform_indices = @transform_1, window_bounds = array<i64: 1, 1, 2, 64>}, {pipeline_mode = #tpu.pipeline_mode<synchronous>, transform_indices = @transform_2, window_bounds = array<i64: 64, 64>}, {pipeline_mode = #tpu.pipeline_mode<synchronous>, transform_indices = @transform_3, window_bounds = array<i64: 1, 64>}, {pipeline_mode = #tpu.pipeline_mode<synchronous>, transform_indices = @transform_4, window_bounds = array<i64: 3, 64>}, {pipeline_mode = #tpu.pipeline_mode<synchronous>, transform_indices = @transform_5, window_bounds = array<i64: 1, 64>}, {pipeline_mode = #tpu.pipeline_mode<synchronous>, transform_indices = @transform_6, window_bounds = array<i64: 64, 64>}, {pipeline_mode = #tpu.pipeline_mode<synchronous>, transform_indices = @transform_7, window_bounds = array<i64: 1, 64>}, {transform_indices = @transform_8, window_bounds = array<i64: 1, 32, 128>}]} {
    %c0 = arith.constant 0 : index
    %c0_0 = arith.constant 0 : index
    %0 = vector.load %arg4[%c0, %c0_0] : memref<64x64xf32, #tpu.memory_space<vmem>>, vector<64x64xf32>
    %c0_1 = arith.constant 0 : index
    %c0_2 = arith.constant 0 : index
    %1 = vector.load %arg8[%c0_1, %c0_2] : memref<64x64xf32, #tpu.memory_space<vmem>>, vector<64x64xf32>
    %c0_3 = arith.constant 0 : index
    %c0_4 = arith.constant 0 : index
    %2 = vector.load %arg5[%c0_3, %c0_4] : memref<1x64xf32, #tpu.memory_space<vmem>>, vector<1x64xf32>
    %c0_5 = arith.constant 0 : index
    %c0_6 = arith.constant 0 : index
    %3 = vector.load %arg7[%c0_5, %c0_6] : memref<1x64xf32, #tpu.memory_space<vmem>>, vector<1x64xf32>
    %c0_7 = arith.constant 0 : index
    %c0_8 = arith.constant 0 : index
    %4 = vector.load %arg9[%c0_7, %c0_8] : memref<1x64xf32, #tpu.memory_space<vmem>>, vector<1x64xf32>
    %c0_9 = arith.constant 0 : index
    %c0_10 = arith.constant 0 : index
    %5 = vector.load %arg6[%c0_9, %c0_10] : memref<3x64xf32, #tpu.memory_space<vmem>>, vector<3x64xf32>
    %c0_11 = arith.constant 0 : index
    %c0_12 = arith.constant 0 : index
    %c0_13 = arith.constant 0 : index
    %6 = vector.load %arg2[%c0_11, %c0_12, %c0_13] : memref<1x32x128xf32, #tpu.memory_space<vmem>>, vector<1x32x64xf32>
    %7 = vector.shape_cast %6 : vector<1x32x64xf32> to vector<32x64xf32>
    %c0_14 = arith.constant 0 : index
    %c0_15 = arith.constant 0 : index
    %c64 = arith.constant 64 : index
    %8 = vector.load %arg2[%c0_14, %c0_15, %c64] : memref<1x32x128xf32, #tpu.memory_space<vmem>>, vector<1x32x64xf32>
    %9 = vector.shape_cast %8 : vector<1x32x64xf32> to vector<32x64xf32>
    %cst = arith.constant dense<0.000000e+00> : vector<32x64xf32>
    %10 = tpu.matmul %9, %0, %cst {dimension_numbers = #tpu.dot_dimension_numbers<[1], [0], [0], [1], [0, 0, 1, 1], [], []>} : vector<32x64xf32>, vector<64x64xf32>, vector<32x64xf32> -> vector<32x64xf32>
    %11 = vector.broadcast %2 : vector<1x64xf32> to vector<32x64xf32>
    %12 = arith.addf %10, %11 : vector<32x64xf32>
    %cst_16 = arith.constant 0.000000e+00 : f32
    %13 = vector.broadcast %cst_16 : f32 to vector<32x64xf32>
    %14 = arith.maximumf %12, %13 : vector<32x64xf32>
    %cst_17 = arith.constant 0.000000e+00 : f32
    %15 = vector.broadcast %cst_17 : f32 to vector<32x64xf32>
    %c1_i32 = arith.constant 1 : i32
    %16 = tpu.dynamic_rotate %14 by %c1_i32 dim 0 : vector<32x64xf32>, i32 -> vector<32x64xf32>
    %17 = vector.extract_strided_slice %5 {offsets = [0, 0], sizes = [1, 64], strides = [1, 1]} : vector<3x64xf32> to vector<1x64xf32>
    %18 = vector.broadcast %17 : vector<1x64xf32> to vector<32x64xf32>
    %19 = arith.mulf %16, %18 : vector<32x64xf32>
    %20 = arith.addf %15, %19 : vector<32x64xf32>
    %21 = vector.extract_strided_slice %5 {offsets = [1, 0], sizes = [1, 64], strides = [1, 1]} : vector<3x64xf32> to vector<1x64xf32>
    %22 = vector.broadcast %21 : vector<1x64xf32> to vector<32x64xf32>
    %23 = arith.mulf %14, %22 : vector<32x64xf32>
    %24 = arith.addf %20, %23 : vector<32x64xf32>
    %c31_i32 = arith.constant 31 : i32
    %25 = tpu.dynamic_rotate %14 by %c31_i32 dim 0 : vector<32x64xf32>, i32 -> vector<32x64xf32>
    %26 = vector.extract_strided_slice %5 {offsets = [2, 0], sizes = [1, 64], strides = [1, 1]} : vector<3x64xf32> to vector<1x64xf32>
    %27 = vector.broadcast %26 : vector<1x64xf32> to vector<32x64xf32>
    %28 = arith.mulf %25, %27 : vector<32x64xf32>
    %29 = arith.addf %24, %28 : vector<32x64xf32>
    %30 = vector.broadcast %3 : vector<1x64xf32> to vector<32x64xf32>
    %31 = arith.addf %29, %30 : vector<32x64xf32>
    %cst_18 = arith.constant dense<0.000000e+00> : vector<32x64xf32>
    %32 = tpu.matmul %31, %1, %cst_18 {dimension_numbers = #tpu.dot_dimension_numbers<[1], [0], [0], [1], [0, 0, 1, 1], [], []>} : vector<32x64xf32>, vector<64x64xf32>, vector<32x64xf32> -> vector<32x64xf32>
    %33 = vector.broadcast %4 : vector<1x64xf32> to vector<32x64xf32>
    %34 = arith.addf %32, %33 : vector<32x64xf32>
    %cst_19 = arith.constant 0.000000e+00 : f32
    %35 = vector.broadcast %cst_19 : f32 to vector<32x64xf32>
    %36 = arith.maximumf %34, %35 : vector<32x64xf32>
    %37 = vector.shape_cast %7 : vector<32x64xf32> to vector<32x64x1xf32>
    %38 = vector.shape_cast %36 : vector<32x64xf32> to vector<32x64x1xf32>
    %39 = tpu.concatenate %37, %38 in 2 : vector<32x64x1xf32>, vector<32x64x1xf32> -> vector<32x64x2xf32>
    %40 = vector.shape_cast %39 : vector<32x64x2xf32> to vector<32x128xf32>
    %c0_20 = arith.constant 0 : index
    %c0_21 = arith.constant 0 : index
    %c0_22 = arith.constant 0 : index
    %41 = vector.load %arg10[%c0_20, %c0_21, %c0_22] : memref<1x32x128xf32, #tpu.memory_space<vmem>>, vector<1x32x128xf32>
    %42 = vector.shape_cast %41 : vector<1x32x128xf32> to vector<32x128xf32>
    %43 = vector.shape_cast %40 : vector<32x128xf32> to vector<1x32x128xf32>
    tpu.vector_store %arg10[%c0_20, %c0_21, %c0_22], %43 {strides = array<i32>} : memref<1x32x128xf32, #tpu.memory_space<vmem>>, vector<1x32x128xf32>,
    %c0_23 = arith.constant 0 : index
    %c0_24 = arith.constant 0 : index
    %c0_25 = arith.constant 0 : index
    %c0_26 = arith.constant 0 : index
    %44 = vector.load %arg3[%c0_23, %c0_24, %c0_25, %c0_26] : memref<1x1x2x64xf32, #tpu.memory_space<vmem>>, vector<1x1x2x64xf32>
    %45 = vector.shape_cast %44 : vector<1x1x2x64xf32> to vector<2x64xf32>
    %cst_27 = arith.constant dense<0.000000e+00> : vector<2x64xf32>
    %46 = tpu.matmul %45, %0, %cst_27 {dimension_numbers = #tpu.dot_dimension_numbers<[1], [0], [0], [1], [0, 0, 1, 1], [], []>} : vector<2x64xf32>, vector<64x64xf32>, vector<2x64xf32> -> vector<2x64xf32>
    %47 = vector.broadcast %2 : vector<1x64xf32> to vector<2x64xf32>
    %48 = arith.addf %46, %47 : vector<2x64xf32>
    %cst_28 = arith.constant 0.000000e+00 : f32
    %49 = vector.broadcast %cst_28 : f32 to vector<2x64xf32>
    %50 = arith.maximumf %48, %49 : vector<2x64xf32>
    %51 = tpu.iota {dimensions = array<i32: 0>} : vector<2x1xi32>
    %c1_i32_29 = arith.constant 1 : i32
    %52 = vector.broadcast %c1_i32_29 : i32 to vector<2x1xi32>
    %53 = arith.cmpi slt, %51, %52 : vector<2x1xi32>
    %c32_i32 = arith.constant 32 : i32
    %54 = arith.muli %arg1, %c32_i32 : i32
    %c1_i32_30 = arith.constant 1 : i32
    %55 = arith.subi %54, %c1_i32_30 : i32
    %56 = vector.broadcast %55 : i32 to vector<2x1xi32>
    %57 = arith.addi %56, %51 : vector<2x1xi32>
    %c32_i32_31 = arith.constant 32 : i32
    %58 = arith.muli %arg1, %c32_i32_31 : i32
    %c32_i32_32 = arith.constant 32 : i32
    %59 = arith.addi %58, %c32_i32_32 : i32
    %c1_i32_33 = arith.constant 1 : i32
    %60 = arith.subi %59, %c1_i32_33 : i32
    %61 = vector.broadcast %60 : i32 to vector<2x1xi32>
    %62 = arith.addi %61, %51 : vector<2x1xi32>
    %63 = arith.select %53, %57, %62 : vector<2x1xi1>, vector<2x1xi32>
    %c0_i32 = arith.constant 0 : i32
    %64 = vector.broadcast %c0_i32 : i32 to vector<2x1xi32>
    %65 = arith.cmpi sge, %63, %64 : vector<2x1xi32>
    %c64_i32 = arith.constant 64 : i32
    %66 = vector.broadcast %c64_i32 : i32 to vector<2x1xi32>
    %67 = arith.cmpi slt, %63, %66 : vector<2x1xi32>
    %68 = arith.andi %65, %67 : vector<2x1xi1>
    %cst_34 = arith.constant 0.000000e+00 : f32
    %69 = vector.shape_cast %68 : vector<2x1xi1> to vector<2x1xi1>
    %70 = vector.broadcast %69 : vector<2x1xi1> to vector<2x64xi1>
    %71 = vector.broadcast %cst_34 : f32 to vector<2x64xf32>
    %72 = arith.select %70, %50, %71 : vector<2x64xi1>, vector<2x64xf32>
    %73 = vector.extract_strided_slice %72 {offsets = [0, 0], sizes = [1, 64], strides = [1, 1]} : vector<2x64xf32> to vector<1x64xf32>
    %74 = vector.extract_strided_slice %14 {offsets = [0, 0], sizes = [2, 64], strides = [1, 1]} : vector<32x64xf32> to vector<2x64xf32>
    %75 = tpu.concatenate %73, %74 in 0 : vector<1x64xf32>, vector<2x64xf32> -> vector<3x64xf32>
    %76 = vector.extract_strided_slice %14 {offsets = [30, 0], sizes = [2, 64], strides = [1, 1]} : vector<32x64xf32> to vector<2x64xf32>
    %77 = vector.extract_strided_slice %72 {offsets = [1, 0], sizes = [1, 64], strides = [1, 1]} : vector<2x64xf32> to vector<1x64xf32>
    %78 = tpu.concatenate %76, %77 in 0 : vector<2x64xf32>, vector<1x64xf32> -> vector<3x64xf32>
    %cst_35 = arith.constant 0.000000e+00 : f32
    %79 = vector.broadcast %cst_35 : f32 to vector<2x64xf32>
    %80 = vector.extract_strided_slice %75 {offsets = [0, 0], sizes = [1, 64], strides = [1, 1]} : vector<3x64xf32> to vector<1x64xf32>
    %81 = vector.extract_strided_slice %78 {offsets = [0, 0], sizes = [1, 64], strides = [1, 1]} : vector<3x64xf32> to vector<1x64xf32>
    %82 = tpu.concatenate %80, %81 in 0 : vector<1x64xf32>, vector<1x64xf32> -> vector<2x64xf32>
    %83 = vector.extract_strided_slice %5 {offsets = [0, 0], sizes = [1, 64], strides = [1, 1]} : vector<3x64xf32> to vector<1x64xf32>
    %84 = vector.broadcast %83 : vector<1x64xf32> to vector<2x64xf32>
    %85 = arith.mulf %82, %84 : vector<2x64xf32>
    %86 = arith.addf %79, %85 : vector<2x64xf32>
    %87 = vector.extract_strided_slice %75 {offsets = [1, 0], sizes = [1, 64], strides = [1, 1]} : vector<3x64xf32> to vector<1x64xf32>
    %88 = vector.extract_strided_slice %78 {offsets = [1, 0], sizes = [1, 64], strides = [1, 1]} : vector<3x64xf32> to vector<1x64xf32>
    %89 = tpu.concatenate %87, %88 in 0 : vector<1x64xf32>, vector<1x64xf32> -> vector<2x64xf32>
    %90 = vector.extract_strided_slice %5 {offsets = [1, 0], sizes = [1, 64], strides = [1, 1]} : vector<3x64xf32> to vector<1x64xf32>
    %91 = vector.broadcast %90 : vector<1x64xf32> to vector<2x64xf32>
    %92 = arith.mulf %89, %91 : vector<2x64xf32>
    %93 = arith.addf %86, %92 : vector<2x64xf32>
    %94 = vector.extract_strided_slice %75 {offsets = [2, 0], sizes = [1, 64], strides = [1, 1]} : vector<3x64xf32> to vector<1x64xf32>
    %95 = vector.extract_strided_slice %78 {offsets = [2, 0], sizes = [1, 64], strides = [1, 1]} : vector<3x64xf32> to vector<1x64xf32>
    %96 = tpu.concatenate %94, %95 in 0 : vector<1x64xf32>, vector<1x64xf32> -> vector<2x64xf32>
    %97 = vector.extract_strided_slice %5 {offsets = [2, 0], sizes = [1, 64], strides = [1, 1]} : vector<3x64xf32> to vector<1x64xf32>
    %98 = vector.broadcast %97 : vector<1x64xf32> to vector<2x64xf32>
    %99 = arith.mulf %96, %98 : vector<2x64xf32>
    %100 = arith.addf %93, %99 : vector<2x64xf32>
    %101 = vector.broadcast %3 : vector<1x64xf32> to vector<2x64xf32>
    %102 = arith.addf %100, %101 : vector<2x64xf32>
    %cst_36 = arith.constant dense<0.000000e+00> : vector<2x64xf32>
    %103 = tpu.matmul %102, %1, %cst_36 {dimension_numbers = #tpu.dot_dimension_numbers<[1], [0], [0], [1], [0, 0, 1, 1], [], []>} : vector<2x64xf32>, vector<64x64xf32>, vector<2x64xf32> -> vector<2x64xf32>
    %104 = vector.broadcast %4 : vector<1x64xf32> to vector<2x64xf32>
    %105 = arith.addf %103, %104 : vector<2x64xf32>
    %cst_37 = arith.constant 0.000000e+00 : f32
    %106 = vector.broadcast %cst_37 : f32 to vector<2x64xf32>
    %107 = arith.maximumf %105, %106 : vector<2x64xf32>
    %108 = vector.extract_strided_slice %7 {offsets = [0, 0], sizes = [1, 64], strides = [1, 1]} : vector<32x64xf32> to vector<1x64xf32>
    %109 = vector.extract_strided_slice %7 {offsets = [31, 0], sizes = [1, 64], strides = [1, 1]} : vector<32x64xf32> to vector<1x64xf32>
    %110 = tpu.concatenate %108, %109 in 0 : vector<1x64xf32>, vector<1x64xf32> -> vector<2x64xf32>
    %111 = vector.shape_cast %110 : vector<2x64xf32> to vector<2x64x1xf32>
    %112 = vector.shape_cast %107 : vector<2x64xf32> to vector<2x64x1xf32>
    %113 = tpu.concatenate %111, %112 in 2 : vector<2x64x1xf32>, vector<2x64x1xf32> -> vector<2x64x2xf32>
    %114 = vector.shape_cast %113 : vector<2x64x2xf32> to vector<2x128xf32>
    %115 = vector.extract_strided_slice %114 {offsets = [0, 0], sizes = [1, 128], strides = [1, 1]} : vector<2x128xf32> to vector<1x128xf32>
    %c0_38 = arith.constant 0 : index
    %c0_39 = arith.constant 0 : index
    %c0_40 = arith.constant 0 : index
    %116 = vector.load %arg10[%c0_38, %c0_39, %c0_40] : memref<1x32x128xf32, #tpu.memory_space<vmem>>, vector<1x1x128xf32>
    %117 = vector.shape_cast %116 : vector<1x1x128xf32> to vector<1x128xf32>
    %118 = vector.shape_cast %115 : vector<1x128xf32> to vector<1x1x128xf32>
    tpu.vector_store %arg10[%c0_38, %c0_39, %c0_40], %118 {strides = array<i32>} : memref<1x32x128xf32, #tpu.memory_space<vmem>>, vector<1x1x128xf32>,
    %119 = vector.extract_strided_slice %114 {offsets = [1, 0], sizes = [1, 128], strides = [1, 1]} : vector<2x128xf32> to vector<1x128xf32>
    %c0_41 = arith.constant 0 : index
    %c31 = arith.constant 31 : index
    %c0_42 = arith.constant 0 : index
    %120 = vector.load %arg10[%c0_41, %c31, %c0_42] : memref<1x32x128xf32, #tpu.memory_space<vmem>>, vector<1x1x128xf32>
    %121 = vector.shape_cast %120 : vector<1x1x128xf32> to vector<1x128xf32>
    %122 = vector.shape_cast %119 : vector<1x128xf32> to vector<1x1x128xf32>
    tpu.vector_store %arg10[%c0_41, %c31, %c0_42], %122 {strides = array<i32>} : memref<1x32x128xf32, #tpu.memory_space<vmem>>, vector<1x1x128xf32>,
    return
  }
  func.func @transform_0(%arg0: i32, %arg1: i32) -> (i32, i32, i32) {
    %c0_i32 = arith.constant 0 : i32
    %c0_i32_0 = arith.constant 0 : i32
    return %arg0, %arg1, %c0_i32 : i32, i32, i32
  }
  func.func @transform_1(%arg0: i32, %arg1: i32) -> (i32, i32, i32, i32) {
    %c0_i32 = arith.constant 0 : i32
    %c0_i32_0 = arith.constant 0 : i32
    %c0_i32_1 = arith.constant 0 : i32
    return %arg0, %arg1, %c0_i32, %c0_i32_0 : i32, i32, i32, i32
  }
  func.func @transform_2(%arg0: i32, %arg1: i32) -> (i32, i32) {
    %c0_i32 = arith.constant 0 : i32
    %c0_i32_0 = arith.constant 0 : i32
    %c0_i32_1 = arith.constant 0 : i32
    return %c0_i32, %c0_i32_0 : i32, i32
  }
  func.func @transform_3(%arg0: i32, %arg1: i32) -> (i32, i32) {
    %c0_i32 = arith.constant 0 : i32
    %c0_i32_0 = arith.constant 0 : i32
    %c0_i32_1 = arith.constant 0 : i32
    return %c0_i32, %c0_i32_0 : i32, i32
  }
  func.func @transform_4(%arg0: i32, %arg1: i32) -> (i32, i32) {
    %c0_i32 = arith.constant 0 : i32
    %c0_i32_0 = arith.constant 0 : i32
    %c0_i32_1 = arith.constant 0 : i32
    return %c0_i32, %c0_i32_0 : i32, i32
  }
  func.func @transform_5(%arg0: i32, %arg1: i32) -> (i32, i32) {
    %c0_i32 = arith.constant 0 : i32
    %c0_i32_0 = arith.constant 0 : i32
    %c0_i32_1 = arith.constant 0 : i32
    return %c0_i32, %c0_i32_0 : i32, i32
  }
  func.func @transform_6(%arg0: i32, %arg1: i32) -> (i32, i32) {
    %c0_i32 = arith.constant 0 : i32
    %c0_i32_0 = arith.constant 0 : i32
    %c0_i32_1 = arith.constant 0 : i32
    return %c0_i32, %c0_i32_0 : i32, i32
  }
  func.func @transform_7(%arg0: i32, %arg1: i32) -> (i32, i32) {
    %c0_i32 = arith.constant 0 : i32
    %c0_i32_0 = arith.constant 0 : i32
    %c0_i32_1 = arith.constant 0 : i32
    return %c0_i32, %c0_i32_0 : i32, i32
  }
  func.func @transform_8(%arg0: i32, %arg1: i32) -> (i32, i32, i32) {
    %c0_i32 = arith.constant 0 : i32
    %c0_i32_0 = arith.constant 0 : i32
    return %arg0, %arg1, %c0_i32 : i32, i32, i32
  }
}

</mosaic_0001>

<bundles_post_ra>
// kernel: tpu_custom_call.1
= control target key start
LH: loop header
LB: loop body
LE: loop exit
PB: predicated region body
PF: predicated region fallthrough
CT: control target
= control target key end

     0   :  { %s19393_s0 = inlined_call_operand.hbm [shape: f32[2,64,128], index: 0, kind: input, shape index: {}]   ;;  %s19394_s1 = inlined_call_operand.hbm [shape: f32[2,2,2,64], index: 1, kind: input, shape index: {}]   ;;  %s19395_s2 = inlined_call_operand.hbm [shape: f32[64,64], index: 2, kind: input, shape index: {}]   ;;  %s19396_s3 = inlined_call_operand.vmem [shape: f32[1,64], index: 3, kind: input, shape index: {}]   ;;  %s19397_s4 = inlined_call_operand.hbm [shape: f32[3,64], index: 4, kind: input, shape index: {}]   ;;  %s19398_s5 = inlined_call_operand.vmem [shape: f32[1,64], index: 5, kind: input, shape index: {}]   ;;  %s19399_s6 = inlined_call_operand.hbm [shape: f32[64,64], index: 6, kind: input, shape index: {}]   ;;  %s19400_s7 = inlined_call_operand.vmem [shape: f32[1,64], index: 7, kind: input, shape index: {}]   ;;  %s19401_s8 = inlined_call_operand.hbm [shape: f32[2,64,128], index: 8, kind: output, shape index: {}]  }
   0x1   :  { %19659 = sst [smem:[#allocation433_spill]] %s19395_s2 }
   0x2   :  { %19660 = sst [smem:[#allocation434_spill]] %s19397_s4 }
   0x3   :  { %19661 = sst [smem:[#allocation435_spill]] %s19399_s6 }
   0x4   :  { %19662 = sst [smem:[#allocation436_spill]] %s19400_s7 }
   0x5   :  { %19663 = sst [smem:[#allocation437_spill]] %s19401_s8 }
   0x6   :  { %13 = vsyncpa [#allocation3], 0 }
   0x7   :  { %15 = vsyncpa [#allocation3 + $0x1], 0 }
   0x8   :  { %16 = vsyncpa [#allocation6], 0 }
   0x9   :  { %18 = vsyncpa [#allocation6 + $0x1], 0 }
   0xa   :  { %19 = vsyncpa [#allocation9], 0 }
   0xb   :  { %20 = vsyncpa [#allocation4], 0 }
   0xc   :  { %22 = vsyncpa [#allocation4 + $0x1], 0  ;;  %s11197_s27 = smov 0   ;;  %s11199_s28 = smov 0  }
   0xd   :  { %s11201_s29 = smov 0   ;;  %s11203_s30 = smov 0  }
   0xe   :  { %s11205_s9 = smov 0   ;;  %s11207_s10 = smov 0  }
   0xf   :  { %s11209_s11 = smov 0   ;;  %s11211_s12 = smov 0  }
  0x10 LB: > { %19664 = sst [smem:[#allocation17_spill]] %s11051_s27  ;;  %s11238_s13 = sadd.s32 4294967295, %s11079_s12   ;;  %s11079_s12 = sphi %s11211_s12, %s28_s12   ;;  %s11075_s11 = sphi %s11209_s11, %s21226_s11   ;;  %s11071_s10 = sphi %s11207_s10, %s21225_s10   ;;  %s11067_s9 = sphi %s11205_s9, %s21224_s9   ;;  %s11063_s30 = sphi %s11203_s30, %s21223_s30   ;;  %s11059_s29 = sphi %s11201_s29, %s21218_s29   ;;  %s11055_s28 = sphi %s11199_s28, %s21222_s28   ;;  %s11051_s27 = sphi %s11197_s27, %s21221_s27  }
  0x11   : > { %19665 = sst [smem:[#allocation18_spill]] %s11059_s29  ;;  %s10129_s14 = sadd.s32 4294967294, %s11079_s12  }
  0x12   : > { %19666 = sst [smem:[#allocation19_spill]] %s11067_s9  ;;  %p62_p0 = scmp.ne.s32.totalorder %s11055_s28, %s11051_s27 }
  0x13   : > { %p63_p1 = scmp.eq.s32.totalorder %s11238_s13, 0  ;;  %p242_p2 = scmp.eq.s32.totalorder %s11238_s13, 3 }
  0x14   : > { %p248_p3 = scmp.eq.s32.totalorder %s10129_s14, 3  ;;  %p10130_p5 = scmp.ge.s32.totalorder %s11079_s12, 1 }
  0x15   : > { %p11247_p4 = por %p63_p1, %p62_p0  ;;  %p255_p7 = scmp.lt.s32.totalorder %s11079_s12, 5 }
  0x16   : > { %p11252_p6 = por %p248_p3, %p62_p0  ;;  %s19670_s2 = sld [smem:[#allocation433_spill]] }
  0x17   : > { %p11260_p8 = pnand %p10130_p5, %p255_p7  ;;  %s11081_s21 = smov [#allocation7]  }
  0x18   : > { %s19668_s16 = scalar_select %p11252_p6, 1, 0 }
  0x19   : > { %p10185_p9 = pneg %p11260_p8  ;;  %s268_s22 = sshll.u32 %s11081_s21, 4  ;;  %s269_s22 = int_to_ptr.vmem [resolvable:$true] %s268_s22 }
  0x1a   : > { %19669 = sst [smem:[#allocation20_spill]] %s19668_s16  ;;  %s19403_s14 = smov 128  }
  0x1b   : > { %p11268_p10 = pnand %p10185_p9, %p63_p1  ;;  %s19673_s4 = sld [smem:[#allocation434_spill]] }
  0x1c   : > { %s266_s19 = sshll.u32 %s19670_s2, 4  ;;  %s19404_s17 = smov 8   ;;  %s267_s19 = int_to_ptr.hbm [resolvable:$true] %s266_s19 }
  0x1d   : > { %10188 = dma.hbm_to_vmem [thread:$0]  (!%p11268_p10), %s267_s19, 1024, %s269_s22, [#allocation6], %s19403_s14, %s19403_s14, %s19404_s17  }
  0x1e   : > { %s11084_s18 = smov [#allocation8]   ;;  %s19674_s6 = sld [smem:[#allocation435_spill]] }
  0x1f   : > { %s286_s21 = sshll.u32 %s11084_s18, 4  ;;  %s37_s19 = sadd.s32 1, %s11071_s10  ;;  %s287_s21 = int_to_ptr.vmem [resolvable:$true] %s286_s21 }
  0x20   : > { %p38_p11 = scmp.ge.s32.totalorder %s37_s19, 2  ;;  %s40_s22 = sadd.s32 1, %s11075_s11 }
  0x21   : > { %s284_s26 = sshll.u32 %s19673_s4, 4  ;;  %s11085_s4 = smov [#allocation10]   ;;  %s285_s26 = int_to_ptr.hbm [resolvable:$true] %s284_s26 }
  0x22   : > { %10191 = dma.hbm_to_vmem [thread:$0]  (!%p11268_p10), %s285_s26, 64, %s287_s21, [#allocation9]  }
  0x23   : > { %s300_s16 = sshll.u32 %s11085_s4, 4  ;;  %s49_s18 = sadd.s32 1, %s11059_s29  ;;  %s301_s16 = int_to_ptr.vmem [resolvable:$true] %s300_s16 }
  0x24   : > { %s298_s2 = sshll.u32 %s19674_s6, 4  ;;  %p56_p12 = scmp.ne.s32.totalorder %s11059_s29, %s11055_s28  ;;  %s299_s2 = int_to_ptr.hbm [resolvable:$true] %s298_s2 }
  0x25   : > { %10194 = dma.hbm_to_vmem [thread:$0]  (!%p11268_p10), %s299_s2, 1024, %s301_s16, [#allocation9], %s19403_s14, %s19403_s14, %s19404_s17  }
  0x26   : > { %s21228_s19 = smov (%p38_p11, %s37_s19), 0  ;;  %s21230_s22 = smov (!%p38_p11, %s40_s22), %s11075_s11 }
  0x27   : > { %19675 = sst [smem:[#allocation21_spill]] %s21228_s19  ;;  %s45_s4 = ssub.s32 %s11071_s10, %s21228_s19 }
  0x28   : > { %p57_p13 = scmp.eq.s32.totalorder %s11079_s12, 0  ;;  %p42_p0 = scmp.ge.s32.totalorder %s21230_s22, 2 }
  0x29   : > { %p11303_p3 = por %p242_p2, %p56_p12  ;;  %p10209_p7 = scmp.lt.s32.totalorder %s11079_s12, 4 }
  0x2a   : > { %p11307_p5 = por %p57_p13, %p56_p12  ;;  %s21232_s22 = smov (%p42_p0, %s21230_s22), 0 }
  0x2b   : > { %s19676_s23 = scalar_select %p11303_p3, 1, 0 }
  0x2c   : > { %19679 = sst [smem:[#allocation23_spill]] %s21232_s22  ;;  %s317_s16 = sand.u32 1, %s11059_s29  }
  0x2d   : > { %19677 = sst [smem:[#allocation22_spill]] %s19676_s23  ;;  %s10136_s26 = sshll.u32 %s11071_s10, 2 }
  0x2e   : > { %s44_s21 = ssub.s32 %s11075_s11, %s21232_s22  ;;  %s10135_s25 = sshll.u32 %s317_s16, 5 }
  0x2f   : > { %s46_s24 = sor.u32 %s45_s4, %s44_s21  ;;  %s10137_s14 = sshll.u32 %s11075_s11, 3 }
  0x30   : > { %p47_p2 = scmp.eq.s32.totalorder %s46_s24, 0  ;;  %s321_s17 = scalar_lea.vmem [#allocation2], %s10135_s25 }
  0x31   : > { %s331_s6 = sshll.u32 %s321_s17, 4  ;;  %s326_s27 = sadd.s32 %s10137_s14, %s10136_s26  ;;  %s332_s6 = int_to_ptr.vmem [resolvable:$true] %s331_s6 }
  0x32   : > { %s11320_s19 = scalar_select %p47_p2, %s11059_s29, %s49_s18  }
  0x33   : > { %s10138_s23 = sshll.u32 %s326_s27, 3  ;;  %p11326_p9 = pnand %p10209_p7, %p11307_p5 }
  0x34   : > { %19680 = sst [smem:[#allocation24_spill]] %s11320_s19  ;;  %s328_s21 = scalar_lea.hbm %s19393_s0, %s10138_s23 }
  0x35   : > { %s341_s24 = sand.u32 1, %s11079_s12   ;;  %s329_s25 = sshll.u32 %s328_s21, 4  ;;  %s330_s25 = int_to_ptr.hbm [resolvable:$true] %s329_s25 }
  0x36   : > { %s318_s17 = scalar_lea.sflag [#allocation3], %s317_s16  ;;  %s19682_s14 = smov 8  }
  0x37   : > { %s19683_s18 = smov 128   ;;  %s10139_s27 = sshll.u32 %s317_s16, 1 }
  0x38   : > { %10198 = dma.hbm_to_vmem [thread:$0]  (!%p11326_p9), %s330_s25, 512, %s332_s6, %s318_s17, %s19683_s18, %s19683_s18, %s19682_s14  }
  0x39   : > { %s10140_s2 = sshll.u32 %s11075_s11, 1  ;;  %s345_s29 = scalar_lea.vmem [#allocation5], %s10139_s27 }
  0x3a   : > { %s349_s26 = sadd.s32 %s11071_s10, %s10140_s2  ;;  %s355_s9 = sshll.u32 %s345_s29, 4  ;;  %s356_s9 = int_to_ptr.vmem [resolvable:$true] %s355_s9 }
  0x3b   : > { %s10141_s19 = sshll.u32 %s349_s26, 1  ;;  %s342_s21 = scalar_lea.sflag [#allocation6], %s341_s24 }
  0x3c   : > { %s351_s23 = scalar_lea.hbm %s19394_s1, %s10141_s19  ;;  %364 = sbr.rel (%p11260_p8) target bundleno = 4607 (0x11ff), region = 52 }
  0x3d   : > { %s353_s4 = sshll.u32 %s351_s23, 4  ;;  %s354_s4 = int_to_ptr.hbm [resolvable:$true] %s353_s4 }
  0x3e   : > { %10201 = dma.hbm_to_vmem [thread:$0]  (!%p11326_p9), %s354_s4, 32, %s356_s9, %s342_s21  }
  0x41   : > { %s11349_s6 = sand.u32 1, %s11055_s28  }
  0x42   : > { %s10143_s29 = sshll.u32 %s11349_s6, 5  ;;  %s367_s16 = scalar_lea.sflag [#allocation3], %s11349_s6 }
  0x43   : > { %s11355_s7 = scalar_lea.vmem [#allocation2], %s10143_s29 }
  0x44   : > { %11030 = dma.done.wait (%p11247_p4), %s367_s16, 512  }
  0x45   : > { %11032 = vsyncadd (%p11247_p4), %s367_s16, 4294966784  ;;  %s376_s8 = sand.u32 1, %s11238_s13   ;;  %s10144_s9 = sshll.u32 %s11349_s6, 1 }
  0x46   : > { %s377_s20 = scalar_lea.sflag [#allocation6], %s376_s8  ;;  %s11363_s19 = scalar_lea.vmem [#allocation5], %s10144_s9 }
  0x47   : > { %11034 = dma.done.wait (%p11247_p4), %s377_s20, 32  }
  0x48   : > { %11036 = vsyncadd (%p11247_p4), %s377_s20, 4294967264 }
  0x49   : > { %11038 = dma.done.wait (%p63_p1), [#allocation6], 1024  }
  0x4a   : > { %11040 = vsyncadd (%p63_p1), [#allocation6], 4294966272 }
  0x4b   : > { %11042 = dma.done.wait (%p63_p1), [#allocation9], 1088  }
  0x4c   : > { %11044 = vsyncadd (%p63_p1), [#allocation9], 4294966208  ;;  %v521_v0 = vlaneseq  ;;  %v11385_v3 = vld [vmem:[%s11355_s7 + $0x10] sm:$0xff]  ;;  %v11388_v4 = vld [vmem:[%s11355_s7] sm:$0xff]  ;;  %s19558_s13 = smov 64   ;;  %vm19628_vm0 = vcmask 523264  }
  0x4d   : > { %471 = vrot.lane.b32.xlu1 %v11385_v3, %s19558_s13  ;;  %467 = vrot.lane.b32.xlu0 %v11388_v4, %s19558_s13  ;;  %v11395_v5 = vperm.slane %v11388_v4, 0  ;;  %v11399_v6 = vld [vmem:[%s11355_s7 + $0x18] sm:$0xff]  ;;  %v11402_v7 = vld [vmem:[%s11355_s7 + $0x8] sm:$0xff]  ;;  %v11430_v12 = vperm.slane %v11388_v4, 1  ;;  %v11457_v23 = vperm.slane %v11388_v4, 2  ;;  %v11478_v29 = vperm.slane %v11388_v4, 3 }
  0x4e   : > { %v11377_v1 = vshrl.u32 %v521_v0, 7  ;;  %v443_v15 = vld [vmem:[#allocation7 + $0x38] sm:$0xff]  ;;  %v442_v16 = vld [vmem:[#allocation7 + $0x30] sm:$0xff]  ;;  %v441_v17 = vld [vmem:[#allocation7 + $0x28] sm:$0xff]  ;;  %v11493_v30 = vperm.slane %v11388_v4, 4  ;;  %v11500_v31 = vperm.slane %v11388_v4, 5 }
  0x4f   : > { %492 = vmatpush.msra.mxu0 %v443_v15  ;;  %8935 = vmatpush.msra.mxu2 %v443_v15  ;;  %v440_v18 = vld [vmem:[#allocation7 + $0x20] sm:$0xff]  ;;  %v439_v19 = vld [vmem:[#allocation7 + $0x18] sm:$0xff]  ;;  %v438_v20 = vld [vmem:[#allocation7 + $0x10] sm:$0xff]  ;;  %s10158_s15 = sshll.u32 %s11063_s30, 5  ;;  %vm8965_vm5 = vcmask 1040384   ;;  %vm8973_vm7 = vcmask 1041408  }
  0x50   : > { %19684 = vst [vmem:[#allocation25_spill] sm:$0xff] %v11377_v1  ;;  %10349 = vset.pattern.permute.xlu2 %v11377_v1  ;;  %v11381_v2 = vadd.s32 24, %v11377_v1  ;;  %v11409_v8 = vadd.s32 8, %v11377_v1  ;;  %v11415_v9 = vadd.s32 40, %v11377_v1  ;;  %v11419_v10 = vadd.s32 32, %v11377_v1  ;;  %v437_v21 = vld [vmem:[#allocation7 + $0x8] sm:$0xff] }
  0x51   : > { %v11426_v11 = vadd.s32 48, %v11377_v1  ;;  %v11435_v13 = vadd.s32 16, %v11377_v1  ;;  %v11438_v14 = vadd.s32 56, %v11377_v1  ;;  %493 = vmatpush.msra.mxu0 %v442_v16  ;;  %8936 = vmatpush.msra.mxu2 %v442_v16  ;;  %v436_v22 = vld [vmem:[#allocation7] sm:$0xff]  ;;  %v8923_v26 = vld [vmem:[%s11363_s19] sm:$0x3] }
  0x52   : > { %19685 = vst [vmem:[#allocation26_spill] sm:$0xff] %v11381_v2  ;;  %10351 = vset.pattern.permute.xlu1 %v11381_v2  ;;  %v451_v32 = vld [vmem:[#allocation10 + $0x38] sm:$0xff]  ;;  %v450_v33 = vld [vmem:[#allocation10 + $0x30] sm:$0xff]  ;;  %v449_v34 = vld [vmem:[#allocation10 + $0x28] sm:$0xff]  ;;  %s10159_s17 = sadd.s32 4294967295, %s10158_s15  ;;  %s8952_s14 = sadd.s32 31, %s10158_s15 }
  0x53   : > { %19686 = vst [vmem:[#allocation27_spill] sm:$0xff] %v11409_v8  ;;  %10355 = vset.pattern.permute.xlu0 %v11438_v14  ;;  %494 = vmatpush.msra.mxu0 %v441_v17  ;;  %v448_v35 = vld [vmem:[#allocation10 + $0x20] sm:$0xff]  ;;  %v447_v37 = vld [vmem:[#allocation10 + $0x18] sm:$0xff]  ;;  %v446_v38 = vld [vmem:[#allocation10 + $0x10] sm:$0xff]  ;;  %v8950_v43 = vstv %s10159_s17  ;;  %v8953_v44 = vstv %s8952_s14  ;;  %vm523_vm1 = vcmp.lt.s32.totalorder %v11377_v1, 1  ;;  %vm550_vm6 = vcmp.lt.s32.totalorder %v11377_v1, 7 }
  0x54   : > { %19687 = vst [vmem:[#allocation28_spill] sm:$0xff] %v11415_v9  ;;  %8937 = vmatpush.msra.mxu2 %v441_v17  ;;  %594 = vmatpush.msra.mxu1 %v451_v32  ;;  %v445_v39 = vld [vmem:[#allocation10 + $0x8] sm:$0xff]  ;;  %v444_v40 = vld [vmem:[#allocation10] sm:$0xff]  ;;  %v10811_v42 = vld [vmem:[%s19396_s3] ss:$0 sm:$0xff]  ;;  %v8951_v47 = vadd.s32 %v8950_v43, %v11377_v1  ;;  %v8954_v48 = vadd.s32 %v8953_v44, %v11377_v1  ;;  %s19692_s22 = sld [smem:[#allocation436_spill]] }
  0x55   : > { %473 = vrot.lane.b32.xlu1 %v11399_v6, %s19558_s13  ;;  %469 = vrot.lane.b32.xlu0 %v11402_v7, %s19558_s13  ;;  %19688 = vst [vmem:[#allocation29_spill] sm:$0xff] %v11419_v10  ;;  %v455_v57 = vld [vmem:[#allocation8] sm:$0x7]  ;;  %vm3755_vm8 = vcmask 7168   ;;  %vm4013_vm9 = vcmask 1047556   ;;  %s11089_s23 = smov 2  }
  0x56   : > { %19689 = vst [vmem:[#allocation30_spill] sm:$0xff] %v11426_v11  ;;  %495 = vmatpush.msra.mxu0 %v440_v18  ;;  %8938 = vmatpush.msra.mxu2 %v440_v18  ;;  %v8955_v52 = vsel %vm523_vm1, %v8951_v47, %v8954_v48  ;;  %v537_v16 = vperm.slane %v455_v57, 1  ;;  %v528_v17 = vperm.slane %v455_v57, 0  ;;  %s11090_s4 = smov 4   ;;  %s11091_s21 = smov 6   ;;  %vm8605_vm10 = vcmask 15360  }
  0x57   : > { %19690 = vst [vmem:[#allocation31_spill] sm:$0xff] %v11435_v13  ;;  %9006 = vmatpush.msra.mxu3 %v451_v32  ;;  %595 = vmatpush.msra.mxu1 %v450_v33  ;;  %vm8956_vm2 = vcmp.ge.s32.totalorder %v8955_v52, 0  ;;  %vm8957_vm3 = vcmp.lt.s32.totalorder %v8955_v52, 64  ;;  %s11092_s16 = smov 8   ;;  %s11093_s8 = smov 10   ;;  %vm19590_vm11 = vcmask 31744  }
  0x58   : > { %624 = vperm.xlu2 %10349, %v11395_v5   ;;  %19691 = vst [vmem:[#allocation32_spill] sm:$0xff] %v11438_v14  ;;  %496 = vmatpush.msra.mxu0 %v439_v19  ;;  %vm8958_vm4 = vmand %vm8956_vm2, %vm8957_vm3  ;;  %s11094_s9 = smov 12   ;;  %s11095_s20 = smov 14   ;;  %vm19594_vm12 = vcmask 48128   ;;  %vm19591_vm13 = vcmask 64512   ;;  %vm19593_vm14 = vcmask 80896  }
  0x59   : > { %8939 = vmatpush.msra.mxu2 %v439_v19  ;;  %9007 = vmatpush.msra.mxu3 %v450_v33  ;;  %v11536_v19 = vperm.slane %v455_v57, 2  ;;  %s11096_s19 = smov 16   ;;  %s11097_s15 = smov 18   ;;  %vm19598_vm15 = vcmask 97280   ;;  %vm19597_vm2 = vcmask 130048   ;;  %vm19601_vm3 = vcmask 146432  }
  0x5a   : > { %497 = vmatpush.msra.mxu0 %v438_v20  ;;  %596 = vmatpush.msra.mxu1 %v449_v34  ;;  %s11098_s24 = smov 20   ;;  %s11099_s25 = smov 22  }
  0x5b   : > { %8940 = vmatpush.msra.mxu2 %v438_v20  ;;  %9008 = vmatpush.msra.mxu3 %v449_v34  ;;  %s19553_s17 = smov 24   ;;  %s11101_s14 = smov 26  }
  0x5c   : > { %498 = vmatpush.msra.mxu0 %v437_v21  ;;  %597 = vmatpush.msra.mxu1 %v448_v35  ;;  %s11102_s18 = smov 28   ;;  %s19542_s27 = smov 30  }
  0x5d   : > { %642 = vperm.xlu1 %10351, %v11395_v5   ;;  %666 = vperm.xlu0 %10355, %v11395_v5   ;;  %s19543_s2 = smov 32   ;;  %s19544_s26 = smov 34  }
  0x5e   : > { %8941 = vmatpush.msra.mxu2 %v437_v21  ;;  %499 = vmatpush.msra.mxu0 %v436_v22 }
  0x5f   : > { %9009 = vmatpush.msra.mxu3 %v448_v35  ;;  %598 = vmatpush.msra.mxu1 %v447_v37 }
  0x60   : > { %10350 = vset.pattern.permute.xlu2 %v11409_v8  ;;  %8942 = vmatpush.msra.mxu2 %v436_v22 }
  0x61   : > { %10157 = vmatmul.msk.f32.vlgmr.msra.gmra.mxu2 %vm19628_vm0, %v8923_v26  ;;  %9010 = vmatpush.msra.mxu3 %v447_v37 }
  0x62   : > { %599 = vmatpush.msra.mxu1 %v446_v38 }
  0x63   : > { %9011 = vmatpush.msra.mxu3 %v446_v38 }
  0x64   : > { %600 = vmatpush.msra.mxu1 %v445_v39 }
  0x65   : > { %10353 = vset.pattern.permute.xlu1 %v11415_v9  ;;  %911 = vperm.xlu0 %10355, %v11500_v31  }
  0x66   : > { %9012 = vmatpush.msra.mxu3 %v445_v39  ;;  %601 = vmatpush.msra.mxu1 %v444_v40 }
  0x68   : > { %630 = vperm.xlu2 %10350, %v11395_v5   ;;  %9013 = vmatpush.msra.mxu3 %v444_v40 }
  0x6d   : > { %654 = vperm.xlu1 %10353, %v11395_v5   ;;  %10388 = vset.pattern.permute.xlu0 %v11435_v13 }
  0x70   : > { %10352 = vset.pattern.permute.xlu2 %v11419_v10 }
  0x75   : > { %10356 = vset.pattern.permute.xlu1 %v11377_v1  ;;  %636 = vperm.xlu0 %10388, %v11395_v5  }
  0x78   : > { %648 = vperm.xlu2 %10352, %v11395_v5  }
  0x7d   : > { %673 = vperm.xlu1 %10356, %v11430_v12   ;;  %881 = vperm.xlu0 %10388, %v11500_v31  }
  0x80   : > { %10354 = vset.pattern.permute.xlu2 %v11426_v11 }
  0x85   : > { %10358 = vset.pattern.permute.xlu1 %v11435_v13 }
  0x88   : > { %660 = vperm.xlu2 %10354, %v11395_v5  }
  0x8d   : > { %685 = vperm.xlu1 %10358, %v11430_v12  }
  0x90   : > { %10357 = vset.pattern.permute.xlu2 %v11409_v8 }
  0x95   : > { %10360 = vset.pattern.permute.xlu1 %v11415_v9 }
  0x98   : > { %679 = vperm.xlu2 %10357, %v11430_v12  }
  0x9d   : > { %703 = vperm.xlu1 %10360, %v11430_v12  }
  0xa0   : > { %10359 = vset.pattern.permute.xlu2 %v11381_v2 }
  0xa5   : > { %10362 = vset.pattern.permute.xlu1 %v11438_v14 }
  0xa8   : > { %691 = vperm.xlu2 %10359, %v11430_v12  }
  0xad   : > { %715 = vperm.xlu1 %10362, %v11430_v12  }
  0xb0   : > { %10361 = vset.pattern.permute.xlu2 %v11426_v11 }
  0xb5   : > { %10364 = vset.pattern.permute.xlu1 %v11435_v13 }
  0xb8   : > { %709 = vperm.xlu2 %10361, %v11430_v12  }
  0xbd   : > { %734 = vperm.xlu1 %10364, %v11457_v23  }
  0xbf   : > { %v468_v24 = vpop.permute.xlu0 %467  ;;  %v472_v27 = vpop.permute.xlu1 %471 }
  0xc0   : > { %10363 = vset.pattern.permute.xlu2 %v11377_v1  ;;  %10149 = vmatmul.msk.f32.vlgmr.msra.gmra.mxu0 %vm19628_vm0, %v468_v24 }
  0xc5   : > { %10366 = vset.pattern.permute.xlu1 %v11419_v10 }
  0xc7   : > { %v470_v25 = vpop.permute.xlu0 %469  ;;  %v474_v28 = vpop.permute.xlu1 %473 }
  0xc8   : > { %722 = vperm.xlu2 %10363, %v11457_v23   ;;  %10150 = vmatmul.msk.f32.gmra.mxu0 %vm19628_vm0, %v470_v25 }
  0xcd   : > { %746 = vperm.xlu1 %10366, %v11457_v23  }
  0xd0   : > { %10365 = vset.pattern.permute.xlu2 %v11381_v2  ;;  %10151 = vmatmul.msk.f32.gmra.mxu0 %vm19628_vm0, %v472_v27 }
  0xd5   : > { %10368 = vset.pattern.permute.xlu1 %v11438_v14 }
  0xd8   : > { %740 = vperm.xlu2 %10365, %v11457_v23   ;;  %10152 = vmatmul.msk.f32.gmra.mxu0 %vm19628_vm0, %v474_v28 }
  0xdd   : > { %764 = vperm.xlu1 %10368, %v11457_v23  }
  0xe0   : > { %10367 = vset.pattern.permute.xlu2 %v11415_v9 }
  0xe4   : > { %v8944_v46 = vpop.f32.mrf.mxu2 }
  0xe5   : > { %10370 = vset.pattern.permute.xlu1 %v11409_v8  ;;  %v8945_v51 = vadd.f32 %v10811_v42, %v8944_v46  ;;  %v10812_v46 = vld [vmem:[%s19398_s5] ss:$0 sm:$0xff] }
  0xe7   : > { %v8947_v55 = vmax.f32 %v8945_v51, 0.0 }
  0xe8   : > { %752 = vperm.xlu2 %10367, %v11457_v23  }
  0xe9   : > { %v8961_v63 = vsel %vm8958_vm4, %v8947_v55, 0.0  ;;  %vm19599_vm4 = vcmask 162816  }
  0xea   : > { %v8971_v20 = vrot.slane %v8961_v63, 7 }
  0xed   : > { %777 = vperm.xlu1 %10370, %v11478_v29  }
  0xf0   : > { %10369 = vset.pattern.permute.xlu2 %v11377_v1 }
  0xf5   : > { %10372 = vset.pattern.permute.xlu1 %v11419_v10 }
  0xf8   : > { %771 = vperm.xlu2 %10369, %v11478_v29  }
  0xfd   : > { %795 = vperm.xlu1 %10372, %v11478_v29  }
 0x100   : > { %10371 = vset.pattern.permute.xlu2 %v11435_v13 }
 0x105   : > { %10374 = vset.pattern.permute.xlu1 %v11426_v11 }
 0x108   : > { %783 = vperm.xlu2 %10371, %v11478_v29  }
 0x10d   : > { %807 = vperm.xlu1 %10374, %v11478_v29  }
 0x110   : > { %10373 = vset.pattern.permute.xlu2 %v11415_v9 }
 0x115   : > { %10376 = vset.pattern.permute.xlu1 %v11409_v8 }
 0x118   : > { %801 = vperm.xlu2 %10373, %v11478_v29  }
 0x11d   : > { %826 = vperm.xlu1 %10376, %v11493_v30  }
 0x120   : > { %10375 = vset.pattern.permute.xlu2 %v11438_v14 }
 0x125   : > { %10378 = vset.pattern.permute.xlu1 %v11381_v2 }
 0x128   : > { %813 = vperm.xlu2 %10375, %v11478_v29  }
 0x12d   : > { %838 = vperm.xlu1 %10378, %v11493_v30  }
 0x130   : > { %10377 = vset.pattern.permute.xlu2 %v11435_v13 }
 0x135   : > { %10380 = vset.pattern.permute.xlu1 %v11426_v11 }
 0x138   : > { %832 = vperm.xlu2 %10377, %v11493_v30  }
 0x13d   : > { %856 = vperm.xlu1 %10380, %v11493_v30   ;;  %v501_v36 = vpop.f32.mrf.mxu0 }
 0x13e   : > { %v502_v45 = vadd.f32 %v10811_v42, %v501_v36 }
 0x140   : > { %10379 = vset.pattern.permute.xlu2 %v11419_v10  ;;  %v11524_v53 = vmax.f32 %v502_v45, 0.0 }
 0x142   : > { %v517_v58 = vrot.slane %v11524_v53, 7  ;;  %v546_v59 = vrot.slane %v11524_v53, 1  ;;  %v538_v28 = vmul.f32 %v537_v16, %v11524_v53  ;;  %v11603_v53 = vperm.slane %v11388_v4, 6 }
 0x144   : > { %v8966_v15 = vsel %vm8965_vm5, %v8961_v63, %v517_v58 }
 0x145   : > { %10382 = vset.pattern.permute.xlu1 %v11377_v1  ;;  %v504_v41 = vpop.f32.mrf.mxu0  ;;  %v8982_v24 = vrot.slane %v8966_v15, 1  ;;  %v8987_v33 = vrot.slane %v8966_v15, 2 }
 0x146   : > { %v505_v49 = vadd.f32 %v10811_v42, %v504_v41 }
 0x148   : > { %844 = vperm.xlu2 %10379, %v11493_v30   ;;  %v514_v54 = vmax.f32 %v505_v49, 0.0 }
 0x14a   : > { %v518_v60 = vrot.slane %v514_v54, 7  ;;  %v547_v61 = vrot.slane %v514_v54, 1  ;;  %v539_v32 = vmul.f32 %v537_v16, %v514_v54 }
 0x14c   : > { %v526_v21 = vsel %vm523_vm1, %v517_v58, %v518_v60  ;;  %v553_v22 = vsel %vm550_vm6, %v546_v59, %v547_v61 }
 0x14d   : > { %869 = vperm.xlu1 %10382, %v11500_v31   ;;  %v507_v50 = vpop.f32.mrf.mxu0  ;;  %v530_v34 = vmul.f32 %v528_v17, %v526_v21  ;;  %v556_v36 = vmul.f32 %v11536_v19, %v553_v22 }
 0x14e   : > { %v508_v56 = vadd.f32 %v10811_v42, %v507_v50 }
 0x14f   : > { %v543_v51 = vadd.f32 %v539_v32, %v530_v34 }
 0x150   : > { %10381 = vset.pattern.permute.xlu2 %v11438_v14  ;;  %v11530_v0 = vmax.f32 %v508_v56, 0.0 }
 0x152   : > { %v548_v25 = vrot.slane %v11530_v0, 1  ;;  %v540_v63 = vmul.f32 %v537_v16, %v11530_v0 }
 0x154   : > { %v552_v43 = vsel %vm550_vm6, %v547_v61, %v548_v25 }
 0x155   : > { %10384 = vset.pattern.permute.xlu1 %v11381_v2  ;;  %v510_v62 = vpop.f32.mrf.mxu0  ;;  %v557_v54 = vmul.f32 %v11536_v19, %v552_v43 }
 0x156   : > { %v511_v5 = vadd.f32 %v10811_v42, %v510_v62  ;;  %v519_v42 = vrot.slane %v11530_v0, 7 }
 0x158   : > { %862 = vperm.xlu2 %10381, %v11493_v30   ;;  %v11534_v18 = vmax.f32 %v511_v5, 0.0  ;;  %v525_v55 = vsel %vm523_vm1, %v518_v60, %v519_v42  ;;  %v561_v5 = vadd.f32 %v557_v54, %v543_v51 }
 0x159   : > { %v531_v62 = vmul.f32 %v528_v17, %v525_v55 }
 0x15a   : > { %v520_v26 = vrot.slane %v11534_v18, 7  ;;  %v8968_v27 = vrot.slane %v11534_v18, 6  ;;  %v549_v56 = vrot.slane %v11534_v18, 1  ;;  %v568_v0 = vadd.f32 %v10812_v46, %v561_v5 }
 0x15b   : > { %v544_v21 = vadd.f32 %v540_v63, %v531_v62  ;;  %v11770_v5 = vperm.slane %v11402_v7, 3 }
 0x15c   : > { %v527_v35 = vsel %vm523_vm1, %v520_v26, %v517_v58  ;;  %v8974_v37 = vsel %vm8973_vm7, %v8968_v27, %v8971_v20  ;;  %v551_v20 = vsel %vm550_vm6, %v548_v25, %v549_v56  ;;  %v11585_v25 = vperm.slane %v11402_v7, 7 }
 0x15d   : > { %887 = vperm.xlu1 %10384, %v11500_v31   ;;  %v529_v38 = vmul.f32 %v528_v17, %v527_v35  ;;  %v8976_v39 = vrot.slane %v8974_v37, 7  ;;  %v8984_v40 = vsel %vm8965_vm5, %v8982_v24, %v8974_v37  ;;  %v8989_v41 = vrot.slane %v8974_v37, 1 }
 0x15e   : > { %v8985_v44 = vmul.f32 %v8984_v40, %v537_v16  ;;  %v558_v22 = vmul.f32 %v11536_v19, %v551_v20  ;;  %v524_v24 = vsel %vm523_vm1, %v519_v42, %v520_v26  ;;  %v11638_v37 = vperm.slane %v11385_v3, 3 }
 0x15f   : > { %v542_v45 = vadd.f32 %v538_v28, %v529_v38  ;;  %v8978_v47 = vsel %vm8965_vm5, %v8966_v15, %v8976_v39  ;;  %v8991_v48 = vsel %vm8965_vm5, %v8987_v33, %v8989_v41  ;;  %v11572_v15 = vperm.slane %v11402_v7, 2 }
 0x160   : > { %10383 = vset.pattern.permute.xlu2 %v11409_v8  ;;  %v8979_v49 = vmul.f32 %v8978_v47, %v528_v17  ;;  %v8992_v50 = vmul.f32 %v8991_v48, %v11536_v19  ;;  %v562_v27 = vadd.f32 %v558_v22, %v544_v21  ;;  %v541_v28 = vmul.f32 %v537_v16, %v11534_v18 }
 0x161   : > { %v560_v52 = vadd.f32 %v556_v36, %v542_v45  ;;  %1126 = vperm.xlu0 %10388, %v11572_v15   ;;  %v532_v32 = vmul.f32 %v528_v17, %v524_v24  ;;  %v554_v33 = vsel %vm550_vm6, %v549_v56, %v546_v59  ;;  %v11598_v16 = vperm.slane %v11385_v3, 4 }
 0x162   : > { %v8986_v57 = vadd.f32 %v8985_v44, %v8979_v49  ;;  %v569_v26 = vadd.f32 %v10812_v46, %v562_v27  ;;  %v559_v35 = vmul.f32 %v11536_v19, %v554_v33  ;;  %v11608_v18 = vperm.slane %v11399_v6, 1 }
 0x163   : > { %v567_v58 = vadd.f32 %v10812_v46, %v560_v52  ;;  %v545_v34 = vadd.f32 %v541_v28, %v532_v32  ;;  %v11614_v19 = vperm.slane %v11399_v6, 6  ;;  %v11632_v36 = vperm.slane %v11402_v7, 6  ;;  %v11865_v28 = vpop.permute.xlu0 %666 }
 0x164   : > { %v8993_v61 = vadd.f32 %v8992_v50, %v8986_v57  ;;  %v11644_v38 = vperm.slane %v11399_v6, 0  ;;  %v11649_v39 = vperm.slane %v11388_v4, 7  ;;  %v11653_v40 = vperm.slane %v11399_v6, 5  ;;  %v11667_v4 = vld [vmem:[%s19692_s22] ss:$0 sm:$0xff]  ;;  %19700 = vst [vmem:[#allocation40_spill] sm:$0xff] %v11865_v28 }
 0x165   : > { %10386 = vset.pattern.permute.xlu1 %v11415_v9  ;;  %10153 = vmatmul.msk.f32.vlgmr.msra.gmra.mxu1 %vm19628_vm0, %v567_v58  ;;  %v563_v17 = vadd.f32 %v559_v35, %v545_v34  ;;  %v11680_v45 = vperm.slane %v11402_v7, 0  ;;  %v11806_v24 = vperm.slane %v11402_v7, 4  ;;  %v11861_v27 = vperm.slane %v11399_v6, 2  ;;  %v11951_v28 = vld [vmem:[%s11355_s7 + $0x10] sm:$0xff] }
 0x166   : > { %v8994_v60 = vadd.f32 %v10812_v46, %v8993_v61  ;;  %vm19595_vm1 = vcmask 113664   ;;  %vm19600_vm6 = vcmask 179200   ;;  %vm19605_vm7 = vcmask 195584  }
 0x167   : > { %v570_v59 = vadd.f32 %v10812_v46, %v563_v17 }
 0x168   : > { %875 = vperm.xlu2 %10383, %v11500_v31   ;;  %10160 = vmatmul.msk.f32.vlgmr.msra.gmra.mxu3 %vm19628_vm0, %v8994_v60 }
 0x169   : > { %1371 = vperm.xlu0 %10388, %v11585_v25  }
 0x16b   : > { %v11874_v32 = vpop.permute.xlu0 %911 }
 0x16c   : > { %19701 = vst [vmem:[#allocation41_spill] sm:$0xff] %v11874_v32 }
 0x16d   : > { %899 = vperm.xlu1 %10386, %v11500_v31   ;;  %10154 = vmatmul.msk.f32.gmra.mxu1 %vm19628_vm0, %v568_v0 }
 0x170   : > { %10385 = vset.pattern.permute.xlu2 %v11419_v10 }
 0x171   : > { %1616 = vperm.xlu0 %10388, %v11598_v16  }
 0x175   : > { %10389 = vset.pattern.permute.xlu1 %v11377_v1  ;;  %10155 = vmatmul.msk.f32.gmra.mxu1 %vm19628_vm0, %v569_v26  ;;  %v11885_v26 = vpop.permute.xlu0 %636 }
 0x176   : > { %19703 = vst [vmem:[#allocation43_spill] sm:$0xff] %v11885_v26 }
 0x178   : > { %893 = vperm.xlu2 %10385, %v11500_v31  }
 0x179   : > { %1861 = vperm.xlu0 %10388, %v11608_v18  }
 0x17d   : > { %918 = vperm.xlu1 %10389, %v11603_v53   ;;  %10156 = vmatmul.msk.f32.gmra.mxu1 %vm19628_vm0, %v570_v59  ;;  %v11895_v35 = vpop.permute.xlu0 %881 }
 0x17e   : > { %19705 = vst [vmem:[#allocation45_spill] sm:$0xff] %v11895_v35 }
 0x180   : > { %10387 = vset.pattern.permute.xlu2 %v11426_v11 }
 0x181   : > { %2106 = vperm.xlu0 %10388, %v11614_v19  }
 0x185   : > { %10391 = vset.pattern.permute.xlu1 %v11435_v13 }
 0x188   : > { %905 = vperm.xlu2 %10387, %v11500_v31   ;;  %v11626_v31 = vperm.slane %v11402_v7, 1 }
 0x189   : > { %10545 = vset.pattern.permute.xlu0 %v11415_v9 }
 0x18d   : > { %930 = vperm.xlu1 %10391, %v11603_v53  }
 0x190   : > { %10390 = vset.pattern.permute.xlu2 %v11409_v8 }
 0x191   : > { %850 = vperm.xlu0 %10545, %v11493_v30  }
 0x195   : > { %10393 = vset.pattern.permute.xlu1 %v11415_v9 }
 0x198   : > { %924 = vperm.xlu2 %10390, %v11603_v53  }
 0x199   : > { %1095 = vperm.xlu0 %10545, %v11626_v31  }
 0x19d   : > { %948 = vperm.xlu1 %10393, %v11603_v53  }
 0x1a0   : > { %10392 = vset.pattern.permute.xlu2 %v11381_v2 }
 0x1a1   : > { %1340 = vperm.xlu0 %10545, %v11632_v36  }
 0x1a5   : > { %10395 = vset.pattern.permute.xlu1 %v11438_v14 }
 0x1a8   : > { %936 = vperm.xlu2 %10392, %v11603_v53  }
 0x1a9   : > { %1585 = vperm.xlu0 %10545, %v11638_v37  }
 0x1ad   : > { %960 = vperm.xlu1 %10395, %v11603_v53  }
 0x1b0   : > { %10394 = vset.pattern.permute.xlu2 %v11426_v11 }
 0x1b1   : > { %1830 = vperm.xlu0 %10545, %v11644_v38  }
 0x1b5   : > { %10397 = vset.pattern.permute.xlu1 %v11435_v13 }
 0x1b8   : > { %954 = vperm.xlu2 %10394, %v11603_v53  }
 0x1b9   : > { %2075 = vperm.xlu0 %10545, %v11653_v40  }
 0x1bd   : > { %979 = vperm.xlu1 %10397, %v11649_v39  }
 0x1c0   : > { %10396 = vset.pattern.permute.xlu2 %v11377_v1 }
 0x1c5   : > { %10399 = vset.pattern.permute.xlu1 %v11419_v10 }
 0x1c8   : > { %967 = vperm.xlu2 %10396, %v11649_v39  }
 0x1cd   : > { %991 = vperm.xlu1 %10399, %v11649_v39  }
 0x1d0   : > { %10398 = vset.pattern.permute.xlu2 %v11381_v2 }
 0x1d5   : > { %10401 = vset.pattern.permute.xlu1 %v11438_v14 }
 0x1d8   : > { %985 = vperm.xlu2 %10398, %v11649_v39  }
 0x1dd   : > { %1009 = vperm.xlu1 %10401, %v11649_v39  }
 0x1e0   : > { %10400 = vset.pattern.permute.xlu2 %v11415_v9 }
 0x1e2   : > { %v603_v41 = vpop.f32.mrf.mxu1 }
 0x1e3   : > { %v604_v42 = vadd.f32 %v11667_v4, %v603_v41 }
 0x1e5   : > { %v11671_v43 = vmax.f32 %v604_v42, 0.0  ;;  %10403 = vset.pattern.permute.xlu1 %v11409_v8 }
 0x1e7   : > { %v11675_v44 = vperm.slane %v11671_v43, 2  ;;  %v11687_v46 = vperm.slane %v11671_v43, 3  ;;  %v11696_v47 = vperm.slane %v11671_v43, 7  ;;  %v11877_v33 = vperm.slane %v11671_v43, 4 }
 0x1e8   : > { %997 = vperm.xlu2 %10400, %v11649_v39   ;;  %v11987_v26 = vperm.slane %v11671_v43, 0 }
 0x1e9   : > { %2320 = vperm.xlu0 %10545, %v11675_v44  }
 0x1ea   : > { %v606_v48 = vpop.f32.mrf.mxu1 }
 0x1eb   : > { %v607_v49 = vadd.f32 %v11667_v4, %v606_v48  ;;  %v11921_v48 = vpop.permute.xlu1 %642 }
 0x1ed   : > { %1022 = vperm.xlu1 %10403, %v11680_v45   ;;  %v11704_v50 = vmax.f32 %v607_v49, 0.0 }
 0x1ef   : > { %v11708_v51 = vperm.slane %v11704_v50, 0  ;;  %v11717_v52 = vperm.slane %v11704_v50, 4  ;;  %v11726_v54 = vperm.slane %v11704_v50, 5  ;;  %v11891_v34 = vperm.slane %v11704_v50, 6 }
 0x1f0   : > { %10402 = vset.pattern.permute.xlu2 %v11377_v1 }
 0x1f1   : > { %10578 = vset.pattern.permute.xlu0 %v11435_v13  ;;  %19693 = vst [vmem:[#allocation33_spill] sm:$0xff] %v11726_v54 }
 0x1f2   : > { %v609_v55 = vpop.f32.mrf.mxu1  ;;  %19704 = vst [vmem:[#allocation44_spill] sm:$0xff] %v11891_v34 }
 0x1f3   : > { %v610_v56 = vadd.f32 %v11667_v4, %v609_v55 }
 0x1f5   : > { %10405 = vset.pattern.permute.xlu1 %v11419_v10  ;;  %v11734_v57 = vmax.f32 %v610_v56, 0.0 }
 0x1f7   : > { %v11738_v58 = vperm.slane %v11734_v57, 1  ;;  %v11747_v61 = vperm.slane %v11734_v57, 2  ;;  %v11756_v62 = vperm.slane %v11734_v57, 6  ;;  %v11765_v63 = vperm.slane %v11734_v57, 7 }
 0x1f8   : > { %1016 = vperm.xlu2 %10402, %v11680_v45   ;;  %v11899_v17 = vperm.slane %v11734_v57, 3 }
 0x1f9   : > { %2351 = vperm.xlu0 %10578, %v11687_v46   ;;  %19694 = vst [vmem:[#allocation34_spill] sm:$0xff] %v11738_v58 }
 0x1fa   : > { %19695 = vst [vmem:[#allocation35_spill] sm:$0xff] %v11747_v61  ;;  %v612_v20 = vpop.f32.mrf.mxu1 }
 0x1fb   : > { %19696 = vst [vmem:[#allocation36_spill] sm:$0xff] %v11756_v62  ;;  %v613_v60 = vadd.f32 %v11667_v4, %v612_v20  ;;  %v11909_v4 = vpop.permute.xlu2 %624 }
 0x1fc   : > { %19697 = vst [vmem:[#allocation37_spill] sm:$0xff] %v11765_v63 }
 0x1fd   : > { %1040 = vperm.xlu1 %10405, %v11680_v45   ;;  %v11776_v21 = vmax.f32 %v613_v60, 0.0  ;;  %19706 = vst [vmem:[#allocation46_spill] sm:$0xff] %v11899_v17 }
 0x1ff   : > { %v11780_v0 = vperm.slane %v11776_v21, 3  ;;  %v11789_v22 = vperm.slane %v11776_v21, 4  ;;  %v11907_v59 = vperm.slane %v11776_v21, 0  ;;  %v11917_v42 = vperm.slane %v11776_v21, 5 }
 0x200   : > { %10404 = vset.pattern.permute.xlu2 %v11435_v13 }
 0x201   : > { %10607 = vset.pattern.permute.xlu0 %v11415_v9  ;;  %19698 = vst [vmem:[#allocation38_spill] sm:$0xff] %v11780_v0 }
 0x202   : > { %19699 = vst [vmem:[#allocation39_spill] sm:$0xff] %v11789_v22 }
 0x203   : > { %19708 = vst [vmem:[#allocation48_spill] sm:$0xff] %v11907_v59  ;;  %v11924_v49 = vpop.permute.xlu2 %630 }
 0x204   : > { %19710 = vst [vmem:[#allocation50_spill] sm:$0xff] %v11917_v42 }
 0x205   : > { %10407 = vset.pattern.permute.xlu1 %v11426_v11  ;;  %19711 = vst [vmem:[#allocation51_spill] sm:$0xff] %v11924_v49 }
 0x208   : > { %1028 = vperm.xlu2 %10404, %v11680_v45  }
 0x209   : > { %2565 = vperm.xlu0 %10607, %v11696_v47  }
 0x20b   : > { %v11938_v20 = vpop.permute.xlu2 %648 }
 0x20c   : > { %19715 = vst [vmem:[#allocation55_spill] sm:$0xff] %v11938_v20 }
 0x20d   : > { %1052 = vperm.xlu1 %10407, %v11680_v45  }
 0x210   : > { %10406 = vset.pattern.permute.xlu2 %v11415_v9 }
 0x211   : > { %10612 = vset.pattern.permute.xlu0 %v11435_v13 }
 0x213   : > { %v11958_v20 = vpop.permute.xlu2 %660 }
 0x215   : > { %10409 = vset.pattern.permute.xlu1 %v11409_v8 }
 0x218   : > { %1046 = vperm.xlu2 %10406, %v11680_v45  }
 0x219   : > { %2596 = vperm.xlu0 %10612, %v11708_v51  }
 0x21d   : > { %1071 = vperm.xlu1 %10409, %v11626_v31  }
 0x220   : > { %10408 = vset.pattern.permute.xlu2 %v11438_v14 }
 0x221   : > { %10641 = vset.pattern.permute.xlu0 %v11415_v9 }
 0x225   : > { %10411 = vset.pattern.permute.xlu1 %v11381_v2 }
 0x228   : > { %1058 = vperm.xlu2 %10408, %v11680_v45  }
 0x229   : > { %2810 = vperm.xlu0 %10641, %v11717_v52  }
 0x22d   : > { %1083 = vperm.xlu1 %10411, %v11626_v31  }
 0x230   : > { %10410 = vset.pattern.permute.xlu2 %v11435_v13 }
 0x231   : > { %10646 = vset.pattern.permute.xlu0 %v11435_v13 }
 0x235   : > { %10413 = vset.pattern.permute.xlu1 %v11426_v11 }
 0x238   : > { %1077 = vperm.xlu2 %10410, %v11626_v31  }
 0x239   : > { %2841 = vperm.xlu0 %10646, %v11726_v54  }
 0x23d   : > { %1101 = vperm.xlu1 %10413, %v11626_v31  }
 0x240   : > { %10412 = vset.pattern.permute.xlu2 %v11419_v10 }
 0x241   : > { %10675 = vset.pattern.permute.xlu0 %v11415_v9 }
 0x245   : > { %10415 = vset.pattern.permute.xlu1 %v11377_v1 }
 0x248   : > { %1089 = vperm.xlu2 %10412, %v11626_v31  }
 0x249   : > { %3055 = vperm.xlu0 %10675, %v11738_v58  }
 0x24d   : > { %1114 = vperm.xlu1 %10415, %v11572_v15  }
 0x250   : > { %10414 = vset.pattern.permute.xlu2 %v11438_v14 }
 0x251   : > { %10680 = vset.pattern.permute.xlu0 %v11435_v13 }
 0x255   : > { %10417 = vset.pattern.permute.xlu1 %v11381_v2 }
 0x258   : > { %1107 = vperm.xlu2 %10414, %v11626_v31  }
 0x259   : > { %3086 = vperm.xlu0 %10680, %v11747_v61  }
 0x25d   : > { %1132 = vperm.xlu1 %10417, %v11572_v15  }
 0x260   : > { %10416 = vset.pattern.permute.xlu2 %v11409_v8 }
 0x261   : > { %10709 = vset.pattern.permute.xlu0 %v11415_v9 }
 0x265   : > { %10419 = vset.pattern.permute.xlu1 %v11415_v9 }
 0x268   : > { %1120 = vperm.xlu2 %10416, %v11572_v15  }
 0x269   : > { %3300 = vperm.xlu0 %10709, %v11756_v62  }
 0x26d   : > { %1144 = vperm.xlu1 %10419, %v11572_v15  }
 0x270   : > { %10418 = vset.pattern.permute.xlu2 %v11419_v10 }
 0x271   : > { %10714 = vset.pattern.permute.xlu0 %v11435_v13 }
 0x275   : > { %10421 = vset.pattern.permute.xlu1 %v11377_v1 }
 0x278   : > { %1138 = vperm.xlu2 %10418, %v11572_v15  }
 0x279   : > { %3331 = vperm.xlu0 %10714, %v11765_v63  }
 0x27d   : > { %1163 = vperm.xlu1 %10421, %v11770_v5  }
 0x280   : > { %10420 = vset.pattern.permute.xlu2 %v11426_v11 }
 0x281   : > { %10743 = vset.pattern.permute.xlu0 %v11415_v9 }
 0x285   : > { %10423 = vset.pattern.permute.xlu1 %v11435_v13 }
 0x288   : > { %1150 = vperm.xlu2 %10420, %v11572_v15  }
 0x289   : > { %3545 = vperm.xlu0 %10743, %v11780_v0  }
 0x28d   : > { %1175 = vperm.xlu1 %10423, %v11770_v5  }
 0x290   : > { %10422 = vset.pattern.permute.xlu2 %v11409_v8 }
 0x291   : > { %10748 = vset.pattern.permute.xlu0 %v11435_v13 }
 0x295   : > { %10425 = vset.pattern.permute.xlu1 %v11415_v9 }
 0x298   : > { %1169 = vperm.xlu2 %10422, %v11770_v5  }
 0x299   : > { %3576 = vperm.xlu0 %10748, %v11789_v22  }
 0x29d   : > { %1193 = vperm.xlu1 %10425, %v11770_v5  }
 0x2a0   : > { %10424 = vset.pattern.permute.xlu2 %v11381_v2 }
 0x2a1   : > { %10749 = vset.pattern.permute.xlu0 %v11438_v14 }
 0x2a5   : > { %10427 = vset.pattern.permute.xlu1 %v11438_v14 }
 0x2a8   : > { %1181 = vperm.xlu2 %10424, %v11770_v5  }
 0x2a9   : > { %1156 = vperm.xlu0 %10749, %v11572_v15   ;;  %v11827_v15 = vperm.slane %v11402_v7, 5  ;;  %v11849_v7 = vperm.slane %v11385_v3, 0 }
 0x2ad   : > { %1205 = vperm.xlu1 %10427, %v11770_v5  }
 0x2b0   : > { %10426 = vset.pattern.permute.xlu2 %v11426_v11 }
 0x2b1   : > { %1401 = vperm.xlu0 %10749, %v11585_v25  }
 0x2b5   : > { %10429 = vset.pattern.permute.xlu1 %v11435_v13 }
 0x2b8   : > { %1199 = vperm.xlu2 %10426, %v11770_v5  }
 0x2b9   : > { %1646 = vperm.xlu0 %10749, %v11598_v16  }
 0x2bd   : > { %1224 = vperm.xlu1 %10429, %v11806_v24  }
 0x2c0   : > { %10428 = vset.pattern.permute.xlu2 %v11377_v1 }
 0x2c1   : > { %1891 = vperm.xlu0 %10749, %v11608_v18  }
 0x2c5   : > { %10431 = vset.pattern.permute.xlu1 %v11419_v10 }
 0x2c8   : > { %1212 = vperm.xlu2 %10428, %v11806_v24  }
 0x2c9   : > { %2136 = vperm.xlu0 %10749, %v11614_v19  }
 0x2cd   : > { %1236 = vperm.xlu1 %10431, %v11806_v24  }
 0x2d0   : > { %10430 = vset.pattern.permute.xlu2 %v11381_v2 }
 0x2d1   : > { %2381 = vperm.xlu0 %10749, %v11687_v46  }
 0x2d5   : > { %10433 = vset.pattern.permute.xlu1 %v11438_v14 }
 0x2d8   : > { %1230 = vperm.xlu2 %10430, %v11806_v24  }
 0x2d9   : > { %2626 = vperm.xlu0 %10749, %v11708_v51  }
 0x2dd   : > { %1254 = vperm.xlu1 %10433, %v11806_v24  }
 0x2e0   : > { %10432 = vset.pattern.permute.xlu2 %v11415_v9 }
 0x2e1   : > { %2871 = vperm.xlu0 %10749, %v11726_v54  }
 0x2e5   : > { %10435 = vset.pattern.permute.xlu1 %v11409_v8 }
 0x2e8   : > { %1242 = vperm.xlu2 %10432, %v11806_v24  }
 0x2e9   : > { %3116 = vperm.xlu0 %10749, %v11747_v61   ;;  %v12045_v61 = vperm.slane %v11776_v21, 6 }
 0x2eb   : > { %19733 = vst [vmem:[#allocation73_spill] sm:$0xff] %v12045_v61 }
 0x2ed   : > { %1267 = vperm.xlu1 %10435, %v11827_v15  }
 0x2f0   : > { %10434 = vset.pattern.permute.xlu2 %v11377_v1 }
 0x2f1   : > { %3361 = vperm.xlu0 %10749, %v11765_v63  }
 0x2f5   : > { %10437 = vset.pattern.permute.xlu1 %v11419_v10 }
 0x2f8   : > { %1261 = vperm.xlu2 %10434, %v11827_v15  }
 0x2f9   : > { %3606 = vperm.xlu0 %10749, %v11789_v22   ;;  %v12007_v22 = vperm.slane %v11704_v50, 2 }
 0x2fd   : > { %1285 = vperm.xlu1 %10437, %v11827_v15  }
 0x300   : > { %10436 = vset.pattern.permute.xlu2 %v11435_v13 }
 0x301   : > { %10754 = vset.pattern.permute.xlu0 %v11419_v10 }
 0x305   : > { %10439 = vset.pattern.permute.xlu1 %v11426_v11 }
 0x308   : > { %1273 = vperm.xlu2 %10436, %v11827_v15  }
 0x309   : > { %697 = vperm.xlu0 %10754, %v11430_v12   ;;  %v11855_v12 = vperm.slane %v11385_v3, 5  ;;  %v11869_v3 = vperm.slane %v11399_v6, 7  ;;  %v11883_v6 = vperm.slane %v11704_v50, 1 }
 0x30b   : > { %19702 = vst [vmem:[#allocation42_spill] sm:$0xff] %v11883_v6 }
 0x30d   : > { %1297 = vperm.xlu1 %10439, %v11827_v15  }
 0x310   : > { %10438 = vset.pattern.permute.xlu2 %v11415_v9 }
 0x311   : > { %942 = vperm.xlu0 %10754, %v11603_v53   ;;  %v11903_v53 = vpop.permute.xlu0 %1126 }
 0x312   : > { %19707 = vst [vmem:[#allocation47_spill] sm:$0xff] %v11903_v53 }
 0x315   : > { %10441 = vset.pattern.permute.xlu1 %v11409_v8 }
 0x318   : > { %1291 = vperm.xlu2 %10438, %v11827_v15  }
 0x319   : > { %1187 = vperm.xlu0 %10754, %v11770_v5   ;;  %v11914_v41 = vpop.permute.xlu0 %1371  ;;  %v11935_v5 = vpop.permute.xlu1 %654 }
 0x31a   : > { %19709 = vst [vmem:[#allocation49_spill] sm:$0xff] %v11914_v41  ;;  %v11979_v41 = vpop.permute.xlu2 %679 }
 0x31b   : > { %19714 = vst [vmem:[#allocation54_spill] sm:$0xff] %v11935_v5  ;;  %v11954_v5 = vperm.slane %v11951_v28, 1 }
 0x31c   : > { %19720 = vst [vmem:[#allocation60_spill] sm:$0xff] %v11979_v41  ;;  %v11997_v41 = vperm.slane %v11671_v43, 5 }
 0x31d   : > { %1316 = vperm.xlu1 %10441, %v11632_v36  }
 0x320   : > { %10440 = vset.pattern.permute.xlu2 %v11438_v14 }
 0x321   : > { %1432 = vperm.xlu0 %10754, %v11849_v7   ;;  %v11926_v55 = vpop.permute.xlu0 %1616  ;;  %v11947_v32 = vpop.permute.xlu1 %673 }
 0x322   : > { %19712 = vst [vmem:[#allocation52_spill] sm:$0xff] %v11926_v55  ;;  %v12015_v55 = vperm.slane %v11704_v50, 7 }
 0x324   : > { %19726 = vst [vmem:[#allocation66_spill] sm:$0xff] %v12015_v55 }
 0x325   : > { %10443 = vset.pattern.permute.xlu1 %v11381_v2 }
 0x328   : > { %1303 = vperm.xlu2 %10440, %v11827_v15  }
 0x329   : > { %1677 = vperm.xlu0 %10754, %v11855_v12   ;;  %v11933_v56 = vpop.permute.xlu0 %1861  ;;  %v11970_v35 = vpop.permute.xlu1 %685 }
 0x32a   : > { %19713 = vst [vmem:[#allocation53_spill] sm:$0xff] %v11933_v56  ;;  %v11964_v56 = vperm.slane %v11951_v28, 6 }
 0x32b   : > { %19719 = vst [vmem:[#allocation59_spill] sm:$0xff] %v11970_v35 }
 0x32d   : > { %1328 = vperm.xlu1 %10443, %v11632_v36  }
 0x330   : > { %10442 = vset.pattern.permute.xlu2 %v11435_v13 }
 0x331   : > { %1922 = vperm.xlu0 %10754, %v11861_v27   ;;  %v11942_v60 = vpop.permute.xlu0 %2106  ;;  %v11991_v35 = vpop.permute.xlu1 %703 }
 0x332   : > { %19716 = vst [vmem:[#allocation56_spill] sm:$0xff] %v11942_v60 }
 0x333   : > { %19722 = vst [vmem:[#allocation62_spill] sm:$0xff] %v11991_v35 }
 0x335   : > { %10445 = vset.pattern.permute.xlu1 %v11426_v11 }
 0x338   : > { %1322 = vperm.xlu2 %10442, %v11632_v36  }
 0x339   : > { %2167 = vperm.xlu0 %10754, %v11869_v3   ;;  %v12011_v35 = vpop.permute.xlu1 %715 }
 0x33a   : > { %19725 = vst [vmem:[#allocation65_spill] sm:$0xff] %v12011_v35 }
 0x33d   : > { %1346 = vperm.xlu1 %10445, %v11632_v36  }
 0x340   : > { %10444 = vset.pattern.permute.xlu2 %v11419_v10 }
 0x341   : > { %2412 = vperm.xlu0 %10754, %v11877_v33   ;;  %v12031_v63 = vpop.permute.xlu1 %734 }
 0x342   : > { %19730 = vst [vmem:[#allocation70_spill] sm:$0xff] %v12031_v63 }
 0x345   : > { %10447 = vset.pattern.permute.xlu1 %v11377_v1 }
 0x348   : > { %1334 = vperm.xlu2 %10444, %v11632_v36  }
 0x349   : > { %2657 = vperm.xlu0 %10754, %v11883_v6   ;;  %v12051_v63 = vpop.permute.xlu1 %746 }
 0x34a   : > { %19735 = vst [vmem:[#allocation75_spill] sm:$0xff] %v12051_v63 }
 0x34d   : > { %1359 = vperm.xlu1 %10447, %v11585_v25  }
 0x350   : > { %10446 = vset.pattern.permute.xlu2 %v11438_v14 }
 0x351   : > { %2902 = vperm.xlu0 %10754, %v11891_v34   ;;  %v12068_v54 = vpop.permute.xlu1 %764 }
 0x352   : > { %19738 = vst [vmem:[#allocation78_spill] sm:$0xff] %v12068_v54 }
 0x355   : > { %10449 = vset.pattern.permute.xlu1 %v11381_v2 }
 0x358   : > { %1352 = vperm.xlu2 %10446, %v11632_v36  }
 0x359   : > { %3147 = vperm.xlu0 %10754, %v11899_v17  }
 0x35d   : > { %1377 = vperm.xlu1 %10449, %v11585_v25  }
 0x360   : > { %10448 = vset.pattern.permute.xlu2 %v11409_v8 }
 0x361   : > { %3392 = vperm.xlu0 %10754, %v11907_v59  }
 0x365   : > { %10451 = vset.pattern.permute.xlu1 %v11415_v9 }
 0x368   : > { %1365 = vperm.xlu2 %10448, %v11585_v25  }
 0x369   : > { %3637 = vperm.xlu0 %10754, %v11917_v42   ;;  %v11999_v42 = vpop.permute.xlu2 %691 }
 0x36d   : > { %1389 = vperm.xlu1 %10451, %v11585_v25  }
 0x370   : > { %10450 = vset.pattern.permute.xlu2 %v11419_v10 }
 0x371   : > { %10759 = vset.pattern.permute.xlu0 %v11409_v8 }
 0x375   : > { %10453 = vset.pattern.permute.xlu1 %v11377_v1 }
 0x378   : > { %1383 = vperm.xlu2 %10450, %v11585_v25  }
 0x379   : > { %728 = vperm.xlu0 %10759, %v11457_v23  }
 0x37d   : > { %1408 = vperm.xlu1 %10453, %v11849_v7  }
 0x380   : > { %10452 = vset.pattern.permute.xlu2 %v11426_v11 }
 0x381   : > { %973 = vperm.xlu0 %10759, %v11649_v39  }
 0x385   : > { %10455 = vset.pattern.permute.xlu1 %v11435_v13 }
 0x388   : > { %1395 = vperm.xlu2 %10452, %v11585_v25   ;;  %v11956_v25 = vpop.permute.xlu0 %850 }
 0x389   : > { %1218 = vperm.xlu0 %10759, %v11806_v24   ;;  %19717 = vst [vmem:[#allocation57_spill] sm:$0xff] %v11956_v25  ;;  %v11974_v25 = vld [vmem:[%s11355_s7 + $0x18] sm:$0xff] }
 0x38a   : > { %v11977_v53 = vperm.slane %v11974_v25, 3 }
 0x38d   : > { %1420 = vperm.xlu1 %10455, %v11849_v7  }
 0x390   : > { %10454 = vset.pattern.permute.xlu2 %v11409_v8  ;;  %v11966_v60 = vpop.permute.xlu0 %1095 }
 0x391   : > { %1463 = vperm.xlu0 %10759, %v11954_v5   ;;  %19718 = vst [vmem:[#allocation58_spill] sm:$0xff] %v11966_v60 }
 0x395   : > { %10457 = vset.pattern.permute.xlu1 %v11415_v9 }
 0x398   : > { %1414 = vperm.xlu2 %10454, %v11849_v7   ;;  %v11983_v60 = vpop.permute.xlu0 %1340 }
 0x399   : > { %1708 = vperm.xlu0 %10759, %v11964_v56   ;;  %19721 = vst [vmem:[#allocation61_spill] sm:$0xff] %v11983_v60 }
 0x39d   : > { %1438 = vperm.xlu1 %10457, %v11849_v7  }
 0x3a0   : > { %10456 = vset.pattern.permute.xlu2 %v11381_v2  ;;  %v11993_v49 = vpop.permute.xlu0 %1585 }
 0x3a1   : > { %1953 = vperm.xlu0 %10759, %v11977_v53   ;;  %19723 = vst [vmem:[#allocation63_spill] sm:$0xff] %v11993_v49 }
 0x3a5   : > { %10459 = vset.pattern.permute.xlu1 %v11438_v14 }
 0x3a8   : > { %1426 = vperm.xlu2 %10456, %v11849_v7   ;;  %v12004_v60 = vpop.permute.xlu0 %1830 }
 0x3a9   : > { %2198 = vperm.xlu0 %10759, %v11987_v26   ;;  %19724 = vst [vmem:[#allocation64_spill] sm:$0xff] %v12004_v60  ;;  %v12025_v60 = vperm.slane %v11734_v57, 4 }
 0x3ab   : > { %19728 = vst [vmem:[#allocation68_spill] sm:$0xff] %v12025_v60 }
 0x3ad   : > { %1450 = vperm.xlu1 %10459, %v11849_v7  }
 0x3b0   : > { %10458 = vset.pattern.permute.xlu2 %v11426_v11  ;;  %v12019_v59 = vpop.permute.xlu0 %2075 }
 0x3b1   : > { %2443 = vperm.xlu0 %10759, %v11997_v41   ;;  %19727 = vst [vmem:[#allocation67_spill] sm:$0xff] %v12019_v59  ;;  %v12035_v59 = vperm.slane %v11776_v21, 1 }
 0x3b3   : > { %19731 = vst [vmem:[#allocation71_spill] sm:$0xff] %v12035_v59 }
 0x3b5   : > { %10461 = vset.pattern.permute.xlu1 %v11435_v13 }
 0x3b8   : > { %1444 = vperm.xlu2 %10458, %v11849_v7   ;;  %v12017_v7 = vpop.permute.xlu2 %709  ;;  %v12029_v35 = vpop.permute.xlu0 %2320 }
 0x3b9   : > { %2688 = vperm.xlu0 %10759, %v12007_v22   ;;  %19729 = vst [vmem:[#allocation69_spill] sm:$0xff] %v12029_v35 }
 0x3bd   : > { %1469 = vperm.xlu1 %10461, %v11954_v5  }
 0x3c0   : > { %10460 = vset.pattern.permute.xlu2 %v11377_v1  ;;  %v12037_v49 = vpop.permute.xlu2 %722  ;;  %v12041_v17 = vpop.permute.xlu0 %2351 }
 0x3c1   : > { %2933 = vperm.xlu0 %10759, %v12015_v55   ;;  %19732 = vst [vmem:[#allocation72_spill] sm:$0xff] %v12041_v17 }
 0x3c5   : > { %10463 = vset.pattern.permute.xlu1 %v11419_v10 }
 0x3c8   : > { %1457 = vperm.xlu2 %10460, %v11954_v5   ;;  %v12049_v35 = vpop.permute.xlu0 %2565  ;;  %v12054_v34 = vpop.permute.xlu2 %740 }
 0x3c9   : > { %3178 = vperm.xlu0 %10759, %v12025_v60   ;;  %19734 = vst [vmem:[#allocation74_spill] sm:$0xff] %v12049_v35  ;;  %v12064_v35 = vperm.slane %v11951_v28, 2 }
 0x3cd   : > { %1481 = vperm.xlu1 %10463, %v11954_v5  }
 0x3d0   : > { %10462 = vset.pattern.permute.xlu2 %v11381_v2  ;;  %v12058_v17 = vpop.permute.xlu0 %2596  ;;  %v12071_v6 = vpop.permute.xlu2 %752 }
 0x3d1   : > { %3423 = vperm.xlu0 %10759, %v12035_v59   ;;  %19736 = vst [vmem:[#allocation76_spill] sm:$0xff] %v12058_v17 }
 0x3d2   : > { %19739 = vst [vmem:[#allocation79_spill] sm:$0xff] %v12071_v6 }
 0x3d5   : > { %10465 = vset.pattern.permute.xlu1 %v11438_v14 }
 0x3d8   : > { %1475 = vperm.xlu2 %10462, %v11954_v5   ;;  %v12066_v63 = vpop.permute.xlu0 %2810  ;;  %v12085_v54 = vpop.permute.xlu2 %771 }
 0x3d9   : > { %3668 = vperm.xlu0 %10759, %v12045_v61   ;;  %19737 = vst [vmem:[#allocation77_spill] sm:$0xff] %v12066_v63  ;;  %v12082_v63 = vpop.permute.xlu1 %777 }
 0x3da   : > { %19742 = vst [vmem:[#allocation82_spill] sm:$0xff] %v12082_v63 }
 0x3dd   : > { %1499 = vperm.xlu1 %10465, %v11954_v5  }
 0x3e0   : > { %10464 = vset.pattern.permute.xlu2 %v11415_v9  ;;  %v12075_v17 = vpop.permute.xlu0 %2841 }
 0x3e1   : > { %10764 = vset.pattern.permute.xlu0 %v11426_v11  ;;  %19740 = vst [vmem:[#allocation80_spill] sm:$0xff] %v12075_v17  ;;  %v12096_v6 = vpop.permute.xlu1 %795  ;;  %v12099_v17 = vpop.permute.xlu2 %783 }
 0x3e2   : > { %19745 = vst [vmem:[#allocation85_spill] sm:$0xff] %v12096_v6 }
 0x3e3   : > { %19746 = vst [vmem:[#allocation86_spill] sm:$0xff] %v12099_v17 }
 0x3e5   : > { %10467 = vset.pattern.permute.xlu1 %v11409_v8 }
 0x3e8   : > { %1487 = vperm.xlu2 %10464, %v11954_v5  }
 0x3e9   : > { %758 = vperm.xlu0 %10764, %v11457_v23   ;;  %v12080_v23 = vpop.permute.xlu0 %3055  ;;  %v12113_v6 = vpop.permute.xlu2 %801 }
 0x3ea   : > { %19741 = vst [vmem:[#allocation81_spill] sm:$0xff] %v12080_v23 }
 0x3eb   : > { %19749 = vst [vmem:[#allocation89_spill] sm:$0xff] %v12113_v6 }
 0x3ed   : > { %1512 = vperm.xlu1 %10467, %v12064_v35  }
 0x3f0   : > { %10466 = vset.pattern.permute.xlu2 %v11377_v1 }
 0x3f1   : > { %1003 = vperm.xlu0 %10764, %v11649_v39   ;;  %v12089_v39 = vpop.permute.xlu0 %3086  ;;  %v12127_v23 = vpop.permute.xlu2 %813 }
 0x3f2   : > { %19743 = vst [vmem:[#allocation83_spill] sm:$0xff] %v12089_v39 }
 0x3f3   : > { %19753 = vst [vmem:[#allocation93_spill] sm:$0xff] %v12127_v23 }
 0x3f5   : > { %10469 = vset.pattern.permute.xlu1 %v11419_v10 }
 0x3f8   : > { %1506 = vperm.xlu2 %10466, %v12064_v35  }
 0x3f9   : > { %1248 = vperm.xlu0 %10764, %v11806_v24   ;;  %v12094_v24 = vpop.permute.xlu0 %3300  ;;  %v12141_v39 = vpop.permute.xlu2 %832 }
 0x3fa   : > { %19744 = vst [vmem:[#allocation84_spill] sm:$0xff] %v12094_v24  ;;  %v12110_v24 = vpop.permute.xlu1 %807 }
 0x3fb   : > { %19756 = vst [vmem:[#allocation96_spill] sm:$0xff] %v12141_v39 }
 0x3fd   : > { %1530 = vperm.xlu1 %10469, %v12064_v35  }
 0x400   : > { %10468 = vset.pattern.permute.xlu2 %v11435_v13 }
 0x401   : > { %1493 = vperm.xlu0 %10764, %v11954_v5   ;;  %v12103_v5 = vpop.permute.xlu0 %3331 }
 0x402   : > { %19747 = vst [vmem:[#allocation87_spill] sm:$0xff] %v12103_v5 }
 0x405   : > { %10471 = vset.pattern.permute.xlu1 %v11426_v11 }
 0x408   : > { %1518 = vperm.xlu2 %10468, %v12064_v35  }
 0x409   : > { %1738 = vperm.xlu0 %10764, %v11964_v56   ;;  %v12108_v63 = vpop.permute.xlu0 %3545 }
 0x40a   : > { %19748 = vst [vmem:[#allocation88_spill] sm:$0xff] %v12108_v63  ;;  %v12124_v63 = vpop.permute.xlu1 %826 }
 0x40b   : > { %19752 = vst [vmem:[#allocation92_spill] sm:$0xff] %v12124_v63 }
 0x40d   : > { %1542 = vperm.xlu1 %10471, %v12064_v35  }
 0x410   : > { %10470 = vset.pattern.permute.xlu2 %v11415_v9 }
 0x411   : > { %1983 = vperm.xlu0 %10764, %v11977_v53   ;;  %v12117_v17 = vpop.permute.xlu0 %3576 }
 0x412   : > { %19750 = vst [vmem:[#allocation90_spill] sm:$0xff] %v12117_v17  ;;  %v12136_v17 = vpop.permute.xlu1 %838 }
 0x415   : > { %10473 = vset.pattern.permute.xlu1 %v11409_v8 }
 0x418   : > { %1536 = vperm.xlu2 %10470, %v12064_v35  }
 0x419   : > { %2228 = vperm.xlu0 %10764, %v11987_v26   ;;  %v12122_v5 = vpop.permute.xlu0 %1156 }
 0x41a   : > { %19751 = vst [vmem:[#allocation91_spill] sm:$0xff] %v12122_v5 }
 0x41d   : > { %1561 = vperm.xlu1 %10473, %v11638_v37  }
 0x420   : > { %10472 = vset.pattern.permute.xlu2 %v11438_v14 }
 0x421   : > { %2473 = vperm.xlu0 %10764, %v11997_v41   ;;  %v12131_v6 = vpop.permute.xlu0 %1401 }
 0x422   : > { %19754 = vst [vmem:[#allocation94_spill] sm:$0xff] %v12131_v6  ;;  %v12153_v6 = vpop.permute.xlu2 %844 }
 0x423   : > { %19758 = vst [vmem:[#allocation98_spill] sm:$0xff] %v12153_v6 }
 0x425   : > { %10475 = vset.pattern.permute.xlu1 %v11381_v2 }
 0x428   : > { %1548 = vperm.xlu2 %10472, %v12064_v35  }
 0x429   : > { %2718 = vperm.xlu0 %10764, %v12007_v22   ;;  %v12139_v63 = vpop.permute.xlu0 %1646 }
 0x42a   : > { %19755 = vst [vmem:[#allocation95_spill] sm:$0xff] %v12139_v63 }
 0x42d   : > { %1573 = vperm.xlu1 %10475, %v11638_v37  }
 0x430   : > { %10474 = vset.pattern.permute.xlu2 %v11435_v13 }
 0x431   : > { %2963 = vperm.xlu0 %10764, %v12015_v55   ;;  %v12146_v23 = vpop.permute.xlu0 %1891 }
 0x432   : > { %19757 = vst [vmem:[#allocation97_spill] sm:$0xff] %v12146_v23 }
 0x435   : > { %10477 = vset.pattern.permute.xlu1 %v11426_v11 }
 0x438   : > { %1567 = vperm.xlu2 %10474, %v11638_v37  }
 0x439   : > { %3208 = vperm.xlu0 %10764, %v12025_v60   ;;  %v12150_v60 = vpop.permute.xlu1 %856  ;;  %v12157_v63 = vpop.permute.xlu0 %2136 }
 0x43a   : > { %19759 = vst [vmem:[#allocation99_spill] sm:$0xff] %v12157_v63 }
 0x43d   : > { %1591 = vperm.xlu1 %10477, %v11638_v37  }
 0x440   : > { %10476 = vset.pattern.permute.xlu2 %v11419_v10 }
 0x441   : > { %3453 = vperm.xlu0 %10764, %v12035_v59   ;;  %v12162_v23 = vpop.permute.xlu1 %869  ;;  %v12164_v39 = vpop.permute.xlu0 %2381 }
 0x442   : > { %19760 = vst [vmem:[#allocation100_spill] sm:$0xff] %v12164_v39 }
 0x445   : > { %10479 = vset.pattern.permute.xlu1 %v11377_v1 }
 0x448   : > { %1579 = vperm.xlu2 %10476, %v11638_v37  }
 0x449   : > { %3698 = vperm.xlu0 %10764, %v12045_v61   ;;  %v12167_v61 = vpop.permute.xlu2 %862  ;;  %v12172_v63 = vpop.permute.xlu0 %2626 }
 0x44a   : > { %19761 = vst [vmem:[#allocation101_spill] sm:$0xff] %v12167_v61 }
 0x44b   : > { %19762 = vst [vmem:[#allocation102_spill] sm:$0xff] %v12172_v63 }
 0x44d   : > { %1604 = vperm.xlu1 %10479, %v11598_v16  }
 0x450   : > { %10478 = vset.pattern.permute.xlu2 %v11438_v14 }
 0x451   : > { %10769 = vset.pattern.permute.xlu0 %v11381_v2  ;;  %v12179_v39 = vpop.permute.xlu2 %875  ;;  %v12181_v6 = vpop.permute.xlu0 %2871 }
 0x452   : > { %19763 = vst [vmem:[#allocation103_spill] sm:$0xff] %v12179_v39  ;;  %v12197_v39 = vperm.slane %v11974_v25, 4 }
 0x453   : > { %19764 = vst [vmem:[#allocation104_spill] sm:$0xff] %v12181_v6 }
 0x455   : > { %10481 = vset.pattern.permute.xlu1 %v11381_v2 }
 0x458   : > { %1597 = vperm.xlu2 %10478, %v11638_v37  }
 0x459   : > { %789 = vperm.xlu0 %10769, %v11478_v29   ;;  %v12176_v29 = vpop.permute.xlu1 %887  ;;  %v12199_v59 = vpop.permute.xlu2 %893 }
 0x45a   : > { %19767 = vst [vmem:[#allocation107_spill] sm:$0xff] %v12199_v59  ;;  %v12227_v59 = vperm.slane %v11704_v50, 3  ;;  %v12245_v50 = vperm.slane %v11734_v57, 5 }
 0x45c   : > { %19775 = vst [vmem:[#allocation115_spill] sm:$0xff] %v12245_v50 }
 0x45d   : > { %1622 = vperm.xlu1 %10481, %v11598_v16  }
 0x460   : > { %10480 = vset.pattern.permute.xlu2 %v11409_v8 }
 0x461   : > { %1034 = vperm.xlu0 %10769, %v11680_v45   ;;  %v12187_v45 = vperm.slane %v11951_v28, 7  ;;  %v12193_v61 = vpop.permute.xlu1 %899 }
 0x462   : > { %19766 = vst [vmem:[#allocation106_spill] sm:$0xff] %v12193_v61  ;;  %v12219_v61 = vpop.permute.xlu2 %905 }
 0x465   : > { %10483 = vset.pattern.permute.xlu1 %v11415_v9 }
 0x468   : > { %1610 = vperm.xlu2 %10480, %v11598_v16  }
 0x469   : > { %1279 = vperm.xlu0 %10769, %v11827_v15   ;;  %v12191_v15 = vpop.permute.xlu0 %3116 }
 0x46a   : > { %19765 = vst [vmem:[#allocation105_spill] sm:$0xff] %v12191_v15  ;;  %v12211_v15 = vpop.permute.xlu1 %918  ;;  %v12237_v6 = vpop.permute.xlu2 %924 }
 0x46b   : > { %19773 = vst [vmem:[#allocation113_spill] sm:$0xff] %v12237_v6 }
 0x46d   : > { %1634 = vperm.xlu1 %10483, %v11598_v16  }
 0x470   : > { %10482 = vset.pattern.permute.xlu2 %v11419_v10 }
 0x471   : > { %1524 = vperm.xlu0 %10769, %v12064_v35   ;;  %v12203_v28 = vpop.permute.xlu0 %3361  ;;  %v12207_v35 = vperm.slane %v11671_v43, 1 }
 0x472   : > { %19768 = vst [vmem:[#allocation108_spill] sm:$0xff] %v12203_v28  ;;  %v12257_v6 = vpop.permute.xlu2 %936 }
 0x475   : > { %10485 = vset.pattern.permute.xlu1 %v11377_v1 }
 0x478   : > { %1628 = vperm.xlu2 %10482, %v11598_v16  }
 0x479   : > { %1769 = vperm.xlu0 %10769, %v12187_v45   ;;  %v12214_v25 = vpop.permute.xlu0 %3606 }
 0x47a   : > { %19769 = vst [vmem:[#allocation109_spill] sm:$0xff] %v12214_v25  ;;  %v12231_v25 = vpop.permute.xlu1 %930 }
 0x47b   : > { %19771 = vst [vmem:[#allocation111_spill] sm:$0xff] %v12231_v25 }
 0x47d   : > { %1653 = vperm.xlu1 %10485, %v11855_v12  }
 0x480   : > { %10484 = vset.pattern.permute.xlu2 %v11426_v11 }
 0x481   : > { %2014 = vperm.xlu0 %10769, %v12197_v39   ;;  %v12224_v28 = vpop.permute.xlu0 %697 }
 0x482   : > { %19770 = vst [vmem:[#allocation110_spill] sm:$0xff] %v12224_v28  ;;  %v12251_v25 = vpop.permute.xlu1 %948 }
 0x483   : > { %19777 = vst [vmem:[#allocation117_spill] sm:$0xff] %v12251_v25 }
 0x485   : > { %10487 = vset.pattern.permute.xlu1 %v11435_v13 }
 0x488   : > { %1640 = vperm.xlu2 %10484, %v11598_v16   ;;  %v12217_v16 = vperm.slane %v11671_v43, 6  ;;  %v12235_v43 = vperm.slane %v11734_v57, 0 }
 0x489   : > { %2259 = vperm.xlu0 %10769, %v12207_v35   ;;  %v12239_v55 = vpop.permute.xlu0 %942 }
 0x48a   : > { %19772 = vst [vmem:[#allocation112_spill] sm:$0xff] %v12235_v43  ;;  %v12269_v25 = vpop.permute.xlu1 %960 }
 0x48b   : > { %19774 = vst [vmem:[#allocation114_spill] sm:$0xff] %v12239_v55  ;;  %v12255_v55 = vperm.slane %v11776_v21, 2 }
 0x48c   : > { %19781 = vst [vmem:[#allocation121_spill] sm:$0xff] %v12269_v25 }
 0x48d   : > { %1665 = vperm.xlu1 %10487, %v11855_v12   ;;  %19778 = vst [vmem:[#allocation118_spill] sm:$0xff] %v12255_v55 }
 0x490   : > { %10486 = vset.pattern.permute.xlu2 %v11409_v8 }
 0x491   : > { %2504 = vperm.xlu0 %10769, %v12217_v16   ;;  %v12249_v28 = vpop.permute.xlu0 %1187 }
 0x492   : > { %19776 = vst [vmem:[#allocation116_spill] sm:$0xff] %v12249_v28 }
 0x495   : > { %10489 = vset.pattern.permute.xlu1 %v11415_v9 }
 0x498   : > { %1659 = vperm.xlu2 %10486, %v11855_v12  }
 0x499   : > { %2749 = vperm.xlu0 %10769, %v12227_v59   ;;  %v12261_v57 = vpop.permute.xlu0 %1432 }
 0x49a   : > { %19779 = vst [vmem:[#allocation119_spill] sm:$0xff] %v12261_v57  ;;  %v12283_v57 = vpop.permute.xlu1 %979 }
 0x49b   : > { %19784 = vst [vmem:[#allocation124_spill] sm:$0xff] %v12283_v57 }
 0x49d   : > { %1683 = vperm.xlu1 %10489, %v11855_v12  }
 0x4a0   : > { %10488 = vset.pattern.permute.xlu2 %v11381_v2 }
 0x4a1   : > { %2994 = vperm.xlu0 %10769, %v12235_v43   ;;  %v12272_v43 = vpop.permute.xlu0 %1677 }
 0x4a2   : > { %19782 = vst [vmem:[#allocation122_spill] sm:$0xff] %v12272_v43 }
 0x4a5   : > { %10491 = vset.pattern.permute.xlu1 %v11438_v14 }
 0x4a8   : > { %1671 = vperm.xlu2 %10488, %v11855_v12  }
 0x4a9   : > { %3239 = vperm.xlu0 %10769, %v12245_v50   ;;  %v12265_v50 = vperm.slane %v11776_v21, 7  ;;  %v12279_v21 = vpop.permute.xlu0 %1922 }
 0x4aa   : > { %19783 = vst [vmem:[#allocation123_spill] sm:$0xff] %v12279_v21  ;;  %v12295_v21 = vpop.permute.xlu1 %991 }
 0x4ab   : > { %19780 = vst [vmem:[#allocation120_spill] sm:$0xff] %v12265_v50 }
 0x4ac   : > { %19786 = vst [vmem:[#allocation126_spill] sm:$0xff] %v12295_v21 }
 0x4ad   : > { %1695 = vperm.xlu1 %10491, %v11855_v12  }
 0x4b0   : > { %10490 = vset.pattern.permute.xlu2 %v11426_v11 }
 0x4b1   : > { %3484 = vperm.xlu0 %10769, %v12255_v55   ;;  %v12290_v43 = vpop.permute.xlu0 %2167 }
 0x4b2   : > { %19785 = vst [vmem:[#allocation125_spill] sm:$0xff] %v12290_v43 }
 0x4b5   : > { %10493 = vset.pattern.permute.xlu1 %v11435_v13 }
 0x4b8   : > { %1689 = vperm.xlu2 %10490, %v11855_v12   ;;  %v12274_v12 = vpop.permute.xlu2 %954 }
 0x4b9   : > { %3729 = vperm.xlu0 %10769, %v12265_v50  }
 0x4bd   : > { %1714 = vperm.xlu1 %10493, %v11964_v56  }
 0x4c0   : > { %10492 = vset.pattern.permute.xlu2 %v11377_v1  ;;  %v12286_v25 = vpop.permute.xlu2 %967 }
 0x4c1   : > { %10774 = vset.pattern.permute.xlu0 %v11377_v1 }
 0x4c5   : > { %10495 = vset.pattern.permute.xlu1 %v11419_v10 }
 0x4c8   : > { %1702 = vperm.xlu2 %10492, %v11964_v56   ;;  %v12300_v57 = vpop.permute.xlu2 %985 }
 0x4c9   : > { %820 = vperm.xlu0 %10774, %v11493_v30   ;;  %v12297_v30 = vpop.permute.xlu0 %2412 }
 0x4ca   : > { %19787 = vst [vmem:[#allocation127_spill] sm:$0xff] %v12297_v30 }
 0x4cd   : > { %1726 = vperm.xlu1 %10495, %v11964_v56  }
 0x4d0   : > { %10494 = vset.pattern.permute.xlu2 %v11381_v2  ;;  %v12312_v43 = vpop.permute.xlu2 %997 }
 0x4d1   : > { %1065 = vperm.xlu0 %10774, %v11626_v31   ;;  %v12305_v31 = vpop.permute.xlu0 %2657  ;;  %19790 = vst [vmem:[#allocation130_spill] sm:$0xff] %v12312_v43 }
 0x4d2   : > { %19788 = vst [vmem:[#allocation128_spill] sm:$0xff] %v12305_v31 }
 0x4d5   : > { %10497 = vset.pattern.permute.xlu1 %v11438_v14 }
 0x4d8   : > { %1720 = vperm.xlu2 %10494, %v11964_v56  }
 0x4d9   : > { %1310 = vperm.xlu0 %10774, %v11632_v36   ;;  %v12309_v36 = vpop.permute.xlu1 %1009  ;;  %v12314_v30 = vpop.permute.xlu0 %2902 }
 0x4da   : > { %19789 = vst [vmem:[#allocation129_spill] sm:$0xff] %v12309_v36  ;;  %v12326_v36 = vpop.permute.xlu2 %1016 }
 0x4db   : > { %19791 = vst [vmem:[#allocation131_spill] sm:$0xff] %v12314_v30 }
 0x4dd   : > { %1744 = vperm.xlu1 %10497, %v11964_v56  }
 0x4e0   : > { %10496 = vset.pattern.permute.xlu2 %v11415_v9 }
 0x4e1   : > { %1555 = vperm.xlu0 %10774, %v11638_v37   ;;  %v12321_v37 = vpop.permute.xlu0 %3147 }
 0x4e2   : > { %19792 = vst [vmem:[#allocation132_spill] sm:$0xff] %v12321_v37  ;;  %v12340_v50 = vpop.permute.xlu2 %1028 }
 0x4e3   : > { %19796 = vst [vmem:[#allocation136_spill] sm:$0xff] %v12340_v50 }
 0x4e5   : > { %10499 = vset.pattern.permute.xlu1 %v11409_v8 }
 0x4e8   : > { %1732 = vperm.xlu2 %10496, %v11964_v56   ;;  %v12323_v56 = vpop.permute.xlu1 %1022 }
 0x4e9   : > { %1800 = vperm.xlu0 %10774, %v11644_v38   ;;  %v12330_v43 = vpop.permute.xlu0 %3392 }
 0x4ea   : > { %19793 = vst [vmem:[#allocation133_spill] sm:$0xff] %v12330_v43 }
 0x4ed   : > { %1757 = vperm.xlu1 %10499, %v12187_v45  }
 0x4f0   : > { %10498 = vset.pattern.permute.xlu2 %v11377_v1  ;;  %v12335_v21 = vpop.permute.xlu1 %1040 }
 0x4f1   : > { %2045 = vperm.xlu0 %10774, %v11653_v40   ;;  %19794 = vst [vmem:[#allocation134_spill] sm:$0xff] %v12335_v21  ;;  %v12338_v37 = vpop.permute.xlu0 %3637 }
 0x4f2   : > { %19795 = vst [vmem:[#allocation135_spill] sm:$0xff] %v12338_v37  ;;  %v12354_v37 = vpop.permute.xlu2 %1046 }
 0x4f3   : > { %19800 = vst [vmem:[#allocation140_spill] sm:$0xff] %v12354_v37 }
 0x4f5   : > { %10501 = vset.pattern.permute.xlu1 %v11419_v10 }
 0x4f8   : > { %1751 = vperm.xlu2 %10498, %v12187_v45   ;;  %v12344_v55 = vpop.permute.xlu1 %1052 }
 0x4f9   : > { %2290 = vperm.xlu0 %10774, %v11675_v44   ;;  %19797 = vst [vmem:[#allocation137_spill] sm:$0xff] %v12344_v55  ;;  %v12347_v43 = vpop.permute.xlu0 %728 }
 0x4fa   : > { %19798 = vst [vmem:[#allocation138_spill] sm:$0xff] %v12347_v43  ;;  %v12364_v43 = vpop.permute.xlu2 %1058 }
 0x4fb   : > { %19803 = vst [vmem:[#allocation143_spill] sm:$0xff] %v12364_v43 }
 0x4fd   : > { %1775 = vperm.xlu1 %10501, %v12187_v45  }
 0x500   : > { %10500 = vset.pattern.permute.xlu2 %v11435_v13  ;;  %v12351_v30 = vpop.permute.xlu1 %1071 }
 0x501   : > { %2535 = vperm.xlu0 %10774, %v11696_v47   ;;  %19799 = vst [vmem:[#allocation139_spill] sm:$0xff] %v12351_v30  ;;  %v12356_v50 = vpop.permute.xlu0 %973 }
 0x502   : > { %19801 = vst [vmem:[#allocation141_spill] sm:$0xff] %v12356_v50  ;;  %v12370_v37 = vpop.permute.xlu2 %1077 }
 0x503   : > { %19805 = vst [vmem:[#allocation145_spill] sm:$0xff] %v12370_v37 }
 0x505   : > { %10503 = vset.pattern.permute.xlu1 %v11426_v11 }
 0x508   : > { %1763 = vperm.xlu2 %10500, %v12187_v45   ;;  %v12360_v55 = vpop.permute.xlu1 %1083 }
 0x509   : > { %2780 = vperm.xlu0 %10774, %v11717_v52   ;;  %19802 = vst [vmem:[#allocation142_spill] sm:$0xff] %v12360_v55 }
 0x50d   : > { %1787 = vperm.xlu1 %10503, %v12187_v45  }
 0x510   : > { %10502 = vset.pattern.permute.xlu2 %v11415_v9 }
 0x511   : > { %3025 = vperm.xlu0 %10774, %v11738_v58  }
 0x515   : > { %10505 = vset.pattern.permute.xlu1 %v11409_v8 }
 0x518   : > { %1781 = vperm.xlu2 %10502, %v12187_v45  }
 0x519   : > { %3270 = vperm.xlu0 %10774, %v11756_v62   ;;  %v12366_v62 = vpop.permute.xlu1 %1101 }
 0x51a   : > { %19804 = vst [vmem:[#allocation144_spill] sm:$0xff] %v12366_v62 }
 0x51d   : > { %1806 = vperm.xlu1 %10505, %v11644_v38  }
 0x520   : > { %10504 = vset.pattern.permute.xlu2 %v11438_v14 }
 0x521   : > { %3515 = vperm.xlu0 %10774, %v11780_v0   ;;  %v12372_v50 = vpop.permute.xlu1 %1114 }
 0x525   : > { %10507 = vset.pattern.permute.xlu1 %v11381_v2 }
 0x528   : > { %1793 = vperm.xlu2 %10504, %v12187_v45   ;;  %v12376_v45 = vpop.permute.xlu2 %1089 }
 0x529   : > { %19806 = vst [vmem:[#allocation146_spill] sm:$0xff] %v12376_v45  ;;  %v12378_v55 = vpop.permute.xlu1 %1132 }
 0x52a   : > { %19807 = vst [vmem:[#allocation147_spill] sm:$0xff] %v12378_v55 }
 0x52d   : > { %1818 = vperm.xlu1 %10507, %v11644_v38  }
 0x530   : > { %10506 = vset.pattern.permute.xlu2 %v11435_v13  ;;  %v12382_v62 = vpop.permute.xlu2 %1107 }
 0x531   : > { %19808 = vst [vmem:[#allocation148_spill] sm:$0xff] %v12382_v62  ;;  %v12384_v0 = vpop.permute.xlu1 %1144 }
 0x532   : > { %19809 = vst [vmem:[#allocation149_spill] sm:$0xff] %v12384_v0 }
 0x535   : > { %10509 = vset.pattern.permute.xlu1 %v11426_v11 }
 0x538   : > { %1812 = vperm.xlu2 %10506, %v11644_v38   ;;  %v12388_v37 = vpop.permute.xlu2 %1120 }
 0x539   : > { %19810 = vst [vmem:[#allocation150_spill] sm:$0xff] %v12388_v37  ;;  %v12390_v58 = vpop.permute.xlu1 %1163 }
 0x53d   : > { %1836 = vperm.xlu1 %10509, %v11644_v38  }
 0x540   : > { %10508 = vset.pattern.permute.xlu2 %v11419_v10  ;;  %v12394_v55 = vpop.permute.xlu2 %1138 }
 0x541   : > { %19811 = vst [vmem:[#allocation151_spill] sm:$0xff] %v12394_v55  ;;  %v12396_v5 = vpop.permute.xlu1 %1175 }
 0x542   : > { %19812 = vst [vmem:[#allocation152_spill] sm:$0xff] %v12396_v5 }
 0x545   : > { %10511 = vset.pattern.permute.xlu1 %v11377_v1 }
 0x548   : > { %1824 = vperm.xlu2 %10508, %v11644_v38   ;;  %v12400_v0 = vpop.permute.xlu2 %1150 }
 0x549   : > { %19813 = vst [vmem:[#allocation153_spill] sm:$0xff] %v12400_v0  ;;  %v12402_v62 = vpop.permute.xlu1 %1193 }
 0x54a   : > { %19814 = vst [vmem:[#allocation154_spill] sm:$0xff] %v12402_v62 }
 0x54d   : > { %1849 = vperm.xlu1 %10511, %v11608_v18  }
 0x550   : > { %10510 = vset.pattern.permute.xlu2 %v11438_v14  ;;  %v12406_v43 = vpop.permute.xlu2 %1169 }
 0x551   : > { %19815 = vst [vmem:[#allocation155_spill] sm:$0xff] %v12406_v43  ;;  %v12408_v63 = vpop.permute.xlu1 %1205  ;;  %v11087_v43 = vmov 1983009808  }
 0x552   : > { %19816 = vst [vmem:[#allocation156_spill] sm:$0xff] %v12408_v63 }
 0x555   : > { %10513 = vset.pattern.permute.xlu1 %v11381_v2 }
 0x558   : > { %1842 = vperm.xlu2 %10510, %v11644_v38   ;;  %v12412_v38 = vpop.permute.xlu2 %1181 }
 0x559   : > { %19817 = vst [vmem:[#allocation157_spill] sm:$0xff] %v12412_v38  ;;  %v12414_v5 = vpop.permute.xlu1 %1224 }
 0x55a   : > { %19818 = vst [vmem:[#allocation158_spill] sm:$0xff] %v12414_v5 }
 0x55d   : > { %1867 = vperm.xlu1 %10513, %v11608_v18  }
 0x560   : > { %10512 = vset.pattern.permute.xlu2 %v11409_v8  ;;  %v12418_v0 = vpop.permute.xlu2 %1199 }
 0x561   : > { %19819 = vst [vmem:[#allocation159_spill] sm:$0xff] %v12418_v0  ;;  %v12420_v62 = vpop.permute.xlu1 %1236 }
 0x562   : > { %19820 = vst [vmem:[#allocation160_spill] sm:$0xff] %v12420_v62 }
 0x565   : > { %10515 = vset.pattern.permute.xlu1 %v11415_v9 }
 0x568   : > { %1855 = vperm.xlu2 %10512, %v11608_v18   ;;  %v12424_v63 = vpop.permute.xlu2 %1212 }
 0x569   : > { %19821 = vst [vmem:[#allocation161_spill] sm:$0xff] %v12424_v63  ;;  %v12426_v28 = vpop.permute.xlu1 %1254 }
 0x56a   : > { %19822 = vst [vmem:[#allocation162_spill] sm:$0xff] %v12426_v28 }
 0x56d   : > { %1879 = vperm.xlu1 %10515, %v11608_v18  }
 0x570   : > { %10514 = vset.pattern.permute.xlu2 %v11419_v10  ;;  %v12430_v38 = vpop.permute.xlu2 %1230 }
 0x571   : > { %19823 = vst [vmem:[#allocation163_spill] sm:$0xff] %v12430_v38  ;;  %v12432_v5 = vpop.permute.xlu1 %1267 }
 0x572   : > { %19824 = vst [vmem:[#allocation164_spill] sm:$0xff] %v12432_v5 }
 0x575   : > { %10517 = vset.pattern.permute.xlu1 %v11377_v1 }
 0x578   : > { %1873 = vperm.xlu2 %10514, %v11608_v18   ;;  %v12436_v0 = vpop.permute.xlu2 %1242 }
 0x579   : > { %19825 = vst [vmem:[#allocation165_spill] sm:$0xff] %v12436_v0  ;;  %v12438_v62 = vpop.permute.xlu1 %1285 }
 0x57a   : > { %19826 = vst [vmem:[#allocation166_spill] sm:$0xff] %v12438_v62 }
 0x57d   : > { %1898 = vperm.xlu1 %10517, %v11861_v27  }
 0x580   : > { %10516 = vset.pattern.permute.xlu2 %v11426_v11  ;;  %v12442_v28 = vpop.permute.xlu2 %1261 }
 0x581   : > { %19827 = vst [vmem:[#allocation167_spill] sm:$0xff] %v12442_v28  ;;  %v12444_v63 = vpop.permute.xlu1 %1297 }
 0x582   : > { %19828 = vst [vmem:[#allocation168_spill] sm:$0xff] %v12444_v63 }
 0x585   : > { %10519 = vset.pattern.permute.xlu1 %v11435_v13 }
 0x588   : > { %1885 = vperm.xlu2 %10516, %v11608_v18   ;;  %v12448_v18 = vpop.permute.xlu2 %1273 }
 0x589   : > { %19829 = vst [vmem:[#allocation169_spill] sm:$0xff] %v12448_v18  ;;  %v12450_v38 = vpop.permute.xlu1 %1316 }
 0x58a   : > { %19830 = vst [vmem:[#allocation170_spill] sm:$0xff] %v12450_v38 }
 0x58d   : > { %1910 = vperm.xlu1 %10519, %v11861_v27  }
 0x590   : > { %10518 = vset.pattern.permute.xlu2 %v11409_v8  ;;  %v12454_v0 = vpop.permute.xlu2 %1291 }
 0x591   : > { %19831 = vst [vmem:[#allocation171_spill] sm:$0xff] %v12454_v0  ;;  %v12456_v62 = vpop.permute.xlu1 %1328 }
 0x592   : > { %19832 = vst [vmem:[#allocation172_spill] sm:$0xff] %v12456_v62 }
 0x595   : > { %10521 = vset.pattern.permute.xlu1 %v11415_v9 }
 0x598   : > { %1904 = vperm.xlu2 %10518, %v11861_v27   ;;  %v12460_v63 = vpop.permute.xlu2 %1303 }
 0x599   : > { %19833 = vst [vmem:[#allocation173_spill] sm:$0xff] %v12460_v63  ;;  %v12462_v28 = vpop.permute.xlu1 %1346 }
 0x59a   : > { %19834 = vst [vmem:[#allocation174_spill] sm:$0xff] %v12462_v28 }
 0x59d   : > { %1928 = vperm.xlu1 %10521, %v11861_v27  }
 0x5a0   : > { %10520 = vset.pattern.permute.xlu2 %v11381_v2  ;;  %v12466_v18 = vpop.permute.xlu2 %1322 }
 0x5a1   : > { %19835 = vst [vmem:[#allocation175_spill] sm:$0xff] %v12466_v18  ;;  %v12468_v38 = vpop.permute.xlu1 %1359 }
 0x5a2   : > { %19836 = vst [vmem:[#allocation176_spill] sm:$0xff] %v12468_v38 }
 0x5a5   : > { %10523 = vset.pattern.permute.xlu1 %v11438_v14 }
 0x5a8   : > { %1916 = vperm.xlu2 %10520, %v11861_v27   ;;  %v12472_v0 = vpop.permute.xlu2 %1334 }
 0x5a9   : > { %19837 = vst [vmem:[#allocation177_spill] sm:$0xff] %v12472_v0  ;;  %v12474_v62 = vpop.permute.xlu1 %1377 }
 0x5aa   : > { %19838 = vst [vmem:[#allocation178_spill] sm:$0xff] %v12474_v62 }
 0x5ad   : > { %1940 = vperm.xlu1 %10523, %v11861_v27  }
 0x5b0   : > { %10522 = vset.pattern.permute.xlu2 %v11426_v11  ;;  %v12478_v28 = vpop.permute.xlu2 %1352 }
 0x5b1   : > { %19839 = vst [vmem:[#allocation179_spill] sm:$0xff] %v12478_v28  ;;  %v12480_v63 = vpop.permute.xlu1 %1389 }
 0x5b2   : > { %19840 = vst [vmem:[#allocation180_spill] sm:$0xff] %v12480_v63 }
 0x5b5   : > { %10525 = vset.pattern.permute.xlu1 %v11435_v13 }
 0x5b8   : > { %1934 = vperm.xlu2 %10522, %v11861_v27   ;;  %v12484_v27 = vpop.permute.xlu2 %1365 }
 0x5b9   : > { %19841 = vst [vmem:[#allocation181_spill] sm:$0xff] %v12484_v27  ;;  %v12486_v18 = vpop.permute.xlu1 %1408 }
 0x5ba   : > { %19842 = vst [vmem:[#allocation182_spill] sm:$0xff] %v12486_v18 }
 0x5bd   : > { %1959 = vperm.xlu1 %10525, %v11977_v53  }
 0x5c0   : > { %10524 = vset.pattern.permute.xlu2 %v11377_v1  ;;  %v12490_v62 = vpop.permute.xlu2 %1383 }
 0x5c1   : > { %19843 = vst [vmem:[#allocation183_spill] sm:$0xff] %v12490_v62  ;;  %v12492_v0 = vpop.permute.xlu1 %1420 }
 0x5c2   : > { %19844 = vst [vmem:[#allocation184_spill] sm:$0xff] %v12492_v0 }
 0x5c5   : > { %10527 = vset.pattern.permute.xlu1 %v11419_v10 }
 0x5c8   : > { %1947 = vperm.xlu2 %10524, %v11977_v53   ;;  %v12496_v63 = vpop.permute.xlu2 %1395 }
 0x5c9   : > { %19845 = vst [vmem:[#allocation185_spill] sm:$0xff] %v12496_v63  ;;  %v12498_v28 = vpop.permute.xlu1 %1438 }
 0x5ca   : > { %19846 = vst [vmem:[#allocation186_spill] sm:$0xff] %v12498_v28 }
 0x5cd   : > { %1971 = vperm.xlu1 %10527, %v11977_v53  }
 0x5d0   : > { %10526 = vset.pattern.permute.xlu2 %v11381_v2  ;;  %v12502_v18 = vpop.permute.xlu2 %1414 }
 0x5d1   : > { %19847 = vst [vmem:[#allocation187_spill] sm:$0xff] %v12502_v18  ;;  %v12504_v38 = vpop.permute.xlu1 %1450 }
 0x5d2   : > { %19848 = vst [vmem:[#allocation188_spill] sm:$0xff] %v12504_v38 }
 0x5d5   : > { %10529 = vset.pattern.permute.xlu1 %v11438_v14 }
 0x5d8   : > { %1965 = vperm.xlu2 %10526, %v11977_v53   ;;  %v12508_v0 = vpop.permute.xlu2 %1426 }
 0x5d9   : > { %19849 = vst [vmem:[#allocation189_spill] sm:$0xff] %v12508_v0  ;;  %v12510_v62 = vpop.permute.xlu1 %1469 }
 0x5da   : > { %19850 = vst [vmem:[#allocation190_spill] sm:$0xff] %v12510_v62 }
 0x5dd   : > { %1989 = vperm.xlu1 %10529, %v11977_v53  }
 0x5e0   : > { %10528 = vset.pattern.permute.xlu2 %v11415_v9  ;;  %v12514_v63 = vpop.permute.xlu2 %1444 }
 0x5e1   : > { %19851 = vst [vmem:[#allocation191_spill] sm:$0xff] %v12514_v63  ;;  %v12516_v28 = vpop.permute.xlu1 %1481 }
 0x5e2   : > { %19852 = vst [vmem:[#allocation192_spill] sm:$0xff] %v12516_v28 }
 0x5e5   : > { %10531 = vset.pattern.permute.xlu1 %v11409_v8 }
 0x5e8   : > { %1977 = vperm.xlu2 %10528, %v11977_v53   ;;  %v12520_v53 = vpop.permute.xlu2 %1457 }
 0x5e9   : > { %19853 = vst [vmem:[#allocation193_spill] sm:$0xff] %v12520_v53  ;;  %v12522_v38 = vpop.permute.xlu1 %1499  ;;  %v12537_v53 = vpop.permute.xlu0 %1218 }
 0x5ea   : > { %19854 = vst [vmem:[#allocation194_spill] sm:$0xff] %v12522_v38 }
 0x5eb   : > { %19859 = vst [vmem:[#allocation199_spill] sm:$0xff] %v12537_v53 }
 0x5ed   : > { %2002 = vperm.xlu1 %10531, %v12197_v39  }
 0x5f0   : > { %10530 = vset.pattern.permute.xlu2 %v11377_v1  ;;  %v12526_v0 = vpop.permute.xlu2 %1475 }
 0x5f1   : > { %19855 = vst [vmem:[#allocation195_spill] sm:$0xff] %v12526_v0  ;;  %v12528_v18 = vpop.permute.xlu1 %1512  ;;  %v12545_v0 = vpop.permute.xlu0 %1463 }
 0x5f2   : > { %19856 = vst [vmem:[#allocation196_spill] sm:$0xff] %v12528_v18 }
 0x5f3   : > { %19862 = vst [vmem:[#allocation202_spill] sm:$0xff] %v12545_v0 }
 0x5f5   : > { %10533 = vset.pattern.permute.xlu1 %v11419_v10 }
 0x5f8   : > { %1996 = vperm.xlu2 %10530, %v12197_v39   ;;  %v12532_v63 = vpop.permute.xlu2 %1487 }
 0x5f9   : > { %19857 = vst [vmem:[#allocation197_spill] sm:$0xff] %v12532_v63  ;;  %v12534_v28 = vpop.permute.xlu1 %1530 }
 0x5fa   : > { %19858 = vst [vmem:[#allocation198_spill] sm:$0xff] %v12534_v28  ;;  %v12554_v28 = vpop.permute.xlu0 %1708 }
 0x5fb   : > { %19865 = vst [vmem:[#allocation205_spill] sm:$0xff] %v12554_v28 }
 0x5fd   : > { %2020 = vperm.xlu1 %10533, %v12197_v39  }
 0x600   : > { %10532 = vset.pattern.permute.xlu2 %v11435_v13  ;;  %v12540_v38 = vpop.permute.xlu2 %1506 }
 0x601   : > { %19860 = vst [vmem:[#allocation200_spill] sm:$0xff] %v12540_v38  ;;  %v12542_v62 = vpop.permute.xlu1 %1542 }
 0x602   : > { %19861 = vst [vmem:[#allocation201_spill] sm:$0xff] %v12542_v62  ;;  %v12564_v0 = vpop.permute.xlu0 %1953 }
 0x603   : > { %19869 = vst [vmem:[#allocation209_spill] sm:$0xff] %v12564_v0 }
 0x605   : > { %10535 = vset.pattern.permute.xlu1 %v11426_v11 }
 0x608   : > { %2008 = vperm.xlu2 %10532, %v12197_v39   ;;  %v12548_v18 = vpop.permute.xlu2 %1518 }
 0x609   : > { %19863 = vst [vmem:[#allocation203_spill] sm:$0xff] %v12548_v18  ;;  %v12550_v63 = vpop.permute.xlu1 %1561 }
 0x60a   : > { %19864 = vst [vmem:[#allocation204_spill] sm:$0xff] %v12550_v63 }
 0x60d   : > { %2032 = vperm.xlu1 %10535, %v12197_v39  }
 0x610   : > { %10534 = vset.pattern.permute.xlu2 %v11415_v9  ;;  %v12556_v53 = vpop.permute.xlu2 %1536 }
 0x611   : > { %19866 = vst [vmem:[#allocation206_spill] sm:$0xff] %v12556_v53  ;;  %v12558_v38 = vpop.permute.xlu1 %1573 }
 0x612   : > { %19867 = vst [vmem:[#allocation207_spill] sm:$0xff] %v12558_v38  ;;  %v12575_v38 = vpop.permute.xlu0 %2198 }
 0x613   : > { %19873 = vst [vmem:[#allocation213_spill] sm:$0xff] %v12575_v38 }
 0x615   : > { %10537 = vset.pattern.permute.xlu1 %v11409_v8 }
 0x618   : > { %2026 = vperm.xlu2 %10534, %v12197_v39   ;;  %v12562_v62 = vpop.permute.xlu2 %1548 }
 0x619   : > { %19868 = vst [vmem:[#allocation208_spill] sm:$0xff] %v12562_v62  ;;  %v12566_v18 = vpop.permute.xlu1 %1591 }
 0x61a   : > { %19870 = vst [vmem:[#allocation210_spill] sm:$0xff] %v12566_v18  ;;  %v12583_v18 = vpop.permute.xlu0 %2443 }
 0x61b   : > { %19876 = vst [vmem:[#allocation216_spill] sm:$0xff] %v12583_v18 }
 0x61d   : > { %2051 = vperm.xlu1 %10537, %v11653_v40  }
 0x620   : > { %10536 = vset.pattern.permute.xlu2 %v11438_v14 }
 0x621   : > { %v12572_v63 = vpop.permute.xlu1 %1604 }
 0x622   : > { %19872 = vst [vmem:[#allocation212_spill] sm:$0xff] %v12572_v63  ;;  %v12592_v38 = vpop.permute.xlu0 %2688 }
 0x625   : > { %10539 = vset.pattern.permute.xlu1 %v11381_v2 }
 0x628   : > { %2038 = vperm.xlu2 %10536, %v12197_v39   ;;  %v12570_v39 = vpop.permute.xlu2 %1567 }
 0x629   : > { %19871 = vst [vmem:[#allocation211_spill] sm:$0xff] %v12570_v39  ;;  %v12580_v62 = vpop.permute.xlu1 %1622 }
 0x62a   : > { %19875 = vst [vmem:[#allocation215_spill] sm:$0xff] %v12580_v62  ;;  %v12602_v18 = vpop.permute.xlu0 %2933 }
 0x62b   : > { %19882 = vst [vmem:[#allocation222_spill] sm:$0xff] %v12602_v18 }
 0x62d   : > { %2063 = vperm.xlu1 %10539, %v11653_v40  }
 0x630   : > { %10538 = vset.pattern.permute.xlu2 %v11435_v13  ;;  %v12578_v28 = vpop.permute.xlu2 %1579 }
 0x631   : > { %19874 = vst [vmem:[#allocation214_spill] sm:$0xff] %v12578_v28  ;;  %v12588_v53 = vpop.permute.xlu1 %1634 }
 0x632   : > { %19878 = vst [vmem:[#allocation218_spill] sm:$0xff] %v12588_v53 }
 0x635   : > { %10541 = vset.pattern.permute.xlu1 %v11426_v11 }
 0x638   : > { %2057 = vperm.xlu2 %10538, %v11653_v40   ;;  %v12586_v0 = vpop.permute.xlu2 %1597 }
 0x639   : > { %19877 = vst [vmem:[#allocation217_spill] sm:$0xff] %v12586_v0  ;;  %v12596_v28 = vpop.permute.xlu1 %1653 }
 0x63a   : > { %19880 = vst [vmem:[#allocation220_spill] sm:$0xff] %v12596_v28 }
 0x63d   : > { %2081 = vperm.xlu1 %10541, %v11653_v40  }
 0x640   : > { %10540 = vset.pattern.permute.xlu2 %v11419_v10  ;;  %v12594_v63 = vpop.permute.xlu2 %1610 }
 0x641   : > { %19879 = vst [vmem:[#allocation219_spill] sm:$0xff] %v12594_v63  ;;  %v12604_v0 = vpop.permute.xlu1 %1665  ;;  %v12613_v63 = vpop.permute.xlu0 %3178 }
 0x642   : > { %19883 = vst [vmem:[#allocation223_spill] sm:$0xff] %v12604_v0 }
 0x643   : > { %19886 = vst [vmem:[#allocation226_spill] sm:$0xff] %v12613_v63 }
 0x645   : > { %10543 = vset.pattern.permute.xlu1 %v11377_v1 }
 0x648   : > { %2069 = vperm.xlu2 %10540, %v11653_v40   ;;  %v12600_v62 = vpop.permute.xlu2 %1628 }
 0x649   : > { %19881 = vst [vmem:[#allocation221_spill] sm:$0xff] %v12600_v62  ;;  %v12610_v39 = vpop.permute.xlu1 %1683  ;;  %v12621_v28 = vpop.permute.xlu0 %3423 }
 0x64a   : > { %19885 = vst [vmem:[#allocation225_spill] sm:$0xff] %v12610_v39 }
 0x64b   : > { %19889 = vst [vmem:[#allocation229_spill] sm:$0xff] %v12621_v28 }
 0x64d   : > { %2094 = vperm.xlu1 %10543, %v11614_v19  }
 0x650   : > { %10542 = vset.pattern.permute.xlu2 %v11438_v14  ;;  %v12608_v53 = vpop.permute.xlu2 %1640 }
 0x651   : > { %19884 = vst [vmem:[#allocation224_spill] sm:$0xff] %v12608_v53  ;;  %v12618_v62 = vpop.permute.xlu1 %1695  ;;  %v12630_v63 = vpop.permute.xlu0 %3668 }
 0x652   : > { %19888 = vst [vmem:[#allocation228_spill] sm:$0xff] %v12618_v62 }
 0x653   : > { %19892 = vst [vmem:[#allocation232_spill] sm:$0xff] %v12630_v63 }
 0x655   : > { %10546 = vset.pattern.permute.xlu1 %v11381_v2 }
 0x658   : > { %2087 = vperm.xlu2 %10542, %v11653_v40   ;;  %v12616_v40 = vpop.permute.xlu2 %1659 }
 0x659   : > { %19887 = vst [vmem:[#allocation227_spill] sm:$0xff] %v12616_v40  ;;  %v12626_v53 = vpop.permute.xlu1 %1714  ;;  %v12638_v62 = vpop.permute.xlu0 %758 }
 0x65a   : > { %19891 = vst [vmem:[#allocation231_spill] sm:$0xff] %v12626_v53 }
 0x65d   : > { %2112 = vperm.xlu1 %10546, %v11614_v19  }
 0x660   : > { %10544 = vset.pattern.permute.xlu2 %v11409_v8  ;;  %v12624_v0 = vpop.permute.xlu2 %1671 }
 0x661   : > { %19890 = vst [vmem:[#allocation230_spill] sm:$0xff] %v12624_v0  ;;  %v12634_v40 = vpop.permute.xlu1 %1726  ;;  %v12648_v63 = vpop.permute.xlu0 %1003 }
 0x662   : > { %19894 = vst [vmem:[#allocation234_spill] sm:$0xff] %v12634_v40 }
 0x665   : > { %10548 = vset.pattern.permute.xlu1 %v11415_v9 }
 0x668   : > { %2100 = vperm.xlu2 %10544, %v11614_v19   ;;  %v12632_v39 = vpop.permute.xlu2 %1689 }
 0x669   : > { %19893 = vst [vmem:[#allocation233_spill] sm:$0xff] %v12632_v39  ;;  %v12642_v0 = vpop.permute.xlu1 %1744 }
 0x66a   : > { %19896 = vst [vmem:[#allocation236_spill] sm:$0xff] %v12642_v0  ;;  %v12659_v0 = vpop.permute.xlu0 %1248 }
 0x66b   : > { %19901 = vst [vmem:[#allocation241_spill] sm:$0xff] %v12659_v0 }
 0x66d   : > { %2124 = vperm.xlu1 %10548, %v11614_v19  }
 0x670   : > { %10547 = vset.pattern.permute.xlu2 %v11419_v10  ;;  %v12640_v28 = vpop.permute.xlu2 %1702 }
 0x671   : > { %19895 = vst [vmem:[#allocation235_spill] sm:$0xff] %v12640_v28  ;;  %v12650_v39 = vpop.permute.xlu1 %1757 }
 0x672   : > { %19898 = vst [vmem:[#allocation238_spill] sm:$0xff] %v12650_v39  ;;  %v12667_v39 = vpop.permute.xlu0 %1493 }
 0x673   : > { %19904 = vst [vmem:[#allocation244_spill] sm:$0xff] %v12667_v39 }
 0x675   : > { %10550 = vset.pattern.permute.xlu1 %v11377_v1 }
 0x678   : > { %2118 = vperm.xlu2 %10547, %v11614_v19   ;;  %v12646_v53 = vpop.permute.xlu2 %1720 }
 0x679   : > { %19897 = vst [vmem:[#allocation237_spill] sm:$0xff] %v12646_v53  ;;  %v12656_v27 = vpop.permute.xlu1 %1775 }
 0x67a   : > { %19900 = vst [vmem:[#allocation240_spill] sm:$0xff] %v12656_v27  ;;  %v12676_v0 = vpop.permute.xlu0 %1738 }
 0x67b   : > { %19907 = vst [vmem:[#allocation247_spill] sm:$0xff] %v12676_v0 }
 0x67d   : > { %2143 = vperm.xlu1 %10550, %v11869_v3  }
 0x680   : > { %10549 = vset.pattern.permute.xlu2 %v11426_v11  ;;  %v12654_v40 = vpop.permute.xlu2 %1732 }
 0x681   : > { %19899 = vst [vmem:[#allocation239_spill] sm:$0xff] %v12654_v40  ;;  %v12664_v53 = vpop.permute.xlu1 %1787 }
 0x682   : > { %19903 = vst [vmem:[#allocation243_spill] sm:$0xff] %v12664_v53  ;;  %v12686_v53 = vpop.permute.xlu0 %1983 }
 0x683   : > { %19911 = vst [vmem:[#allocation251_spill] sm:$0xff] %v12686_v53 }
 0x685   : > { %10552 = vset.pattern.permute.xlu1 %v11435_v13 }
 0x688   : > { %2130 = vperm.xlu2 %10549, %v11614_v19   ;;  %v12662_v19 = vpop.permute.xlu2 %1751 }
 0x689   : > { %19902 = vst [vmem:[#allocation242_spill] sm:$0xff] %v12662_v19  ;;  %v12672_v40 = vpop.permute.xlu1 %1806 }
 0x68a   : > { %19906 = vst [vmem:[#allocation246_spill] sm:$0xff] %v12672_v40 }
 0x68d   : > { %2155 = vperm.xlu1 %10552, %v11869_v3  }
 0x690   : > { %10551 = vset.pattern.permute.xlu2 %v11409_v8  ;;  %v12670_v28 = vpop.permute.xlu2 %1763 }
 0x691   : > { %19905 = vst [vmem:[#allocation245_spill] sm:$0xff] %v12670_v28  ;;  %v12680_v19 = vpop.permute.xlu1 %1818 }
 0x692   : > { %19909 = vst [vmem:[#allocation249_spill] sm:$0xff] %v12680_v19  ;;  %v12697_v19 = vpop.permute.xlu0 %2228 }
 0x695   : > { %10554 = vset.pattern.permute.xlu1 %v11415_v9 }
 0x698   : > { %2149 = vperm.xlu2 %10551, %v11869_v3   ;;  %v12678_v27 = vpop.permute.xlu2 %1781 }
 0x699   : > { %19908 = vst [vmem:[#allocation248_spill] sm:$0xff] %v12678_v27  ;;  %v12688_v28 = vpop.permute.xlu1 %1836 }
 0x69a   : > { %19912 = vst [vmem:[#allocation252_spill] sm:$0xff] %v12688_v28  ;;  %v12705_v53 = vpop.permute.xlu0 %2473 }
 0x69d   : > { %2173 = vperm.xlu1 %10554, %v11869_v3  }
 0x6a0   : > { %10553 = vset.pattern.permute.xlu2 %v11381_v2  ;;  %v12684_v39 = vpop.permute.xlu2 %1793 }
 0x6a1   : > { %19910 = vst [vmem:[#allocation250_spill] sm:$0xff] %v12684_v39  ;;  %v12694_v0 = vpop.permute.xlu1 %1849 }
 0x6a2   : > { %19914 = vst [vmem:[#allocation254_spill] sm:$0xff] %v12694_v0  ;;  %v12714_v0 = vpop.permute.xlu0 %2718 }
 0x6a3   : > { %19919 = vst [vmem:[#allocation259_spill] sm:$0xff] %v12714_v0 }
 0x6a5   : > { %10556 = vset.pattern.permute.xlu1 %v11438_v14 }
 0x6a8   : > { %2161 = vperm.xlu2 %10553, %v11869_v3   ;;  %v12692_v40 = vpop.permute.xlu2 %1812 }
 0x6a9   : > { %19913 = vst [vmem:[#allocation253_spill] sm:$0xff] %v12692_v40  ;;  %v12702_v39 = vpop.permute.xlu1 %1867 }
 0x6aa   : > { %19916 = vst [vmem:[#allocation256_spill] sm:$0xff] %v12702_v39  ;;  %v12724_v18 = vpop.permute.xlu0 %2963 }
 0x6ab   : > { %19923 = vst [vmem:[#allocation263_spill] sm:$0xff] %v12724_v18 }
 0x6ad   : > { %2185 = vperm.xlu1 %10556, %v11869_v3  }
 0x6b0   : > { %10555 = vset.pattern.permute.xlu2 %v11426_v11  ;;  %v12700_v27 = vpop.permute.xlu2 %1824 }
 0x6b1   : > { %19915 = vst [vmem:[#allocation255_spill] sm:$0xff] %v12700_v27  ;;  %v12710_v40 = vpop.permute.xlu1 %1879 }
 0x6b2   : > { %19918 = vst [vmem:[#allocation258_spill] sm:$0xff] %v12710_v40 }
 0x6b5   : > { %10558 = vset.pattern.permute.xlu1 %v11435_v13 }
 0x6b8   : > { %2179 = vperm.xlu2 %10555, %v11869_v3   ;;  %v12708_v3 = vpop.permute.xlu2 %1842 }
 0x6b9   : > { %19917 = vst [vmem:[#allocation257_spill] sm:$0xff] %v12708_v3  ;;  %v12718_v27 = vpop.permute.xlu1 %1898 }
 0x6ba   : > { %19921 = vst [vmem:[#allocation261_spill] sm:$0xff] %v12718_v27 }
 0x6bd   : > { %2204 = vperm.xlu1 %10558, %v11987_v26  }
 0x6c0   : > { %10557 = vset.pattern.permute.xlu2 %v11377_v1  ;;  %v12716_v28 = vpop.permute.xlu2 %1855 }
 0x6c1   : > { %19920 = vst [vmem:[#allocation260_spill] sm:$0xff] %v12716_v28  ;;  %v12726_v3 = vpop.permute.xlu1 %1910  ;;  %v12735_v28 = vpop.permute.xlu0 %3208 }
 0x6c2   : > { %19924 = vst [vmem:[#allocation264_spill] sm:$0xff] %v12726_v3 }
 0x6c3   : > { %19927 = vst [vmem:[#allocation267_spill] sm:$0xff] %v12735_v28 }
 0x6c5   : > { %10560 = vset.pattern.permute.xlu1 %v11419_v10 }
 0x6c8   : > { %2192 = vperm.xlu2 %10557, %v11987_v26   ;;  %v12722_v39 = vpop.permute.xlu2 %1873 }
 0x6c9   : > { %19922 = vst [vmem:[#allocation262_spill] sm:$0xff] %v12722_v39  ;;  %v12732_v0 = vpop.permute.xlu1 %1928  ;;  %v12743_v18 = vpop.permute.xlu0 %3453 }
 0x6ca   : > { %19926 = vst [vmem:[#allocation266_spill] sm:$0xff] %v12732_v0 }
 0x6cb   : > { %19930 = vst [vmem:[#allocation270_spill] sm:$0xff] %v12743_v18 }
 0x6cd   : > { %2216 = vperm.xlu1 %10560, %v11987_v26  }
 0x6d0   : > { %10559 = vset.pattern.permute.xlu2 %v11381_v2  ;;  %v12730_v40 = vpop.permute.xlu2 %1885 }
 0x6d1   : > { %19925 = vst [vmem:[#allocation265_spill] sm:$0xff] %v12730_v40  ;;  %v12740_v39 = vpop.permute.xlu1 %1940  ;;  %v12752_v28 = vpop.permute.xlu0 %3698 }
 0x6d2   : > { %19929 = vst [vmem:[#allocation269_spill] sm:$0xff] %v12740_v39 }
 0x6d3   : > { %19933 = vst [vmem:[#allocation273_spill] sm:$0xff] %v12752_v28 }
 0x6d5   : > { %10562 = vset.pattern.permute.xlu1 %v11438_v14 }
 0x6d8   : > { %2210 = vperm.xlu2 %10559, %v11987_v26   ;;  %v12738_v27 = vpop.permute.xlu2 %1904 }
 0x6d9   : > { %19928 = vst [vmem:[#allocation268_spill] sm:$0xff] %v12738_v27  ;;  %v12748_v40 = vpop.permute.xlu1 %1959  ;;  %v12760_v39 = vpop.permute.xlu0 %789 }
 0x6da   : > { %19932 = vst [vmem:[#allocation272_spill] sm:$0xff] %v12748_v40 }
 0x6dd   : > { %2234 = vperm.xlu1 %10562, %v11987_v26  }
 0x6e0   : > { %10561 = vset.pattern.permute.xlu2 %v11415_v9  ;;  %v12746_v3 = vpop.permute.xlu2 %1916 }
 0x6e1   : > { %19931 = vst [vmem:[#allocation271_spill] sm:$0xff] %v12746_v3  ;;  %v12756_v0 = vpop.permute.xlu1 %1971  ;;  %v12770_v28 = vpop.permute.xlu0 %1034 }
 0x6e2   : > { %19935 = vst [vmem:[#allocation275_spill] sm:$0xff] %v12756_v0 }
 0x6e3   : > { %19939 = vst [vmem:[#allocation279_spill] sm:$0xff] %v12770_v28 }
 0x6e5   : > { %10564 = vset.pattern.permute.xlu1 %v11409_v8 }
 0x6e8   : > { %2222 = vperm.xlu2 %10561, %v11987_v26   ;;  %v12754_v26 = vpop.permute.xlu2 %1934 }
 0x6e9   : > { %19934 = vst [vmem:[#allocation274_spill] sm:$0xff] %v12754_v26  ;;  %v12764_v18 = vpop.permute.xlu1 %1989 }
 0x6ea   : > { %19937 = vst [vmem:[#allocation277_spill] sm:$0xff] %v12764_v18  ;;  %v12781_v18 = vpop.permute.xlu0 %1279 }
 0x6eb   : > { %19943 = vst [vmem:[#allocation283_spill] sm:$0xff] %v12781_v18 }
 0x6ed   : > { %2247 = vperm.xlu1 %10564, %v12207_v35  }
 0x6f0   : > { %10563 = vset.pattern.permute.xlu2 %v11377_v1  ;;  %v12762_v27 = vpop.permute.xlu2 %1947 }
 0x6f1   : > { %19936 = vst [vmem:[#allocation276_spill] sm:$0xff] %v12762_v27  ;;  %v12772_v26 = vpop.permute.xlu1 %2002 }
 0x6f2   : > { %19940 = vst [vmem:[#allocation280_spill] sm:$0xff] %v12772_v26  ;;  %v12789_v28 = vpop.permute.xlu0 %1524 }
 0x6f3   : > { %19946 = vst [vmem:[#allocation286_spill] sm:$0xff] %v12789_v28 }
 0x6f5   : > { %10566 = vset.pattern.permute.xlu1 %v11419_v10 }
 0x6f8   : > { %2241 = vperm.xlu2 %10563, %v12207_v35   ;;  %v12768_v40 = vpop.permute.xlu2 %1965 }
 0x6f9   : > { %19938 = vst [vmem:[#allocation278_spill] sm:$0xff] %v12768_v40  ;;  %v12778_v3 = vpop.permute.xlu1 %2020 }
 0x6fa   : > { %19942 = vst [vmem:[#allocation282_spill] sm:$0xff] %v12778_v3  ;;  %v12798_v3 = vpop.permute.xlu0 %1769 }
 0x6fb   : > { %19949 = vst [vmem:[#allocation289_spill] sm:$0xff] %v12798_v3 }
 0x6fd   : > { %2265 = vperm.xlu1 %10566, %v12207_v35  }
 0x700   : > { %10565 = vset.pattern.permute.xlu2 %v11435_v13  ;;  %v12776_v0 = vpop.permute.xlu2 %1977 }
 0x701   : > { %19941 = vst [vmem:[#allocation281_spill] sm:$0xff] %v12776_v0  ;;  %v12786_v40 = vpop.permute.xlu1 %2032 }
 0x702   : > { %19945 = vst [vmem:[#allocation285_spill] sm:$0xff] %v12786_v40  ;;  %v12808_v40 = vpop.permute.xlu0 %2014 }
 0x703   : > { %19953 = vst [vmem:[#allocation293_spill] sm:$0xff] %v12808_v40 }
 0x705   : > { %10568 = vset.pattern.permute.xlu1 %v11426_v11 }
 0x708   : > { %2253 = vperm.xlu2 %10565, %v12207_v35   ;;  %v12784_v27 = vpop.permute.xlu2 %1996 }
 0x709   : > { %19944 = vst [vmem:[#allocation284_spill] sm:$0xff] %v12784_v27  ;;  %v12794_v0 = vpop.permute.xlu1 %2051 }
 0x70a   : > { %19948 = vst [vmem:[#allocation288_spill] sm:$0xff] %v12794_v0 }
 0x70d   : > { %2277 = vperm.xlu1 %10568, %v12207_v35  }
 0x710   : > { %10567 = vset.pattern.permute.xlu2 %v11415_v9  ;;  %v12792_v26 = vpop.permute.xlu2 %2008 }
 0x711   : > { %19947 = vst [vmem:[#allocation287_spill] sm:$0xff] %v12792_v26  ;;  %v12802_v27 = vpop.permute.xlu1 %2063 }
 0x712   : > { %19951 = vst [vmem:[#allocation291_spill] sm:$0xff] %v12802_v27 }
 0x715   : > { %10570 = vset.pattern.permute.xlu1 %v11409_v8 }
 0x718   : > { %2271 = vperm.xlu2 %10567, %v12207_v35   ;;  %v12800_v18 = vpop.permute.xlu2 %2026 }
 0x719   : > { %19950 = vst [vmem:[#allocation290_spill] sm:$0xff] %v12800_v18  ;;  %v12810_v26 = vpop.permute.xlu1 %2081  ;;  %v12819_v18 = vpop.permute.xlu0 %2259 }
 0x71a   : > { %19954 = vst [vmem:[#allocation294_spill] sm:$0xff] %v12810_v26 }
 0x71d   : > { %2296 = vperm.xlu1 %10570, %v11675_v44  }
 0x720   : > { %10569 = vset.pattern.permute.xlu2 %v11438_v14  ;;  %v12806_v28 = vpop.permute.xlu2 %2038 }
 0x721   : > { %19952 = vst [vmem:[#allocation292_spill] sm:$0xff] %v12806_v28  ;;  %v12816_v3 = vpop.permute.xlu1 %2094  ;;  %v12827_v26 = vpop.permute.xlu0 %2504 }
 0x722   : > { %19956 = vst [vmem:[#allocation296_spill] sm:$0xff] %v12816_v3 }
 0x725   : > { %10572 = vset.pattern.permute.xlu1 %v11381_v2 }
 0x728   : > { %2283 = vperm.xlu2 %10569, %v12207_v35   ;;  %v12814_v35 = vpop.permute.xlu2 %2057 }
 0x729   : > { %19955 = vst [vmem:[#allocation295_spill] sm:$0xff] %v12814_v35  ;;  %v12824_v28 = vpop.permute.xlu1 %2112  ;;  %v12836_v3 = vpop.permute.xlu0 %2749 }
 0x72a   : > { %19958 = vst [vmem:[#allocation298_spill] sm:$0xff] %v12824_v28 }
 0x72b   : > { %19961 = vst [vmem:[#allocation301_spill] sm:$0xff] %v12836_v3 }
 0x72d   : > { %2308 = vperm.xlu1 %10572, %v11675_v44  }
 0x730   : > { %10571 = vset.pattern.permute.xlu2 %v11435_v13  ;;  %v12822_v0 = vpop.permute.xlu2 %2069 }
 0x731   : > { %19957 = vst [vmem:[#allocation297_spill] sm:$0xff] %v12822_v0  ;;  %v12832_v35 = vpop.permute.xlu1 %2124  ;;  %v12846_v5 = vpop.permute.xlu0 %2994 }
 0x732   : > { %19960 = vst [vmem:[#allocation300_spill] sm:$0xff] %v12832_v35 }
 0x733   : > { %19965 = vst [vmem:[#allocation305_spill] sm:$0xff] %v12846_v5 }
 0x735   : > { %10574 = vset.pattern.permute.xlu1 %v11426_v11 }
 0x738   : > { %2302 = vperm.xlu2 %10571, %v11675_v44   ;;  %v12830_v40 = vpop.permute.xlu2 %2087 }
 0x739   : > { %19959 = vst [vmem:[#allocation299_spill] sm:$0xff] %v12830_v40  ;;  %v12841_v0 = vpop.permute.xlu1 %2143  ;;  %v12855_v3 = vpop.permute.xlu0 %3239 }
 0x73a   : > { %19963 = vst [vmem:[#allocation303_spill] sm:$0xff] %v12841_v0 }
 0x73b   : > { %19968 = vst [vmem:[#allocation308_spill] sm:$0xff] %v12855_v3 }
 0x73d   : > { %2326 = vperm.xlu1 %10574, %v11675_v44  }
 0x740   : > { %10573 = vset.pattern.permute.xlu2 %v11419_v10  ;;  %v12838_v27 = vpop.permute.xlu2 %2100 }
 0x741   : > { %19962 = vst [vmem:[#allocation302_spill] sm:$0xff] %v12838_v27  ;;  %v12849_v40 = vpop.permute.xlu1 %2155 }
 0x742   : > { %19966 = vst [vmem:[#allocation306_spill] sm:$0xff] %v12849_v40 }
 0x745   : > { %10576 = vset.pattern.permute.xlu1 %v11377_v1 }
 0x748   : > { %2314 = vperm.xlu2 %10573, %v11675_v44   ;;  %v12844_v28 = vpop.permute.xlu2 %2118 }
 0x749   : > { %19964 = vst [vmem:[#allocation304_spill] sm:$0xff] %v12844_v28  ;;  %v12863_v28 = vpop.permute.xlu0 %3484 }
 0x74a   : > { %19971 = vst [vmem:[#allocation311_spill] sm:$0xff] %v12863_v28 }
 0x74d   : > { %2339 = vperm.xlu1 %10576, %v11687_v46  }
 0x750   : > { %10575 = vset.pattern.permute.xlu2 %v11438_v14  ;;  %v12852_v35 = vpop.permute.xlu2 %2130 }
 0x751   : > { %19967 = vst [vmem:[#allocation307_spill] sm:$0xff] %v12852_v35  ;;  %v12872_v3 = vpop.permute.xlu0 %3729 }
 0x752   : > { %19974 = vst [vmem:[#allocation314_spill] sm:$0xff] %v12872_v3 }
 0x755   : > { %10579 = vset.pattern.permute.xlu1 %v11381_v2 }
 0x758   : > { %2332 = vperm.xlu2 %10575, %v11675_v44   ;;  %v12858_v27 = vpop.permute.xlu2 %2149  ;;  %v12860_v44 = vpop.permute.xlu1 %2173 }
 0x759   : > { %19969 = vst [vmem:[#allocation309_spill] sm:$0xff] %v12858_v27  ;;  %v12880_v27 = vpop.permute.xlu0 %820 }
 0x75a   : > { %19970 = vst [vmem:[#allocation310_spill] sm:$0xff] %v12860_v44 }
 0x75d   : > { %2357 = vperm.xlu1 %10579, %v11687_v46  }
 0x760   : > { %10577 = vset.pattern.permute.xlu2 %v11409_v8  ;;  %v12866_v5 = vpop.permute.xlu2 %2161  ;;  %v12868_v40 = vpop.permute.xlu1 %2185 }
 0x761   : > { %19972 = vst [vmem:[#allocation312_spill] sm:$0xff] %v12866_v5  ;;  %v12886_v28 = vpop.permute.xlu0 %1065 }
 0x762   : > { %19973 = vst [vmem:[#allocation313_spill] sm:$0xff] %v12868_v40 }
 0x765   : > { %10581 = vset.pattern.permute.xlu1 %v11415_v9 }
 0x768   : > { %2345 = vperm.xlu2 %10577, %v11687_v46   ;;  %v12874_v35 = vpop.permute.xlu2 %2179  ;;  %v12877_v44 = vpop.permute.xlu1 %2204 }
 0x769   : > { %19975 = vst [vmem:[#allocation315_spill] sm:$0xff] %v12874_v35  ;;  %v12895_v3 = vpop.permute.xlu0 %1310 }
 0x76a   : > { %19976 = vst [vmem:[#allocation316_spill] sm:$0xff] %v12877_v44 }
 0x76b   : > { %19980 = vst [vmem:[#allocation320_spill] sm:$0xff] %v12895_v3 }
 0x76d   : > { %2369 = vperm.xlu1 %10581, %v11687_v46  }
 0x770   : > { %10580 = vset.pattern.permute.xlu2 %v11419_v10  ;;  %v2193_v0 = vpop.permute.xlu2 %2192  ;;  %v12883_v40 = vpop.permute.xlu1 %2216 }
 0x771   : > { %19977 = vst [vmem:[#allocation317_spill] sm:$0xff] %v12883_v40  ;;  %v12903_v31 = vpop.permute.xlu0 %1555 }
 0x772   : > { %19983 = vst [vmem:[#allocation323_spill] sm:$0xff] %v12903_v31 }
 0x775   : > { %10583 = vset.pattern.permute.xlu1 %v11377_v1 }
 0x778   : > { %2363 = vperm.xlu2 %10580, %v11687_v46   ;;  %v2211_v5 = vpop.permute.xlu2 %2210  ;;  %v12889_v35 = vpop.permute.xlu1 %2234 }
 0x779   : > { %19978 = vst [vmem:[#allocation318_spill] sm:$0xff] %v12889_v35 }
 0x77d   : > { %2388 = vperm.xlu1 %10583, %v11877_v33  }
 0x780   : > { %10582 = vset.pattern.permute.xlu2 %v11426_v11  ;;  %v12892_v44 = vpop.permute.xlu2 %2222  ;;  %v12897_v45 = vpop.permute.xlu1 %2247 }
 0x781   : > { %19979 = vst [vmem:[#allocation319_spill] sm:$0xff] %v12892_v44 }
 0x782   : > { %19981 = vst [vmem:[#allocation321_spill] sm:$0xff] %v12897_v45  ;;  %v12912_v45 = vpop.permute.xlu0 %1800 }
 0x783   : > { %19985 = vst [vmem:[#allocation325_spill] sm:$0xff] %v12912_v45 }
 0x785   : > { %10585 = vset.pattern.permute.xlu1 %v11435_v13 }
 0x788   : > { %2375 = vperm.xlu2 %10582, %v11687_v46   ;;  %v2242_v46 = vpop.permute.xlu2 %2241  ;;  %v12901_v40 = vpop.permute.xlu1 %2265 }
 0x789   : > { %19982 = vst [vmem:[#allocation322_spill] sm:$0xff] %v12901_v40  ;;  %v12947_v30 = vsel %vm3755_vm8, %v11947_v32, %v2242_v46 }
 0x78a   : > { %v12922_v31 = vpop.permute.xlu0 %2045  ;;  %v4027_v37 = vrot.slane %v12947_v30, 4 }
 0x78b   : > { %19989 = vst [vmem:[#allocation329_spill] sm:$0xff] %v12922_v31  ;;  %v4018_v31 = vunpack.c.l.s4 %v11087_v43 }
 0x78d   : > { %2400 = vperm.xlu1 %10585, %v11877_v33  }
 0x790   : > { %10584 = vset.pattern.permute.xlu2 %v11409_v8  ;;  %v12906_v35 = vpop.permute.xlu2 %2253  ;;  %v12909_v44 = vpop.permute.xlu1 %2277 }
 0x791   : > { %19984 = vst [vmem:[#allocation324_spill] sm:$0xff] %v12906_v35 }
 0x795   : > { %10587 = vset.pattern.permute.xlu1 %v11415_v9 }
 0x798   : > { %2394 = vperm.xlu2 %10584, %v11877_v33   ;;  %v12914_v3 = vpop.permute.xlu2 %2271  ;;  %v12917_v55 = vpop.permute.xlu1 %2296 }
 0x799   : > { %19986 = vst [vmem:[#allocation326_spill] sm:$0xff] %v12914_v3  ;;  %v12930_v3 = vsel %vm3755_vm8, %v11909_v4, %v2193_v0  ;;  %v12943_v4 = vunpack.c.0.s8 %v4018_v31 }
 0x79a   : > { %19987 = vst [vmem:[#allocation327_spill] sm:$0xff] %v12917_v55  ;;  %v2291_v55 = vpop.permute.xlu0 %2290  ;;  %v4015_v45 = vrot.slane %v12930_v3, 4 }
 0x79d   : > { %2418 = vperm.xlu1 %10587, %v11877_v33  }
 0x7a0   : > { %10586 = vset.pattern.permute.xlu2 %v11381_v2  ;;  %v12920_v40 = vpop.permute.xlu2 %2283  ;;  %v2309_v35 = vpop.permute.xlu1 %2308 }
 0x7a1   : > { %19988 = vst [vmem:[#allocation328_spill] sm:$0xff] %v12920_v40 }
 0x7a5   : > { %10589 = vset.pattern.permute.xlu1 %v11438_v14 }
 0x7a8   : > { %2406 = vperm.xlu2 %10586, %v11877_v33   ;;  %v12926_v21 = vpop.permute.xlu2 %2302 }
 0x7a9   : > { %19990 = vst [vmem:[#allocation330_spill] sm:$0xff] %v12926_v21 }
 0x7ad   : > { %2430 = vperm.xlu1 %10589, %v11877_v33  }
 0x7af   : > { %v2327_v40 = vpop.permute.xlu1 %2326 }
 0x7b0   : > { %10588 = vset.pattern.permute.xlu2 %v11426_v11  ;;  %v12941_v0 = vpop.permute.xlu2 %2314 }
 0x7b1   : > { %19991 = vst [vmem:[#allocation331_spill] sm:$0xff] %v12941_v0 }
 0x7b5   : > { %10591 = vset.pattern.permute.xlu1 %v11435_v13 }
 0x7b8   : > { %2424 = vperm.xlu2 %10588, %v11877_v33   ;;  %v12937_v33 = vsel %vm3755_vm8, %v12037_v49, %v2291_v55  ;;  %v12960_v46 = vpop.permute.xlu2 %2332 }
 0x7b9   : > { %v4016_v21 = vsel %vm4013_vm9, %v12937_v33, %v4015_v45  ;;  %19992 = vst [vmem:[#allocation332_spill] sm:$0xff] %v12960_v46  ;;  %v13008_v46 = vsel %vm3755_vm8, %v12638_v62, %v2327_v40 }
 0x7ba   : > { %v4024_v43 = vperm.slane %v4016_v21, %v12943_v4  ;;  %19999 = vst [vmem:[#allocation339_spill] sm:$0xff] %v13008_v46 }
 0x7bc   : > { %v4075_v31 = vrot.slane %v4024_v43, 4 }
 0x7bd   : > { %2449 = vperm.xlu1 %10591, %v11997_v41  }
 0x7bf   : > { %v2340_v49 = vpop.permute.xlu1 %2339 }
 0x7c0   : > { %10590 = vset.pattern.permute.xlu2 %v11377_v1  ;;  %v12954_v55 = vsel %vm3755_vm8, %v12085_v54, %v2340_v49  ;;  %v12968_v54 = vsel %vm3755_vm8, %v11921_v48, %v2211_v5  ;;  %v12986_v48 = vsel %vm3755_vm8, %v11999_v42, %v12819_v18  ;;  %v13001_v42 = vsel %vm3755_vm8, %v11958_v20, %v12697_v19 }
 0x7c1   : > { %v4028_v45 = vsel %vm4013_vm9, %v12954_v55, %v4027_v37  ;;  %19993 = vst [vmem:[#allocation333_spill] sm:$0xff] %v12968_v54  ;;  %v12975_v37 = vsel %vm3755_vm8, %v12054_v34, %v2309_v35  ;;  %v5371_v34 = vrot.slane %v12986_v48, 4 }
 0x7c2   : > { %v4036_v32 = vperm.slane %v4028_v45, %v12943_v4  ;;  %19994 = vst [vmem:[#allocation334_spill] sm:$0xff] %v12975_v37  ;;  %v5359_v45 = vrot.slane %v12968_v54, 4 }
 0x7c3   : > { %19995 = vst [vmem:[#allocation335_spill] sm:$0xff] %v12986_v48  ;;  %v20081_v48 = vld [vmem:[#allocation170_spill] sm:$0xff] }
 0x7c4   : > { %v4073_v0 = vrot.slane %v4036_v32, 4  ;;  %v12963_v21 = vsel %vm4013_vm9, %v4036_v32, %v4075_v31  ;;  %v5360_v31 = vsel %vm4013_vm9, %v12975_v37, %v5359_v45  ;;  %v12981_v32 = vpop.permute.xlu2 %2345  ;;  %19997 = vst [vmem:[#allocation337_spill] sm:$0xff] %v13001_v42 }
 0x7c5   : > { %10593 = vset.pattern.permute.xlu1 %v11419_v10  ;;  %v5368_v5 = vperm.slane %v5360_v31, %v12943_v4 }
 0x7c6   : > { %v12971_v49 = vsel %vm4013_vm9, %v4073_v0, %v4024_v43 }
 0x7c7   : > { %v5419_v18 = vrot.slane %v5368_v5, 4 }
 0x7c8   : > { %2437 = vperm.xlu2 %10590, %v11997_v41  }
 0x7cd   : > { %2461 = vperm.xlu1 %10593, %v11997_v41  }
 0x7cf   : > { %v2358_v35 = vpop.permute.xlu1 %2357 }
 0x7d0   : > { %10592 = vset.pattern.permute.xlu2 %v11381_v2  ;;  %v12993_v0 = vsel %vm3755_vm8, %v12760_v39, %v2358_v35 }
 0x7d1   : > { %19996 = vst [vmem:[#allocation336_spill] sm:$0xff] %v12993_v0  ;;  %v5372_v43 = vsel %vm4013_vm9, %v12993_v0, %v5371_v34  ;;  %v6703_v34 = vrot.slane %v13001_v42, 4 }
 0x7d2   : > { %v5380_v45 = vperm.slane %v5372_v43, %v12943_v4  ;;  %v13004_v31 = vpop.permute.xlu2 %2363  ;;  %v13023_v43 = vsel %vm3755_vm8, %v12017_v7, %v12909_v44 }
 0x7d3   : > { %19998 = vst [vmem:[#allocation338_spill] sm:$0xff] %v13004_v31  ;;  %v6704_v19 = vsel %vm4013_vm9, %v13008_v46, %v6703_v34  ;;  %v6715_v40 = vrot.slane %v13023_v43, 4  ;;  %v11088_v31 = vmov 1934713408  }
 0x7d4   : > { %v5417_v39 = vrot.slane %v5380_v45, 4  ;;  %v13011_v35 = vsel %vm4013_vm9, %v5380_v45, %v5419_v18  ;;  %20000 = vst [vmem:[#allocation340_spill] sm:$0xff] %v13023_v43  ;;  %v6712_v62 = vperm.slane %v6704_v19, %v12943_v4  ;;  %v4012_v43 = vrot.slane %v12937_v33, 4 }
 0x7d5   : > { %10595 = vset.pattern.permute.xlu1 %v11438_v14  ;;  %v4066_v33 = vunpack.c.l.s4 %v11088_v31 }
 0x7d6   : > { %v13016_v20 = vsel %vm4013_vm9, %v5417_v39, %v5368_v5  ;;  %v6763_v39 = vrot.slane %v6712_v62, 4 }
 0x7d8   : > { %2455 = vperm.xlu2 %10592, %v11997_v41  }
 0x7dd   : > { %2479 = vperm.xlu1 %10595, %v11997_v41  }
 0x7e0   : > { %10594 = vset.pattern.permute.xlu2 %v11415_v9 }
 0x7e2   : > { %v2376_v18 = vpop.permute.xlu2 %2375 }
 0x7e3   : > { %v13030_v45 = vsel %vm3755_vm8, %v12110_v24, %v2376_v18 }
 0x7e4   : > { %20001 = vst [vmem:[#allocation341_spill] sm:$0xff] %v13030_v45  ;;  %v6716_v5 = vsel %vm4013_vm9, %v13030_v45, %v6715_v40 }
 0x7e5   : > { %v6724_v7 = vperm.slane %v6716_v5, %v12943_v4  ;;  %10597 = vset.pattern.permute.xlu1 %v11409_v8  ;;  %v13074_v5 = vpop.permute.xlu1 %2369 }
 0x7e6   : > { %20002 = vst [vmem:[#allocation342_spill] sm:$0xff] %v13074_v5  ;;  %v4014_v5 = vsel %vm4013_vm9, %v4012_v43, %v12930_v3  ;;  %v13098_v43 = vunpack.c.0.s8 %v4066_v33 }
 0x7e7   : > { %v6761_v44 = vrot.slane %v6724_v7, 4  ;;  %v13037_v34 = vsel %vm4013_vm9, %v6724_v7, %v6763_v39 }
 0x7e8   : > { %2467 = vperm.xlu2 %10594, %v11997_v41   ;;  %v4084_v33 = vperm.slane %v12963_v21, %v13098_v43 }
 0x7e9   : > { %v13041_v19 = vsel %vm4013_vm9, %v6761_v44, %v6712_v62  ;;  %v2536_v44 = vpop.permute.xlu0 %2535 }
 0x7ed   : > { %2492 = vperm.xlu1 %10597, %v12217_v16  }
 0x7f0   : > { %10596 = vset.pattern.permute.xlu2 %v11377_v1 }
 0x7f2   : > { %v13057_v41 = vpop.permute.xlu2 %2394 }
 0x7f5   : > { %10599 = vset.pattern.permute.xlu1 %v11419_v10 }
 0x7f8   : > { %2486 = vperm.xlu2 %10596, %v12217_v16  }
 0x7fd   : > { %2510 = vperm.xlu1 %10599, %v12217_v16  }
 0x800   : > { %10598 = vset.pattern.permute.xlu2 %v11435_v13 }
 0x802   : > { %v13061_v24 = vpop.permute.xlu2 %2406 }
 0x805   : > { %10601 = vset.pattern.permute.xlu1 %v11426_v11 }
 0x808   : > { %2498 = vperm.xlu2 %10598, %v12217_v16  }
 0x80d   : > { %2522 = vperm.xlu1 %10601, %v12217_v16  }
 0x810   : > { %10600 = vset.pattern.permute.xlu2 %v11415_v9 }
 0x812   : > { %v13065_v62 = vpop.permute.xlu2 %2424 }
 0x815   : > { %10603 = vset.pattern.permute.xlu1 %v11409_v8 }
 0x818   : > { %2516 = vperm.xlu2 %10600, %v12217_v16  }
 0x81d   : > { %2541 = vperm.xlu1 %10603, %v11696_v47  }
 0x820   : > { %10602 = vset.pattern.permute.xlu2 %v11438_v14 }
 0x822   : > { %v2438_v40 = vpop.permute.xlu2 %2437 }
 0x823   : > { %v3796_v7 = vsel %vm3755_vm8, %v12162_v23, %v2438_v40 }
 0x824   : > { %v4051_v45 = vrot.slane %v3796_v7, 4 }
 0x825   : > { %10605 = vset.pattern.permute.xlu1 %v11381_v2 }
 0x828   : > { %2528 = vperm.xlu2 %10602, %v12217_v16   ;;  %v4025_v16 = vrot.slane %v12954_v55, 4  ;;  %v3812_v55 = vsel %vm3755_vm8, %v12286_v25, %v2536_v44 }
 0x829   : > { %v4049_v23 = vrot.slane %v3812_v55, 4 }
 0x82a   : > { %v4026_v39 = vsel %vm4013_vm9, %v4025_v16, %v12947_v30  ;;  %v2389_v30 = vpop.permute.xlu1 %2388  ;;  %v4052_v16 = vsel %vm4013_vm9, %v3812_v55, %v4051_v45 }
 0x82b   : > { %v4032_v42 = vperm.slane %v4026_v39, %v12943_v4  ;;  %v4020_v39 = vperm.slane %v4014_v5, %v12943_v4  ;;  %v4050_v54 = vsel %vm4013_vm9, %v4049_v23, %v3796_v7  ;;  %v4060_v25 = vperm.slane %v4052_v16, %v12943_v4 }
 0x82c   : > { %v4056_v31 = vperm.slane %v4050_v54, %v12943_v4  ;;  %v4080_v7 = vperm.slane %v12971_v49, %v13098_v43 }
 0x82d   : > { %2553 = vperm.xlu1 %10605, %v11696_v47   ;;  %v4061_v40 = vrot.slane %v4032_v42, 4  ;;  %v4063_v45 = vrot.slane %v4020_v39, 4 }
 0x82f   : > { %v4062_v37 = vsel %vm4013_vm9, %v4061_v40, %v4020_v39  ;;  %v4064_v40 = vsel %vm4013_vm9, %v4032_v42, %v4063_v45  ;;  %v4085_v39 = vrot.slane %v4056_v31, 4  ;;  %v4119_v42 = vrot.slane %v4080_v7, 4 }
 0x830   : > { %10604 = vset.pattern.permute.xlu2 %v11435_v13  ;;  %v13110_v16 = vperm.slane %v4062_v37, %v13098_v43  ;;  %v4072_v37 = vperm.slane %v4064_v40, %v13098_v43  ;;  %v4123_v40 = vrot.slane %v4084_v33, 4 }
 0x832   : > { %v13071_v18 = vpop.permute.xlu2 %2455  ;;  %20004 = vst [vmem:[#allocation344_spill] sm:$0xff] %v13110_v16  ;;  %v13113_v54 = vpop.permute.xlu1 %2400 }
 0x833   : > { %20005 = vst [vmem:[#allocation345_spill] sm:$0xff] %v13113_v54  ;;  %v20096_v54 = vld [vmem:[#allocation34_spill] sm:$0xff] }
 0x835   : > { %10608 = vset.pattern.permute.xlu1 %v11426_v11 }
 0x838   : > { %2547 = vperm.xlu2 %10604, %v11696_v47  }
 0x83d   : > { %2571 = vperm.xlu1 %10608, %v11696_v47  }
 0x840   : > { %10606 = vset.pattern.permute.xlu2 %v11419_v10 }
 0x842   : > { %v13084_v46 = vpop.permute.xlu2 %2467 }
 0x843   : > { %20003 = vst [vmem:[#allocation343_spill] sm:$0xff] %v13084_v46  ;;  %v3788_v46 = vsel %vm3755_vm8, %v12880_v27, %v2389_v30  ;;  %v4097_v30 = vrot.slane %v4060_v25, 4 }
 0x844   : > { %v4039_v3 = vrot.slane %v3788_v46, 4 }
 0x845   : > { %10610 = vset.pattern.permute.xlu1 %v11377_v1 }
 0x848   : > { %2559 = vperm.xlu2 %10606, %v11696_v47  }
 0x84d   : > { %2584 = vperm.xlu1 %10610, %v11708_v51  }
 0x850   : > { %10609 = vset.pattern.permute.xlu2 %v11438_v14 }
 0x852   : > { %v2487_v44 = vpop.permute.xlu2 %2486 }
 0x853   : > { %v3804_v5 = vsel %vm3755_vm8, %v12211_v15, %v2487_v44 }
 0x854   : > { %v4037_v55 = vrot.slane %v3804_v5, 4  ;;  %v4040_v27 = vsel %vm4013_vm9, %v3804_v5, %v4039_v3 }
 0x855   : > { %v4048_v23 = vperm.slane %v4040_v27, %v12943_v4  ;;  %10613 = vset.pattern.permute.xlu1 %v11381_v2 }
 0x856   : > { %v4038_v15 = vsel %vm4013_vm9, %v4037_v55, %v3788_v46  ;;  %v4111_v46 = vrot.slane %v13110_v16, 4 }
 0x857   : > { %v4044_v3 = vperm.slane %v4038_v15, %v12943_v4  ;;  %v4099_v44 = vrot.slane %v4048_v23, 4  ;;  %v4098_v49 = vsel %vm4013_vm9, %v4097_v30, %v4048_v23 }
 0x858   : > { %2577 = vperm.xlu2 %10609, %v11696_v47   ;;  %v4104_v5 = vperm.slane %v4098_v49, %v13098_v43 }
 0x859   : > { %v4086_v45 = vsel %vm4013_vm9, %v4085_v39, %v4044_v3  ;;  %v4087_v27 = vrot.slane %v4044_v3, 4  ;;  %v4100_v21 = vsel %vm4013_vm9, %v4060_v25, %v4099_v44  ;;  %v4115_v25 = vrot.slane %v4072_v37, 4 }
 0x85a   : > { %v13127_v55 = vperm.slane %v4086_v45, %v13098_v43  ;;  %v4108_v15 = vperm.slane %v4100_v21, %v13098_v43  ;;  %v13131_v30 = vsel %vm4013_vm9, %v4104_v5, %v4119_v42  ;;  %v4117_v47 = vrot.slane %v4104_v5, 4 }
 0x85b   : > { %v4088_v23 = vsel %vm4013_vm9, %v4056_v31, %v4087_v27  ;;  %v13145_v31 = vpop.permute.xlu1 %2418 }
 0x85c   : > { %20006 = vst [vmem:[#allocation346_spill] sm:$0xff] %v13127_v55  ;;  %v4112_v39 = vsel %vm4013_vm9, %v13127_v55, %v4111_v46  ;;  %v4096_v3 = vperm.slane %v4088_v23, %v13098_v43  ;;  %v4121_v44 = vrot.slane %v4108_v15, 4  ;;  %v13140_v49 = vsel %vm4013_vm9, %v4117_v47, %v4080_v7 }
 0x85d   : > { %7601 = vrot.lane.b32.xlu0 %v4112_v39, %s11089_s23  ;;  %v13143_v5 = vsel %vm4013_vm9, %v4108_v15, %v4123_v40  ;;  %20008 = vst [vmem:[#allocation348_spill] sm:$0xff] %v13145_v31  ;;  %2602 = vperm.xlu1 %10613, %v11708_v51   ;;  %v20013_v15 = vld [vmem:[#allocation42_spill] sm:$0xff]  ;;  %v13186_v39 = vsel %vm3755_vm8, %v12136_v17, %v13061_v24 }
 0x85e   : > { %20007 = vst [vmem:[#allocation347_spill] sm:$0xff] %v13143_v5  ;;  %v4113_v42 = vrot.slane %v4096_v3, 4  ;;  %v13148_v45 = vsel %vm4013_vm9, %v4096_v3, %v4115_v25  ;;  %v13151_v27 = vsel %vm4013_vm9, %v4121_v44, %v4084_v33  ;;  %v13196_v25 = vsel %vm3755_vm8, %v12257_v6, %v12827_v26  ;;  %v20176_v5 = vld [vmem:[#allocation87_spill] sm:$0xff] }
 0x85f   : > { %20015 = vst [vmem:[#allocation353_spill] sm:$0xff] %v13186_v39  ;;  %v13203_v17 = vsel %vm3755_vm8, %v12176_v29, %v13071_v18  ;;  %v5428_v18 = vperm.slane %v13011_v35, %v13098_v43 }
 0x860   : > { %10611 = vset.pattern.permute.xlu2 %v11409_v8  ;;  %v13155_v46 = vsel %vm4013_vm9, %v4113_v42, %v4072_v37  ;;  %20016 = vst [vmem:[#allocation354_spill] sm:$0xff] %v13196_v25  ;;  %v5395_v42 = vrot.slane %v13203_v17, 4 }
 0x861   : > { %20017 = vst [vmem:[#allocation355_spill] sm:$0xff] %v13203_v17 }
 0x863   : > { %v13158_v7 = vpop.permute.xlu1 %2430 }
 0x864   : > { %20009 = vst [vmem:[#allocation349_spill] sm:$0xff] %v13158_v7 }
 0x865   : > { %10615 = vset.pattern.permute.xlu1 %v11415_v9 }
 0x868   : > { %2590 = vperm.xlu2 %10611, %v11708_v51  }
 0x86b   : > { %v13162_v21 = vpop.permute.xlu1 %2449 }
 0x86c   : > { %20010 = vst [vmem:[#allocation350_spill] sm:$0xff] %v13162_v21 }
 0x86d   : > { %2614 = vperm.xlu1 %10615, %v11708_v51  }
 0x870   : > { %10614 = vset.pattern.permute.xlu2 %v11419_v10 }
 0x873   : > { %v13166_v33 = vpop.permute.xlu1 %2461 }
 0x874   : > { %20011 = vst [vmem:[#allocation351_spill] sm:$0xff] %v13166_v33  ;;  %v20050_v33 = vld [vmem:[#allocation155_spill] sm:$0xff] }
 0x875   : > { %10617 = vset.pattern.permute.xlu1 %v11377_v1 }
 0x878   : > { %2608 = vperm.xlu2 %10614, %v11708_v51  }
 0x87b   : > { %v13170_v37 = vpop.permute.xlu1 %2479 }
 0x87c   : > { %20012 = vst [vmem:[#allocation352_spill] sm:$0xff] %v13170_v37  ;;  %v5424_v37 = vperm.slane %v13016_v20, %v13098_v43 }
 0x87d   : > { %2633 = vperm.xlu1 %10617, %v20013_v15  }
 0x87e   : > { %v5463_v20 = vrot.slane %v5424_v37, 4 }
 0x880   : > { %10616 = vset.pattern.permute.xlu2 %v11426_v11 }
 0x883   : > { %v13174_v47 = vpop.permute.xlu1 %2492 }
 0x885   : > { %10619 = vset.pattern.permute.xlu1 %v11435_v13 }
 0x888   : > { %2620 = vperm.xlu2 %10616, %v11708_v51   ;;  %v5383_v51 = vrot.slane %v13186_v39, 4  ;;  %v20079_v39 = vld [vmem:[#allocation199_spill] sm:$0xff] }
 0x88a   : > { %v5384_v44 = vsel %vm4013_vm9, %v13196_v25, %v5383_v51 }
 0x88b   : > { %v13178_v23 = vpop.permute.xlu1 %2510  ;;  %v5392_v24 = vperm.slane %v5384_v44, %v12943_v4 }
 0x88c   : > { %20014 = vst [vmem:[#allocation42_spill] sm:$0xff] %v13178_v23 }
 0x88d   : > { %2645 = vperm.xlu1 %10619, %v20013_v15   ;;  %v5443_v26 = vrot.slane %v5392_v24, 4 }
 0x890   : > { %10618 = vset.pattern.permute.xlu2 %v11409_v8 }
 0x893   : > { %v2523_v40 = vpop.permute.xlu1 %2522 }
 0x895   : > { %10621 = vset.pattern.permute.xlu1 %v11415_v9 }
 0x898   : > { %2639 = vperm.xlu2 %10618, %v20013_v15  }
 0x89b   : > { %v13190_v3 = vpop.permute.xlu1 %2541 }
 0x89d   : > { %2663 = vperm.xlu1 %10621, %v20013_v15  }
 0x8a0   : > { %10620 = vset.pattern.permute.xlu2 %v11381_v2 }
 0x8a3   : > { %v2554_v16 = vpop.permute.xlu1 %2553 }
 0x8a4   : > { %v13210_v55 = vsel %vm3755_vm8, %v12300_v57, %v2554_v16  ;;  %v13226_v16 = vsel %vm3755_vm8, %v12150_v60, %v13065_v62 }
 0x8a5   : > { %20018 = vst [vmem:[#allocation356_spill] sm:$0xff] %v13210_v55  ;;  %v5396_v6 = vsel %vm4013_vm9, %v13210_v55, %v5395_v42  ;;  %10623 = vset.pattern.permute.xlu1 %v11438_v14 }
 0x8a6   : > { %v5404_v29 = vperm.slane %v5396_v6, %v12943_v4  ;;  %20019 = vst [vmem:[#allocation357_spill] sm:$0xff] %v13226_v16  ;;  %v5467_v6 = vrot.slane %v5428_v18, 4 }
 0x8a8   : > { %2651 = vperm.xlu2 %10620, %v20013_v15   ;;  %v5441_v51 = vrot.slane %v5404_v29, 4  ;;  %v5444_v44 = vsel %vm4013_vm9, %v5404_v29, %v5443_v26  ;;  %v13232_v26 = vsel %vm3755_vm8, %v12274_v12, %v2523_v40  ;;  %v13250_v12 = vsel %vm3755_vm8, %v12219_v61, %v12705_v53 }
 0x8a9   : > { %v5452_v57 = vperm.slane %v5444_v44, %v13098_v43  ;;  %20020 = vst [vmem:[#allocation358_spill] sm:$0xff] %v13232_v26  ;;  %v6727_v44 = vrot.slane %v13226_v16, 4 }
 0x8aa   : > { %v5442_v42 = vsel %vm4013_vm9, %v5441_v51, %v5392_v24  ;;  %20024 = vst [vmem:[#allocation362_spill] sm:$0xff] %v13250_v12 }
 0x8ab   : > { %v5465_v7 = vrot.slane %v5452_v57, 4  ;;  %v5448_v35 = vperm.slane %v5442_v42, %v13098_v43  ;;  %v13235_v29 = vsel %vm4013_vm9, %v5452_v57, %v5467_v6  ;;  %v6728_v51 = vsel %vm4013_vm9, %v13232_v26, %v6727_v44 }
 0x8ac   : > { %20021 = vst [vmem:[#allocation359_spill] sm:$0xff] %v13235_v29  ;;  %v6768_v44 = vperm.slane %v13041_v19, %v13098_v43 }
 0x8ad   : > { %v13240_v60 = vsel %vm4013_vm9, %v5465_v7, %v5428_v18  ;;  %v5461_v62 = vrot.slane %v5448_v35, 4  ;;  %v13243_v24 = vsel %vm4013_vm9, %v5448_v35, %v5463_v20  ;;  %2675 = vperm.xlu1 %10623, %v20013_v15   ;;  %v6736_v7 = vperm.slane %v6728_v51, %v12943_v4 }
 0x8ae   : > { %20022 = vst [vmem:[#allocation360_spill] sm:$0xff] %v13240_v60  ;;  %v6739_v18 = vrot.slane %v13250_v12, 4 }
 0x8af   : > { %20023 = vst [vmem:[#allocation361_spill] sm:$0xff] %v13243_v24  ;;  %v13253_v40 = vsel %vm4013_vm9, %v5461_v62, %v5424_v37  ;;  %v2572_v57 = vpop.permute.xlu1 %2571  ;;  %v6787_v61 = vrot.slane %v6736_v7, 4  ;;  %v6772_v37 = vperm.slane %v13037_v34, %v13098_v43 }
 0x8b0   : > { %10622 = vset.pattern.permute.xlu2 %v11426_v11  ;;  %20025 = vst [vmem:[#allocation363_spill] sm:$0xff] %v13253_v40  ;;  %v13260_v42 = vsel %vm3755_vm8, %v12648_v63, %v2572_v57  ;;  %v6807_v57 = vrot.slane %v6768_v44, 4  ;;  %v20056_v40 = vld [vmem:[#allocation128_spill] sm:$0xff] }
 0x8b1   : > { %20026 = vst [vmem:[#allocation364_spill] sm:$0xff] %v13260_v42  ;;  %v6740_v6 = vsel %vm4013_vm9, %v13260_v42, %v6739_v18  ;;  %v6811_v51 = vrot.slane %v6772_v37, 4 }
 0x8b2   : > { %v6748_v53 = vperm.slane %v6740_v6, %v12943_v4 }
 0x8b4   : > { %v6785_v35 = vrot.slane %v6748_v53, 4  ;;  %v6788_v20 = vsel %vm4013_vm9, %v6748_v53, %v6787_v61 }
 0x8b5   : > { %10625 = vset.pattern.permute.xlu1 %v11435_v13  ;;  %v6796_v63 = vperm.slane %v6788_v20, %v13098_v43 }
 0x8b6   : > { %v6786_v62 = vsel %vm4013_vm9, %v6785_v35, %v6736_v7  ;;  %v13294_v7 = vpop.permute.xlu2 %2498 }
 0x8b7   : > { %v6792_v18 = vperm.slane %v6786_v62, %v13098_v43  ;;  %v13276_v6 = vsel %vm4013_vm9, %v6796_v63, %v6811_v51  ;;  %20031 = vst [vmem:[#allocation369_spill] sm:$0xff] %v13294_v7 }
 0x8b8   : > { %2669 = vperm.xlu2 %10622, %v20013_v15   ;;  %v6809_v15 = vrot.slane %v6796_v63, 4  ;;  %20027 = vst [vmem:[#allocation365_spill] sm:$0xff] %v13276_v6 }
 0x8b9   : > { %v6805_v19 = vrot.slane %v6792_v18, 4  ;;  %v13283_v61 = vsel %vm4013_vm9, %v6792_v18, %v6807_v57 }
 0x8ba   : > { %v13280_v34 = vsel %vm4013_vm9, %v6809_v15, %v6772_v37  ;;  %20029 = vst [vmem:[#allocation367_spill] sm:$0xff] %v13283_v61 }
 0x8bb   : > { %20028 = vst [vmem:[#allocation366_spill] sm:$0xff] %v13280_v34  ;;  %v13286_v53 = vsel %vm4013_vm9, %v6805_v19, %v6768_v44 }
 0x8bc   : > { %20030 = vst [vmem:[#allocation368_spill] sm:$0xff] %v13286_v53 }
 0x8bd   : > { %2694 = vperm.xlu1 %10625, %v12007_v22  }
 0x8be   : > { %v13298_v37 = vpop.permute.xlu2 %2516 }
 0x8bf   : > { %20032 = vst [vmem:[#allocation370_spill] sm:$0xff] %v13298_v37  ;;  %v2585_v51 = vpop.permute.xlu1 %2584 }
 0x8c0   : > { %10624 = vset.pattern.permute.xlu2 %v11377_v1 }
 0x8c5   : > { %10627 = vset.pattern.permute.xlu1 %v11419_v10 }
 0x8c6   : > { %v13302_v35 = vpop.permute.xlu2 %2528 }
 0x8c7   : > { %20033 = vst [vmem:[#allocation371_spill] sm:$0xff] %v13302_v35 }
 0x8c8   : > { %2682 = vperm.xlu2 %10624, %v12007_v22  }
 0x8cd   : > { %2706 = vperm.xlu1 %10627, %v12007_v22  }
 0x8ce   : > { %v13306_v20 = vpop.permute.xlu2 %2547 }
 0x8cf   : > { %20034 = vst [vmem:[#allocation372_spill] sm:$0xff] %v13306_v20  ;;  %v13327_v18 = vpop.permute.xlu1 %2602 }
 0x8d0   : > { %10626 = vset.pattern.permute.xlu2 %v11381_v2  ;;  %20038 = vst [vmem:[#allocation376_spill] sm:$0xff] %v13327_v18 }
 0x8d5   : > { %10629 = vset.pattern.permute.xlu1 %v11438_v14 }
 0x8d6   : > { %v13310_v44 = vpop.permute.xlu2 %2559 }
 0x8d7   : > { %20035 = vst [vmem:[#allocation373_spill] sm:$0xff] %v13310_v44  ;;  %v20057_v44 = vld [vmem:[#allocation146_spill] sm:$0xff] }
 0x8d8   : > { %2700 = vperm.xlu2 %10626, %v12007_v22  }
 0x8dd   : > { %2724 = vperm.xlu1 %10629, %v12007_v22  }
 0x8de   : > { %v13314_v63 = vpop.permute.xlu2 %2577 }
 0x8df   : > { %20036 = vst [vmem:[#allocation374_spill] sm:$0xff] %v13314_v63  ;;  %v13331_v19 = vpop.permute.xlu1 %2614 }
 0x8e0   : > { %10628 = vset.pattern.permute.xlu2 %v11415_v9  ;;  %20039 = vst [vmem:[#allocation377_spill] sm:$0xff] %v13331_v19 }
 0x8e5   : > { %10631 = vset.pattern.permute.xlu1 %v11409_v8 }
 0x8e8   : > { %2712 = vperm.xlu2 %10628, %v12007_v22   ;;  %v2591_v22 = vpop.permute.xlu2 %2590 }
 0x8ed   : > { %2737 = vperm.xlu1 %10631, %v12227_v59  }
 0x8ef   : > { %v2634_v61 = vpop.permute.xlu1 %2633 }
 0x8f0   : > { %10630 = vset.pattern.permute.xlu2 %v11377_v1  ;;  %v13320_v62 = vpop.permute.xlu2 %2608  ;;  %v13372_v31 = vsel %vm3755_vm8, %v12886_v28, %v2634_v61 }
 0x8f5   : > { %10633 = vset.pattern.permute.xlu1 %v11419_v10 }
 0x8f8   : > { %2731 = vperm.xlu2 %10630, %v12227_v59   ;;  %v13324_v15 = vpop.permute.xlu2 %2620 }
 0x8f9   : > { %20037 = vst [vmem:[#allocation375_spill] sm:$0xff] %v13324_v15 }
 0x8fd   : > { %2755 = vperm.xlu1 %10633, %v12227_v59  }
 0x8ff   : > { %v13341_v34 = vpop.permute.xlu1 %2645 }
 0x900   : > { %10632 = vset.pattern.permute.xlu2 %v11435_v13  ;;  %v2640_v57 = vpop.permute.xlu2 %2639  ;;  %20042 = vst [vmem:[#allocation380_spill] sm:$0xff] %v13341_v34 }
 0x905   : > { %10635 = vset.pattern.permute.xlu1 %v11426_v11 }
 0x908   : > { %2743 = vperm.xlu2 %10632, %v12227_v59   ;;  %v13334_v6 = vpop.permute.xlu2 %2651 }
 0x909   : > { %20040 = vst [vmem:[#allocation378_spill] sm:$0xff] %v13334_v6 }
 0x90d   : > { %2767 = vperm.xlu1 %10635, %v12227_v59  }
 0x90f   : > { %v13345_v63 = vpop.permute.xlu1 %2663 }
 0x910   : > { %10634 = vset.pattern.permute.xlu2 %v11415_v9  ;;  %20043 = vst [vmem:[#allocation381_spill] sm:$0xff] %v13345_v63 }
 0x912   : > { %v13338_v53 = vpop.permute.xlu2 %2669 }
 0x913   : > { %20041 = vst [vmem:[#allocation379_spill] sm:$0xff] %v13338_v53  ;;  %v13356_v53 = vsel %vm3755_vm8, %v12326_v36, %v2585_v51 }
 0x914   : > { %v4127_v12 = vrot.slane %v13356_v53, 4 }
 0x915   : > { %10637 = vset.pattern.permute.xlu1 %v11409_v8 }
 0x918   : > { %2761 = vperm.xlu2 %10634, %v12227_v59  }
 0x91d   : > { %2786 = vperm.xlu1 %10637, %v11717_v52  }
 0x91f   : > { %v13351_v16 = vpop.permute.xlu1 %2675 }
 0x920   : > { %10636 = vset.pattern.permute.xlu2 %v11438_v14 }
 0x922   : > { %v2683_v15 = vpop.permute.xlu2 %2682 }
 0x923   : > { %v13362_v26 = vsel %vm3755_vm8, %v12372_v50, %v2683_v15  ;;  %v4139_v50 = vrot.slane %v13372_v31, 4 }
 0x924   : > { %v4128_v42 = vsel %vm4013_vm9, %v13362_v26, %v4127_v12 }
 0x925   : > { %10639 = vset.pattern.permute.xlu1 %v11381_v2  ;;  %v4136_v36 = vperm.slane %v4128_v42, %v12943_v4 }
 0x927   : > { %v4187_v63 = vrot.slane %v4136_v36, 4 }
 0x928   : > { %2773 = vperm.xlu2 %10636, %v12227_v59  }
 0x92d   : > { %2798 = vperm.xlu1 %10639, %v11717_v52  }
 0x92f   : > { %v13368_v19 = vpop.permute.xlu1 %2694 }
 0x930   : > { %10638 = vset.pattern.permute.xlu2 %v11435_v13  ;;  %20046 = vst [vmem:[#allocation384_spill] sm:$0xff] %v13368_v19 }
 0x932   : > { %v13348_v59 = vpop.permute.xlu2 %2700 }
 0x933   : > { %20044 = vst [vmem:[#allocation382_spill] sm:$0xff] %v13348_v59 }
 0x935   : > { %10642 = vset.pattern.permute.xlu1 %v11426_v11 }
 0x938   : > { %2792 = vperm.xlu2 %10638, %v11717_v52  }
 0x93d   : > { %2816 = vperm.xlu1 %10642, %v11717_v52  }
 0x93f   : > { %v2707_v61 = vpop.permute.xlu1 %2706 }
 0x940   : > { %10640 = vset.pattern.permute.xlu2 %v11419_v10 }
 0x942   : > { %v13358_v35 = vpop.permute.xlu2 %2712 }
 0x943   : > { %20045 = vst [vmem:[#allocation383_spill] sm:$0xff] %v13358_v35  ;;  %v20047_v35 = vld [vmem:[#allocation33_spill] sm:$0xff] }
 0x945   : > { %10644 = vset.pattern.permute.xlu1 %v11377_v1 }
 0x948   : > { %2804 = vperm.xlu2 %10640, %v11717_v52  }
 0x94d   : > { %2829 = vperm.xlu1 %10644, %v20047_v35  }
 0x950   : > { %10643 = vset.pattern.permute.xlu2 %v11438_v14 }
 0x952   : > { %v2732_v51 = vpop.permute.xlu2 %2731 }
 0x953   : > { %v13379_v15 = vsel %vm3755_vm8, %v12390_v58, %v2732_v51  ;;  %v13394_v58 = vsel %vm3755_vm8, %v12323_v56, %v2591_v22  ;;  %v2725_v51 = vpop.permute.xlu1 %2724 }
 0x954   : > { %v4140_v12 = vsel %vm4013_vm9, %v13379_v15, %v4139_v50  ;;  %v4575_v50 = vrot.slane %v13394_v58, 4 }
 0x955   : > { %v4148_v28 = vperm.slane %v4140_v12, %v12943_v4  ;;  %10647 = vset.pattern.permute.xlu1 %v11381_v2  ;;  %v20048_v12 = vld [vmem:[#allocation150_spill] sm:$0xff] }
 0x957   : > { %v4185_v37 = vrot.slane %v4148_v28, 4  ;;  %v13386_v29 = vsel %vm4013_vm9, %v4148_v28, %v4187_v63  ;;  %v13402_v63 = vsel %vm3755_vm8, %v20048_v12, %v12592_v38 }
 0x958   : > { %2822 = vperm.xlu2 %10643, %v11717_v52   ;;  %v4576_v52 = vsel %vm4013_vm9, %v13402_v63, %v4575_v50 }
 0x959   : > { %v13390_v42 = vsel %vm4013_vm9, %v4185_v37, %v4136_v36  ;;  %v20049_v37 = vld [vmem:[#allocation139_spill] sm:$0xff]  ;;  %v4584_v56 = vperm.slane %v4576_v52, %v12943_v4  ;;  %v20051_v52 = vld [vmem:[#allocation134_spill] sm:$0xff] }
 0x95a   : > { %v13408_v36 = vsel %vm3755_vm8, %v20049_v37, %v2640_v57  ;;  %v13428_v24 = vsel %vm3755_vm8, %v20051_v52, %v13320_v62  ;;  %v13446_v62 = vsel %vm3755_vm8, %v20057_v44, %v20056_v40  ;;  %v20059_v52 = vld [vmem:[#allocation116_spill] sm:$0xff] }
 0x95b   : > { %v4587_v22 = vrot.slane %v13408_v36, 4  ;;  %v4635_v50 = vrot.slane %v4584_v56, 4  ;;  %20052 = vst [vmem:[#allocation33_spill] sm:$0xff] %v13428_v24 }
 0x95c   : > { %20058 = vst [vmem:[#allocation155_spill] sm:$0xff] %v13446_v62 }
 0x95d   : > { %2847 = vperm.xlu1 %10647, %v20047_v35  }
 0x95f   : > { %v2738_v28 = vpop.permute.xlu1 %2737 }
 0x960   : > { %10645 = vset.pattern.permute.xlu2 %v11409_v8  ;;  %v13415_v23 = vsel %vm3755_vm8, %v20050_v33, %v2738_v28 }
 0x961   : > { %v4588_v38 = vsel %vm4013_vm9, %v13415_v23, %v4587_v22  ;;  %v20053_v22 = vld [vmem:[#allocation151_spill] sm:$0xff] }
 0x962   : > { %v4596_v57 = vperm.slane %v4588_v38, %v12943_v4  ;;  %v13435_v28 = vsel %vm3755_vm8, %v20053_v22, %v2707_v61  ;;  %v5919_v38 = vrot.slane %v13428_v24, 4  ;;  %v5931_v61 = vrot.slane %v13446_v62, 4  ;;  %v20061_v24 = vld [vmem:[#allocation102_spill] sm:$0xff]  ;;  %v20065_v62 = vld [vmem:[#allocation91_spill] sm:$0xff] }
 0x963   : > { %20054 = vst [vmem:[#allocation150_spill] sm:$0xff] %v13435_v28  ;;  %v13468_v18 = vsel %vm3755_vm8, %v20065_v62, %v2725_v51 }
 0x964   : > { %v4633_v12 = vrot.slane %v4596_v57, 4  ;;  %v13422_v37 = vsel %vm4013_vm9, %v4596_v57, %v4635_v50  ;;  %v5920_v50 = vsel %vm4013_vm9, %v13435_v28, %v5919_v38  ;;  %v13441_v57 = vpop.permute.xlu2 %2743  ;;  %v20062_v28 = vld [vmem:[#allocation143_spill] sm:$0xff]  ;;  %20066 = vst [vmem:[#allocation146_spill] sm:$0xff] %v13468_v18 }
 0x965   : > { %10649 = vset.pattern.permute.xlu1 %v11415_v9  ;;  %20055 = vst [vmem:[#allocation139_spill] sm:$0xff] %v13441_v57  ;;  %v13461_v40 = vsel %vm3755_vm8, %v20062_v28, %v20061_v24  ;;  %v4644_v0 = vperm.slane %v13422_v37, %v13098_v43 }
 0x966   : > { %v13431_v33 = vsel %vm4013_vm9, %v4633_v12, %v4584_v56  ;;  %v5928_v56 = vperm.slane %v5920_v50, %v12943_v4  ;;  %20063 = vst [vmem:[#allocation151_spill] sm:$0xff] %v13461_v40 }
 0x968   : > { %2835 = vperm.xlu2 %10645, %v20047_v35   ;;  %v5979_v44 = vrot.slane %v5928_v56, 4 }
 0x96d   : > { %2859 = vperm.xlu1 %10649, %v20047_v35  }
 0x96f   : > { %v2756_v12 = vpop.permute.xlu1 %2755 }
 0x970   : > { %10648 = vset.pattern.permute.xlu2 %v11419_v10  ;;  %v13453_v22 = vsel %vm3755_vm8, %v20059_v52, %v2756_v12 }
 0x971   : > { %20060 = vst [vmem:[#allocation134_spill] sm:$0xff] %v13453_v22  ;;  %v5932_v38 = vsel %vm4013_vm9, %v13453_v22, %v5931_v61  ;;  %v7263_v61 = vrot.slane %v13461_v40, 4  ;;  %v20078_v22 = vld [vmem:[#allocation181_spill] sm:$0xff] }
 0x972   : > { %v5940_v50 = vperm.slane %v5932_v38, %v12943_v4  ;;  %v13464_v60 = vpop.permute.xlu2 %2761  ;;  %v20067_v38 = vld [vmem:[#allocation148_spill] sm:$0xff] }
 0x973   : > { %20064 = vst [vmem:[#allocation128_spill] sm:$0xff] %v13464_v60  ;;  %v7264_v28 = vsel %vm4013_vm9, %v13468_v18, %v7263_v61  ;;  %v13483_v60 = vsel %vm3755_vm8, %v20067_v38, %v13351_v16 }
 0x974   : > { %v5977_v12 = vrot.slane %v5940_v50, 4  ;;  %v13471_v52 = vsel %vm4013_vm9, %v5940_v50, %v5979_v44  ;;  %20068 = vst [vmem:[#allocation116_spill] sm:$0xff] %v13483_v60  ;;  %v7272_v51 = vperm.slane %v7264_v28, %v12943_v4  ;;  %v7275_v62 = vrot.slane %v13483_v60, 4  ;;  %v20069_v50 = vld [vmem:[#allocation156_spill] sm:$0xff] }
 0x975   : > { %10651 = vset.pattern.permute.xlu1 %v11377_v1 }
 0x976   : > { %v13476_v24 = vsel %vm4013_vm9, %v5977_v12, %v5928_v56  ;;  %v20071_v12 = vld [vmem:[#allocation44_spill] sm:$0xff]  ;;  %v7323_v61 = vrot.slane %v7272_v51, 4 }
 0x978   : > { %2853 = vperm.xlu2 %10648, %v20047_v35  }
 0x97d   : > { %2878 = vperm.xlu1 %10651, %v20071_v12  }
 0x980   : > { %10650 = vset.pattern.permute.xlu2 %v11426_v11 }
 0x982   : > { %v2774_v44 = vpop.permute.xlu2 %2773 }
 0x983   : > { %v13490_v40 = vsel %vm3755_vm8, %v20069_v50, %v2774_v44 }
 0x984   : > { %20070 = vst [vmem:[#allocation102_spill] sm:$0xff] %v13490_v40  ;;  %v7276_v56 = vsel %vm4013_vm9, %v13490_v40, %v7275_v62 }
 0x985   : > { %v7284_v16 = vperm.slane %v7276_v56, %v12943_v4  ;;  %10653 = vset.pattern.permute.xlu1 %v11435_v13  ;;  %v13530_v56 = vpop.permute.xlu1 %2767 }
 0x986   : > { %20074 = vst [vmem:[#allocation91_spill] sm:$0xff] %v13530_v56  ;;  %v20077_v56 = vld [vmem:[#allocation222_spill] sm:$0xff] }
 0x987   : > { %v7321_v38 = vrot.slane %v7284_v16, 4  ;;  %v13497_v18 = vsel %vm4013_vm9, %v7284_v16, %v7323_v61  ;;  %v20075_v61 = vld [vmem:[#allocation164_spill] sm:$0xff]  ;;  %v13548_v6 = vsel %vm3755_vm8, %v20078_v22, %v20077_v56 }
 0x988   : > { %2865 = vperm.xlu2 %10650, %v20047_v35   ;;  %v20082_v56 = vld [vmem:[#allocation112_spill] sm:$0xff] }
 0x989   : > { %v13501_v28 = vsel %vm4013_vm9, %v7321_v38, %v7272_v51  ;;  %v20073_v51 = vld [vmem:[#allocation66_spill] sm:$0xff] }
 0x98d   : > { %2890 = vperm.xlu1 %10653, %v20071_v12  }
 0x98f   : > { %v2787_v38 = vpop.permute.xlu1 %2786 }
 0x990   : > { %10652 = vset.pattern.permute.xlu2 %v11409_v8 }
 0x992   : > { %v13517_v35 = vpop.permute.xlu2 %2792 }
 0x993   : > { %20072 = vst [vmem:[#allocation143_spill] sm:$0xff] %v13517_v35 }
 0x995   : > { %10655 = vset.pattern.permute.xlu1 %v11415_v9 }
 0x998   : > { %2884 = vperm.xlu2 %10652, %v20071_v12  }
 0x99d   : > { %2908 = vperm.xlu1 %10655, %v20071_v12  }
 0x9a0   : > { %10654 = vset.pattern.permute.xlu2 %v11381_v2 }
 0x9a2   : > { %v13521_v62 = vpop.permute.xlu2 %2804 }
 0x9a5   : > { %10657 = vset.pattern.permute.xlu1 %v11438_v14 }
 0x9a8   : > { %2896 = vperm.xlu2 %10654, %v20071_v12  }
 0x9ad   : > { %2920 = vperm.xlu1 %10657, %v20071_v12  }
 0x9b0   : > { %10656 = vset.pattern.permute.xlu2 %v11426_v11 }
 0x9b2   : > { %v13525_v44 = vpop.permute.xlu2 %2822 }
 0x9b5   : > { %10659 = vset.pattern.permute.xlu1 %v11435_v13 }
 0x9b8   : > { %2914 = vperm.xlu2 %10656, %v20071_v12  }
 0x9bd   : > { %2939 = vperm.xlu1 %10659, %v20073_v51  }
 0x9c0   : > { %10658 = vset.pattern.permute.xlu2 %v11377_v1 }
 0x9c2   : > { %v2836_v50 = vpop.permute.xlu2 %2835 }
 0x9c3   : > { %v13538_v16 = vsel %vm3755_vm8, %v20075_v61, %v2836_v50  ;;  %v13554_v50 = vsel %vm3755_vm8, %v20079_v39, %v2787_v38  ;;  %v13556_v61 = vpop.permute.xlu1 %2798 }
 0x9c4   : > { %v4611_v60 = vrot.slane %v13538_v16, 4  ;;  %20080 = vst [vmem:[#allocation156_spill] sm:$0xff] %v13556_v61  ;;  %v4640_v61 = vperm.slane %v13431_v33, %v13098_v43 }
 0x9c5   : > { %10661 = vset.pattern.permute.xlu1 %v11419_v10 }
 0x9c6   : > { %v4612_v59 = vsel %vm4013_vm9, %v13548_v6, %v4611_v60 }
 0x9c8   : > { %2927 = vperm.xlu2 %10658, %v20073_v51  }
 0x9cb   : > { %v13574_v55 = vpop.permute.xlu1 %2816 }
 0x9cc   : > { %20083 = vst [vmem:[#allocation44_spill] sm:$0xff] %v13574_v55 }
 0x9cd   : > { %2951 = vperm.xlu1 %10661, %v20073_v51  }
 0x9d0   : > { %10660 = vset.pattern.permute.xlu2 %v11381_v2 }
 0x9d2   : > { %v13533_v12 = vpop.permute.xlu2 %2853 }
 0x9d5   : > { %10663 = vset.pattern.permute.xlu1 %v11438_v14 }
 0x9d8   : > { %2945 = vperm.xlu2 %10660, %v20073_v51  }
 0x9dd   : > { %2969 = vperm.xlu1 %10663, %v20073_v51  }
 0x9e0   : > { %10662 = vset.pattern.permute.xlu2 %v11415_v9 }
 0x9e2   : > { %v13542_v40 = vpop.permute.xlu2 %2865 }
 0x9e3   : > { %20076 = vst [vmem:[#allocation148_spill] sm:$0xff] %v13542_v40  ;;  %v4599_v40 = vrot.slane %v13554_v50, 4 }
 0x9e5   : > { %10665 = vset.pattern.permute.xlu1 %v11409_v8 }
 0x9e8   : > { %2957 = vperm.xlu2 %10662, %v20073_v51   ;;  %v4620_v51 = vperm.slane %v4612_v59, %v12943_v4 }
 0x9ea   : > { %v4657_v39 = vrot.slane %v4620_v51, 4 }
 0x9ed   : > { %2982 = vperm.xlu1 %10665, %v20082_v56  }
 0x9f0   : > { %10664 = vset.pattern.permute.xlu2 %v11377_v1 }
 0x9f2   : > { %v2885_v25 = vpop.permute.xlu2 %2884 }
 0x9f3   : > { %v13563_v22 = vsel %vm3755_vm8, %v20081_v48, %v2885_v25 }
 0x9f4   : > { %v4600_v60 = vsel %vm4013_vm9, %v13563_v22, %v4599_v40  ;;  %v4679_v40 = vrot.slane %v4640_v61, 4 }
 0x9f5   : > { %v4608_v38 = vperm.slane %v4600_v60, %v12943_v4  ;;  %10667 = vset.pattern.permute.xlu1 %v11419_v10 }
 0x9f7   : > { %v4658_v59 = vsel %vm4013_vm9, %v4657_v39, %v4608_v38  ;;  %v4659_v17 = vrot.slane %v4608_v38, 4  ;;  %v4683_v39 = vrot.slane %v4644_v0, 4 }
 0x9f8   : > { %2976 = vperm.xlu2 %10664, %v20082_v56   ;;  %v4664_v48 = vperm.slane %v4658_v59, %v13098_v43 }
 0x9f9   : > { %v4660_v25 = vsel %vm4013_vm9, %v4620_v51, %v4659_v17  ;;  %v2830_v17 = vpop.permute.xlu1 %2829 }
 0x9fa   : > { %v4668_v60 = vperm.slane %v4660_v25, %v13098_v43  ;;  %v4677_v21 = vrot.slane %v4664_v48, 4  ;;  %v13581_v33 = vsel %vm4013_vm9, %v4664_v48, %v4679_v40  ;;  %v20091_v25 = vld [vmem:[#allocation161_spill] sm:$0xff] }
 0x9fb   : > { %20084 = vst [vmem:[#allocation66_spill] sm:$0xff] %v13581_v33  ;;  %v20113_v33 = vld [vmem:[#allocation179_spill] sm:$0xff] }
 0x9fc   : > { %v4681_v38 = vrot.slane %v4668_v60, 4  ;;  %v13585_v37 = vsel %vm4013_vm9, %v4677_v21, %v4640_v61  ;;  %v13588_v55 = vsel %vm4013_vm9, %v4668_v60, %v4683_v39  ;;  %v20093_v39 = vld [vmem:[#allocation320_spill] sm:$0xff] }
 0x9fd   : > { %20085 = vst [vmem:[#allocation164_spill] sm:$0xff] %v13585_v37  ;;  %3000 = vperm.xlu1 %10667, %v20082_v56  }
 0x9fe   : > { %20086 = vst [vmem:[#allocation222_spill] sm:$0xff] %v13588_v55  ;;  %v13591_v59 = vsel %vm4013_vm9, %v4681_v38, %v4644_v0  ;;  %v2781_v0 = vpop.permute.xlu0 %2780 }
 0x9ff   : > { %20087 = vst [vmem:[#allocation181_spill] sm:$0xff] %v13591_v59  ;;  %v13608_v40 = vsel %vm3755_vm8, %v20091_v25, %v2781_v0 }
 0xa00   : > { %10666 = vset.pattern.permute.xlu2 %v11435_v13 }
 0xa01   : > { %v13595_v51 = vpop.permute.xlu1 %2847 }
 0xa02   : > { %20088 = vst [vmem:[#allocation199_spill] sm:$0xff] %v13595_v51  ;;  %v13602_v21 = vpop.permute.xlu2 %2896 }
 0xa03   : > { %20090 = vst [vmem:[#allocation112_spill] sm:$0xff] %v13602_v21  ;;  %v20094_v21 = vld [vmem:[#allocation167_spill] sm:$0xff] }
 0xa04   : > { %v13622_v55 = vsel %vm3755_vm8, %v20094_v21, %v2830_v17  ;;  %v4196_v17 = vperm.slane %v13386_v29, %v13098_v43 }
 0xa05   : > { %10669 = vset.pattern.permute.xlu1 %v11426_v11  ;;  %v4163_v25 = vrot.slane %v13622_v55, 4 }
 0xa08   : > { %2988 = vperm.xlu2 %10666, %v20082_v56  }
 0xa09   : > { %v13599_v48 = vpop.permute.xlu1 %2859 }
 0xa0a   : > { %20089 = vst [vmem:[#allocation170_spill] sm:$0xff] %v13599_v48  ;;  %v4151_v48 = vrot.slane %v13608_v40, 4 }
 0xa0d   : > { %3012 = vperm.xlu1 %10669, %v20082_v56  }
 0xa10   : > { %10668 = vset.pattern.permute.xlu2 %v11415_v9 }
 0xa11   : > { %v2879_v61 = vpop.permute.xlu1 %2878 }
 0xa12   : > { %v13610_v60 = vpop.permute.xlu2 %2914  ;;  %v13614_v38 = vsel %vm3755_vm8, %v20093_v39, %v2879_v61  ;;  %v20095_v61 = vld [vmem:[#allocation176_spill] sm:$0xff] }
 0xa13   : > { %20092 = vst [vmem:[#allocation161_spill] sm:$0xff] %v13610_v60  ;;  %v4152_v51 = vsel %vm4013_vm9, %v13614_v38, %v4151_v48 }
 0xa14   : > { %v4160_v0 = vperm.slane %v4152_v51, %v12943_v4  ;;  %v4192_v51 = vperm.slane %v13390_v42, %v13098_v43 }
 0xa15   : > { %10671 = vset.pattern.permute.xlu1 %v11409_v8 }
 0xa16   : > { %v4211_v48 = vrot.slane %v4160_v0, 4  ;;  %v4231_v7 = vrot.slane %v4192_v51, 4 }
 0xa18   : > { %3006 = vperm.xlu2 %10668, %v20082_v56  }
 0xa19   : > { %v13637_v19 = vpop.permute.xlu1 %2890 }
 0xa1a   : > { %20097 = vst [vmem:[#allocation320_spill] sm:$0xff] %v13637_v19 }
 0xa1d   : > { %3031 = vperm.xlu1 %10671, %v20096_v54  }
 0xa20   : > { %10670 = vset.pattern.permute.xlu2 %v11438_v14 }
 0xa22   : > { %v2928_v60 = vpop.permute.xlu2 %2927 }
 0xa23   : > { %v13629_v39 = vsel %vm3755_vm8, %v20095_v61, %v2928_v60  ;;  %v4235_v61 = vrot.slane %v4196_v17, 4 }
 0xa24   : > { %v4164_v35 = vsel %vm4013_vm9, %v13629_v39, %v4163_v25 }
 0xa25   : > { %v4172_v21 = vperm.slane %v4164_v35, %v12943_v4  ;;  %10673 = vset.pattern.permute.xlu1 %v11381_v2 }
 0xa27   : > { %v4209_v34 = vrot.slane %v4172_v21, 4  ;;  %v4212_v60 = vsel %vm4013_vm9, %v4172_v21, %v4211_v48  ;;  %v13656_v21 = vpop.permute.xlu1 %2908 }
 0xa28   : > { %3018 = vperm.xlu2 %10670, %v20082_v56   ;;  %v4220_v25 = vperm.slane %v4212_v60, %v13098_v43  ;;  %20100 = vst [vmem:[#allocation34_spill] sm:$0xff] %v13656_v21  ;;  %v20105_v60 = vld [vmem:[#allocation177_spill] sm:$0xff] }
 0xa29   : > { %v4210_v20 = vsel %vm4013_vm9, %v4209_v34, %v4160_v0  ;;  %v20101_v0 = vld [vmem:[#allocation160_spill] sm:$0xff] }
 0xa2a   : > { %v4216_v29 = vperm.slane %v4210_v20, %v13098_v43  ;;  %v13647_v35 = vsel %vm4013_vm9, %v4220_v25, %v4235_v61  ;;  %v4233_v19 = vrot.slane %v4220_v25, 4 }
 0xa2b   : > { %20098 = vst [vmem:[#allocation167_spill] sm:$0xff] %v13647_v35 }
 0xa2c   : > { %v13651_v42 = vsel %vm4013_vm9, %v4216_v29, %v4231_v7  ;;  %v4229_v48 = vrot.slane %v4216_v29, 4  ;;  %v13654_v56 = vsel %vm4013_vm9, %v4233_v19, %v4196_v17  ;;  %v13667_v7 = vsel %vm3755_vm8, %v20101_v0, %v13521_v62  ;;  %v20107_v29 = vld [vmem:[#allocation166_spill] sm:$0xff] }
 0xa2d   : > { %20099 = vst [vmem:[#allocation176_spill] sm:$0xff] %v13654_v56  ;;  %3043 = vperm.xlu1 %10673, %v20096_v54   ;;  %v5943_v19 = vrot.slane %v13667_v7, 4  ;;  %v13684_v62 = vsel %vm3755_vm8, %v20107_v29, %v13533_v12  ;;  %v20179_v56 = vld [vmem:[#allocation52_spill] sm:$0xff] }
 0xa2e   : > { %v13659_v34 = vsel %vm4013_vm9, %v4229_v48, %v4192_v51  ;;  %20102 = vst [vmem:[#allocation160_spill] sm:$0xff] %v13667_v7  ;;  %v20104_v51 = vld [vmem:[#allocation131_spill] sm:$0xff]  ;;  %v5955_v0 = vrot.slane %v13684_v62, 4 }
 0xa2f   : > { %v2921_v20 = vpop.permute.xlu1 %2920  ;;  %v13677_v25 = vsel %vm3755_vm8, %v20105_v60, %v20104_v51  ;;  %20108 = vst [vmem:[#allocation177_spill] sm:$0xff] %v13684_v62  ;;  %v20109_v7 = vld [vmem:[#allocation183_spill] sm:$0xff]  ;;  %v5988_v60 = vperm.slane %v13471_v52, %v13098_v43 }
 0xa30   : > { %10672 = vset.pattern.permute.xlu2 %v11435_v13  ;;  %20106 = vst [vmem:[#allocation131_spill] sm:$0xff] %v13677_v25  ;;  %v5944_v61 = vsel %vm4013_vm9, %v13677_v25, %v5943_v19  ;;  %v5984_v25 = vperm.slane %v13476_v24, %v13098_v43 }
 0xa31   : > { %v5952_v48 = vperm.slane %v5944_v61, %v12943_v4  ;;  %v6027_v62 = vrot.slane %v5988_v60, 4 }
 0xa32   : > { %v6023_v24 = vrot.slane %v5984_v25, 4 }
 0xa33   : > { %v6003_v19 = vrot.slane %v5952_v48, 4 }
 0xa35   : > { %10676 = vset.pattern.permute.xlu1 %v11426_v11 }
 0xa37   : > { %v13671_v17 = vpop.permute.xlu1 %2939 }
 0xa38   : > { %3037 = vperm.xlu2 %10672, %v20096_v54   ;;  %20103 = vst [vmem:[#allocation385_spill] sm:$0xff] %v13671_v17 }
 0xa3d   : > { %3061 = vperm.xlu1 %10676, %v20096_v54  }
 0xa3f   : > { %v2952_v21 = vpop.permute.xlu1 %2951 }
 0xa40   : > { %10674 = vset.pattern.permute.xlu2 %v11419_v10  ;;  %v13691_v17 = vsel %vm3755_vm8, %v20109_v7, %v2952_v21  ;;  %v20111_v7 = vld [vmem:[#allocation162_spill] sm:$0xff] }
 0xa41   : > { %20110 = vst [vmem:[#allocation166_spill] sm:$0xff] %v13691_v17  ;;  %v5956_v51 = vsel %vm4013_vm9, %v13691_v17, %v5955_v0  ;;  %v13707_v0 = vsel %vm3755_vm8, %v20111_v7, %v13525_v44 }
 0xa42   : > { %v5964_v12 = vperm.slane %v5956_v51, %v12943_v4  ;;  %20112 = vst [vmem:[#allocation183_spill] sm:$0xff] %v13707_v0 }
 0xa44   : > { %v6001_v29 = vrot.slane %v5964_v12, 4  ;;  %v6004_v61 = vsel %vm4013_vm9, %v5964_v12, %v6003_v19  ;;  %v13713_v19 = vsel %vm3755_vm8, %v20113_v33, %v2921_v20  ;;  %v20118_v33 = vld [vmem:[#allocation104_spill] sm:$0xff]  ;;  %v20119_v20 = vld [vmem:[#allocation173_spill] sm:$0xff] }
 0xa45   : > { %10678 = vset.pattern.permute.xlu1 %v11377_v1  ;;  %v6012_v21 = vperm.slane %v6004_v61, %v13098_v43  ;;  %20114 = vst [vmem:[#allocation162_spill] sm:$0xff] %v13713_v19  ;;  %v7287_v61 = vrot.slane %v13707_v0, 4 }
 0xa46   : > { %v6002_v51 = vsel %vm4013_vm9, %v6001_v29, %v5952_v48 }
 0xa47   : > { %v6025_v17 = vrot.slane %v6012_v21, 4  ;;  %v6008_v52 = vperm.slane %v6002_v51, %v13098_v43  ;;  %v13716_v12 = vsel %vm4013_vm9, %v6012_v21, %v6027_v62  ;;  %v7288_v7 = vsel %vm4013_vm9, %v13713_v19, %v7287_v61  ;;  %v20122_v21 = vld [vmem:[#allocation35_spill] sm:$0xff] }
 0xa48   : > { %3049 = vperm.xlu2 %10674, %v20096_v54   ;;  %20115 = vst [vmem:[#allocation179_spill] sm:$0xff] %v13716_v12  ;;  %v13731_v51 = vsel %vm3755_vm8, %v20119_v20, %v20118_v33  ;;  %v7328_v19 = vperm.slane %v13501_v28, %v13098_v43 }
 0xa49   : > { %v13721_v44 = vsel %vm4013_vm9, %v6025_v17, %v5988_v60  ;;  %v6021_v48 = vrot.slane %v6008_v52, 4  ;;  %v13724_v29 = vsel %vm4013_vm9, %v6008_v52, %v6023_v24  ;;  %20120 = vst [vmem:[#allocation104_spill] sm:$0xff] %v13731_v51  ;;  %v7296_v17 = vperm.slane %v7288_v7, %v12943_v4  ;;  %v20123_v52 = vld [vmem:[#allocation94_spill] sm:$0xff] }
 0xa4a   : > { %20116 = vst [vmem:[#allocation386_spill] sm:$0xff] %v13721_v44  ;;  %v7299_v60 = vrot.slane %v13731_v51, 4 }
 0xa4b   : > { %20117 = vst [vmem:[#allocation387_spill] sm:$0xff] %v13724_v29  ;;  %v13734_v62 = vsel %vm4013_vm9, %v6021_v48, %v5984_v25  ;;  %v7332_v25 = vperm.slane %v13497_v18, %v13098_v43  ;;  %v7347_v48 = vrot.slane %v7296_v17, 4  ;;  %v20144_v29 = vld [vmem:[#allocation83_spill] sm:$0xff] }
 0xa4c   : > { %20121 = vst [vmem:[#allocation173_spill] sm:$0xff] %v13734_v62  ;;  %v20145_v62 = vld [vmem:[#allocation203_spill] sm:$0xff] }
 0xa4d   : > { %3074 = vperm.xlu1 %10678, %v20122_v21   ;;  %v13843_v44 = vsel %vm3755_vm8, %v20145_v62, %v20144_v29 }
 0xa4e   : > { %20146 = vst [vmem:[#allocation83_spill] sm:$0xff] %v13843_v44 }
 0xa4f   : > { %v2970_v0 = vpop.permute.xlu1 %2969 }
 0xa50   : > { %10677 = vset.pattern.permute.xlu2 %v11438_v14  ;;  %v13741_v24 = vsel %vm3755_vm8, %v20123_v52, %v2970_v0  ;;  %v7371_v52 = vrot.slane %v7332_v25, 4 }
 0xa51   : > { %20124 = vst [vmem:[#allocation35_spill] sm:$0xff] %v13741_v24  ;;  %v7300_v61 = vsel %vm4013_vm9, %v13741_v24, %v7299_v60 }
 0xa52   : > { %v7308_v33 = vperm.slane %v7300_v61, %v12943_v4  ;;  %v7367_v61 = vrot.slane %v7328_v19, 4 }
 0xa54   : > { %v7345_v20 = vrot.slane %v7308_v33, 4  ;;  %v7348_v7 = vsel %vm4013_vm9, %v7308_v33, %v7347_v48 }
 0xa55   : > { %10681 = vset.pattern.permute.xlu1 %v11381_v2  ;;  %v7356_v0 = vperm.slane %v7348_v7, %v13098_v43 }
 0xa56   : > { %v7346_v60 = vsel %vm4013_vm9, %v7345_v20, %v7296_v17  ;;  %v20132_v17 = vld [vmem:[#allocation68_spill] sm:$0xff] }
 0xa57   : > { %v7352_v51 = vperm.slane %v7346_v60, %v13098_v43  ;;  %v13757_v18 = vsel %vm4013_vm9, %v7356_v0, %v7371_v52 }
 0xa58   : > { %3067 = vperm.xlu2 %10677, %v20096_v54   ;;  %v7369_v54 = vrot.slane %v7356_v0, 4  ;;  %20125 = vst [vmem:[#allocation94_spill] sm:$0xff] %v13757_v18  ;;  %v13804_v0 = vpop.permute.xlu2 %2945 }
 0xa59   : > { %v7365_v28 = vrot.slane %v7352_v51, 4  ;;  %v13764_v33 = vsel %vm4013_vm9, %v7352_v51, %v7367_v61  ;;  %v20129_v51 = vld [vmem:[#allocation46_spill] sm:$0xff]  ;;  %20135 = vst [vmem:[#allocation393_spill] sm:$0xff] %v13804_v0 }
 0xa5a   : > { %v13761_v48 = vsel %vm4013_vm9, %v7369_v54, %v7332_v25  ;;  %20127 = vst [vmem:[#allocation389_spill] sm:$0xff] %v13764_v33 }
 0xa5b   : > { %20126 = vst [vmem:[#allocation388_spill] sm:$0xff] %v13761_v48  ;;  %v13767_v7 = vsel %vm4013_vm9, %v7365_v28, %v7328_v19 }
 0xa5c   : > { %20128 = vst [vmem:[#allocation390_spill] sm:$0xff] %v13767_v7  ;;  %v20140_v7 = vld [vmem:[#allocation115_spill] sm:$0xff] }
 0xa5d   : > { %3092 = vperm.xlu1 %10681, %v20122_v21  }
 0xa5f   : > { %v13790_v19 = vpop.permute.xlu1 %2982 }
 0xa60   : > { %10679 = vset.pattern.permute.xlu2 %v11409_v8  ;;  %20130 = vst [vmem:[#allocation46_spill] sm:$0xff] %v13790_v19  ;;  %v13810_v60 = vpop.permute.xlu2 %2957  ;;  %v20177_v19 = vld [vmem:[#allocation245_spill] sm:$0xff] }
 0xa61   : > { %20137 = vst [vmem:[#allocation395_spill] sm:$0xff] %v13810_v60 }
 0xa65   : > { %10683 = vset.pattern.permute.xlu1 %v11415_v9 }
 0xa68   : > { %3080 = vperm.xlu2 %10679, %v20122_v21   ;;  %v13816_v61 = vpop.permute.xlu2 %2976 }
 0xa6d   : > { %3104 = vperm.xlu1 %10683, %v20122_v21  }
 0xa70   : > { %10682 = vset.pattern.permute.xlu2 %v11419_v10 }
 0xa75   : > { %10685 = vset.pattern.permute.xlu1 %v11377_v1 }
 0xa78   : > { %3098 = vperm.xlu2 %10682, %v20122_v21  }
 0xa7d   : > { %3123 = vperm.xlu1 %10685, %v20129_v51  }
 0xa80   : > { %10684 = vset.pattern.permute.xlu2 %v11426_v11 }
 0xa85   : > { %10687 = vset.pattern.permute.xlu1 %v11435_v13 }
 0xa88   : > { %3110 = vperm.xlu2 %10684, %v20122_v21   ;;  %v13794_v21 = vpop.permute.xlu1 %3000 }
 0xa89   : > { %20131 = vst [vmem:[#allocation391_spill] sm:$0xff] %v13794_v21  ;;  %v20147_v21 = vld [vmem:[#allocation190_spill] sm:$0xff] }
 0xa8d   : > { %3135 = vperm.xlu1 %10687, %v20129_v51  }
 0xa90   : > { %10686 = vset.pattern.permute.xlu2 %v11409_v8  ;;  %v13798_v25 = vpop.permute.xlu1 %3012 }
 0xa91   : > { %20133 = vst [vmem:[#allocation68_spill] sm:$0xff] %v13798_v25  ;;  %v20142_v25 = vld [vmem:[#allocation184_spill] sm:$0xff] }
 0xa95   : > { %10689 = vset.pattern.permute.xlu1 %v11415_v9 }
 0xa98   : > { %3129 = vperm.xlu2 %10686, %v20129_v51   ;;  %v13802_v20 = vpop.permute.xlu1 %3031 }
 0xa99   : > { %20134 = vst [vmem:[#allocation392_spill] sm:$0xff] %v13802_v20  ;;  %v13970_v20 = vsel %vm3755_vm8, %v20177_v19, %v20176_v5 }
 0xa9a   : > { %20178 = vst [vmem:[#allocation87_spill] sm:$0xff] %v13970_v20 }
 0xa9d   : > { %3153 = vperm.xlu1 %10689, %v20129_v51  }
 0xaa0   : > { %10688 = vset.pattern.permute.xlu2 %v11381_v2  ;;  %v13808_v52 = vpop.permute.xlu1 %3043 }
 0xaa1   : > { %20136 = vst [vmem:[#allocation394_spill] sm:$0xff] %v13808_v52  ;;  %v20149_v52 = vld [vmem:[#allocation211_spill] sm:$0xff] }
 0xaa5   : > { %10691 = vset.pattern.permute.xlu1 %v11438_v14 }
 0xaa8   : > { %3141 = vperm.xlu2 %10688, %v20129_v51  }
 0xaad   : > { %3165 = vperm.xlu1 %10691, %v20129_v51  }
 0xaaf   : > { %v13814_v54 = vpop.permute.xlu1 %3061 }
 0xab0   : > { %10690 = vset.pattern.permute.xlu2 %v11426_v11  ;;  %20138 = vst [vmem:[#allocation396_spill] sm:$0xff] %v13814_v54 }
 0xab5   : > { %10693 = vset.pattern.permute.xlu1 %v11435_v13 }
 0xab8   : > { %3159 = vperm.xlu2 %10690, %v20129_v51   ;;  %v2989_v51 = vpop.permute.xlu2 %2988 }
 0xab9   : > { %v13833_v54 = vsel %vm3755_vm8, %v20142_v25, %v2989_v51 }
 0xaba   : > { %20143 = vst [vmem:[#allocation184_spill] sm:$0xff] %v13833_v54 }
 0xabd   : > { %3184 = vperm.xlu1 %10693, %v20132_v17  }
 0xabf   : > { %v13820_v28 = vpop.permute.xlu1 %3074 }
 0xac0   : > { %10692 = vset.pattern.permute.xlu2 %v11377_v1  ;;  %v3007_v33 = vpop.permute.xlu2 %3006 }
 0xac5   : > { %10695 = vset.pattern.permute.xlu1 %v11419_v10 }
 0xac8   : > { %3172 = vperm.xlu2 %10692, %v20132_v17   ;;  %v13828_v24 = vpop.permute.xlu2 %3018 }
 0xac9   : > { %20141 = vst [vmem:[#allocation115_spill] sm:$0xff] %v13828_v24 }
 0xacd   : > { %3196 = vperm.xlu1 %10695, %v20132_v17  }
 0xacf   : > { %v13824_v18 = vpop.permute.xlu1 %3092 }
 0xad0   : > { %10694 = vset.pattern.permute.xlu2 %v11381_v2  ;;  %20139 = vst [vmem:[#allocation397_spill] sm:$0xff] %v13824_v18  ;;  %v3038_v60 = vpop.permute.xlu2 %3037 }
 0xad1   : > { %v13849_v25 = vsel %vm3755_vm8, %v20147_v21, %v3038_v60 }
 0xad2   : > { %20148 = vst [vmem:[#allocation203_spill] sm:$0xff] %v13849_v25  ;;  %v5147_v0 = vrot.slane %v13849_v25, 4 }
 0xad5   : > { %10697 = vset.pattern.permute.xlu1 %v11438_v14 }
 0xad8   : > { %3190 = vperm.xlu2 %10694, %v20132_v17  }
 0xadd   : > { %3214 = vperm.xlu1 %10697, %v20132_v17  }
 0xadf   : > { %v3105_v48 = vpop.permute.xlu1 %3104 }
 0xae0   : > { %10696 = vset.pattern.permute.xlu2 %v11415_v9 }
 0xae5   : > { %10699 = vset.pattern.permute.xlu1 %v11409_v8 }
 0xae8   : > { %3202 = vperm.xlu2 %10696, %v20132_v17   ;;  %v5135_v17 = vrot.slane %v13833_v54, 4 }
 0xaea   : > { %v5136_v24 = vsel %vm4013_vm9, %v13843_v44, %v5135_v17 }
 0xaeb   : > { %v5144_v51 = vperm.slane %v5136_v24, %v12943_v4  ;;  %v20151_v24 = vld [vmem:[#allocation186_spill] sm:$0xff] }
 0xaec   : > { %v13868_v25 = vsel %vm3755_vm8, %v20151_v24, %v3007_v33 }
 0xaed   : > { %3227 = vperm.xlu1 %10699, %v20140_v7   ;;  %v5195_v62 = vrot.slane %v5144_v51, 4  ;;  %20152 = vst [vmem:[#allocation211_spill] sm:$0xff] %v13868_v25 }
 0xaef   : > { %v13837_v12 = vpop.permute.xlu1 %3123 }
 0xaf0   : > { %10698 = vset.pattern.permute.xlu2 %v11377_v1 }
 0xaf5   : > { %10701 = vset.pattern.permute.xlu1 %v11419_v10 }
 0xaf8   : > { %3221 = vperm.xlu2 %10698, %v20140_v7  }
 0xafd   : > { %3245 = vperm.xlu1 %10701, %v20140_v7  }
 0xaff   : > { %v3136_v18 = vpop.permute.xlu1 %3135 }
 0xb00   : > { %10700 = vset.pattern.permute.xlu2 %v11435_v13  ;;  %v13856_v54 = vsel %vm3755_vm8, %v20149_v52, %v3136_v18  ;;  %v20153_v52 = vld [vmem:[#allocation206_spill] sm:$0xff] }
 0xb01   : > { %20150 = vst [vmem:[#allocation190_spill] sm:$0xff] %v13856_v54  ;;  %v5148_v29 = vsel %vm4013_vm9, %v13856_v54, %v5147_v0  ;;  %v13875_v0 = vsel %vm3755_vm8, %v20153_v52, %v3105_v48  ;;  %v6479_v54 = vrot.slane %v13868_v25, 4 }
 0xb02   : > { %v5156_v21 = vperm.slane %v5148_v29, %v12943_v4  ;;  %20154 = vst [vmem:[#allocation186_spill] sm:$0xff] %v13875_v0 }
 0xb03   : > { %v6480_v29 = vsel %vm4013_vm9, %v13875_v0, %v6479_v54 }
 0xb04   : > { %v5193_v60 = vrot.slane %v5156_v21, 4  ;;  %v13863_v17 = vsel %vm4013_vm9, %v5156_v21, %v5195_v62  ;;  %v20155_v62 = vld [vmem:[#allocation81_spill] sm:$0xff]  ;;  %v6488_v33 = vperm.slane %v6480_v29, %v12943_v4 }
 0xb05   : > { %10703 = vset.pattern.permute.xlu1 %v11426_v11  ;;  %v20156_v21 = vld [vmem:[#allocation197_spill] sm:$0xff] }
 0xb06   : > { %v13871_v18 = vsel %vm4013_vm9, %v5193_v60, %v5144_v51  ;;  %v13884_v37 = vsel %vm3755_vm8, %v20156_v21, %v20155_v62  ;;  %v20158_v60 = vld [vmem:[#allocation63_spill] sm:$0xff]  ;;  %v6539_v54 = vrot.slane %v6488_v33, 4  ;;  %v13897_v21 = vpop.permute.xlu2 %3049 }
 0xb07   : > { %20157 = vst [vmem:[#allocation206_spill] sm:$0xff] %v13884_v37  ;;  %v6491_v51 = vrot.slane %v13884_v37, 4 }
 0xb08   : > { %3233 = vperm.xlu2 %10700, %v20140_v7   ;;  %20160 = vst [vmem:[#allocation197_spill] sm:$0xff] %v13897_v21 }
 0xb0d   : > { %3257 = vperm.xlu1 %10703, %v20140_v7  }
 0xb0f   : > { %v3154_v48 = vpop.permute.xlu1 %3153 }
 0xb10   : > { %10702 = vset.pattern.permute.xlu2 %v11415_v9  ;;  %v13891_v24 = vsel %vm3755_vm8, %v20158_v60, %v3154_v48  ;;  %v13907_v48 = vpop.permute.xlu2 %3067 }
 0xb11   : > { %20159 = vst [vmem:[#allocation81_spill] sm:$0xff] %v13891_v24  ;;  %v6492_v52 = vsel %vm4013_vm9, %v13891_v24, %v6491_v51  ;;  %v20162_v51 = vld [vmem:[#allocation36_spill] sm:$0xff] }
 0xb12   : > { %v6500_v62 = vperm.slane %v6492_v52, %v12943_v4  ;;  %20161 = vst [vmem:[#allocation63_spill] sm:$0xff] %v13907_v48 }
 0xb14   : > { %v6537_v25 = vrot.slane %v6500_v62, 4  ;;  %v13900_v29 = vsel %vm4013_vm9, %v6500_v62, %v6539_v54  ;;  %v20169_v62 = vld [vmem:[#allocation37_spill] sm:$0xff] }
 0xb15   : > { %10705 = vset.pattern.permute.xlu1 %v11409_v8 }
 0xb16   : > { %v13904_v0 = vsel %vm4013_vm9, %v6537_v25, %v6488_v33 }
 0xb18   : > { %3251 = vperm.xlu2 %10702, %v20140_v7   ;;  %v13911_v60 = vpop.permute.xlu2 %3080 }
 0xb19   : > { %20163 = vst [vmem:[#allocation36_spill] sm:$0xff] %v13911_v60 }
 0xb1d   : > { %3276 = vperm.xlu1 %10705, %v20162_v51  }
 0xb1f   : > { %v13955_v21 = vpop.permute.xlu1 %3165 }
 0xb20   : > { %10704 = vset.pattern.permute.xlu2 %v11438_v14  ;;  %v13915_v52 = vpop.permute.xlu2 %3098  ;;  %20171 = vst [vmem:[#allocation403_spill] sm:$0xff] %v13955_v21 }
 0xb21   : > { %20164 = vst [vmem:[#allocation398_spill] sm:$0xff] %v13915_v52  ;;  %v20172_v52 = vld [vmem:[#allocation48_spill] sm:$0xff] }
 0xb25   : > { %10707 = vset.pattern.permute.xlu1 %v11381_v2 }
 0xb28   : > { %3263 = vperm.xlu2 %10704, %v20140_v7   ;;  %v13919_v25 = vpop.permute.xlu2 %3110 }
 0xb29   : > { %20165 = vst [vmem:[#allocation399_spill] sm:$0xff] %v13919_v25 }
 0xb2d   : > { %3288 = vperm.xlu1 %10707, %v20162_v51  }
 0xb2f   : > { %v3185_v59 = vpop.permute.xlu1 %3184 }
 0xb30   : > { %10706 = vset.pattern.permute.xlu2 %v11435_v13  ;;  %v13923_v33 = vpop.permute.xlu2 %3129 }
 0xb31   : > { %20166 = vst [vmem:[#allocation400_spill] sm:$0xff] %v13923_v33 }
 0xb35   : > { %10710 = vset.pattern.permute.xlu1 %v11426_v11 }
 0xb38   : > { %3282 = vperm.xlu2 %10706, %v20162_v51   ;;  %v13927_v7 = vpop.permute.xlu2 %3141 }
 0xb39   : > { %20167 = vst [vmem:[#allocation401_spill] sm:$0xff] %v13927_v7 }
 0xb3d   : > { %3306 = vperm.xlu1 %10710, %v20162_v51  }
 0xb3f   : > { %v13991_v19 = vpop.permute.xlu1 %3196 }
 0xb40   : > { %10708 = vset.pattern.permute.xlu2 %v11419_v10  ;;  %v13931_v54 = vpop.permute.xlu2 %3159 }
 0xb41   : > { %20168 = vst [vmem:[#allocation402_spill] sm:$0xff] %v13931_v54 }
 0xb45   : > { %10712 = vset.pattern.permute.xlu1 %v11377_v1 }
 0xb48   : > { %3294 = vperm.xlu2 %10708, %v20162_v51   ;;  %v13935_v48 = vpop.permute.xlu2 %3172 }
 0xb4d   : > { %3319 = vperm.xlu1 %10712, %v20169_v62  }
 0xb50   : > { %10711 = vset.pattern.permute.xlu2 %v11438_v14  ;;  %v13939_v25 = vpop.permute.xlu2 %3190 }
 0xb51   : > { %20170 = vst [vmem:[#allocation37_spill] sm:$0xff] %v13939_v25  ;;  %v20173_v25 = vld [vmem:[#allocation223_spill] sm:$0xff] }
 0xb55   : > { %10715 = vset.pattern.permute.xlu1 %v11381_v2 }
 0xb58   : > { %3312 = vperm.xlu2 %10711, %v20162_v51   ;;  %v13943_v37 = vpop.permute.xlu2 %3202 }
 0xb5d   : > { %3337 = vperm.xlu1 %10715, %v20169_v62  }
 0xb60   : > { %10713 = vset.pattern.permute.xlu2 %v11409_v8  ;;  %v13947_v54 = vpop.permute.xlu2 %3221 }
 0xb65   : > { %10717 = vset.pattern.permute.xlu1 %v11415_v9 }
 0xb68   : > { %3325 = vperm.xlu2 %10713, %v20169_v62   ;;  %v3234_v51 = vpop.permute.xlu2 %3233 }
 0xb69   : > { %v13960_v7 = vsel %vm3755_vm8, %v20173_v25, %v3234_v51  ;;  %v13976_v25 = vsel %vm3755_vm8, %v20179_v56, %v3185_v59  ;;  %v5200_v56 = vperm.slane %v13871_v18, %v13098_v43 }
 0xb6a   : > { %20174 = vst [vmem:[#allocation48_spill] sm:$0xff] %v13960_v7  ;;  %v5171_v57 = vrot.slane %v13960_v7, 4  ;;  %v5159_v51 = vrot.slane %v13976_v25, 4  ;;  %v20181_v7 = vld [vmem:[#allocation231_spill] sm:$0xff] }
 0xb6b   : > { %20180 = vst [vmem:[#allocation245_spill] sm:$0xff] %v13976_v25 }
 0xb6c   : > { %v5172_v21 = vsel %vm4013_vm9, %v13970_v20, %v5171_v57  ;;  %20183 = vst [vmem:[#allocation231_spill] sm:$0xff] %v13991_v19 }
 0xb6d   : > { %3349 = vperm.xlu1 %10717, %v20169_v62  }
 0xb70   : > { %10716 = vset.pattern.permute.xlu2 %v11419_v10 }
 0xb72   : > { %v13953_v24 = vpop.permute.xlu2 %3251 }
 0xb75   : > { %10719 = vset.pattern.permute.xlu1 %v11377_v1 }
 0xb78   : > { %3343 = vperm.xlu2 %10716, %v20169_v62  }
 0xb7d   : > { %3368 = vperm.xlu1 %10719, %v20172_v52  }
 0xb80   : > { %10718 = vset.pattern.permute.xlu2 %v11426_v11 }
 0xb82   : > { %v13964_v44 = vpop.permute.xlu2 %3263 }
 0xb83   : > { %20175 = vst [vmem:[#allocation223_spill] sm:$0xff] %v13964_v44 }
 0xb85   : > { %10721 = vset.pattern.permute.xlu1 %v11435_v13 }
 0xb88   : > { %3355 = vperm.xlu2 %10718, %v20169_v62   ;;  %v5180_v62 = vperm.slane %v5172_v21, %v12943_v4 }
 0xb8a   : > { %v5217_v57 = vrot.slane %v5180_v62, 4 }
 0xb8d   : > { %3380 = vperm.xlu1 %10721, %v20172_v52  }
 0xb90   : > { %10720 = vset.pattern.permute.xlu2 %v11409_v8 }
 0xb92   : > { %v3283_v44 = vpop.permute.xlu2 %3282 }
 0xb93   : > { %v13983_v35 = vsel %vm3755_vm8, %v20181_v7, %v3283_v44  ;;  %v5204_v44 = vperm.slane %v13863_v17, %v13098_v43 }
 0xb94   : > { %20182 = vst [vmem:[#allocation52_spill] sm:$0xff] %v13983_v35  ;;  %v5160_v5 = vsel %vm4013_vm9, %v13983_v35, %v5159_v51  ;;  %v5239_v35 = vrot.slane %v5200_v56, 4 }
 0xb95   : > { %v5168_v59 = vperm.slane %v5160_v5, %v12943_v4  ;;  %v5243_v19 = vrot.slane %v5204_v44, 4  ;;  %10723 = vset.pattern.permute.xlu1 %v11415_v9 }
 0xb97   : > { %v5218_v21 = vsel %vm4013_vm9, %v5217_v57, %v5168_v59  ;;  %v5219_v25 = vrot.slane %v5168_v59, 4 }
 0xb98   : > { %3374 = vperm.xlu2 %10720, %v20172_v52   ;;  %v5224_v7 = vperm.slane %v5218_v21, %v13098_v43  ;;  %v14010_v21 = vpop.permute.xlu1 %3214 }
 0xb99   : > { %v5220_v51 = vsel %vm4013_vm9, %v5180_v62, %v5219_v25  ;;  %20187 = vst [vmem:[#allocation407_spill] sm:$0xff] %v14010_v21 }
 0xb9a   : > { %v5228_v5 = vperm.slane %v5220_v51, %v13098_v43  ;;  %v5237_v20 = vrot.slane %v5224_v7, 4  ;;  %v14001_v18 = vsel %vm4013_vm9, %v5224_v7, %v5239_v35  ;;  %v20195_v51 = vld [vmem:[#allocation218_spill] sm:$0xff] }
 0xb9b   : > { %20184 = vst [vmem:[#allocation404_spill] sm:$0xff] %v14001_v18  ;;  %v20203_v18 = vld [vmem:[#allocation248_spill] sm:$0xff] }
 0xb9c   : > { %v5241_v57 = vrot.slane %v5228_v5, 4  ;;  %v14005_v59 = vsel %vm4013_vm9, %v5237_v20, %v5200_v56  ;;  %v14008_v17 = vsel %vm4013_vm9, %v5228_v5, %v5243_v19  ;;  %v20192_v19 = vld [vmem:[#allocation71_spill] sm:$0xff]  ;;  %v14047_v5 = vsel %vm3755_vm8, %v20195_v51, %v13943_v37 }
 0xb9d   : > { %20185 = vst [vmem:[#allocation405_spill] sm:$0xff] %v14005_v59  ;;  %3398 = vperm.xlu1 %10723, %v20172_v52  }
 0xb9e   : > { %20186 = vst [vmem:[#allocation406_spill] sm:$0xff] %v14008_v17  ;;  %v14013_v25 = vsel %vm4013_vm9, %v5241_v57, %v5204_v44  ;;  %v6503_v57 = vrot.slane %v14047_v5, 4 }
 0xb9f   : > { %20188 = vst [vmem:[#allocation408_spill] sm:$0xff] %v14013_v25  ;;  %v20228_v25 = vld [vmem:[#allocation311_spill] sm:$0xff] }
 0xba0   : > { %10722 = vset.pattern.permute.xlu2 %v11381_v2  ;;  %v14017_v35 = vpop.permute.xlu1 %3227  ;;  %20196 = vst [vmem:[#allocation218_spill] sm:$0xff] %v14047_v5 }
 0xba1   : > { %20189 = vst [vmem:[#allocation409_spill] sm:$0xff] %v14017_v35 }
 0xba5   : > { %10725 = vset.pattern.permute.xlu1 %v11438_v14 }
 0xba8   : > { %3386 = vperm.xlu2 %10722, %v20172_v52   ;;  %v14021_v20 = vpop.permute.xlu1 %3245 }
 0xba9   : > { %20190 = vst [vmem:[#allocation410_spill] sm:$0xff] %v14021_v20 }
 0xbad   : > { %3410 = vperm.xlu1 %10725, %v20172_v52  }
 0xbb0   : > { %10724 = vset.pattern.permute.xlu2 %v11426_v11  ;;  %v14025_v62 = vpop.permute.xlu1 %3257 }
 0xbb1   : > { %20191 = vst [vmem:[#allocation411_spill] sm:$0xff] %v14025_v62  ;;  %v20199_v62 = vld [vmem:[#allocation239_spill] sm:$0xff] }
 0xbb5   : > { %10727 = vset.pattern.permute.xlu1 %v11435_v13 }
 0xbb8   : > { %3404 = vperm.xlu2 %10724, %v20172_v52   ;;  %v14029_v56 = vpop.permute.xlu1 %3276 }
 0xbbd   : > { %3429 = vperm.xlu1 %10727, %v20192_v19  }
 0xbc0   : > { %10726 = vset.pattern.permute.xlu2 %v11377_v1  ;;  %v14033_v44 = vpop.permute.xlu1 %3288 }
 0xbc1   : > { %20193 = vst [vmem:[#allocation71_spill] sm:$0xff] %v14033_v44  ;;  %v20201_v44 = vld [vmem:[#allocation225_spill] sm:$0xff] }
 0xbc2   : > { %v14064_v37 = vsel %vm3755_vm8, %v20201_v44, %v13953_v24  ;;  %v6548_v44 = vperm.slane %v13900_v29, %v13098_v43 }
 0xbc3   : > { %20202 = vst [vmem:[#allocation239_spill] sm:$0xff] %v14064_v37  ;;  %v6515_v5 = vrot.slane %v14064_v37, 4 }
 0xbc5   : > { %10729 = vset.pattern.permute.xlu1 %v11419_v10 }
 0xbc8   : > { %3417 = vperm.xlu2 %10726, %v20192_v19   ;;  %v14037_v7 = vpop.permute.xlu1 %3306 }
 0xbc9   : > { %20194 = vst [vmem:[#allocation412_spill] sm:$0xff] %v14037_v7  ;;  %v20198_v7 = vld [vmem:[#allocation84_spill] sm:$0xff] }
 0xbca   : > { %v14057_v20 = vsel %vm3755_vm8, %v20199_v62, %v20198_v7 }
 0xbcb   : > { %20200 = vst [vmem:[#allocation84_spill] sm:$0xff] %v14057_v20  ;;  %v6504_v17 = vsel %vm4013_vm9, %v14057_v20, %v6503_v57  ;;  %v6544_v20 = vperm.slane %v13904_v0, %v13098_v43 }
 0xbcc   : > { %v6512_v51 = vperm.slane %v6504_v17, %v12943_v4 }
 0xbcd   : > { %3441 = vperm.xlu1 %10729, %v20192_v19  }
 0xbce   : > { %v6563_v7 = vrot.slane %v6512_v51, 4 }
 0xbd0   : > { %10728 = vset.pattern.permute.xlu2 %v11381_v2  ;;  %v14041_v52 = vpop.permute.xlu1 %3319 }
 0xbd5   : > { %10731 = vset.pattern.permute.xlu1 %v11438_v14 }
 0xbd8   : > { %3435 = vperm.xlu2 %10728, %v20192_v19   ;;  %v14051_v21 = vpop.permute.xlu1 %3337 }
 0xbd9   : > { %20197 = vst [vmem:[#allocation413_spill] sm:$0xff] %v14051_v21 }
 0xbdd   : > { %3459 = vperm.xlu1 %10731, %v20192_v19  }
 0xbe0   : > { %10730 = vset.pattern.permute.xlu2 %v11415_v9  ;;  %v3350_v21 = vpop.permute.xlu1 %3349 }
 0xbe1   : > { %v14071_v59 = vsel %vm3755_vm8, %v20203_v18, %v3350_v21 }
 0xbe2   : > { %20204 = vst [vmem:[#allocation225_spill] sm:$0xff] %v14071_v59  ;;  %v6516_v62 = vsel %vm4013_vm9, %v14071_v59, %v6515_v5  ;;  %v6587_v5 = vrot.slane %v6548_v44, 4 }
 0xbe3   : > { %v6524_v24 = vperm.slane %v6516_v62, %v12943_v4  ;;  %v6583_v62 = vrot.slane %v6544_v20, 4 }
 0xbe5   : > { %v6561_v57 = vrot.slane %v6524_v24, 4  ;;  %v6564_v17 = vsel %vm4013_vm9, %v6524_v24, %v6563_v7  ;;  %10733 = vset.pattern.permute.xlu1 %v11409_v8 }
 0xbe6   : > { %v6572_v18 = vperm.slane %v6564_v17, %v13098_v43  ;;  %v14128_v17 = vpop.permute.xlu2 %3294 }
 0xbe7   : > { %v6562_v21 = vsel %vm4013_vm9, %v6561_v57, %v6512_v51  ;;  %v20209_v51 = vld [vmem:[#allocation118_spill] sm:$0xff] }
 0xbe8   : > { %3447 = vperm.xlu2 %10730, %v20192_v19   ;;  %v6585_v19 = vrot.slane %v6572_v18, 4  ;;  %v6568_v37 = vperm.slane %v6562_v21, %v13098_v43  ;;  %v14087_v59 = vsel %vm4013_vm9, %v6572_v18, %v6587_v5 }
 0xbe9   : > { %20205 = vst [vmem:[#allocation248_spill] sm:$0xff] %v14087_v59  ;;  %v20224_v59 = vld [vmem:[#allocation50_spill] sm:$0xff] }
 0xbea   : > { %v14091_v29 = vsel %vm4013_vm9, %v6585_v19, %v6548_v44  ;;  %v6581_v0 = vrot.slane %v6568_v37, 4  ;;  %v14094_v7 = vsel %vm4013_vm9, %v6568_v37, %v6583_v62  ;;  %v20211_v44 = vld [vmem:[#allocation39_spill] sm:$0xff] }
 0xbeb   : > { %20206 = vst [vmem:[#allocation414_spill] sm:$0xff] %v14091_v29 }
 0xbec   : > { %20207 = vst [vmem:[#allocation415_spill] sm:$0xff] %v14094_v7  ;;  %v14097_v24 = vsel %vm4013_vm9, %v6581_v0, %v6544_v20  ;;  %v20210_v20 = vld [vmem:[#allocation38_spill] sm:$0xff] }
 0xbed   : > { %20208 = vst [vmem:[#allocation416_spill] sm:$0xff] %v14097_v24  ;;  %3472 = vperm.xlu1 %10733, %v20209_v51  }
 0xbee   : > { %20213 = vst [vmem:[#allocation38_spill] sm:$0xff] %v14128_v17  ;;  %v14134_v21 = vpop.permute.xlu2 %3312 }
 0xbef   : > { %v14122_v37 = vpop.permute.xlu1 %3368  ;;  %20215 = vst [vmem:[#allocation417_spill] sm:$0xff] %v14134_v21 }
 0xbf0   : > { %10732 = vset.pattern.permute.xlu2 %v11377_v1 }
 0xbf5   : > { %10735 = vset.pattern.permute.xlu1 %v11419_v10 }
 0xbf6   : > { %v14140_v19 = vpop.permute.xlu2 %3325 }
 0xbf7   : > { %20217 = vst [vmem:[#allocation419_spill] sm:$0xff] %v14140_v19  ;;  %v20233_v19 = vld [vmem:[#allocation278_spill] sm:$0xff] }
 0xbf8   : > { %3466 = vperm.xlu2 %10732, %v20209_v51  }
 0xbfd   : > { %3490 = vperm.xlu1 %10735, %v20209_v51  }
 0xbfe   : > { %v14146_v0 = vpop.permute.xlu2 %3343 }
 0xbff   : > { %v14126_v57 = vpop.permute.xlu1 %3380  ;;  %20219 = vst [vmem:[#allocation421_spill] sm:$0xff] %v14146_v0  ;;  %v20226_v0 = vld [vmem:[#allocation249_spill] sm:$0xff] }
 0xc00   : > { %10734 = vset.pattern.permute.xlu2 %v11435_v13  ;;  %20212 = vst [vmem:[#allocation118_spill] sm:$0xff] %v14126_v57  ;;  %v20229_v57 = vld [vmem:[#allocation271_spill] sm:$0xff] }
 0xc05   : > { %10737 = vset.pattern.permute.xlu1 %v11426_v11 }
 0xc08   : > { %3478 = vperm.xlu2 %10734, %v20209_v51  }
 0xc0d   : > { %3502 = vperm.xlu1 %10737, %v20209_v51  }
 0xc0f   : > { %v14132_v18 = vpop.permute.xlu1 %3398 }
 0xc10   : > { %10736 = vset.pattern.permute.xlu2 %v11415_v9  ;;  %20214 = vst [vmem:[#allocation39_spill] sm:$0xff] %v14132_v18 }
 0xc15   : > { %10739 = vset.pattern.permute.xlu1 %v11409_v8 }
 0xc18   : > { %3496 = vperm.xlu2 %10736, %v20209_v51  }
 0xc1d   : > { %3521 = vperm.xlu1 %10739, %v20210_v20  }
 0xc1f   : > { %v14138_v5 = vpop.permute.xlu1 %3410 }
 0xc20   : > { %10738 = vset.pattern.permute.xlu2 %v11438_v14  ;;  %20216 = vst [vmem:[#allocation418_spill] sm:$0xff] %v14138_v5 }
 0xc25   : > { %10741 = vset.pattern.permute.xlu1 %v11381_v2 }
 0xc28   : > { %3508 = vperm.xlu2 %10738, %v20209_v51  }
 0xc2d   : > { %3533 = vperm.xlu1 %10741, %v20210_v20  }
 0xc2f   : > { %v14144_v62 = vpop.permute.xlu1 %3429 }
 0xc30   : > { %10740 = vset.pattern.permute.xlu2 %v11435_v13  ;;  %20218 = vst [vmem:[#allocation420_spill] sm:$0xff] %v14144_v62  ;;  %v14185_v62 = vsel %vm3755_vm8, %v20229_v57, %v20228_v25 }
 0xc31   : > { %20230 = vst [vmem:[#allocation311_spill] sm:$0xff] %v14185_v62 }
 0xc35   : > { %10744 = vset.pattern.permute.xlu1 %v11426_v11 }
 0xc38   : > { %3527 = vperm.xlu2 %10740, %v20210_v20  }
 0xc3d   : > { %3551 = vperm.xlu1 %10744, %v20210_v20  }
 0xc3f   : > { %v14150_v51 = vpop.permute.xlu1 %3441 }
 0xc40   : > { %10742 = vset.pattern.permute.xlu2 %v11419_v10  ;;  %20220 = vst [vmem:[#allocation422_spill] sm:$0xff] %v14150_v51 }
 0xc45   : > { %10746 = vset.pattern.permute.xlu1 %v11377_v1 }
 0xc48   : > { %3539 = vperm.xlu2 %10742, %v20210_v20  }
 0xc4d   : > { %3564 = vperm.xlu1 %10746, %v20211_v44  }
 0xc4f   : > { %v14156_v5 = vpop.permute.xlu1 %3459 }
 0xc50   : > { %10745 = vset.pattern.permute.xlu2 %v11438_v14  ;;  %20222 = vst [vmem:[#allocation424_spill] sm:$0xff] %v14156_v5 }
 0xc55   : > { %10750 = vset.pattern.permute.xlu1 %v11381_v2 }
 0xc58   : > { %3557 = vperm.xlu2 %10745, %v20210_v20   ;;  %v14152_v20 = vpop.permute.xlu2 %3355 }
 0xc59   : > { %20221 = vst [vmem:[#allocation423_spill] sm:$0xff] %v14152_v20 }
 0xc5d   : > { %3582 = vperm.xlu1 %10750, %v20211_v44  }
 0xc5f   : > { %v14162_v7 = vpop.permute.xlu1 %3472 }
 0xc60   : > { %10747 = vset.pattern.permute.xlu2 %v11409_v8  ;;  %v14158_v21 = vpop.permute.xlu2 %3374 }
 0xc61   : > { %20223 = vst [vmem:[#allocation425_spill] sm:$0xff] %v14158_v21  ;;  %v20231_v21 = vld [vmem:[#allocation256_spill] sm:$0xff] }
 0xc65   : > { %10752 = vset.pattern.permute.xlu1 %v11415_v9 }
 0xc68   : > { %3570 = vperm.xlu2 %10747, %v20211_v44   ;;  %v3387_v24 = vpop.permute.xlu2 %3386 }
 0xc69   : > { %v14175_v17 = vsel %vm3755_vm8, %v20226_v0, %v3387_v24 }
 0xc6a   : > { %20227 = vst [vmem:[#allocation249_spill] sm:$0xff] %v14175_v17 }
 0xc6d   : > { %3594 = vperm.xlu1 %10752, %v20211_v44  }
 0xc6f   : > { %v14166_v20 = vpop.permute.xlu1 %3490 }
 0xc70   : > { %10751 = vset.pattern.permute.xlu2 %v11419_v10  ;;  %20225 = vst [vmem:[#allocation50_spill] sm:$0xff] %v14166_v20  ;;  %v3405_v29 = vpop.permute.xlu2 %3404 }
 0xc75   : > { %10755 = vset.pattern.permute.xlu1 %v11377_v1 }
 0xc78   : > { %3588 = vperm.xlu2 %10751, %v20211_v44   ;;  %v14170_v18 = vpop.permute.xlu2 %3417 }
 0xc7d   : > { %3613 = vperm.xlu1 %10755, %v20224_v59  }
 0xc7f   : > { %v3503_v5 = vpop.permute.xlu1 %3502 }
 0xc80   : > { %10753 = vset.pattern.permute.xlu2 %v11426_v11  ;;  %v3436_v20 = vpop.permute.xlu2 %3435 }
 0xc81   : > { %v14191_v24 = vsel %vm3755_vm8, %v20231_v21, %v3436_v20 }
 0xc82   : > { %20232 = vst [vmem:[#allocation271_spill] sm:$0xff] %v14191_v24 }
 0xc85   : > { %10757 = vset.pattern.permute.xlu1 %v11435_v13 }
 0xc88   : > { %3600 = vperm.xlu2 %10753, %v20211_v44   ;;  %v5695_v44 = vrot.slane %v14175_v17, 4  ;;  %v5707_v17 = vrot.slane %v14191_v24, 4 }
 0xc8a   : > { %v5696_v35 = vsel %vm4013_vm9, %v14185_v62, %v5695_v44 }
 0xc8b   : > { %v5704_v0 = vperm.slane %v5696_v35, %v12943_v4  ;;  %v20235_v35 = vld [vmem:[#allocation252_spill] sm:$0xff] }
 0xc8c   : > { %v14210_v24 = vsel %vm3755_vm8, %v20235_v35, %v3405_v29 }
 0xc8d   : > { %3625 = vperm.xlu1 %10757, %v20224_v59   ;;  %v5755_v57 = vrot.slane %v5704_v0, 4  ;;  %20236 = vst [vmem:[#allocation278_spill] sm:$0xff] %v14210_v24  ;;  %v7039_v62 = vrot.slane %v14210_v24, 4 }
 0xc8f   : > { %v14179_v51 = vpop.permute.xlu1 %3521 }
 0xc90   : > { %10756 = vset.pattern.permute.xlu2 %v11409_v8 }
 0xc95   : > { %10760 = vset.pattern.permute.xlu1 %v11415_v9 }
 0xc98   : > { %3619 = vperm.xlu2 %10756, %v20224_v59  }
 0xc9d   : > { %3643 = vperm.xlu1 %10760, %v20224_v59  }
 0xc9f   : > { %v3534_v33 = vpop.permute.xlu1 %3533 }
 0xca0   : > { %10758 = vset.pattern.permute.xlu2 %v11381_v2  ;;  %v14198_v60 = vsel %vm3755_vm8, %v20233_v19, %v3534_v33  ;;  %v20237_v19 = vld [vmem:[#allocation274_spill] sm:$0xff] }
 0xca1   : > { %20234 = vst [vmem:[#allocation256_spill] sm:$0xff] %v14198_v60  ;;  %v5708_v25 = vsel %vm4013_vm9, %v14198_v60, %v5707_v17  ;;  %v14217_v17 = vsel %vm3755_vm8, %v20237_v19, %v3503_v5 }
 0xca2   : > { %v5716_v21 = vperm.slane %v5708_v25, %v12943_v4  ;;  %20238 = vst [vmem:[#allocation252_spill] sm:$0xff] %v14217_v17  ;;  %v7040_v25 = vsel %vm4013_vm9, %v14217_v17, %v7039_v62 }
 0xca3   : > { %v7048_v29 = vperm.slane %v7040_v25, %v12943_v4 }
 0xca4   : > { %v5753_v20 = vrot.slane %v5716_v21, 4  ;;  %v14205_v44 = vsel %vm4013_vm9, %v5716_v21, %v5755_v57  ;;  %v20239_v57 = vld [vmem:[#allocation270_spill] sm:$0xff]  ;;  %v20240_v21 = vld [vmem:[#allocation265_spill] sm:$0xff] }
 0xca5   : > { %10762 = vset.pattern.permute.xlu1 %v11438_v14  ;;  %v14226_v60 = vsel %vm3755_vm8, %v20240_v21, %v20239_v57  ;;  %v7099_v62 = vrot.slane %v7048_v29, 4  ;;  %v14239_v21 = vpop.permute.xlu2 %3447 }
 0xca6   : > { %v14213_v33 = vsel %vm4013_vm9, %v5753_v20, %v5704_v0  ;;  %20241 = vst [vmem:[#allocation274_spill] sm:$0xff] %v14226_v60  ;;  %v7051_v0 = vrot.slane %v14226_v60, 4  ;;  %v20242_v20 = vld [vmem:[#allocation251_spill] sm:$0xff]  ;;  %v4125_v60 = vrot.slane %v13362_v26, 4 }
 0xca7   : > { %20244 = vst [vmem:[#allocation265_spill] sm:$0xff] %v14239_v21 }
 0xca8   : > { %3631 = vperm.xlu2 %10758, %v20224_v59  }
 0xcad   : > { %3655 = vperm.xlu1 %10762, %v20224_v59  }
 0xcaf   : > { %v3552_v5 = vpop.permute.xlu1 %3551 }
 0xcb0   : > { %10761 = vset.pattern.permute.xlu2 %v11426_v11  ;;  %v14233_v35 = vsel %vm3755_vm8, %v20242_v20, %v3552_v5  ;;  %v14249_v5 = vpop.permute.xlu2 %3466 }
 0xcb1   : > { %20243 = vst [vmem:[#allocation270_spill] sm:$0xff] %v14233_v35  ;;  %v7052_v19 = vsel %vm4013_vm9, %v14233_v35, %v7051_v0  ;;  %v20247_v0 = vld [vmem:[#allocation73_spill] sm:$0xff] }
 0xcb2   : > { %v7060_v57 = vperm.slane %v7052_v19, %v12943_v4 }
 0xcb4   : > { %v7097_v24 = vrot.slane %v7060_v57, 4  ;;  %v14242_v25 = vsel %vm4013_vm9, %v7060_v57, %v7099_v62  ;;  %v20254_v57 = vld [vmem:[#allocation120_spill] sm:$0xff] }
 0xcb5   : > { %20245 = vst [vmem:[#allocation251_spill] sm:$0xff] %v14242_v25  ;;  %10765 = vset.pattern.permute.xlu1 %v11435_v13 }
 0xcb6   : > { %v14246_v17 = vsel %vm4013_vm9, %v7097_v24, %v7048_v29 }
 0xcb7   : > { %20246 = vst [vmem:[#allocation426_spill] sm:$0xff] %v14246_v17 }
 0xcb8   : > { %3649 = vperm.xlu2 %10761, %v20224_v59   ;;  %v14253_v59 = vpop.permute.xlu2 %3478 }
 0xcb9   : > { %20248 = vst [vmem:[#allocation73_spill] sm:$0xff] %v14253_v59  ;;  %v20263_v59 = vld [vmem:[#allocation220_spill] sm:$0xff] }
 0xcbd   : > { %3674 = vperm.xlu1 %10765, %v20247_v0  }
 0xcc0   : > { %10763 = vset.pattern.permute.xlu2 %v11377_v1  ;;  %v14257_v20 = vpop.permute.xlu2 %3496 }
 0xcc1   : > { %20249 = vst [vmem:[#allocation427_spill] sm:$0xff] %v14257_v20 }
 0xcc5   : > { %10767 = vset.pattern.permute.xlu1 %v11419_v10 }
 0xcc8   : > { %3662 = vperm.xlu2 %10763, %v20247_v0   ;;  %v14261_v24 = vpop.permute.xlu2 %3508 }
 0xcc9   : > { %20250 = vst [vmem:[#allocation428_spill] sm:$0xff] %v14261_v24 }
 0xccd   : > { %3686 = vperm.xlu1 %10767, %v20247_v0  }
 0xcd0   : > { %10766 = vset.pattern.permute.xlu2 %v11381_v2  ;;  %v14265_v29 = vpop.permute.xlu2 %3527 }
 0xcd1   : > { %20251 = vst [vmem:[#allocation429_spill] sm:$0xff] %v14265_v29 }
 0xcd5   : > { %10770 = vset.pattern.permute.xlu1 %v11438_v14 }
 0xcd8   : > { %3680 = vperm.xlu2 %10766, %v20247_v0   ;;  %v14269_v19 = vpop.permute.xlu2 %3539 }
 0xcd9   : > { %20252 = vst [vmem:[#allocation430_spill] sm:$0xff] %v14269_v19 }
 0xcdd   : > { %3704 = vperm.xlu1 %10770, %v20247_v0  }
 0xce0   : > { %10768 = vset.pattern.permute.xlu2 %v11415_v9  ;;  %v14273_v62 = vpop.permute.xlu2 %3557 }
 0xce1   : > { %20253 = vst [vmem:[#allocation431_spill] sm:$0xff] %v14273_v62 }
 0xce5   : > { %10772 = vset.pattern.permute.xlu1 %v11409_v8 }
 0xce8   : > { %3692 = vperm.xlu2 %10768, %v20247_v0   ;;  %v14277_v2 = vpop.permute.xlu2 %3570  ;;  %v4137_v0 = vrot.slane %v13379_v15, 4  ;;  %v4149_v15 = vrot.slane %v13614_v38, 4 }
 0xce9   : > { %20255 = vst [vmem:[#allocation120_spill] sm:$0xff] %v14277_v2 }
 0xcea   : > { %v4138_v62 = vsel %vm4013_vm9, %v4137_v0, %v13372_v31  ;;  %v4126_v31 = vsel %vm4013_vm9, %v4125_v60, %v13356_v53  ;;  %v4150_v26 = vsel %vm4013_vm9, %v4149_v15, %v13608_v40  ;;  %v20257_v60 = vld [vmem:[#allocation323_spill] sm:$0xff] }
 0xceb   : > { %v14293_v35 = vperm.slane %v4138_v62, %v12943_v4  ;;  %v3026_v62 = vpop.permute.xlu0 %3025  ;;  %v4156_v38 = vperm.slane %v4150_v26, %v12943_v4  ;;  %v14318_v40 = vsel %vm3755_vm8, %v20257_v60, %v13837_v12 }
 0xced   : > { %3717 = vperm.xlu1 %10772, %v20254_v57   ;;  %v4199_v29 = vrot.slane %v4156_v38, 4 }
 0xcf0   : > { %10771 = vset.pattern.permute.xlu2 %v11377_v1  ;;  %v14281_v24 = vpop.permute.xlu2 %3588  ;;  %v4161_v1 = vrot.slane %v13629_v39, 4  ;;  %v4173_v39 = vrot.slane %v14293_v35, 4 }
 0xcf1   : > { %20256 = vst [vmem:[#allocation432_spill] sm:$0xff] %v14281_v24 }
 0xcf5   : > { %10775 = vset.pattern.permute.xlu1 %v11419_v10  ;;  %v4162_v10 = vsel %vm4013_vm9, %v4161_v1, %v13622_v55  ;;  %v14306_v1 = vperm.slane %v4126_v31, %v12943_v4  ;;  %v20259_v31 = vld [vmem:[#allocation242_spill] sm:$0xff] }
 0xcf6   : > { %v4168_v20 = vperm.slane %v4162_v10, %v12943_v4  ;;  %v14327_v26 = vsel %vm3755_vm8, %v20259_v31, %v14041_v52 }
 0xcf7   : > { %v4174_v10 = vsel %vm4013_vm9, %v4173_v39, %v14306_v1  ;;  %v4273_v12 = vrot.slane %v14327_v26, 4 }
 0xcf8   : > { %3711 = vperm.xlu2 %10771, %v20254_v57   ;;  %v14295_v21 = vpop.permute.xlu2 %3600  ;;  %v4197_v55 = vrot.slane %v4168_v20, 4  ;;  %v14322_v15 = vperm.slane %v4174_v10, %v13098_v43  ;;  %v4200_v17 = vsel %vm4013_vm9, %v4168_v20, %v4199_v29  ;;  %v4175_v20 = vrot.slane %v14306_v1, 4 }
 0xcfa   : > { %v4198_v53 = vsel %vm4013_vm9, %v4197_v55, %v4156_v38  ;;  %20258 = vst [vmem:[#allocation323_spill] sm:$0xff] %v14322_v15  ;;  %v4249_v55 = vrot.slane %v14318_v40, 4  ;;  %v4223_v60 = vrot.slane %v14322_v15, 4  ;;  %v14352_v15 = vsel %vm3755_vm8, %v20263_v59, %v13947_v54  ;;  %v20266_v59 = vld [vmem:[#allocation212_spill] sm:$0xff]  ;;  %v20274_v38 = vld [vmem:[#allocation293_spill] sm:$0xff] }
 0xcfb   : > { %v14330_v39 = vperm.slane %v4198_v53, %v13098_v43  ;;  %v3271_v53 = vpop.permute.xlu0 %3270 }
 0xcfd   : > { %3735 = vperm.xlu1 %10775, %v20254_v57   ;;  %20260 = vst [vmem:[#allocation242_spill] sm:$0xff] %v14330_v39  ;;  %v4224_v19 = vsel %vm4013_vm9, %v14330_v39, %v4223_v60  ;;  %v20265_v60 = vld [vmem:[#allocation182_spill] sm:$0xff] }
 0xcfe   : > { %v14369_v54 = vsel %vm3755_vm8, %v20265_v60, %v13816_v61  ;;  %v14392_v60 = vpop.permute.xlu1 %3564 }
 0xd00   : > { %10773 = vset.pattern.permute.xlu2 %v11435_v13  ;;  %v14312_v0 = vpop.permute.xlu2 %3619 }
 0xd05   : > { %10777 = vset.pattern.permute.xlu1 %v11426_v11  ;;  %v20261_v11 = vld [vmem:[#allocation193_spill] sm:$0xff] }
 0xd06   : > { %v14338_v10 = vsel %vm3755_vm8, %v20261_v11, %v3026_v62 }
 0xd07   : > { %v4250_v24 = vsel %vm4013_vm9, %v4249_v55, %v14338_v10 }
 0xd08   : > { %3723 = vperm.xlu2 %10773, %v20254_v57   ;;  %v3632_v31 = vpop.permute.xlu2 %3631  ;;  %v14364_v55 = vperm.slane %v4250_v24, %v12943_v4 }
 0xd0d   : > { %3747 = vperm.xlu1 %10777, %v20254_v57  }
 0xd10   : > { %10776 = vset.pattern.permute.xlu2 %v11415_v9  ;;  %v20262_v9 = vld [vmem:[#allocation200_spill] sm:$0xff] }
 0xd11   : > { %v14343_v52 = vsel %vm3755_vm8, %v20262_v9, %v13820_v28  ;;  %v4274_v9 = vsel %vm4013_vm9, %v4273_v12, %v14352_v15  ;;  %v20264_v28 = vld [vmem:[#allocation235_spill] sm:$0xff] }
 0xd12   : > { %v4237_v11 = vrot.slane %v14343_v52, 4  ;;  %v14361_v62 = vsel %vm3755_vm8, %v20264_v28, %v3271_v53  ;;  %v14377_v12 = vperm.slane %v4274_v9, %v12943_v4  ;;  %v4285_v28 = vrot.slane %v14364_v55, 4 }
 0xd13   : > { %v4261_v53 = vrot.slane %v14361_v62, 4 }
 0xd14   : > { %v4238_v24 = vsel %vm4013_vm9, %v4237_v11, %v14369_v54  ;;  %v4309_v9 = vrot.slane %v14377_v12, 4 }
 0xd15   : > { %7603 = vrot.lane.b32.xlu1 %v4224_v19, %s11089_s23  ;;  %v14374_v19 = vsel %vm3755_vm8, %v20266_v59, %v13935_v48  ;;  %v14389_v48 = vperm.slane %v4238_v24, %v12943_v4 }
 0xd16   : > { %10779 = vset.pattern.permute.xlu1 %v11409_v8  ;;  %v14384_v8 = vpop.permute.xlu2 %3649  ;;  %v4262_v61 = vsel %vm4013_vm9, %v4261_v53, %v14374_v19 }
 0xd17   : > { %v14397_v11 = vperm.slane %v4262_v61, %v12943_v4  ;;  %v4286_v59 = vsel %vm4013_vm9, %v4285_v28, %v14389_v48  ;;  %v3583_v28 = vpop.permute.xlu1 %3582 }
 0xd18   : > { %3741 = vperm.xlu2 %10776, %v20254_v57   ;;  %v14409_v39 = vperm.slane %v4286_v59, %v13098_v43  ;;  %v14426_v59 = vsel %vm3755_vm8, %v20274_v38, %v3583_v28  ;;  %v4176_v28 = vsel %vm4013_vm9, %v14293_v35, %v4175_v20 }
 0xd19   : > { %v4310_v24 = vsel %vm4013_vm9, %v4309_v9, %v14397_v11  ;;  %20275 = vst [vmem:[#allocation182_spill] sm:$0xff] %v14426_v59 }
 0xd1a   : > { %20269 = vst [vmem:[#allocation200_spill] sm:$0xff] %v14409_v39  ;;  %v14413_v2 = vperm.slane %v4310_v24, %v13098_v43 }
 0xd1c   : > { %20270 = vst [vmem:[#allocation220_spill] sm:$0xff] %v14413_v2 }
 0xd1d   : > { %7617 = vrot.lane.b32.xlu1 %v13155_v46, %s11090_s4 }
 0xd20   : > { %10778 = vset.pattern.permute.xlu2 %v11438_v14  ;;  %v20267_v14 = vld [vmem:[#allocation291_spill] sm:$0xff] }
 0xd21   : > { %v14403_v53 = vsel %vm3755_vm8, %v20267_v14, %v3632_v31  ;;  %v20271_v14 = vld [vmem:[#allocation314_spill] sm:$0xff]  ;;  %v20272_v31 = vld [vmem:[#allocation312_spill] sm:$0xff] }
 0xd22   : > { %20268 = vst [vmem:[#allocation193_spill] sm:$0xff] %v14403_v53  ;;  %v5731_v46 = vrot.slane %v14403_v53, 4  ;;  %v3663_v61 = vpop.permute.xlu2 %3662  ;;  %v14419_v25 = vsel %vm3755_vm8, %v20272_v31, %v20271_v14  ;;  %v14431_v53 = vperm.slane %v4200_v17, %v13098_v43  ;;  %v20276_v31 = vld [vmem:[#allocation298_spill] sm:$0xff] }
 0xd23   : > { %20273 = vst [vmem:[#allocation235_spill] sm:$0xff] %v14419_v25 }
 0xd24   : > { %v5732_v9 = vsel %vm4013_vm9, %v14419_v25, %v5731_v46  ;;  %v5719_v46 = vrot.slane %v14426_v59, 4  ;;  %v4225_v17 = vrot.slane %v14431_v53, 4  ;;  %v20293_v59 = vld [vmem:[#allocation329_spill] sm:$0xff]  ;;  %v20351_v25 = vld [vmem:[#allocation202_spill] sm:$0xff] }
 0xd25   : > { %v5740_v29 = vperm.slane %v5732_v9, %v12943_v4 }
 0xd27   : > { %v5777_v38 = vrot.slane %v5740_v29, 4 }
 0xd28   : > { %3753 = vperm.xlu2 %10778, %v20254_v57   ;;  %v4335_v57 = vrot.slane %v14409_v39, 4  ;;  %v14453_v39 = vpop.permute.xlu1 %3594 }
 0xd29   : > { %20278 = vst [vmem:[#allocation291_spill] sm:$0xff] %v14453_v39 }
 0xd2a   : > { %v4336_v24 = vsel %vm4013_vm9, %v14413_v2, %v4335_v57 }
 0xd30   : > { %7605 = vrot.lane.b32.xlu2 %v4336_v24, %s11089_s23  ;;  %v14449_v24 = vperm.slane %v4176_v28, %v13098_v43 }
 0xd31   : > { %10780 = vset.pattern.permute.xlu2 %v11435_v13  ;;  %v5760_v13 = vperm.slane %v14213_v33, %v13098_v43 }
 0xd32   : > { %v3681_v14 = vpop.permute.xlu2 %3680 }
 0xd33   : > { %v14442_v57 = vsel %vm3755_vm8, %v20276_v31, %v3681_v14  ;;  %v4226_v14 = vsel %vm4013_vm9, %v4225_v17, %v14449_v24 }
 0xd34   : > { %20277 = vst [vmem:[#allocation212_spill] sm:$0xff] %v14442_v57  ;;  %v5720_v1 = vsel %vm4013_vm9, %v14442_v57, %v5719_v46  ;;  %v5764_v46 = vperm.slane %v14205_v44, %v13098_v43 }
 0xd35   : > { %v5728_v9 = vperm.slane %v5720_v1, %v12943_v4  ;;  %v5799_v1 = vrot.slane %v5760_v13, 4 }
 0xd37   : > { %v5778_v35 = vsel %vm4013_vm9, %v5777_v38, %v5728_v9  ;;  %v5779_v20 = vrot.slane %v5728_v9, 4  ;;  %v5803_v38 = vrot.slane %v5764_v46, 4 }
 0xd38   : > { %7619 = vrot.lane.b32.xlu2 %v4226_v14, %s11090_s4  ;;  %v5784_v31 = vperm.slane %v5778_v35, %v13098_v43  ;;  %v3614_v14 = vpop.permute.xlu1 %3613 }
 0xd39   : > { %v5780_v28 = vsel %vm4013_vm9, %v5740_v29, %v5779_v20  ;;  %v20283_v29 = vld [vmem:[#allocation261_spill] sm:$0xff] }
 0xd3a   : > { %v5788_v33 = vperm.slane %v5780_v28, %v13098_v43  ;;  %v5797_v2 = vrot.slane %v5784_v31, 4  ;;  %v14465_v39 = vsel %vm4013_vm9, %v5784_v31, %v5799_v1  ;;  %v14481_v20 = vsel %vm3755_vm8, %v20283_v29, %v14249_v5  ;;  %v20285_v28 = vld [vmem:[#allocation276_spill] sm:$0xff]  ;;  %v20287_v5 = vld [vmem:[#allocation254_spill] sm:$0xff] }
 0xd3b   : > { %20279 = vst [vmem:[#allocation314_spill] sm:$0xff] %v14465_v39  ;;  %v4349_v31 = vrot.slane %v14481_v20, 4 }
 0xd3c   : > { %v5801_v9 = vrot.slane %v5788_v33, 4  ;;  %v14468_v17 = vsel %vm4013_vm9, %v5797_v2, %v5760_v13  ;;  %v14471_v44 = vsel %vm4013_vm9, %v5788_v33, %v5803_v38  ;;  %v3516_v2 = vpop.permute.xlu0 %3515  ;;  %v14500_v38 = vsel %vm3755_vm8, %v20287_v5, %v14170_v18 }
 0xd3d   : > { %20280 = vst [vmem:[#allocation312_spill] sm:$0xff] %v14468_v17  ;;  %v14488_v1 = vsel %vm3755_vm8, %v20285_v28, %v3516_v2  ;;  %v4263_v5 = vrot.slane %v14374_v19, 4  ;;  %v20292_v17 = vld [vmem:[#allocation303_spill] sm:$0xff] }
 0xd3e   : > { %20281 = vst [vmem:[#allocation293_spill] sm:$0xff] %v14471_v44  ;;  %v14474_v35 = vsel %vm4013_vm9, %v5801_v9, %v5764_v46  ;;  %v20286_v46 = vld [vmem:[#allocation325_spill] sm:$0xff]  ;;  %v20288_v9 = vld [vmem:[#allocation296_spill] sm:$0xff]  ;;  %v4361_v2 = vrot.slane %v14488_v1, 4  ;;  %v4275_v44 = vrot.slane %v14352_v15, 4 }
 0xd3f   : > { %20282 = vst [vmem:[#allocation298_spill] sm:$0xff] %v14474_v35  ;;  %v14493_v33 = vsel %vm3755_vm8, %v20286_v46, %v14122_v37  ;;  %v14504_v29 = vsel %vm3755_vm8, %v20288_v9, %v3663_v61  ;;  %v4264_v19 = vsel %vm4013_vm9, %v14361_v62, %v4263_v5 }
 0xd40   : > { %7633 = vrot.lane.b32.xlu2 %v13148_v45, %s11091_s21  ;;  %v14484_v13 = vpop.permute.xlu1 %3625  ;;  %v4350_v45 = vsel %vm4013_vm9, %v4349_v31, %v14493_v33  ;;  %v4362_v31 = vsel %vm4013_vm9, %v4361_v2, %v14500_v38  ;;  %v4373_v46 = vrot.slane %v14504_v29, 4  ;;  %v4276_v18 = vsel %vm4013_vm9, %v14327_v26, %v4275_v44 }
 0xd41   : > { %20284 = vst [vmem:[#allocation261_spill] sm:$0xff] %v14484_v13  ;;  %v4356_v37 = vperm.slane %v4350_v45, %v12943_v4  ;;  %v4368_v9 = vperm.slane %v4362_v31, %v12943_v4  ;;  %v14526_v45 = vperm.slane %v4276_v18, %v12943_v4  ;;  %v4251_v26 = vrot.slane %v14338_v10, 4 }
 0xd42   : > { %v14507_v28 = vpop.permute.xlu2 %3692  ;;  %v3988_v10 = vsel %vm3755_vm8, %v20293_v59, %v3614_v14  ;;  %v14544_v5 = vperm.slane %v4264_v19, %v12943_v4 }
 0xd43   : > { %20289 = vst [vmem:[#allocation276_spill] sm:$0xff] %v14507_v28  ;;  %v4399_v39 = vrot.slane %v4356_v37, 4  ;;  %v20291_v28 = vld [vmem:[#allocation284_spill] sm:$0xff]  ;;  %v4321_v18 = vrot.slane %v14526_v45, 4 }
 0xd44   : > { %v14523_v15 = vsel %vm3755_vm8, %v20291_v28, %v14392_v60  ;;  %v4252_v28 = vsel %vm4013_vm9, %v14318_v40, %v4251_v26 }
 0xd45   : > { %v4374_v2 = vsel %vm4013_vm9, %v4373_v46, %v14523_v15  ;;  %v4400_v60 = vsel %vm4013_vm9, %v4368_v9, %v4399_v39  ;;  %v4322_v14 = vsel %vm4013_vm9, %v4321_v18, %v14544_v5 }
 0xd46   : > { %v4380_v31 = vperm.slane %v4374_v2, %v12943_v4  ;;  %v4408_v39 = vperm.slane %v4400_v60, %v13098_v43 }
 0xd48   : > { %v14517_v61 = vpop.permute.xlu1 %3643  ;;  %v4423_v40 = vrot.slane %v4380_v31, 4 }
 0xd49   : > { %20290 = vst [vmem:[#allocation325_spill] sm:$0xff] %v14517_v61  ;;  %v4397_v61 = vrot.slane %v4368_v9, 4  ;;  %v14551_v9 = vperm.slane %v4252_v28, %v12943_v4  ;;  %v4287_v28 = vrot.slane %v14389_v48, 4 }
 0xd4b   : > { %v4398_v62 = vsel %vm4013_vm9, %v4397_v61, %v4356_v37  ;;  %v4311_v37 = vrot.slane %v14397_v11, 4 }
 0xd4c   : > { %v14556_v59 = vperm.slane %v4398_v62, %v13098_v43 }
 0xd4d   : > { %v4312_v11 = vsel %vm4013_vm9, %v14377_v12, %v4311_v37 }
 0xd4e   : > { %20295 = vst [vmem:[#allocation296_spill] sm:$0xff] %v14556_v59  ;;  %v4447_v48 = vrot.slane %v14556_v59, 4  ;;  %v4320_v37 = vperm.slane %v4312_v11, %v13098_v43 }
 0xd50   : > { %v14546_v2 = vpop.permute.xlu1 %3655 }
 0xd51   : > { %20294 = vst [vmem:[#allocation254_spill] sm:$0xff] %v14546_v2  ;;  %v14569_v2 = vperm.slane %v4322_v14, %v13098_v43 }
 0xd52   : > { %v3712_v44 = vpop.permute.xlu2 %3711 }
 0xd53   : > { %v4004_v35 = vsel %vm3755_vm8, %v20292_v17, %v3712_v44  ;;  %v4239_v44 = vrot.slane %v14369_v54, 4  ;;  %v4297_v54 = vrot.slane %v14551_v9, 4 }
 0xd54   : > { %v4385_v46 = vrot.slane %v4004_v35, 4 }
 0xd55   : > { %v4240_v60 = vsel %vm4013_vm9, %v14343_v52, %v4239_v44 }
 0xd56   : > { %v4386_v17 = vsel %vm4013_vm9, %v4385_v46, %v3988_v10 }
 0xd57   : > { %v4392_v26 = vperm.slane %v4386_v17, %v12943_v4  ;;  %v4451_v17 = vrot.slane %v4408_v39, 4 }
 0xd58   : > { %v14584_v44 = vpop.permute.xlu1 %3674 }
 0xd59   : > { %v4421_v61 = vrot.slane %v4392_v26, 4  ;;  %v4424_v19 = vsel %vm4013_vm9, %v4392_v26, %v4423_v40  ;;  %v14579_v26 = vperm.slane %v4240_v60, %v12943_v4 }
 0xd5a   : > { %v4432_v46 = vperm.slane %v4424_v19, %v13098_v43  ;;  %v4341_v19 = vrot.slane %v14569_v2, 4 }
 0xd5b   : > { %v4422_v62 = vsel %vm4013_vm9, %v4421_v61, %v4380_v31  ;;  %v4288_v31 = vsel %vm4013_vm9, %v14364_v55, %v4287_v28  ;;  %v4298_v61 = vsel %vm4013_vm9, %v4297_v54, %v14579_v26 }
 0xd5c   : > { %v14574_v18 = vperm.slane %v4422_v62, %v13098_v43  ;;  %v4452_v52 = vsel %vm4013_vm9, %v4432_v46, %v4451_v17  ;;  %v4449_v40 = vrot.slane %v4432_v46, 4  ;;  %v4296_v55 = vperm.slane %v4288_v31, %v13098_v43 }
 0xd5d   : > { %7639 = vrot.lane.b32.xlu2 %v4452_v52, %s11091_s21  ;;  %v14597_v60 = vperm.slane %v4298_v61, %v13098_v43  ;;  %v4375_v17 = vrot.slane %v14523_v15, 4  ;;  %v4387_v62 = vrot.slane %v3988_v10, 4  ;;  %v4351_v15 = vrot.slane %v14493_v33, 4  ;;  %v20298_v10 = vld [vmem:[#allocation82_spill] sm:$0xff]  ;;  %v20299_v33 = vld [vmem:[#allocation141_spill] sm:$0xff] }
 0xd5e   : > { %20296 = vst [vmem:[#allocation284_spill] sm:$0xff] %v14574_v18  ;;  %v4450_v12 = vsel %vm4013_vm9, %v4449_v40, %v4408_v39  ;;  %v4448_v14 = vsel %vm4013_vm9, %v14574_v18, %v4447_v48  ;;  %v4337_v39 = vrot.slane %v4320_v37, 4  ;;  %v4339_v46 = vrot.slane %v4296_v55, 4  ;;  %v20341_v18 = vld [vmem:[#allocation120_spill] sm:$0xff] }
 0xd5f   : > { %7623 = vrot.lane.b32.xlu1 %v4450_v12, %s11090_s4  ;;  %7607 = vrot.lane.b32.xlu0 %v4448_v14, %s11089_s23  ;;  %v4342_v28 = vsel %vm4013_vm9, %v4341_v19, %v14597_v60  ;;  %v4363_v40 = vrot.slane %v14500_v38, 4  ;;  %v4376_v48 = vsel %vm4013_vm9, %v14504_v29, %v4375_v17  ;;  %v4388_v31 = vsel %vm4013_vm9, %v4004_v35, %v4387_v62  ;;  %v20303_v62 = vld [vmem:[#allocation327_spill] sm:$0xff] }
 0xd60   : > { %v14603_v11 = vpop.permute.xlu1 %3686  ;;  %v4340_v54 = vsel %vm4013_vm9, %v4320_v37, %v4339_v46  ;;  %v4338_v52 = vsel %vm4013_vm9, %v4337_v39, %v4296_v55  ;;  %v14617_v12 = vsel %vm3755_vm8, %v20298_v10, %v12981_v32  ;;  %v4384_v14 = vperm.slane %v4376_v48, %v12943_v4 }
 0xd61   : > { %20297 = vst [vmem:[#allocation303_spill] sm:$0xff] %v14603_v11  ;;  %v4396_v37 = vperm.slane %v4388_v31, %v12943_v4  ;;  %v4364_v61 = vsel %vm4013_vm9, %v14488_v1, %v4363_v40  ;;  %v4352_v38 = vsel %vm4013_vm9, %v14481_v20, %v4351_v15  ;;  %v4227_v29 = vrot.slane %v14449_v24, 4 }
 0xd62   : > { %v4609_v35 = vrot.slane %v13548_v6, 4  ;;  %v4473_v32 = vrot.slane %v14617_v12, 4  ;;  %v14633_v19 = vsel %vm3755_vm8, %v20299_v33, %v13190_v3  ;;  %v4597_v1 = vrot.slane %v13563_v22, 4  ;;  %v20302_v22 = vld [vmem:[#allocation60_spill] sm:$0xff] }
 0xd63   : > { %v4228_v24 = vsel %vm4013_vm9, %v14431_v53, %v4227_v29  ;;  %v4372_v6 = vperm.slane %v4364_v61, %v12943_v4  ;;  %v4360_v20 = vperm.slane %v4352_v38, %v12943_v4  ;;  %v4435_v39 = vrot.slane %v4384_v14, 4  ;;  %v20306_v29 = vld [vmem:[#allocation213_spill] sm:$0xff] }
 0xd64   : > { %v4585_v3 = vrot.slane %v13415_v23, 4  ;;  %v4610_v53 = vsel %vm4013_vm9, %v4609_v35, %v13538_v16  ;;  %v4497_v23 = vrot.slane %v14633_v19, 4  ;;  %v4598_v40 = vsel %vm4013_vm9, %v4597_v1, %v13554_v50  ;;  %v20305_v16 = vld [vmem:[#allocation113_spill] sm:$0xff]  ;;  %v20307_v50 = vld [vmem:[#allocation51_spill] sm:$0xff] }
 0xd65   : > { %7653 = vrot.lane.b32.xlu2 %v4342_v28, %s11092_s16  ;;  %v20301_v28 = vld [vmem:[#allocation321_spill] sm:$0xff]  ;;  %v4436_v17 = vsel %vm4013_vm9, %v4396_v37, %v4435_v39  ;;  %v4409_v48 = vrot.slane %v4372_v6, 4  ;;  %v4411_v31 = vrot.slane %v4360_v20, 4  ;;  %v14668_v10 = vsel %vm3755_vm8, %v20305_v16, %v13174_v47 }
 0xd66   : > { %v14649_v46 = vsel %vm3755_vm8, %v20302_v22, %v20301_v28  ;;  %v14673_v61 = vperm.slane %v4610_v53, %v12943_v4  ;;  %v14676_v38 = vperm.slane %v4436_v17, %v13098_v43  ;;  %v14681_v35 = vsel %vm3755_vm8, %v20307_v50, %v20306_v29 }
 0xd67   : > { %7637 = vrot.lane.b32.xlu1 %v4340_v54, %s11091_s21  ;;  %7621 = vrot.lane.b32.xlu0 %v4338_v52, %s11090_s4  ;;  %v20304_v54 = vld [vmem:[#allocation138_spill] sm:$0xff]  ;;  %v4573_v1 = vrot.slane %v13402_v63, 4  ;;  %v14696_v39 = vperm.slane %v4598_v40, %v12943_v4  ;;  %v4299_v53 = vrot.slane %v14579_v26, 4 }
 0xd68   : > { %v14636_v55 = vpop.permute.xlu1 %3704  ;;  %v14657_v52 = vsel %vm3755_vm8, %v20304_v54, %v20303_v62  ;;  %v4645_v63 = vrot.slane %v14673_v61, 4  ;;  %v4457_v17 = vrot.slane %v14676_v38, 4 }
 0xd69   : > { %20300 = vst [vmem:[#allocation329_spill] sm:$0xff] %v14636_v55  ;;  %v4461_v47 = vrot.slane %v14657_v52, 4 }
 0xd6a   : > { %v4646_v40 = vsel %vm4013_vm9, %v4645_v63, %v14696_v39 }
 0xd6b   : > { %v4462_v54 = vsel %vm4013_vm9, %v4461_v47, %v14681_v35 }
 0xd6d   : > { %7667 = vrot.lane.b32.xlu2 %v13651_v42, %s11093_s8  ;;  %v4433_v42 = vrot.slane %v4396_v37, 4  ;;  %v4586_v37 = vsel %vm4013_vm9, %v4585_v3, %v13408_v36  ;;  %v4410_v36 = vsel %vm4013_vm9, %v4409_v48, %v4360_v20  ;;  %v4485_v20 = vrot.slane %v14668_v10, 4 }
 0xd6e   : > { %v14704_v22 = vperm.slane %v4586_v37, %v12943_v4  ;;  %v4416_v62 = vperm.slane %v4410_v36, %v13098_v43 }
 0xd6f   : > { %7651 = vrot.lane.b32.xlu1 %v13659_v34, %s11092_s16  ;;  %7635 = vrot.lane.b32.xlu0 %v4228_v24, %s11091_s21  ;;  %v4474_v34 = vsel %vm4013_vm9, %v4473_v32, %v14649_v46  ;;  %v4434_v15 = vsel %vm4013_vm9, %v4433_v42, %v4384_v14  ;;  %v20308_v14 = vld [vmem:[#allocation216_spill] sm:$0xff]  ;;  %v20309_v32 = vld [vmem:[#allocation103_spill] sm:$0xff] }
 0xd70   : > { %v14686_v33 = vsel %vm3755_vm8, %v20309_v32, %v20308_v14  ;;  %v3718_v42 = vpop.permute.xlu1 %3717  ;;  %v4440_v3 = vperm.slane %v4434_v15, %v13098_v43  ;;  %v14700_v28 = vperm.slane %v4474_v34, %v12943_v4  ;;  %v4621_v37 = vrot.slane %v14704_v22, 4 }
 0xd71   : > { %v4498_v24 = vsel %vm4013_vm9, %v4497_v23, %v14686_v33  ;;  %v4455_v50 = vrot.slane %v4416_v62, 4 }
 0xd72   : > { %v14718_v34 = vperm.slane %v4498_v24, %v12943_v4  ;;  %v4453_v23 = vrot.slane %v4440_v3, 4  ;;  %v4509_v48 = vrot.slane %v14700_v28, 4 }
 0xd73   : > { %v4456_v36 = vsel %vm4013_vm9, %v4440_v3, %v4455_v50 }
 0xd75   : > { %7681 = vrot.lane.b32.xlu2 %v13151_v27, %s11094_s9  ;;  %v4412_v27 = vsel %vm4013_vm9, %v4372_v6, %v4411_v31  ;;  %v4300_v6 = vsel %vm4013_vm9, %v14551_v9, %v4299_v53  ;;  %v20310_v31 = vld [vmem:[#allocation92_spill] sm:$0xff]  ;;  %v14769_v53 = vperm.slane %v4462_v54, %v12943_v4 }
 0xd76   : > { %v14726_v26 = vperm.slane %v4412_v27, %v13098_v43  ;;  %v14734_v15 = vsel %vm3755_vm8, %v20310_v31, %v13057_v41  ;;  %v4533_v41 = vrot.slane %v14718_v34, 4  ;;  %v20315_v27 = vld [vmem:[#allocation219_spill] sm:$0xff] }
 0xd77   : > { %7665 = vrot.lane.b32.xlu1 %v13131_v30, %s11093_s8  ;;  %7649 = vrot.lane.b32.xlu0 %v13140_v49, %s11092_s16  ;;  %v4574_v30 = vsel %vm4013_vm9, %v4573_v1, %v13394_v58  ;;  %v4323_v49 = vrot.slane %v14544_v5, 4  ;;  %v20311_v58 = vld [vmem:[#allocation285_spill] sm:$0xff]  ;;  %v4486_v16 = vsel %vm4013_vm9, %v4485_v20, %v14734_v15  ;;  %v4454_v1 = vsel %vm4013_vm9, %v4453_v23, %v4416_v62  ;;  %v20314_v20 = vld [vmem:[#allocation226_spill] sm:$0xff] }
 0xd78   : > { %v14739_v5 = vsel %vm3755_vm8, %v20311_v58, %v14295_v21  ;;  %v4458_v29 = vsel %vm4013_vm9, %v4457_v17, %v14726_v26  ;;  %v14750_v14 = vperm.slane %v4574_v30, %v12943_v4  ;;  %v4308_v21 = vperm.slane %v4300_v6, %v13098_v43  ;;  %v14758_v47 = vpop.permute.xlu1 %3735  ;;  %v20316_v17 = vld [vmem:[#allocation229_spill] sm:$0xff]  ;;  %v20317_v30 = vld [vmem:[#allocation260_spill] sm:$0xff]  ;;  %v14793_v58 = vpop.permute.xlu2 %3723 }
 0xd79   : > { %20312 = vst [vmem:[#allocation82_spill] sm:$0xff] %v14739_v5  ;;  %v4324_v9 = vsel %vm4013_vm9, %v14526_v45, %v4323_v49  ;;  %v14755_v45 = vperm.slane %v4646_v40, %v13098_v43  ;;  %v7063_v32 = vrot.slane %v14739_v5, 4  ;;  %v14766_v63 = vsel %vm3755_vm8, %v20315_v27, %v20314_v20  ;;  %v20318_v49 = vld [vmem:[#allocation209_spill] sm:$0xff]  ;;  %v20320_v40 = vld [vmem:[#allocation307_spill] sm:$0xff]  ;;  %v20323_v20 = vld [vmem:[#allocation232_spill] sm:$0xff] }
 0xd7a   : > { %20313 = vst [vmem:[#allocation141_spill] sm:$0xff] %v14758_v47  ;;  %v4332_v24 = vperm.slane %v4324_v9, %v13098_v43  ;;  %v14776_v3 = vsel %vm3755_vm8, %v20317_v30, %v20316_v17  ;;  %v14779_v62 = vperm.slane %v4486_v16, %v12943_v4  ;;  %v14784_v6 = vsel %vm3755_vm8, %v20318_v49, %v14179_v51  ;;  %v20319_v23 = vld [vmem:[#allocation273_spill] sm:$0xff]  ;;  %v20324_v27 = vld [vmem:[#allocation302_spill] sm:$0xff]  ;;  %v20342_v5 = vld [vmem:[#allocation280_spill] sm:$0xff] }
 0xd7b   : > { %v4622_v54 = vsel %vm4013_vm9, %v4621_v37, %v14750_v14  ;;  %v14791_v31 = vsel %vm3755_vm8, %v20320_v40, %v20319_v23  ;;  %v20322_v9 = vld [vmem:[#allocation309_spill] sm:$0xff]  ;;  %v4669_v16 = vrot.slane %v14755_v45, 4  ;;  %v4510_v51 = vsel %vm4013_vm9, %v4509_v48, %v14769_v53  ;;  %v20325_v30 = vld [vmem:[#allocation294_spill] sm:$0xff] }
 0xd7c   : > { %20321 = vst [vmem:[#allocation321_spill] sm:$0xff] %v14791_v31  ;;  %v7064_v50 = vsel %vm4013_vm9, %v14791_v31, %v7063_v32  ;;  %v4347_v37 = vrot.slane %v4308_v21, 4  ;;  %v14809_v17 = vsel %vm3755_vm8, %v20324_v27, %v20323_v20  ;;  %v14815_v49 = vsel %vm3755_vm8, %v20325_v30, %v14384_v8  ;;  %v20343_v31 = vld [vmem:[#allocation425_spill] sm:$0xff] }
 0xd7d   : > { %7687 = vrot.lane.b32.xlu2 %v4458_v29, %s11094_s9  ;;  %v14797_v29 = vsel %vm3755_vm8, %v20322_v9, %v3718_v42  ;;  %v4809_v42 = vrot.slane %v14784_v6, 4  ;;  %20326 = vst [vmem:[#allocation60_spill] sm:$0xff] %v14815_v49  ;;  %v14818_v48 = vperm.slane %v4622_v54, %v13098_v43  ;;  %v14824_v40 = vperm.slane %v4510_v51, %v13098_v43  ;;  %v20327_v9 = vld [vmem:[#allocation205_spill] sm:$0xff] }
 0xd7e   : > { %v4833_v32 = vrot.slane %v14797_v29, 4  ;;  %v4348_v23 = vsel %vm4013_vm9, %v4332_v24, %v4347_v37  ;;  %v14829_v20 = vsel %vm3755_vm8, %v20327_v9, %v14029_v56  ;;  %v7072_v8 = vperm.slane %v7064_v50, %v12943_v4 }
 0xd7f   : > { %7671 = vrot.lane.b32.xlu1 %v4456_v36, %s11093_s8  ;;  %7655 = vrot.lane.b32.xlu0 %v4454_v1, %s11092_s16  ;;  %v4345_v36 = vrot.slane %v4332_v24, 4  ;;  %v4534_v1 = vsel %vm4013_vm9, %v4533_v41, %v14779_v62  ;;  %v4343_v41 = vrot.slane %v14597_v60, 4  ;;  %v4670_v54 = vsel %vm4013_vm9, %v4669_v16, %v14818_v48  ;;  %v20328_v60 = vld [vmem:[#allocation268_spill] sm:$0xff] }
 0xd80   : > { %v14836_v24 = vperm.slane %v4534_v1, %v13098_v43  ;;  %v14841_v51 = vsel %vm3755_vm8, %v20328_v60, %v14162_v7  ;;  %v7075_v37 = vrot.slane %v14815_v49, 4  ;;  %v3748_v56 = vpop.permute.xlu1 %3747  ;;  %v4821_v30 = vrot.slane %v14809_v17, 4  ;;  %v20329_v1 = vld [vmem:[#allocation288_spill] sm:$0xff]  ;;  %v20330_v7 = vld [vmem:[#allocation315_spill] sm:$0xff]  ;;  %v14878_v55 = vpop.permute.xlu2 %3741 }
 0xd81   : > { %v4346_v27 = vsel %vm4013_vm9, %v4345_v36, %v4308_v21  ;;  %v4344_v50 = vsel %vm4013_vm9, %v14569_v2, %v4343_v41  ;;  %v4810_v16 = vsel %vm4013_vm9, %v4809_v42, %v14776_v3  ;;  %v14857_v9 = vsel %vm3755_vm8, %v20330_v7, %v3748_v56  ;;  %v20332_v21 = vld [vmem:[#allocation36_spill] sm:$0xff]  ;;  %v20334_v41 = vld [vmem:[#allocation251_spill] sm:$0xff]  ;;  %20337 = vst [vmem:[#allocation138_spill] sm:$0xff] %v14878_v55  ;;  %v20344_v55 = vld [vmem:[#allocation246_spill] sm:$0xff] }
 0xd82   : > { %20331 = vst [vmem:[#allocation327_spill] sm:$0xff] %v14857_v9  ;;  %v20333_v2 = vld [vmem:[#allocation196_spill] sm:$0xff]  ;;  %v7108_v60 = vperm.slane %v20334_v41, %v13098_v43  ;;  %v20335_v56 = vld [vmem:[#allocation419_spill] sm:$0xff]  ;;  %v7123_v7 = vrot.slane %v7072_v8, 4  ;;  %v14888_v41 = vperm.slane %v4810_v16, %v12943_v4  ;;  %v14895_v49 = vsel %vm3755_vm8, %v20342_v5, %v20341_v18  ;;  %v20345_v18 = vld [vmem:[#allocation409_spill] sm:$0xff] }
 0xd83   : > { %v14864_v36 = vsel %vm3755_vm8, %v20333_v2, %v20332_v21  ;;  %v20338_v2 = vld [vmem:[#allocation400_spill] sm:$0xff]  ;;  %v14905_v16 = vsel %vm3755_vm8, %v20344_v55, %v20343_v31  ;;  %v20346_v5 = vld [vmem:[#allocation227_spill] sm:$0xff]  ;;  %v4822_v55 = vsel %vm4013_vm9, %v4821_v30, %v14895_v49 }
 0xd84   : > { %v7147_v11 = vrot.slane %v7108_v60, 4 }
 0xd85   : > { %7701 = vrot.lane.b32.xlu2 %v4348_v23, %s11095_s20  ;;  %v14853_v23 = vsel %vm3755_vm8, %v20329_v1, %v14312_v0  ;;  %v7076_v0 = vsel %vm4013_vm9, %v14857_v9, %v7075_v37  ;;  %v20336_v1 = vld [vmem:[#allocation238_spill] sm:$0xff]  ;;  %v4709_v37 = vrot.slane %v14829_v20, 4 }
 0xd86   : > { %v4834_v42 = vsel %vm4013_vm9, %v4833_v32, %v14853_v23  ;;  %v7084_v21 = vperm.slane %v7076_v0, %v12943_v4  ;;  %v20339_v32 = vld [vmem:[#allocation204_spill] sm:$0xff] }
 0xd87   : > { %7685 = vrot.lane.b32.xlu1 %v4346_v27, %s11094_s9  ;;  %7669 = vrot.lane.b32.xlu0 %v4344_v50, %s11093_s8  ;;  %v14875_v27 = vsel %vm3755_vm8, %v20336_v1, %v20335_v56  ;;  %v4797_v50 = vrot.slane %v14841_v51, 4  ;;  %v14884_v59 = vsel %vm3755_vm8, %v20339_v32, %v20338_v2  ;;  %v20340_v56 = vld [vmem:[#allocation426_spill] sm:$0xff]  ;;  %v14898_v0 = vperm.slane %v4834_v42, %v12943_v4 }
 0xd88   : > { %v7104_v1 = vperm.slane %v20340_v56, %v13098_v43  ;;  %v7121_v9 = vrot.slane %v7084_v21, 4  ;;  %v7124_v2 = vsel %vm4013_vm9, %v7084_v21, %v7123_v7  ;;  %v4721_v32 = vrot.slane %v14875_v27, 4 }
 0xd89   : > { %v7132_v56 = vperm.slane %v7124_v2, %v13098_v43  ;;  %v4697_v47 = vrot.slane %v14884_v59, 4  ;;  %v14912_v42 = vsel %vm3755_vm8, %v20346_v5, %v20345_v18  ;;  %v4798_v7 = vsel %vm4013_vm9, %v4797_v50, %v14905_v16 }
 0xd8a   : > { %v7122_v21 = vsel %vm4013_vm9, %v7121_v9, %v7072_v8  ;;  %v4710_v18 = vsel %vm4013_vm9, %v4709_v37, %v14766_v63  ;;  %v4845_v5 = vrot.slane %v14888_v41, 4  ;;  %v4869_v50 = vrot.slane %v14898_v0, 4  ;;  %v20349_v8 = vld [vmem:[#allocation176_spill] sm:$0xff] }
 0xd8b   : > { %v7145_v31 = vrot.slane %v7132_v56, 4  ;;  %v7128_v2 = vperm.slane %v7122_v21, %v13098_v43  ;;  %v14922_v57 = vsel %vm4013_vm9, %v7132_v56, %v7147_v11  ;;  %v7143_v30 = vrot.slane %v7104_v1, 4  ;;  %v20350_v9 = vld [vmem:[#allocation392_spill] sm:$0xff] }
 0xd8c   : > { %20347 = vst [vmem:[#allocation113_spill] sm:$0xff] %v14922_v57  ;;  %v14935_v21 = vsel %vm3755_vm8, %v20351_v25, %v20350_v9  ;;  %v4722_v11 = vsel %vm4013_vm9, %v4721_v32, %v14912_v42  ;;  %v4559_v37 = vrot.slane %v14824_v40, 4  ;;  %v14944_v57 = vperm.slane %v4798_v7, %v12943_v4 }
 0xd8d   : > { %7715 = vrot.lane.b32.xlu2 %v4670_v54, %s11096_s19  ;;  %v20348_v54 = vld [vmem:[#allocation167_spill] sm:$0xff]  ;;  %v14941_v56 = vsel %vm4013_vm9, %v7145_v31, %v7108_v60  ;;  %v7141_v13 = vrot.slane %v7128_v2, 4  ;;  %v14952_v25 = vsel %vm4013_vm9, %v7128_v2, %v7143_v30  ;;  %v4685_v9 = vrot.slane %v14864_v36, 4 }
 0xd8e   : > { %20352 = vst [vmem:[#allocation213_spill] sm:$0xff] %v14941_v56  ;;  %v4698_v32 = vsel %vm4013_vm9, %v4697_v47, %v14935_v21  ;;  %v4716_v60 = vperm.slane %v4710_v18, %v12943_v4  ;;  %v4557_v31 = vrot.slane %v14836_v24, 4  ;;  %v4728_v7 = vperm.slane %v4722_v11, %v12943_v4  ;;  %v20357_v47 = vld [vmem:[#allocation187_spill] sm:$0xff] }
 0xd8f   : > { %7699 = vrot.lane.b32.xlu1 %v20348_v54, %s11095_s20  ;;  %7683 = vrot.lane.b32.xlu0 %v20349_v8, %s11094_s9  ;;  %v14947_v54 = vperm.slane %v4822_v55, %v12943_v4  ;;  %v14949_v8 = vpop.permute.xlu2 %3753  ;;  %20354 = vst [vmem:[#allocation216_spill] sm:$0xff] %v14952_v25  ;;  %v4846_v55 = vsel %vm4013_vm9, %v4845_v5, %v14944_v57  ;;  %v20356_v25 = vld [vmem:[#allocation46_spill] sm:$0xff] }
 0xd90   : > { %20353 = vst [vmem:[#allocation51_spill] sm:$0xff] %v14949_v8  ;;  %v14965_v2 = vsel %vm4013_vm9, %v7141_v13, %v7104_v1  ;;  %v4560_v30 = vsel %vm4013_vm9, %v14836_v24, %v4559_v37  ;;  %v14972_v18 = vsel %vm3755_vm8, %v20357_v47, %v20356_v25  ;;  %v4704_v56 = vperm.slane %v4698_v32, %v12943_v4  ;;  %v20358_v37 = vld [vmem:[#allocation347_spill] sm:$0xff] }
 0xd91   : > { %v4870_v8 = vsel %vm4013_vm9, %v4869_v50, %v14947_v54  ;;  %20355 = vst [vmem:[#allocation103_spill] sm:$0xff] %v14965_v2  ;;  %v4686_v5 = vsel %vm4013_vm9, %v4685_v9, %v14972_v18  ;;  %v4558_v13 = vsel %vm4013_vm9, %v4557_v31, %v14824_v40  ;;  %v4852_v1 = vperm.slane %v4846_v55, %v13098_v43 }
 0xd92   : > { %v4876_v24 = vperm.slane %v4870_v8, %v13098_v43  ;;  %v4759_v50 = vrot.slane %v4716_v60, 4  ;;  %v4757_v11 = vrot.slane %v4728_v7, 4  ;;  %v4692_v25 = vperm.slane %v4686_v5, %v12943_v4 }
 0xd93   : > { %v4733_v32 = vrot.slane %v4704_v56, 4  ;;  %v4895_v9 = vrot.slane %v4852_v1, 4  ;;  %v4499_v40 = vrot.slane %v14686_v33, 4 }
 0xd94   : > { %v4893_v47 = vrot.slane %v4876_v24, 4  ;;  %v4758_v8 = vsel %vm4013_vm9, %v4757_v11, %v4716_v60  ;;  %v4647_v11 = vrot.slane %v14696_v39, 4 }
 0xd95   : > { %7729 = vrot.lane.b32.xlu2 %v4560_v30, %s11097_s15  ;;  %v4760_v30 = vsel %vm4013_vm9, %v4728_v7, %v4759_v50  ;;  %v4896_v55 = vsel %vm4013_vm9, %v4876_v24, %v4895_v9  ;;  %v4500_v5 = vsel %vm4013_vm9, %v14633_v19, %v4499_v40  ;;  %v4734_v7 = vsel %vm4013_vm9, %v4733_v32, %v4692_v25 }
 0xd96   : > { %v14994_v2 = vperm.slane %v4760_v30, %v13098_v43  ;;  %v4894_v60 = vsel %vm4013_vm9, %v4893_v47, %v4852_v1  ;;  %v4764_v24 = vperm.slane %v4758_v8, %v13098_v43  ;;  %v4487_v50 = vrot.slane %v14734_v15, 4 }
 0xd97   : > { %7713 = vrot.lane.b32.xlu1 %v4558_v13, %s11096_s19  ;;  %7697 = vrot.lane.b32.xlu0 %v20358_v37, %s11095_s20  ;;  %v14988_v31 = vpop.permute.xlu2 %7605  ;;  %v4459_v13 = vrot.slane %v14726_v26, 4  ;;  %v4735_v37 = vrot.slane %v4692_v25, 4  ;;  %v4475_v26 = vrot.slane %v14649_v46, 4  ;;  %v15011_v25 = vperm.slane %v4500_v5, %v12943_v4 }
 0xd98   : > { %v4785_v1 = vrot.slane %v14994_v2, 4  ;;  %v4740_v32 = vperm.slane %v4734_v7, %v13098_v43  ;;  %v4488_v39 = vsel %vm4013_vm9, %v14668_v10, %v4487_v50  ;;  %v4781_v30 = vrot.slane %v4764_v24, 4 }
 0xd99   : > { %v4460_v33 = vsel %vm4013_vm9, %v14676_v38, %v4459_v13  ;;  %v4736_v19 = vsel %vm4013_vm9, %v4704_v56, %v4735_v37  ;;  %v4623_v38 = vrot.slane %v14750_v14, 4  ;;  %v4476_v46 = vsel %vm4013_vm9, %v14617_v12, %v4475_v26 }
 0xd9a   : > { %v15021_v15 = vperm.slane %v4736_v19, %v13098_v43  ;;  %v4648_v14 = vsel %vm4013_vm9, %v14673_v61, %v4647_v11  ;;  %v4545_v9 = vrot.slane %v15011_v25, 4  ;;  %v4835_v47 = vrot.slane %v14853_v23, 4 }
 0xd9b   : > { %v4624_v56 = vsel %vm4013_vm9, %v14704_v22, %v4623_v38  ;;  %v4783_v40 = vrot.slane %v4740_v32, 4  ;;  %v4463_v10 = vrot.slane %v14681_v35, 4  ;;  %v15033_v8 = vperm.slane %v4476_v46, %v12943_v4 }
 0xd9c   : > { %v4786_v12 = vsel %vm4013_vm9, %v4785_v1, %v15021_v15  ;;  %v4632_v61 = vperm.slane %v4624_v56, %v13098_v43  ;;  %v4836_v23 = vsel %vm4013_vm9, %v14797_v29, %v4835_v47  ;;  %v4782_v13 = vsel %vm4013_vm9, %v4781_v30, %v4740_v32 }
 0xd9d   : > { %7735 = vrot.lane.b32.xlu2 %v4896_v55, %s11097_s15  ;;  %v15036_v55 = vperm.slane %v4488_v39, %v12943_v4  ;;  %v4784_v35 = vsel %vm4013_vm9, %v4764_v24, %v4783_v40  ;;  %v4656_v5 = vperm.slane %v4648_v14, %v13098_v43  ;;  %v4464_v37 = vsel %vm4013_vm9, %v14657_v52, %v4463_v10 }
 0xd9e   : > { %v4511_v7 = vrot.slane %v14769_v53, 4  ;;  %v4535_v24 = vrot.slane %v14779_v62, 4  ;;  %v15058_v26 = vperm.slane %v4836_v23, %v12943_v4  ;;  %v4811_v50 = vrot.slane %v14776_v3, 4 }
 0xd9f   : > { %7703 = vrot.lane.b32.xlu0 %v4460_v33, %s11095_s20  ;;  %7719 = vrot.lane.b32.xlu1 %v4894_v60, %s11096_s19  ;;  %v15038_v22 = vpop.permute.xlu2 %7619  ;;  %v4823_v33 = vrot.slane %v14895_v49, 4  ;;  %v4546_v29 = vsel %vm4013_vm9, %v4545_v9, %v15036_v55  ;;  %v4521_v60 = vrot.slane %v15033_v8, 4  ;;  %v4675_v11 = vrot.slane %v4632_v61, 4 }
 0xda0   : > { %20359 = vst [vmem:[#allocation92_spill] sm:$0xff] %v15038_v22  ;;  %v4673_v19 = vrot.slane %v4656_v5, 4  ;;  %v4512_v52 = vsel %vm4013_vm9, %v14700_v28, %v4511_v7  ;;  %v15064_v53 = vperm.slane %v4464_v37, %v12943_v4  ;;  %v15067_v49 = vperm.slane %v4546_v29, %v13098_v43 }
 0xda1   : > { %v4536_v38 = vsel %vm4013_vm9, %v14718_v34, %v4535_v24  ;;  %v4812_v62 = vsel %vm4013_vm9, %v14784_v6, %v4811_v50  ;;  %v4824_v3 = vsel %vm4013_vm9, %v14809_v17, %v4823_v33  ;;  %v4676_v1 = vsel %vm4013_vm9, %v4656_v5, %v4675_v11 }
 0xda2   : > { %v4671_v32 = vrot.slane %v14818_v48, 4  ;;  %v4699_v28 = vrot.slane %v14935_v21, 4  ;;  %v4881_v46 = vrot.slane %v15058_v26, 4  ;;  %v4522_v34 = vsel %vm4013_vm9, %v4521_v60, %v15064_v53 }
 0xda3   : > { %v4520_v39 = vperm.slane %v4512_v52, %v13098_v43  ;;  %v4723_v6 = vrot.slane %v14912_v42, 4  ;;  %v4674_v30 = vsel %vm4013_vm9, %v4673_v19, %v4632_v61  ;;  %v4544_v48 = vperm.slane %v4536_v38, %v13098_v43 }
 0xda4   : > { %v4672_v17 = vsel %vm4013_vm9, %v14755_v45, %v4671_v32  ;;  %v4700_v21 = vsel %vm4013_vm9, %v14884_v59, %v4699_v28  ;;  %v15091_v56 = vperm.slane %v4812_v62, %v12943_v4  ;;  %v15094_v14 = vperm.slane %v4824_v3, %v12943_v4 }
 0xda5   : > { %7749 = vrot.lane.b32.xlu2 %v4786_v12, %s11098_s24  ;;  %v4724_v45 = vsel %vm4013_vm9, %v14875_v27, %v4723_v6  ;;  %v4799_v42 = vrot.slane %v14905_v16, 4  ;;  %v4565_v47 = vrot.slane %v15067_v49, 4  ;;  %v4871_v59 = vrot.slane %v14947_v54, 4 }
 0xda6   : > { %v15106_v12 = vperm.slane %v4522_v34, %v13098_v43  ;;  %v4882_v40 = vsel %vm4013_vm9, %v4881_v46, %v15094_v14  ;;  %v15111_v10 = vperm.slane %v4700_v21, %v12943_v4  ;;  %v4561_v23 = vrot.slane %v4544_v48, 4 }
 0xda7   : > { %7717 = vrot.lane.b32.xlu0 %v4782_v13, %s11096_s19  ;;  %7733 = vrot.lane.b32.xlu1 %v4784_v35, %s11097_s15  ;;  %v15096_v9 = vpop.permute.xlu2 %7633  ;;  %v4800_v61 = vsel %vm4013_vm9, %v14841_v51, %v4799_v42  ;;  %v4563_v27 = vrot.slane %v4520_v39, 4  ;;  %v15116_v16 = vperm.slane %v4724_v45, %v12943_v4  ;;  %v4847_v13 = vrot.slane %v14944_v57, 4 }
 0xda8   : > { %20360 = vst [vmem:[#allocation285_spill] sm:$0xff] %v15096_v9  ;;  %v4857_v54 = vrot.slane %v15091_v56, 4  ;;  %v4872_v35 = vsel %vm4013_vm9, %v14898_v0, %v4871_v59  ;;  %v4711_v5 = vrot.slane %v14766_v63, 4  ;;  %v4687_v37 = vrot.slane %v14972_v18, 4 }
 0xda9   : > { %v4566_v7 = vsel %vm4013_vm9, %v4565_v47, %v15106_v12  ;;  %v15127_v51 = vperm.slane %v4882_v40, %v13098_v43  ;;  %v15130_v33 = vperm.slane %v4800_v61, %v12943_v4  ;;  %v4564_v57 = vsel %vm4013_vm9, %v4544_v48, %v4563_v27  ;;  %v15190_v27 = vpop.permute.xlu0 %7601 }
 0xdaa   : > { %v4848_v0 = vsel %vm4013_vm9, %v14888_v41, %v4847_v13  ;;  %v4688_v63 = vsel %vm4013_vm9, %v14864_v36, %v4687_v37  ;;  %v4712_v18 = vsel %vm4013_vm9, %v14829_v20, %v4711_v5  ;;  %v4562_v29 = vsel %vm4013_vm9, %v4561_v23, %v4520_v39  ;;  %v20366_v13 = vld [vmem:[#allocation72_spill] sm:$0xff] }
 0xdab   : > { %v4880_v60 = vperm.slane %v4872_v35, %v13098_v43  ;;  %v4745_v24 = vrot.slane %v15111_v10, 4  ;;  %v4769_v50 = vrot.slane %v15116_v16, 4  ;;  %v4858_v36 = vsel %vm4013_vm9, %v4857_v54, %v15130_v33  ;;  %v20367_v54 = vld [vmem:[#allocation86_spill] sm:$0xff] }
 0xdac   : > { %v4901_v41 = vrot.slane %v15127_v51, 4  ;;  %v4856_v20 = vperm.slane %v4848_v0, %v13098_v43  ;;  %v15153_v19 = vperm.slane %v4688_v63, %v12943_v4  ;;  %v15156_v52 = vperm.slane %v4712_v18, %v12943_v4  ;;  %v20371_v63 = vld [vmem:[#allocation87_spill] sm:$0xff] }
 0xdad   : > { %7763 = vrot.lane.b32.xlu2 %v4676_v1, %s11099_s25  ;;  %v15159_v38 = vperm.slane %v4858_v36, %v13098_v43  ;;  %v4897_v62 = vrot.slane %v4880_v60, 4  ;;  %v4787_v42 = vrot.slane %v15021_v15, 4  ;;  %v4523_v61 = vrot.slane %v15064_v53, 4  ;;  %v20375_v36 = vld [vmem:[#allocation83_spill] sm:$0xff] }
 0xdae   : > { %v4746_v3 = vsel %vm4013_vm9, %v4745_v24, %v15153_v19  ;;  %v4770_v1 = vsel %vm4013_vm9, %v4769_v50, %v15156_v52  ;;  %v4899_v28 = vrot.slane %v4856_v20, 4  ;;  %v4547_v23 = vrot.slane %v15036_v55, 4  ;;  %v20368_v55 = vld [vmem:[#allocation181_spill] sm:$0xff] }
 0xdaf   : > { %7731 = vrot.lane.b32.xlu0 %v4672_v17, %s11097_s15  ;;  %7747 = vrot.lane.b32.xlu1 %v4674_v30, %s11098_s24  ;;  %v4902_v32 = vsel %vm4013_vm9, %v4901_v41, %v15159_v38  ;;  %v4898_v46 = vsel %vm4013_vm9, %v4897_v62, %v4856_v20  ;;  %v4752_v39 = vperm.slane %v4746_v3, %v13098_v43  ;;  %v15172_v17 = vpop.permute.xlu1 %7603  ;;  %v5169_v18 = vrot.slane %v20371_v63, 4  ;;  %v20374_v24 = vld [vmem:[#allocation169_spill] sm:$0xff]  ;;  %v20376_v20 = vld [vmem:[#allocation316_spill] sm:$0xff]  ;;  %v20377_v62 = vld [vmem:[#allocation43_spill] sm:$0xff] }
 0xdb0   : > { %v4900_v34 = vsel %vm4013_vm9, %v4880_v60, %v4899_v28  ;;  %v4776_v6 = vperm.slane %v4770_v1, %v13098_v43  ;;  %20362 = vst [vmem:[#allocation219_spill] sm:$0xff] %v15172_v17  ;;  %v4788_v47 = vsel %vm4013_vm9, %v14994_v2, %v4787_v42  ;;  %v15197_v2 = vsel %vm3755_vm8, %v20367_v54, %v20366_v13  ;;  %v20378_v1 = vld [vmem:[#allocation139_spill] sm:$0xff]  ;;  %v20386_v42 = vld [vmem:[#allocation70_spill] sm:$0xff]  ;;  %v20389_v54 = vld [vmem:[#allocation385_spill] sm:$0xff] }
 0xdb1   : > { %v4791_v48 = vrot.slane %v4752_v39, 4  ;;  %v4524_v35 = vsel %vm4013_vm9, %v15033_v8, %v4523_v61  ;;  %v4548_v5 = vsel %vm4013_vm9, %v15011_v25, %v4547_v23  ;;  %v20373_v25 = vld [vmem:[#allocation80_spill] sm:$0xff]  ;;  %v5133_v41 = vrot.slane %v20375_v36, 4  ;;  %v20612_v17 = vld [vmem:[#allocation359_spill] sm:$0xff] }
 0xdb2   : > { %v4789_v21 = vrot.slane %v4776_v6, 4  ;;  %v4532_v53 = vperm.slane %v4524_v35, %v13098_v43  ;;  %v4556_v60 = vperm.slane %v4548_v5, %v13098_v43  ;;  %v15218_v50 = vsel %vm3755_vm8, %v20374_v24, %v20373_v25  ;;  %v20388_v23 = vld [vmem:[#allocation48_spill] sm:$0xff]  ;;  %v20390_v35 = vld [vmem:[#allocation49_spill] sm:$0xff] }
 0xdb3   : > { %v4792_v45 = vsel %vm4013_vm9, %v4776_v6, %v4791_v48  ;;  %v15224_v3 = vsel %vm3755_vm8, %v20377_v62, %v20376_v20  ;;  %v20383_v6 = vld [vmem:[#allocation324_spill] sm:$0xff]  ;;  %v20384_v48 = vld [vmem:[#allocation59_spill] sm:$0xff]  ;;  %v5170_v13 = vsel %vm4013_vm9, %v5169_v18, %v20388_v23  ;;  %v15253_v5 = vsel %vm3755_vm8, %v20390_v35, %v20389_v54  ;;  %v20393_v24 = vld [vmem:[#allocation245_spill] sm:$0xff] }
 0xdb4   : > { %v4790_v59 = vsel %vm4013_vm9, %v4789_v21, %v4752_v39  ;;  %v20382_v39 = vld [vmem:[#allocation66_spill] sm:$0xff]  ;;  %v15240_v21 = vsel %vm3755_vm8, %v20384_v48, %v20383_v6  ;;  %v4567_v18 = vrot.slane %v15106_v12, 4  ;;  %v4569_v20 = vrot.slane %v4556_v60, 4  ;;  %v20394_v62 = vld [vmem:[#allocation369_spill] sm:$0xff]  ;;  %v20397_v6 = vld [vmem:[#allocation124_spill] sm:$0xff] }
 0xdb5   : > { %7777 = vrot.lane.b32.xlu2 %v4566_v7, %s19553_s17  ;;  %v20369_v7 = vld [vmem:[#allocation76_spill] sm:$0xff]  ;;  %v5057_v12 = vrot.slane %v15253_v5, 4  ;;  %v20398_v48 = vld [vmem:[#allocation203_spill] sm:$0xff]  ;;  %v20400_v23 = vld [vmem:[#allocation145_spill] sm:$0xff]  ;;  %v4903_v37 = vrot.slane %v15159_v38, 4 }
 0xdb6   : > { %v20402_v54 = vld [vmem:[#allocation47_spill] sm:$0xff] }
 0xdb7   : > { %v15144_v11 = vpop.permute.xlu2 %7639  ;;  %7745 = vrot.lane.b32.xlu0 %v4562_v29, %s11098_s24  ;;  %7761 = vrot.lane.b32.xlu1 %v4564_v57, %s11099_s25  ;;  %v15192_v15 = vpop.permute.xlu1 %7617  ;;  %v20370_v57 = vld [vmem:[#allocation136_spill] sm:$0xff] }
 0xdb8   : > { %20361 = vst [vmem:[#allocation226_spill] sm:$0xff] %v15144_v11  ;;  %v15210_v0 = vsel %vm3755_vm8, %v20370_v57, %v20369_v7  ;;  %v20372_v29 = vld [vmem:[#allocation52_spill] sm:$0xff]  ;;  %v4883_v7 = vrot.slane %v15094_v14, 4  ;;  %v15271_v14 = vperm.slane %v5170_v13, %v12943_v4 }
 0xdb9   : > { %20365 = vst [vmem:[#allocation209_spill] sm:$0xff] %v15192_v15  ;;  %v5157_v8 = vrot.slane %v20372_v29, 4  ;;  %v4571_v29 = vrot.slane %v4532_v53, 4 }
 0xdbb   : > { %v5158_v36 = vsel %vm4013_vm9, %v5157_v8, %v20393_v24 }
 0xdbc   : > { %v15297_v35 = vperm.slane %v5158_v36, %v12943_v4  ;;  %v20404_v36 = vld [vmem:[#allocation175_spill] sm:$0xff] }
 0xdbd   : > { %7783 = vrot.lane.b32.xlu2 %v4902_v32, %s19553_s17  ;;  %v20379_v32 = vld [vmem:[#allocation152_spill] sm:$0xff] }
 0xdbe   : > { %v15229_v28 = vsel %vm3755_vm8, %v20379_v32, %v20378_v1  ;;  %v20395_v1 = vld [vmem:[#allocation111_spill] sm:$0xff] }
 0xdbf   : > { %v15174_v30 = vpop.permute.xlu2 %7653  ;;  %7751 = vrot.lane.b32.xlu0 %v4898_v46, %s11098_s24  ;;  %7767 = vrot.lane.b32.xlu1 %v4900_v34, %s11099_s25  ;;  %v20381_v34 = vld [vmem:[#allocation164_spill] sm:$0xff]  ;;  %v5033_v25 = vrot.slane %v15229_v28, 4  ;;  %v15268_v32 = vsel %vm3755_vm8, %v20395_v1, %v20394_v62 }
 0xdc0   : > { %20363 = vst [vmem:[#allocation229_spill] sm:$0xff] %v15174_v30  ;;  %v20403_v62 = vld [vmem:[#allocation320_spill] sm:$0xff] }
 0xdc1   : > { %v15311_v1 = vsel %vm3755_vm8, %v20404_v36, %v20403_v62 }
 0xdc5   : > { %7797 = vrot.lane.b32.xlu2 %v4792_v45, %s11101_s14  ;;  %v20385_v45 = vld [vmem:[#allocation330_spill] sm:$0xff] }
 0xdc7   : > { %v15184_v40 = vpop.permute.xlu2 %7667  ;;  %7765 = vrot.lane.b32.xlu0 %v4788_v47, %s11099_s25  ;;  %7781 = vrot.lane.b32.xlu1 %v4790_v59, %s19553_s17  ;;  %v15245_v47 = vsel %vm3755_vm8, %v20386_v42, %v20385_v45  ;;  %v20387_v59 = vld [vmem:[#allocation190_spill] sm:$0xff]  ;;  %v4572_v42 = vsel %vm4013_vm9, %v4556_v60, %v4571_v29 }
 0xdc8   : > { %20364 = vst [vmem:[#allocation260_spill] sm:$0xff] %v15184_v40  ;;  %v5145_v61 = vrot.slane %v20387_v59, 4  ;;  %v20399_v59 = vld [vmem:[#allocation380_spill] sm:$0xff]  ;;  %v4909_v24 = vrot.slane %v15245_v47, 4 }
 0xdc9   : > { %v15289_v13 = vsel %vm3755_vm8, %v20400_v23, %v20399_v59 }
 0xdca   : > { %v5146_v45 = vsel %vm4013_vm9, %v5145_v61, %v20398_v48  ;;  %v4568_v61 = vsel %vm4013_vm9, %v15067_v49, %v4567_v18  ;;  %v5034_v60 = vsel %vm4013_vm9, %v5033_v25, %v15289_v13  ;;  %v5205_v49 = vrot.slane %v15271_v14, 4  ;;  %v20407_v25 = vld [vmem:[#allocation96_spill] sm:$0xff] }
 0xdcd   : > { %7811 = vrot.lane.b32.xlu2 %v20368_v55, %s11102_s18  ;;  %v4859_v55 = vrot.slane %v15130_v33, 4 }
 0xdcf   : > { %v15231_v46 = vpop.permute.xlu2 %7681  ;;  %7779 = vrot.lane.b32.xlu0 %v20381_v34, %s19553_s17  ;;  %7795 = vrot.lane.b32.xlu1 %v20382_v39, %s11101_s14  ;;  %v4860_v33 = vsel %vm4013_vm9, %v15091_v56, %v4859_v55  ;;  %v4884_v34 = vsel %vm4013_vm9, %v15058_v26, %v4883_v7  ;;  %v20396_v39 = vld [vmem:[#allocation372_spill] sm:$0xff]  ;;  %v4570_v55 = vsel %vm4013_vm9, %v4569_v20, %v4532_v53  ;;  %v20406_v53 = vld [vmem:[#allocation345_spill] sm:$0xff]  ;;  %s19556_s17 = smov 58  }
 0xdd0   : > { %20380 = vst [vmem:[#allocation273_spill] sm:$0xff] %v15231_v46  ;;  %v15280_v8 = vsel %vm3755_vm8, %v20397_v6, %v20396_v39  ;;  %v20401_v56 = vld [vmem:[#allocation384_spill] sm:$0xff]  ;;  %v4868_v7 = vperm.slane %v4860_v33, %v13098_v43  ;;  %v4892_v29 = vperm.slane %v4884_v34, %v13098_v43  ;;  %v15314_v39 = vperm.slane %v5146_v45, %v12943_v4 }
 0xdd1   : > { %v15257_v57 = vpop.permute.xlu0 %7607  ;;  %v15259_v63 = vpop.permute.xlu1 %7623  ;;  %v15294_v26 = vsel %vm3755_vm8, %v20402_v54, %v20401_v56  ;;  %v15324_v20 = vsel %vm3755_vm8, %v20407_v25, %v20406_v53  ;;  %v4933_v33 = vrot.slane %v15268_v32, 4  ;;  %v5058_v6 = vsel %vm4013_vm9, %v5057_v12, %v15218_v50 }
 0xdd2   : > { %20391 = vst [vmem:[#allocation307_spill] sm:$0xff] %v15257_v57  ;;  %v5021_v34 = vrot.slane %v15294_v26, 4  ;;  %v4945_v48 = vrot.slane %v15280_v8, 4  ;;  %v15332_v45 = vperm.slane %v5034_v60, %v12943_v4  ;;  %v5206_v56 = vsel %vm4013_vm9, %v5205_v49, %v15297_v35  ;;  %v20421_v57 = vld [vmem:[#allocation90_spill] sm:$0xff] }
 0xdd3   : > { %20392 = vst [vmem:[#allocation309_spill] sm:$0xff] %v15259_v63  ;;  %v5045_v54 = vrot.slane %v15311_v1, 4  ;;  %v4907_v12 = vrot.slane %v4868_v7, 4  ;;  %v4905_v62 = vrot.slane %v4892_v29, 4  ;;  %v15345_v36 = vperm.slane %v5058_v6, %v12943_v4 }
 0xdd4   : > { %v4747_v60 = vrot.slane %v15153_v19, 4  ;;  %v5022_v49 = vsel %vm4013_vm9, %v5021_v34, %v15210_v0  ;;  %v5069_v6 = vrot.slane %v15332_v45, 4 }
 0xdd5   : > { %7825 = vrot.lane.b32.xlu2 %v4572_v42, %s19542_s27  ;;  %v4771_v42 = vrot.slane %v15156_v52, 4  ;;  %v5181_v52 = vrot.slane %v15314_v39, 4  ;;  %v4908_v25 = vsel %vm4013_vm9, %v4892_v29, %v4907_v12  ;;  %v4904_v29 = vsel %vm4013_vm9, %v15127_v51, %v4903_v37 }
 0xdd6   : > { %v4906_v34 = vsel %vm4013_vm9, %v4905_v62, %v4868_v7  ;;  %v4934_v12 = vsel %vm4013_vm9, %v4933_v33, %v15324_v20  ;;  %v15393_v7 = vperm.slane %v5022_v49, %v12943_v4  ;;  %v20414_v62 = vrot.slane %v15197_v2, 4 }
 0xdd7   : > { %v15317_v18 = vpop.permute.xlu2 %7687  ;;  %7793 = vrot.lane.b32.xlu0 %v4568_v61, %s11101_s14  ;;  %7809 = vrot.lane.b32.xlu1 %v4570_v55, %s11102_s18  ;;  %v20408_v61 = vld [vmem:[#allocation184_spill] sm:$0xff]  ;;  %v4772_v53 = vsel %vm4013_vm9, %v15116_v16, %v4771_v42  ;;  %v4748_v16 = vsel %vm4013_vm9, %v15111_v10, %v4747_v60  ;;  %v5093_v10 = vrot.slane %v15345_v36, 4 }
 0xdd8   : > { %20405 = vst [vmem:[#allocation232_spill] sm:$0xff] %v15317_v18  ;;  %v5134_v55 = vsel %vm4013_vm9, %v5133_v41, %v20408_v61  ;;  %v15356_v41 = vperm.slane %v5206_v56, %v13098_v43  ;;  %v20409_v61 = vld [vmem:[#allocation143_spill] sm:$0xff]  ;;  %v20410_v18 = vld [vmem:[#allocation158_spill] sm:$0xff]  ;;  %v4780_v42 = vperm.slane %v4772_v53, %v13098_v43  ;;  %v20412_v56 = vld [vmem:[#allocation45_spill] sm:$0xff]  ;;  %v4756_v33 = vperm.slane %v4748_v16, %v13098_v43 }
 0xdd9   : > { %v15335_v59 = vpop.permute.xlu0 %7621  ;;  %v15337_v23 = vpop.permute.xlu1 %7637  ;;  %v15362_v19 = vsel %vm3755_vm8, %v20410_v18, %v20409_v61  ;;  %v15365_v11 = vperm.slane %v5134_v55, %v12943_v4  ;;  %v20411_v18 = vld [vmem:[#allocation350_spill] sm:$0xff]  ;;  %v4922_v53 = vsel %vm4013_vm9, %v20414_v62, %v15240_v21 }
 0xdda   : > { %v5046_v38 = vsel %vm4013_vm9, %v5045_v54, %v15362_v19  ;;  %v15379_v55 = vsel %vm3755_vm8, %v20412_v56, %v20411_v18  ;;  %v5229_v54 = vrot.slane %v15356_v41, 4  ;;  %v4793_v18 = vrot.slane %v4780_v42, 4 }
 0xddb   : > { %v5182_v51 = vsel %vm4013_vm9, %v5181_v52, %v15365_v11  ;;  %v4946_v37 = vsel %vm4013_vm9, %v4945_v48, %v15379_v55  ;;  %v20415_v52 = vld [vmem:[#allocation56_spill] sm:$0xff]  ;;  %v20416_v48 = vld [vmem:[#allocation306_spill] sm:$0xff]  ;;  %v4940_v56 = vperm.slane %v4934_v12, %v12943_v4  ;;  %v20422_v12 = vld [vmem:[#allocation287_spill] sm:$0xff]  ;;  %v4928_v9 = vperm.slane %v4922_v53, %v12943_v4 }
 0xddc   : > { %v15407_v61 = vsel %vm3755_vm8, %v20415_v52, %v14584_v44  ;;  %v15412_v49 = vsel %vm3755_vm8, %v20416_v48, %v14793_v58  ;;  %v5070_v44 = vsel %vm4013_vm9, %v5069_v6, %v15393_v7  ;;  %v4952_v62 = vperm.slane %v4946_v37, %v12943_v4  ;;  %v20419_v58 = vld [vmem:[#allocation429_spill] sm:$0xff]  ;;  %v20420_v52 = vld [vmem:[#allocation272_spill] sm:$0xff] }
 0xddd   : > { %7831 = vrot.lane.b32.xlu2 %v4908_v25, %s19542_s27  ;;  %v15402_v25 = vperm.slane %v5046_v38, %v12943_v4  ;;  %v15421_v38 = vperm.slane %v5182_v51, %v13098_v43  ;;  %v15430_v48 = vsel %vm3755_vm8, %v20420_v52, %v20419_v58  ;;  %v5281_v51 = vrot.slane %v15412_v49, 4 }
 0xdde   : > { %v4795_v6 = vrot.slane %v4756_v33, 4  ;;  %v15441_v37 = vsel %vm3755_vm8, %v20422_v12, %v20421_v57  ;;  %v5257_v52 = vrot.slane %v15430_v48, 4  ;;  %v4794_v40 = vsel %vm4013_vm9, %v4793_v18, %v4756_v33  ;;  %v20423_v12 = vld [vmem:[#allocation73_spill] sm:$0xff] }
 0xddf   : > { %v15384_v60 = vpop.permute.xlu2 %7701  ;;  %7799 = vrot.lane.b32.xlu0 %v4904_v29, %s11101_s14  ;;  %7815 = vrot.lane.b32.xlu1 %v4906_v34, %s11102_s18  ;;  %v4910_v34 = vsel %vm4013_vm9, %v4909_v24, %v15224_v3  ;;  %v5094_v46 = vsel %vm4013_vm9, %v5093_v10, %v15402_v25  ;;  %v5269_v24 = vrot.slane %v15407_v61, 4  ;;  %v5230_v63 = vsel %vm4013_vm9, %v5229_v54, %v15421_v38  ;;  %v20429_v18 = vld [vmem:[#allocation53_spill] sm:$0xff] }
 0xde0   : > { %20413 = vst [vmem:[#allocation302_spill] sm:$0xff] %v15384_v60  ;;  %v4916_v58 = vperm.slane %v4910_v34, %v12943_v4  ;;  %v5076_v10 = vperm.slane %v5070_v44, %v13098_v43  ;;  %v4796_v54 = vsel %vm4013_vm9, %v4780_v42, %v4795_v6  ;;  %v5100_v15 = vperm.slane %v5094_v46, %v13098_v43  ;;  %v20425_v34 = vld [vmem:[#allocation261_spill] sm:$0xff] }
 0xde1   : > { %v15414_v29 = vpop.permute.xlu0 %7635  ;;  %v15416_v16 = vpop.permute.xlu1 %7651  ;;  %v4983_v60 = vrot.slane %v4940_v56, 4  ;;  %v4981_v57 = vrot.slane %v4952_v62, 4  ;;  %v5270_v46 = vsel %vm4013_vm9, %v5269_v24, %v15441_v37  ;;  %v4957_v33 = vrot.slane %v4928_v9, 4 }
 0xde2   : > { %20417 = vst [vmem:[#allocation294_spill] sm:$0xff] %v15414_v29  ;;  %v20426_v29 = vld [vmem:[#allocation295_spill] sm:$0xff]  ;;  %v5276_v22 = vperm.slane %v5270_v46, %v12943_v4 }
 0xde3   : > { %20418 = vst [vmem:[#allocation205_spill] sm:$0xff] %v15416_v16  ;;  %v20424_v16 = vld [vmem:[#allocation264_spill] sm:$0xff]  ;;  %v4958_v46 = vsel %vm4013_vm9, %v4957_v33, %v4916_v58 }
 0xde4   : > { %v15454_v53 = vsel %vm3755_vm8, %v20424_v16, %v20423_v12  ;;  %v20428_v16 = vld [vmem:[#allocation420_spill] sm:$0xff]  ;;  %v4964_v33 = vperm.slane %v4958_v46, %v13098_v43 }
 0xde5   : > { %7845 = vrot.lane.b32.xlu2 %v5230_v63, %s19543_s2  ;;  %v15459_v63 = vsel %vm3755_vm8, %v20426_v29, %v20425_v34  ;;  %v15472_v6 = vsel %vm3755_vm8, %v20429_v18, %v20428_v16  ;;  %v5119_v34 = vrot.slane %v5076_v10, 4  ;;  %v4982_v16 = vsel %vm4013_vm9, %v4981_v57, %v4940_v56 }
 0xde6   : > { %v5282_v42 = vsel %vm4013_vm9, %v5281_v51, %v15459_v63  ;;  %v5258_v24 = vsel %vm4013_vm9, %v5257_v52, %v15472_v6  ;;  %v4959_v51 = vrot.slane %v4916_v58, 4  ;;  %v4988_v57 = vperm.slane %v4982_v16, %v13098_v43 }
 0xde7   : > { %v15461_v44 = vpop.permute.xlu2 %7715  ;;  %7813 = vrot.lane.b32.xlu0 %v4794_v40, %s11102_s18  ;;  %7829 = vrot.lane.b32.xlu1 %v4796_v54, %s19542_s27  ;;  %v4984_v40 = vsel %vm4013_vm9, %v4952_v62, %v4983_v60  ;;  %v5245_v54 = vrot.slane %v15454_v53, 4  ;;  %v5288_v30 = vperm.slane %v5282_v42, %v12943_v4  ;;  %v5120_v18 = vsel %vm4013_vm9, %v5100_v15, %v5119_v34  ;;  %v20432_v60 = vld [vmem:[#allocation118_spill] sm:$0xff]  ;;  %v20433_v62 = vld [vmem:[#allocation253_spill] sm:$0xff] }
 0xde8   : > { %20427 = vst [vmem:[#allocation268_spill] sm:$0xff] %v15461_v44  ;;  %v5117_v44 = vrot.slane %v5100_v15, 4  ;;  %v5264_v52 = vperm.slane %v5258_v24, %v12943_v4  ;;  %v5319_v42 = vrot.slane %v5276_v22, 4  ;;  %v4960_v24 = vsel %vm4013_vm9, %v4928_v9, %v4959_v51 }
 0xde9   : > { %v15474_v29 = vpop.permute.xlu0 %7649  ;;  %v15476_v12 = vpop.permute.xlu1 %7665  ;;  %v5059_v9 = vrot.slane %v15218_v50, 4  ;;  %v5007_v46 = vrot.slane %v4964_v33, 4 }
 0xdea   : > { %20430 = vst [vmem:[#allocation288_spill] sm:$0xff] %v15474_v29  ;;  %v15492_v29 = vsel %vm3755_vm8, %v20433_v62, %v20432_v60  ;;  %v5118_v15 = vsel %vm4013_vm9, %v5117_v44, %v5076_v10  ;;  %v20435_v60 = vld [vmem:[#allocation222_spill] sm:$0xff]  ;;  %v5293_v10 = vrot.slane %v5264_v52, 4  ;;  %v15516_v62 = vperm.slane %v4960_v24, %v13098_v43 }
 0xdeb   : > { %20431 = vst [vmem:[#allocation315_spill] sm:$0xff] %v15476_v12  ;;  %v15487_v12 = vperm.slane %v4984_v40, %v13098_v43  ;;  %v5246_v56 = vsel %vm4013_vm9, %v5245_v54, %v15492_v29  ;;  %v5317_v40 = vrot.slane %v5288_v30, 4  ;;  %v5008_v50 = vsel %vm4013_vm9, %v4988_v57, %v5007_v46 }
 0xdec   : > { %v5252_v54 = vperm.slane %v5246_v56, %v12943_v4  ;;  %v5207_v24 = vrot.slane %v15297_v35, 4 }
 0xded   : > { %7859 = vrot.lane.b32.xlu2 %v5120_v18, %s19544_s26  ;;  %v5009_v58 = vrot.slane %v15487_v12, 4  ;;  %v5320_v18 = vsel %vm4013_vm9, %v5288_v30, %v5319_v42  ;;  %v5060_v42 = vsel %vm4013_vm9, %v15253_v5, %v5059_v9 }
 0xdee   : > { %v15523_v56 = vperm.slane %v5320_v18, %v13098_v43  ;;  %v5294_v30 = vsel %vm4013_vm9, %v5293_v10, %v5252_v54 }
 0xdef   : > { %v15501_v34 = vpop.permute.xlu2 %7729  ;;  %7827 = vrot.lane.b32.xlu0 %v20435_v60, %s19542_s27  ;;  %7843 = vrot.lane.b32.xlu1 %v5118_v15, %s19543_s2  ;;  %v5005_v60 = vrot.slane %v4988_v57, 4  ;;  %v5318_v15 = vsel %vm4013_vm9, %v5317_v40, %v5276_v22  ;;  %v5010_v51 = vsel %vm4013_vm9, %v5009_v58, %v15516_v62  ;;  %s19545_s27 = smov 36   ;;  %v5300_v5 = vperm.slane %v5294_v30, %v13098_v43 }
 0xdf0   : > { %20434 = vst [vmem:[#allocation36_spill] sm:$0xff] %v15501_v34  ;;  %v5295_v34 = vrot.slane %v5252_v54, 4  ;;  %v5324_v40 = vperm.slane %v5318_v15, %v13098_v43  ;;  %v5345_v54 = vrot.slane %v15523_v56, 4  ;;  %v5183_v57 = vrot.slane %v15365_v11, 4 }
 0xdf1   : > { %v15510_v44 = vpop.permute.xlu0 %7655  ;;  %v15512_v16 = vpop.permute.xlu1 %7671  ;;  %v5006_v22 = vsel %vm4013_vm9, %v5005_v60, %v4964_v33  ;;  %v15541_v33 = vperm.slane %v5060_v42, %v12943_v4  ;;  %v5035_v60 = vrot.slane %v15289_v13, 4  ;;  %v5047_v15 = vrot.slane %v15362_v19, 4 }
 0xdf2   : > { %20436 = vst [vmem:[#allocation196_spill] sm:$0xff] %v15510_v44  ;;  %v5296_v18 = vsel %vm4013_vm9, %v5264_v52, %v5295_v34  ;;  %v5341_v52 = vrot.slane %v5324_v40, 4  ;;  %v4923_v34 = vrot.slane %v15240_v21, 4  ;;  %v5184_v46 = vsel %vm4013_vm9, %v15314_v39, %v5183_v57  ;;  %v20514_v44 = vld [vmem:[#allocation376_spill] sm:$0xff] }
 0xdf3   : > { %20437 = vst [vmem:[#allocation251_spill] sm:$0xff] %v15512_v16  ;;  %v15551_v9 = vperm.slane %v5296_v18, %v13098_v43  ;;  %v5208_v11 = vsel %vm4013_vm9, %v15271_v14, %v5207_v24  ;;  %v5036_v30 = vsel %vm4013_vm9, %v15229_v28, %v5035_v60  ;;  %v5048_v13 = vsel %vm4013_vm9, %v15311_v1, %v5047_v15 }
 0xdf4   : > { %v5343_v42 = vrot.slane %v5300_v5, 4  ;;  %v4911_v21 = vrot.slane %v15224_v3, 4  ;;  %v5105_v39 = vrot.slane %v15541_v33, 4  ;;  %v5342_v14 = vsel %vm4013_vm9, %v5341_v52, %v5300_v5 }
 0xdf5   : > { %7873 = vrot.lane.b32.xlu2 %v5010_v51, %s19545_s27  ;;  %v4947_v51 = vrot.slane %v15379_v55, 4  ;;  %v5346_v19 = vsel %vm4013_vm9, %v5345_v54, %v15551_v9  ;;  %v5216_v1 = vperm.slane %v5208_v11, %v13098_v43  ;;  %v15578_v3 = vperm.slane %v5048_v13, %v12943_v4 }
 0xdf6   : > { %v5344_v28 = vsel %vm4013_vm9, %v5324_v40, %v5343_v42  ;;  %v5023_v24 = vrot.slane %v15210_v0, 4  ;;  %v4924_v40 = vsel %vm4013_vm9, %v15197_v2, %v4923_v34  ;;  %v4912_v18 = vsel %vm4013_vm9, %v15245_v47, %v4911_v21 }
 0xdf7   : > { %7841 = vrot.lane.b32.xlu0 %v5006_v22, %s19543_s2  ;;  %v15534_v58 = vpop.permute.xlu2 %7735  ;;  %7857 = vrot.lane.b32.xlu1 %v5008_v50, %s19544_s26  ;;  %v4948_v55 = vsel %vm4013_vm9, %v15280_v8, %v4947_v51  ;;  %v5192_v22 = vperm.slane %v5184_v46, %v13098_v43  ;;  %v15575_v50 = vperm.slane %v5036_v30, %v12943_v4  ;;  %v5095_v54 = vrot.slane %v15402_v25, 4 }
 0xdf8   : > { %20438 = vst [vmem:[#allocation419_spill] sm:$0xff] %v15534_v58  ;;  %v4935_v5 = vrot.slane %v15324_v20, 4  ;;  %v15592_v57 = vperm.slane %v4948_v55, %v12943_v4  ;;  %v5106_v0 = vsel %vm4013_vm9, %v5105_v39, %v15578_v3  ;;  %v5024_v2 = vsel %vm4013_vm9, %v15294_v26, %v5023_v24 }
 0xdf9   : > { %v15544_v10 = vpop.permute.xlu0 %7669  ;;  %v15546_v35 = vpop.permute.xlu1 %7685  ;;  %v5235_v52 = vrot.slane %v5192_v22, 4  ;;  %v5233_v34 = vrot.slane %v5216_v1, 4  ;;  %v5096_v47 = vsel %vm4013_vm9, %v15345_v36, %v5095_v54  ;;  %v15605_v20 = vperm.slane %v4924_v40, %v12943_v4 }
 0xdfa   : > { %20439 = vst [vmem:[#allocation238_spill] sm:$0xff] %v15544_v10  ;;  %v15608_v25 = vperm.slane %v4912_v18, %v12943_v4  ;;  %v5071_v51 = vrot.slane %v15393_v7, 4  ;;  %v5081_v46 = vrot.slane %v15575_v50, 4  ;;  %v4936_v11 = vsel %vm4013_vm9, %v15268_v32, %v4935_v5 }
 0xdfb   : > { %20440 = vst [vmem:[#allocation400_spill] sm:$0xff] %v15546_v35  ;;  %v5236_v26 = vsel %vm4013_vm9, %v5216_v1, %v5235_v52  ;;  %v5231_v30 = vrot.slane %v15421_v38, 4  ;;  %v15617_v13 = vperm.slane %v5106_v0, %v13098_v43  ;;  %v4993_v36 = vrot.slane %v15592_v57, 4 }
 0xdfc   : > { %v5072_v7 = vsel %vm4013_vm9, %v15332_v45, %v5071_v51  ;;  %v5104_v32 = vperm.slane %v5096_v47, %v13098_v43  ;;  %v5259_v42 = vrot.slane %v15472_v6, 4  ;;  %v5283_v38 = vrot.slane %v15459_v63, 4 }
 0xdfd   : > { %7879 = vrot.lane.b32.xlu2 %v5346_v19, %s19545_s27  ;;  %v15621_v19 = vperm.slane %v5024_v2, %v12943_v4  ;;  %v5232_v21 = vsel %vm4013_vm9, %v15356_v41, %v5231_v30  ;;  %v5234_v55 = vsel %vm4013_vm9, %v5233_v34, %v5192_v22  ;;  %v4969_v39 = vrot.slane %v15605_v20, 4 }
 0xdfe   : > { %v5260_v63 = vsel %vm4013_vm9, %v15430_v48, %v5259_v42  ;;  %v5284_v41 = vsel %vm4013_vm9, %v15412_v49, %v5283_v38  ;;  %v5125_v6 = vrot.slane %v15617_v13, 4  ;;  %v5080_v22 = vperm.slane %v5072_v7, %v13098_v43 }
 0xdff   : > { %7847 = vrot.lane.b32.xlu0 %v5342_v14, %s19543_s2  ;;  %v15581_v8 = vpop.permute.xlu2 %7749  ;;  %7863 = vrot.lane.b32.xlu1 %v5344_v28, %s19544_s26  ;;  %s19546_s2 = smov 38   ;;  %v15634_v14 = vperm.slane %v4936_v11, %v12943_v4  ;;  %v5082_v45 = vsel %vm4013_vm9, %v5081_v46, %v15621_v19  ;;  %v4970_v40 = vsel %vm4013_vm9, %v4969_v39, %v15608_v25  ;;  %v5121_v54 = vrot.slane %v5104_v32, 4 }
 0xe00   : > { %20441 = vst [vmem:[#allocation204_spill] sm:$0xff] %v15581_v8  ;;  %v15655_v18 = vperm.slane %v5082_v45, %v13098_v43  ;;  %v15660_v49 = vperm.slane %v5260_v63, %v12943_v4  ;;  %v15663_v5 = vperm.slane %v5284_v41, %v12943_v4  ;;  %v5271_v0 = vrot.slane %v15441_v37, 4 }
 0xe01   : > { %v15594_v60 = vpop.permute.xlu0 %7683  ;;  %v15596_v15 = vpop.permute.xlu1 %7699  ;;  %v4994_v48 = vsel %vm4013_vm9, %v4993_v36, %v15634_v14  ;;  %v5247_v2 = vrot.slane %v15492_v29, 4  ;;  %v5123_v34 = vrot.slane %v5080_v22, 4  ;;  %v4976_v47 = vperm.slane %v4970_v40, %v13098_v43 }
 0xe02   : > { %20442 = vst [vmem:[#allocation426_spill] sm:$0xff] %v15594_v60  ;;  %v5126_v52 = vsel %vm4013_vm9, %v5125_v6, %v15655_v18  ;;  %v5000_v51 = vperm.slane %v4994_v48, %v13098_v43  ;;  %v5272_v11 = vsel %vm4013_vm9, %v15407_v61, %v5271_v0  ;;  %v5122_v37 = vsel %vm4013_vm9, %v5121_v54, %v5080_v22  ;;  %v20451_v54 = vld [vmem:[#allocation356_spill] sm:$0xff]  ;;  %v20611_v60 = vld [vmem:[#allocation119_spill] sm:$0xff] }
 0xe03   : > { %20443 = vst [vmem:[#allocation120_spill] sm:$0xff] %v15596_v15  ;;  %v5248_v46 = vsel %vm4013_vm9, %v15454_v53, %v5247_v2  ;;  %v5124_v29 = vsel %vm4013_vm9, %v5104_v32, %v5123_v34  ;;  %v5329_v30 = vrot.slane %v15663_v5, 4  ;;  %v15688_v53 = vperm.slane %v5272_v11, %v12943_v4  ;;  %v20454_v2 = vld [vmem:[#allocation336_spill] sm:$0xff] }
 0xe04   : > { %v15685_v7 = vperm.slane %v5248_v46, %v12943_v4  ;;  %v5015_v32 = vrot.slane %v4976_v47, 4  ;;  %v5013_v38 = vrot.slane %v5000_v51, 4  ;;  %v5011_v45 = vrot.slane %v15516_v62, 4  ;;  %v20455_v46 = vld [vmem:[#allocation355_spill] sm:$0xff] }
 0xe05   : > { %7893 = vrot.lane.b32.xlu2 %v5236_v26, %s19546_s2  ;;  %v5305_v26 = vrot.slane %v15660_v49, 4  ;;  %v5393_v62 = vrot.slane %v20451_v54, 4 }
 0xe06   : > { %v5016_v39 = vsel %vm4013_vm9, %v5000_v51, %v5015_v32  ;;  %v5012_v63 = vsel %vm4013_vm9, %v15487_v12, %v5011_v45  ;;  %v5014_v41 = vsel %vm4013_vm9, %v5013_v38, %v4976_v47  ;;  %v5369_v12 = vrot.slane %v20454_v2, 4 }
 0xe07   : > { %7861 = vrot.lane.b32.xlu0 %v5232_v21, %s19544_s26  ;;  %v15637_v28 = vpop.permute.xlu2 %7763  ;;  %7877 = vrot.lane.b32.xlu1 %v5234_v55, %s19545_s27  ;;  %s19547_s26 = smov 40   ;;  %v5306_v21 = vsel %vm4013_vm9, %v5305_v26, %v15685_v7  ;;  %v5330_v55 = vsel %vm4013_vm9, %v5329_v30, %v15688_v53  ;;  %v5347_v51 = vrot.slane %v15551_v9, 4  ;;  %v5394_v11 = vsel %vm4013_vm9, %v5393_v62, %v20455_v46  ;;  %v20458_v9 = vld [vmem:[#allocation354_spill] sm:$0xff] }
 0xe08   : > { %20444 = vst [vmem:[#allocation280_spill] sm:$0xff] %v15637_v28  ;;  %v5312_v6 = vperm.slane %v5306_v21, %v13098_v43  ;;  %v5336_v22 = vperm.slane %v5330_v55, %v13098_v43  ;;  %v5381_v38 = vrot.slane %v20458_v9, 4  ;;  %v20459_v21 = vld [vmem:[#allocation334_spill] sm:$0xff]  ;;  %v15734_v45 = vperm.slane %v5394_v11, %v12943_v4  ;;  %v20466_v11 = vld [vmem:[#allocation212_spill] sm:$0xff]  ;;  %v20468_v9 = vld [vmem:[#allocation157_spill] sm:$0xff] }
 0xe09   : > { %v15648_v1 = vpop.permute.xlu0 %7697  ;;  %v15650_v24 = vpop.permute.xlu1 %7713  ;;  %v5348_v26 = vsel %vm4013_vm9, %v15523_v56, %v5347_v51  ;;  %v5357_v55 = vrot.slane %v20459_v21, 4  ;;  %v20469_v21 = vld [vmem:[#allocation305_spill] sm:$0xff] }
 0xe0a   : > { %20445 = vst [vmem:[#allocation425_spill] sm:$0xff] %v15648_v1  ;;  %v5349_v34 = vrot.slane %v5336_v22, 4  ;;  %v20515_v1 = vld [vmem:[#allocation279_spill] sm:$0xff] }
 0xe0b   : > { %20446 = vst [vmem:[#allocation246_spill] sm:$0xff] %v15650_v24  ;;  %v20508_v24 = vld [vmem:[#allocation283_spill] sm:$0xff] }
 0xe0c   : > { %v5350_v30 = vsel %vm4013_vm9, %v5349_v34, %v5312_v6  ;;  %v20464_v34 = vld [vmem:[#allocation235_spill] sm:$0xff] }
 0xe0d   : > { %7907 = vrot.lane.b32.xlu2 %v5126_v52, %s19547_s26  ;;  %v5351_v52 = vrot.slane %v5312_v6, 4  ;;  %v5107_v6 = vrot.slane %v15578_v3, 4  ;;  %v5429_v3 = vrot.slane %v15734_v45, 4 }
 0xe0f   : > { %7875 = vrot.lane.b32.xlu0 %v5122_v37, %s19545_s27  ;;  %v15681_v36 = vpop.permute.xlu2 %7777  ;;  %7891 = vrot.lane.b32.xlu1 %v5124_v29, %s19546_s2  ;;  %s19548_s27 = smov 42   ;;  %v5352_v47 = vsel %vm4013_vm9, %v5336_v22, %v5351_v52  ;;  %v20456_v37 = vld [vmem:[#allocation335_spill] sm:$0xff]  ;;  %v20463_v52 = vld [vmem:[#allocation333_spill] sm:$0xff] }
 0xe10   : > { %20447 = vst [vmem:[#allocation409_spill] sm:$0xff] %v15681_v36  ;;  %v5370_v29 = vsel %vm4013_vm9, %v5369_v12, %v20456_v37  ;;  %v5108_v12 = vsel %vm4013_vm9, %v15541_v33, %v5107_v6  ;;  %v5717_v37 = vrot.slane %v20466_v11, 4  ;;  %v20473_v6 = vld [vmem:[#allocation404_spill] sm:$0xff]  ;;  %v20479_v11 = vld [vmem:[#allocation230_spill] sm:$0xff]  ;;  %v20486_v36 = vld [vmem:[#allocation271_spill] sm:$0xff] }
 0xe11   : > { %v15690_v61 = vpop.permute.xlu0 %7703  ;;  %v15692_v42 = vpop.permute.xlu1 %7719  ;;  %v15738_v56 = vperm.slane %v5370_v29, %v12943_v4 }
 0xe12   : > { %20448 = vst [vmem:[#allocation227_spill] sm:$0xff] %v15690_v61 }
 0xe13   : > { %20449 = vst [vmem:[#allocation167_spill] sm:$0xff] %v15692_v42  ;;  %v5405_v51 = vrot.slane %v15738_v56, 4  ;;  %v20487_v42 = vld [vmem:[#allocation394_spill] sm:$0xff] }
 0xe15   : > { %7921 = vrot.lane.b32.xlu2 %v5016_v39, %s19548_s27  ;;  %v4995_v39 = vrot.slane %v15634_v14, 4  ;;  %v20462_v14 = vld [vmem:[#allocation353_spill] sm:$0xff] }
 0xe16   : > { %v5382_v2 = vsel %vm4013_vm9, %v5381_v38, %v20462_v14  ;;  %v20475_v14 = vld [vmem:[#allocation207_spill] sm:$0xff] }
 0xe17   : > { %7889 = vrot.lane.b32.xlu0 %v5012_v63, %s19546_s2  ;;  %v15707_v40 = vpop.permute.xlu2 %7783  ;;  %7905 = vrot.lane.b32.xlu1 %v5014_v41, %s19547_s26  ;;  %v4971_v63 = vrot.slane %v15608_v25, 4  ;;  %v5083_v41 = vrot.slane %v15621_v19, 4  ;;  %v4996_v62 = vsel %vm4013_vm9, %v15592_v57, %v4995_v39  ;;  %v5358_v19 = vsel %vm4013_vm9, %v5357_v55, %v20463_v52  ;;  %v20465_v57 = vld [vmem:[#allocation408_spill] sm:$0xff]  ;;  %v20470_v55 = vld [vmem:[#allocation189_spill] sm:$0xff] }
 0xe18   : > { %20450 = vst [vmem:[#allocation176_spill] sm:$0xff] %v15707_v40  ;;  %v15765_v33 = vperm.slane %v5382_v2, %v12943_v4  ;;  %v15781_v39 = vperm.slane %v5358_v19, %v12943_v4  ;;  %v20477_v52 = vld [vmem:[#allocation193_spill] sm:$0xff] }
 0xe19   : > { %v15711_v48 = vpop.permute.xlu0 %7717  ;;  %v15713_v0 = vpop.permute.xlu1 %7733  ;;  %v5084_v25 = vsel %vm4013_vm9, %v15575_v50, %v5083_v41  ;;  %v4972_v46 = vsel %vm4013_vm9, %v15605_v20, %v4971_v63  ;;  %v5004_v50 = vperm.slane %v4996_v62, %v13098_v43  ;;  %v15778_v20 = vsel %vm3755_vm8, %v20470_v55, %v20469_v21  ;;  %v20471_v63 = vld [vmem:[#allocation405_spill] sm:$0xff] }
 0xe1a   : > { %20452 = vst [vmem:[#allocation392_spill] sm:$0xff] %v15711_v48  ;;  %v5092_v29 = vperm.slane %v5084_v25, %v13098_v43  ;;  %v20474_v62 = vld [vmem:[#allocation401_spill] sm:$0xff]  ;;  %v20476_v25 = vld [vmem:[#allocation256_spill] sm:$0xff]  ;;  %v5430_v19 = vsel %vm4013_vm9, %v5429_v3, %v15765_v33 }
 0xe1b   : > { %20453 = vst [vmem:[#allocation202_spill] sm:$0xff] %v15713_v0  ;;  %v15792_v2 = vsel %vm3755_vm8, %v20475_v14, %v20474_v62  ;;  %v20481_v21 = vld [vmem:[#allocation289_spill] sm:$0xff]  ;;  %v4980_v62 = vperm.slane %v4972_v46, %v13098_v43  ;;  %v20484_v14 = vld [vmem:[#allocation182_spill] sm:$0xff]  ;;  %v15824_v58 = vperm.slane %v5430_v19, %v13098_v43 }
 0xe1c   : > { %v5718_v3 = vsel %vm4013_vm9, %v5717_v37, %v20484_v14  ;;  %v20602_v0 = vld [vmem:[#allocation221_spill] sm:$0xff] }
 0xe1d   : > { %7927 = vrot.lane.b32.xlu2 %v5352_v47, %s19548_s27  ;;  %v5729_v47 = vrot.slane %v20464_v34, 4 }
 0xe1f   : > { %7895 = vrot.lane.b32.xlu0 %v5348_v26, %s19546_s2  ;;  %v15727_v32 = vpop.permute.xlu2 %7797  ;;  %7911 = vrot.lane.b32.xlu1 %v5350_v30, %s19547_s26  ;;  %s19549_s2 = smov 44   ;;  %v5116_v26 = vperm.slane %v5108_v12, %v13098_v43  ;;  %v20467_v30 = vld [vmem:[#allocation301_spill] sm:$0xff]  ;;  %v5705_v12 = vrot.slane %v20476_v25, 4  ;;  %v5730_v34 = vsel %vm4013_vm9, %v5729_v47, %v20477_v52  ;;  %v5017_v47 = vrot.slane %v5004_v50, 4 }
 0xe20   : > { %20457 = vst [vmem:[#allocation46_spill] sm:$0xff] %v15727_v32  ;;  %v15773_v38 = vsel %vm3755_vm8, %v20468_v9, %v20467_v30  ;;  %v20480_v9 = vld [vmem:[#allocation413_spill] sm:$0xff]  ;;  %v5131_v25 = vrot.slane %v5092_v29, 4 }
 0xe21   : > { %v15742_v22 = vpop.permute.xlu0 %7731  ;;  %v15744_v54 = vpop.permute.xlu1 %7747  ;;  %v15807_v55 = vsel %vm3755_vm8, %v20481_v21, %v20480_v9  ;;  %v5129_v52 = vrot.slane %v5116_v26, 4  ;;  %v5593_v9 = vrot.slane %v15792_v2, 4  ;;  %v15821_v21 = vperm.slane %v5730_v34, %v12943_v4 }
 0xe22   : > { %20460 = vst [vmem:[#allocation187_spill] sm:$0xff] %v15742_v22  ;;  %v5617_v46 = vrot.slane %v15807_v55, 4  ;;  %v5706_v37 = vsel %vm4013_vm9, %v5705_v12, %v20486_v36  ;;  %v5132_v14 = vsel %vm4013_vm9, %v5116_v26, %v5131_v25  ;;  %v5018_v19 = vsel %vm4013_vm9, %v5017_v47, %v4980_v62  ;;  %v20489_v26 = vld [vmem:[#allocation397_spill] sm:$0xff]  ;;  %v20490_v12 = vld [vmem:[#allocation286_spill] sm:$0xff]  ;;  %v20491_v47 = vld [vmem:[#allocation71_spill] sm:$0xff] }
 0xe23   : > { %20461 = vst [vmem:[#allocation347_spill] sm:$0xff] %v15744_v54  ;;  %v5130_v25 = vsel %vm4013_vm9, %v5129_v52, %v5092_v29  ;;  %v20495_v29 = vld [vmem:[#allocation147_spill] sm:$0xff]  ;;  %v20511_v54 = vld [vmem:[#allocation142_spill] sm:$0xff] }
 0xe25   : > { %7941 = vrot.lane.b32.xlu2 %v20465_v57, %s19549_s2  ;;  %v20478_v57 = vld [vmem:[#allocation308_spill] sm:$0xff] }
 0xe26   : > { %v15802_v30 = vsel %vm3755_vm8, %v20479_v11, %v20478_v57  ;;  %v5406_v57 = vsel %vm4013_vm9, %v5405_v51, %v15781_v39  ;;  %v20485_v11 = vld [vmem:[#allocation311_spill] sm:$0xff]  ;;  %v15832_v51 = vperm.slane %v5718_v3, %v12943_v4 }
 0xe27   : > { %7909 = vrot.lane.b32.xlu0 %v20471_v63, %s19547_s26  ;;  %v15785_v41 = vpop.permute.xlu2 %7811  ;;  %7925 = vrot.lane.b32.xlu1 %v20473_v6, %s19548_s27  ;;  %v5693_v40 = vrot.slane %v20485_v11, 4  ;;  %s19550_s26 = smov 46   ;;  %v15836_v34 = vperm.slane %v5406_v57, %v13098_v43  ;;  %v5019_v11 = vrot.slane %v4980_v62, 4  ;;  %v20492_v62 = vld [vmem:[#allocation237_spill] sm:$0xff]  ;;  %v5618_v52 = vsel %vm4013_vm9, %v5617_v46, %v15802_v30 }
 0xe28   : > { %20472 = vst [vmem:[#allocation72_spill] sm:$0xff] %v15785_v41  ;;  %v5127_v41 = vrot.slane %v15655_v18, 4  ;;  %v15847_v18 = vsel %vm3755_vm8, %v20490_v12, %v20489_v26  ;;  %v20496_v12 = vld [vmem:[#allocation112_spill] sm:$0xff] }
 0xe29   : > { %v15809_v63 = vpop.permute.xlu0 %7745  ;;  %v15811_v6 = vpop.permute.xlu1 %7761 }
 0xe2a   : > { %20482 = vst [vmem:[#allocation86_spill] sm:$0xff] %v15809_v63  ;;  %v5128_v3 = vsel %vm4013_vm9, %v15617_v13, %v5127_v41  ;;  %v20494_v13 = vld [vmem:[#allocation382_spill] sm:$0xff] }
 0xe2b   : > { %20483 = vst [vmem:[#allocation181_spill] sm:$0xff] %v15811_v6  ;;  %v20488_v6 = vld [vmem:[#allocation195_spill] sm:$0xff]  ;;  %v15870_v41 = vsel %vm3755_vm8, %v20495_v29, %v20494_v13  ;;  %v5331_v13 = vrot.slane %v15688_v53, 4  ;;  %v5307_v53 = vrot.slane %v15685_v7, 4 }
 0xe2c   : > { %v15842_v36 = vsel %vm3755_vm8, %v20488_v6, %v20487_v42  ;;  %v15860_v42 = vperm.slane %v5706_v37, %v12943_v4  ;;  %v5765_v6 = vrot.slane %v15821_v21, 4  ;;  %v5020_v37 = vsel %vm4013_vm9, %v5004_v50, %v5019_v11 }
 0xe2d   : > { %7955 = vrot.lane.b32.xlu2 %v5132_v14, %s19550_s26  ;;  %v5594_v57 = vsel %vm4013_vm9, %v5593_v9, %v15842_v36  ;;  %v15857_v14 = vsel %vm3755_vm8, %v20492_v62, %v20491_v47  ;;  %v5453_v9 = vrot.slane %v15824_v58, 4  ;;  %v20497_v47 = vld [vmem:[#allocation172_spill] sm:$0xff]  ;;  %v20498_v62 = vld [vmem:[#allocation393_spill] sm:$0xff]  ;;  %v5581_v50 = vrot.slane %v15847_v18, 4 }
 0xe2e   : > { %v5766_v46 = vsel %vm4013_vm9, %v5765_v6, %v15832_v51  ;;  %v15895_v11 = vperm.slane %v5594_v57, %v12943_v4  ;;  %v5332_v6 = vsel %vm4013_vm9, %v15663_v5, %v5331_v13  ;;  %v5308_v5 = vsel %vm4013_vm9, %v15660_v49, %v5307_v53  ;;  %v20506_v13 = vld [vmem:[#allocation163_spill] sm:$0xff] }
 0xe2f   : > { %7923 = vrot.lane.b32.xlu0 %v5128_v3, %s19548_s27  ;;  %v15864_v26 = vpop.permute.xlu2 %7825  ;;  %7939 = vrot.lane.b32.xlu1 %v5130_v25, %s19549_s2  ;;  %v15879_v3 = vsel %vm3755_vm8, %v20497_v47, %v20496_v12  ;;  %v5605_v12 = vrot.slane %v15857_v14, 4  ;;  %v20502_v47 = vld [vmem:[#allocation249_spill] sm:$0xff]  ;;  %v5454_v63 = vsel %vm4013_vm9, %v5453_v9, %v15836_v34  ;;  %v15912_v28 = vperm.slane %v5766_v46, %v13098_v43  ;;  %s19551_s27 = smov 48   ;;  %v20505_v9 = vld [vmem:[#allocation156_spill] sm:$0xff] }
 0xe30   : > { %20493 = vst [vmem:[#allocation76_spill] sm:$0xff] %v15864_v26  ;;  %v20499_v26 = vld [vmem:[#allocation178_spill] sm:$0xff]  ;;  %v15929_v46 = vsel %vm3755_vm8, %v20506_v13, %v20505_v9  ;;  %v5582_v16 = vsel %vm4013_vm9, %v5581_v50, %v15778_v20  ;;  %v5629_v49 = vrot.slane %v15895_v11, 4  ;;  %v5316_v13 = vperm.slane %v5308_v5, %v13098_v43 }
 0xe31   : > { %v15884_v25 = vsel %vm3755_vm8, %v20499_v26, %v20498_v62  ;;  %v15887_v29 = vpop.permute.xlu0 %7751  ;;  %v15889_v61 = vpop.permute.xlu1 %7767  ;;  %v5694_v26 = vsel %vm4013_vm9, %v5693_v40, %v20502_v47  ;;  %v15901_v62 = vperm.slane %v5618_v52, %v12943_v4  ;;  %v5469_v40 = vrot.slane %v15870_v41, 4  ;;  %v20503_v52 = vld [vmem:[#allocation37_spill] sm:$0xff]  ;;  %v20504_v47 = vld [vmem:[#allocation215_spill] sm:$0xff] }
 0xe32   : > { %20500 = vst [vmem:[#allocation136_spill] sm:$0xff] %v15887_v29  ;;  %v5493_v29 = vrot.slane %v15879_v3, 4  ;;  %v5505_v57 = vrot.slane %v15884_v25, 4  ;;  %v15918_v7 = vsel %vm3755_vm8, %v20504_v47, %v20503_v52  ;;  %v15921_v32 = vperm.slane %v5694_v26, %v12943_v4  ;;  %v20507_v47 = vld [vmem:[#allocation199_spill] sm:$0xff] }
 0xe33   : > { %20501 = vst [vmem:[#allocation87_spill] sm:$0xff] %v15889_v61  ;;  %v5741_v61 = vrot.slane %v15860_v42, 4  ;;  %v5606_v52 = vsel %vm4013_vm9, %v5605_v12, %v15918_v7  ;;  %v5340_v26 = vperm.slane %v5332_v6, %v13098_v43  ;;  %v5653_v53 = vrot.slane %v15901_v62, 4 }
 0xe34   : > { %v5494_v12 = vsel %vm4013_vm9, %v5493_v29, %v15929_v46  ;;  %v5789_v6 = vrot.slane %v15912_v28, 4  ;;  %v15974_v5 = vsel %vm3755_vm8, %v20515_v1, %v20514_v44 }
 0xe35   : > { %7969 = vrot.lane.b32.xlu2 %v5454_v63, %s19551_s27  ;;  %v15939_v63 = vsel %vm3755_vm8, %v20508_v24, %v20507_v47  ;;  %v5742_v50 = vsel %vm4013_vm9, %v5741_v61, %v15921_v32  ;;  %v20510_v47 = vld [vmem:[#allocation378_spill] sm:$0xff]  ;;  %v15964_v61 = vperm.slane %v5606_v52, %v12943_v4  ;;  %v5470_v44 = vsel %vm4013_vm9, %v5469_v40, %v15974_v5 }
 0xe36   : > { %v5506_v24 = vsel %vm4013_vm9, %v5505_v57, %v15939_v63  ;;  %v5481_v57 = vrot.slane %v15773_v38, 4 }
 0xe37   : > { %7937 = vrot.lane.b32.xlu0 %v5018_v19, %s19549_s2  ;;  %v15944_v9 = vpop.permute.xlu2 %7831  ;;  %7953 = vrot.lane.b32.xlu1 %v5020_v37, %s19550_s26  ;;  %v15958_v19 = vsel %vm3755_vm8, %v20511_v54, %v20510_v47  ;;  %v15961_v37 = vperm.slane %v5582_v16, %v12943_v4  ;;  %v15977_v54 = vperm.slane %v5742_v50, %v13098_v43  ;;  %v5353_v47 = vrot.slane %v5340_v26, 4 }
 0xe38   : > { %20509 = vst [vmem:[#allocation52_spill] sm:$0xff] %v15944_v9  ;;  %v5500_v16 = vperm.slane %v5494_v12, %v12943_v4  ;;  %v5512_v52 = vperm.slane %v5506_v24, %v12943_v4  ;;  %v5355_v50 = vrot.slane %v5316_v13, 4 }
 0xe39   : > { %v15966_v9 = vpop.permute.xlu0 %7765  ;;  %v15968_v29 = vpop.permute.xlu1 %7781  ;;  %v5630_v22 = vsel %vm4013_vm9, %v5629_v49, %v15961_v37  ;;  %v5790_v1 = vsel %vm4013_vm9, %v5789_v6, %v15977_v54  ;;  %v5354_v12 = vsel %vm4013_vm9, %v5353_v47, %v5316_v13 }
 0xe3a   : > { %20512 = vst [vmem:[#allocation80_spill] sm:$0xff] %v15966_v9  ;;  %v5482_v9 = vsel %vm4013_vm9, %v5481_v57, %v15958_v19  ;;  %v5356_v24 = vsel %vm4013_vm9, %v5340_v26, %v5355_v50  ;;  %v5636_v49 = vperm.slane %v5630_v22, %v13098_v43  ;;  %v5476_v57 = vperm.slane %v5470_v44, %v12943_v4 }
 0xe3b   : > { %20513 = vst [vmem:[#allocation169_spill] sm:$0xff] %v15968_v29  ;;  %v5654_v29 = vsel %vm4013_vm9, %v5653_v53, %v15964_v61  ;;  %v5488_v8 = vperm.slane %v5482_v9, %v12943_v4  ;;  %v5543_v15 = vrot.slane %v5500_v16, 4  ;;  %v5541_v40 = vrot.slane %v5512_v52, 4 }
 0xe3c   : > { %v5660_v53 = vperm.slane %v5654_v29, %v13098_v43  ;;  %v5679_v26 = vrot.slane %v5636_v49, 4  ;;  %v5519_v9 = vrot.slane %v5476_v57, 4 }
 0xe3d   : > { %7975 = vrot.lane.b32.xlu2 %v5790_v1, %s19551_s27  ;;  %v5544_v22 = vsel %vm4013_vm9, %v5512_v52, %v5543_v15  ;;  %v5517_v47 = vrot.slane %v5488_v8, 4  ;;  %v5542_v44 = vsel %vm4013_vm9, %v5541_v40, %v5500_v16  ;;  %v20519_v52 = vld [vmem:[#allocation406_spill] sm:$0xff] }
 0xe3e   : > { %v5677_v29 = vrot.slane %v5660_v53, 4  ;;  %v5680_v50 = vsel %vm4013_vm9, %v5660_v53, %v5679_v26  ;;  %v5548_v15 = vperm.slane %v5542_v44, %v13098_v43  ;;  %v5520_v16 = vsel %vm4013_vm9, %v5488_v8, %v5519_v9 }
 0xe3f   : > { %7943 = vrot.lane.b32.xlu0 %v5354_v12, %s19549_s2  ;;  %v15999_v6 = vpop.permute.xlu2 %7845  ;;  %7959 = vrot.lane.b32.xlu1 %v5356_v24, %s19550_s26  ;;  %v16010_v12 = vperm.slane %v5544_v22, %v13098_v43  ;;  %s19552_s2 = smov 50   ;;  %v5518_v24 = vsel %vm4013_vm9, %v5517_v47, %v5476_v57  ;;  %v5407_v53 = vrot.slane %v15781_v39, 4  ;;  %v5431_v57 = vrot.slane %v15765_v33, 4 }
 0xe40   : > { %20516 = vst [vmem:[#allocation83_spill] sm:$0xff] %v15999_v6  ;;  %v5678_v6 = vsel %vm4013_vm9, %v5677_v29, %v5636_v49  ;;  %v5524_v22 = vperm.slane %v5518_v24, %v13098_v43  ;;  %v16031_v29 = vperm.slane %v5520_v16, %v13098_v43  ;;  %v5565_v47 = vrot.slane %v5548_v15, 4 }
 0xe41   : > { %v16002_v1 = vpop.permute.xlu0 %7779  ;;  %v16004_v13 = vpop.permute.xlu1 %7795  ;;  %v5569_v40 = vrot.slane %v16010_v12, 4  ;;  %v5432_v8 = vsel %vm4013_vm9, %v15734_v45, %v5431_v57  ;;  %v5619_v39 = vrot.slane %v15802_v30, 4  ;;  %v5767_v30 = vrot.slane %v15832_v51, 4 }
 0xe42   : > { %20517 = vst [vmem:[#allocation316_spill] sm:$0xff] %v16002_v1  ;;  %v5567_v33 = vrot.slane %v5524_v22, 4  ;;  %v5566_v24 = vsel %vm4013_vm9, %v5565_v47, %v5524_v22  ;;  %v5440_v45 = vperm.slane %v5432_v8, %v13098_v43  ;;  %v5607_v22 = vrot.slane %v15918_v7, 4 }
 0xe43   : > { %20518 = vst [vmem:[#allocation43_spill] sm:$0xff] %v16004_v13  ;;  %v5570_v9 = vsel %vm4013_vm9, %v5569_v40, %v16031_v29  ;;  %v5455_v47 = vrot.slane %v15836_v34, 4  ;;  %v5768_v8 = vsel %vm4013_vm9, %v15821_v21, %v5767_v30  ;;  %v5483_v7 = vrot.slane %v15958_v19, 4 }
 0xe44   : > { %v5457_v57 = vrot.slane %v5440_v45, 4  ;;  %v5507_v21 = vrot.slane %v15939_v63, 4  ;;  %v5471_v63 = vrot.slane %v15974_v5, 4 }
 0xe45   : > { %7989 = vrot.lane.b32.xlu2 %v5680_v50, %s19552_s2  ;;  %v5620_v50 = vsel %vm4013_vm9, %v15807_v55, %v5619_v39  ;;  %v5608_v39 = vsel %vm4013_vm9, %v15857_v14, %v5607_v22  ;;  %v5456_v34 = vsel %vm4013_vm9, %v15824_v58, %v5455_v47  ;;  %v5776_v14 = vperm.slane %v5768_v8, %v13098_v43 }
 0xe46   : > { %v16053_v16 = vperm.slane %v5620_v50, %v12943_v4  ;;  %v16085_v19 = vperm.slane %v5608_v39, %v12943_v4  ;;  %v5583_v58 = vrot.slane %v15778_v20, 4  ;;  %v5472_v20 = vsel %vm4013_vm9, %v15870_v41, %v5471_v63 }
 0xe47   : > { %7957 = vrot.lane.b32.xlu0 %v20519_v52, %s19550_s26  ;;  %v16018_v13 = vpop.permute.xlu2 %7859  ;;  %7973 = vrot.lane.b32.xlu1 %v5678_v6, %s19551_s27  ;;  %v5408_v6 = vsel %vm4013_vm9, %v15738_v56, %v5407_v53  ;;  %s19554_s26 = smov 52   ;;  %v5568_v56 = vsel %vm4013_vm9, %v5548_v15, %v5567_v33  ;;  %v5743_v53 = vrot.slane %v15921_v32, 4  ;;  %v5595_v15 = vrot.slane %v15842_v36, 4 }
 0xe48   : > { %20520 = vst [vmem:[#allocation139_spill] sm:$0xff] %v16018_v13  ;;  %v5416_v44 = vperm.slane %v5408_v6, %v13098_v43  ;;  %v5584_v5 = vsel %vm4013_vm9, %v15847_v18, %v5583_v58  ;;  %v5791_v41 = vrot.slane %v15977_v54, 4  ;;  %v16137_v39 = vperm.slane %v5472_v20, %v12943_v4  ;;  %v20582_v13 = vld [vmem:[#allocation50_spill] sm:$0xff] }
 0xe49   : > { %v16026_v49 = vpop.permute.xlu0 %7793  ;;  %v16028_v26 = vpop.permute.xlu1 %7809  ;;  %v5744_v6 = vsel %vm4013_vm9, %v15860_v42, %v5743_v53  ;;  %v5596_v32 = vsel %vm4013_vm9, %v15792_v2, %v5595_v15  ;;  %v16125_v8 = vperm.slane %v5584_v5, %v12943_v4 }
 0xe4a   : > { %20521 = vst [vmem:[#allocation152_spill] sm:$0xff] %v16026_v49  ;;  %v5459_v51 = vrot.slane %v5416_v44, 4  ;;  %v5458_v42 = vsel %vm4013_vm9, %v5457_v57, %v5416_v44  ;;  %v5752_v2 = vperm.slane %v5744_v6, %v13098_v43  ;;  %v16082_v33 = vperm.slane %v5596_v32, %v12943_v4 }
 0xe4b   : > { %20522 = vst [vmem:[#allocation164_spill] sm:$0xff] %v16028_v26  ;;  %v5508_v44 = vsel %vm4013_vm9, %v15884_v25, %v5507_v21  ;;  %v5793_v25 = vrot.slane %v5776_v14, 4  ;;  %v5495_v57 = vrot.slane %v15929_v46, 4  ;;  %v20596_v26 = vld [vmem:[#allocation255_spill] sm:$0xff] }
 0xe4c   : > { %v5460_v36 = vsel %vm4013_vm9, %v5440_v45, %v5459_v51  ;;  %v5795_v15 = vrot.slane %v5752_v2, 4  ;;  %v16109_v22 = vperm.slane %v5508_v44, %v12943_v4 }
 0xe4d   : > { %8003 = vrot.lane.b32.xlu2 %v5570_v9, %s19554_s26  ;;  %v5665_v9 = vrot.slane %v16053_v16, 4  ;;  %v5496_v46 = vsel %vm4013_vm9, %v15879_v3, %v5495_v57  ;;  %v5794_v54 = vsel %vm4013_vm9, %v5793_v25, %v5752_v2 }
 0xe4e   : > { %v5796_v47 = vsel %vm4013_vm9, %v5776_v14, %v5795_v15 }
 0xe4f   : > { %7971 = vrot.lane.b32.xlu0 %v5566_v24, %s19551_s27  ;;  %v16049_v52 = vpop.permute.xlu2 %7873  ;;  %7987 = vrot.lane.b32.xlu1 %v5568_v56, %s19552_s2  ;;  %s11115_s27 = smov 54   ;;  %v5484_v24 = vsel %vm4013_vm9, %v15773_v38, %v5483_v7  ;;  %v5655_v56 = vrot.slane %v15964_v61, 4  ;;  %v5666_v53 = vsel %vm4013_vm9, %v5665_v9, %v16085_v19  ;;  %v5631_v38 = vrot.slane %v15961_v37, 4 }
 0xe50   : > { %20523 = vst [vmem:[#allocation66_spill] sm:$0xff] %v16049_v52  ;;  %v5641_v61 = vrot.slane %v16082_v33, 4  ;;  %v16119_v18 = vperm.slane %v5666_v53, %v13098_v43  ;;  %v16122_v6 = vperm.slane %v5484_v24, %v12943_v4  ;;  %v5792_v37 = vsel %vm4013_vm9, %v15912_v28, %v5791_v41  ;;  %v20574_v52 = vld [vmem:[#allocation430_spill] sm:$0xff] }
 0xe51   : > { %v16056_v55 = vpop.permute.xlu0 %7799  ;;  %v16058_v40 = vpop.permute.xlu1 %7815  ;;  %v5656_v51 = vsel %vm4013_vm9, %v15901_v62, %v5655_v56  ;;  %v5632_v62 = vsel %vm4013_vm9, %v15895_v11, %v5631_v38 }
 0xe52   : > { %20524 = vst [vmem:[#allocation324_spill] sm:$0xff] %v16056_v55  ;;  %v5664_v32 = vperm.slane %v5656_v51, %v13098_v43  ;;  %v5642_v3 = vsel %vm4013_vm9, %v5641_v61, %v16125_v8  ;;  %v5685_v28 = vrot.slane %v16119_v18, 4  ;;  %v5640_v11 = vperm.slane %v5632_v62, %v13098_v43 }
 0xe53   : > { %20525 = vst [vmem:[#allocation59_spill] sm:$0xff] %v16058_v40  ;;  %v5529_v9 = vrot.slane %v16122_v6, 4  ;;  %v16157_v2 = vperm.slane %v5642_v3, %v13098_v43 }
 0xe54   : > { %v5681_v14 = vrot.slane %v5664_v32, 4  ;;  %v5683_v24 = vrot.slane %v5640_v11, 4 }
 0xe55   : > { %8017 = vrot.lane.b32.xlu2 %v5460_v36, %s11115_s27  ;;  %v5553_v36 = vrot.slane %v16109_v22, 4  ;;  %v5530_v58 = vsel %vm4013_vm9, %v5529_v9, %v16137_v39  ;;  %v5686_v44 = vsel %vm4013_vm9, %v5685_v28, %v16157_v2  ;;  %v20541_v28 = vld [vmem:[#allocation338_spill] sm:$0xff]  ;;  %v5687_v55 = vrot.slane %v16157_v2, 4 }
 0xe56   : > { %v5682_v56 = vsel %vm4013_vm9, %v5681_v14, %v5640_v11  ;;  %v5684_v53 = vsel %vm4013_vm9, %v5664_v32, %v5683_v24  ;;  %v5536_v20 = vperm.slane %v5530_v58, %v13098_v43  ;;  %v20542_v11 = vld [vmem:[#allocation85_spill] sm:$0xff]  ;;  %v20544_v58 = vld [vmem:[#allocation126_spill] sm:$0xff]  ;;  %v20546_v24 = vld [vmem:[#allocation75_spill] sm:$0xff] }
 0xe57   : > { %7985 = vrot.lane.b32.xlu0 %v5456_v34, %s19552_s2  ;;  %v16088_v50 = vpop.permute.xlu2 %7879  ;;  %8001 = vrot.lane.b32.xlu1 %v5458_v42, %s19554_s26  ;;  %v16150_v34 = vperm.slane %v5496_v46, %v12943_v4  ;;  %v16200_v9 = vsel %vm3755_vm8, %v20542_v11, %v20541_v28  ;;  %v20543_v14 = vld [vmem:[#allocation373_spill] sm:$0xff] }
 0xe58   : > { %20526 = vst [vmem:[#allocation330_spill] sm:$0xff] %v16088_v50  ;;  %v5575_v61 = vrot.slane %v5536_v20, 4  ;;  %v20560_v50 = vld [vmem:[#allocation351_spill] sm:$0xff] }
 0xe59   : > { %v16098_v45 = vpop.permute.xlu0 %7813  ;;  %v16100_v30 = vpop.permute.xlu1 %7829  ;;  %v5554_v63 = vsel %vm4013_vm9, %v5553_v36, %v16150_v34 }
 0xe5a   : > { %20527 = vst [vmem:[#allocation70_spill] sm:$0xff] %v16098_v45  ;;  %v5560_v5 = vperm.slane %v5554_v63, %v13098_v43  ;;  %v16205_v63 = vsel %vm3755_vm8, %v20544_v58, %v20543_v14  ;;  %v20554_v14 = vld [vmem:[#allocation42_spill] sm:$0xff]  ;;  %v20601_v45 = vld [vmem:[#allocation231_spill] sm:$0xff] }
 0xe5b   : > { %20528 = vst [vmem:[#allocation190_spill] sm:$0xff] %v16100_v30  ;;  %v20555_v58 = vld [vmem:[#allocation114_spill] sm:$0xff] }
 0xe5c   : > { %v5573_v51 = vrot.slane %v5560_v5, 4  ;;  %v5576_v57 = vsel %vm4013_vm9, %v5560_v5, %v5575_v61  ;;  %v20548_v5 = vld [vmem:[#allocation363_spill] sm:$0xff] }
 0xe5d   : > { %8023 = vrot.lane.b32.xlu2 %v5796_v47, %s11115_s27  ;;  %v5571_v47 = vrot.slane %v16031_v29, 4  ;;  %v20539_v29 = vld [vmem:[#allocation177_spill] sm:$0xff] }
 0xe5e   : > { %v5574_v62 = vsel %vm4013_vm9, %v5573_v51, %v5536_v20  ;;  %v20550_v51 = vld [vmem:[#allocation361_spill] sm:$0xff] }
 0xe5f   : > { %7991 = vrot.lane.b32.xlu0 %v5792_v37, %s19552_s2  ;;  %v16141_v7 = vpop.permute.xlu2 %7893  ;;  %8007 = vrot.lane.b32.xlu1 %v5794_v54, %s19554_s26  ;;  %s19555_s2 = smov 56   ;;  %v5572_v41 = vsel %vm4013_vm9, %v16010_v12, %v5571_v47  ;;  %v20536_v37 = vld [vmem:[#allocation166_spill] sm:$0xff]  ;;  %v20540_v12 = vld [vmem:[#allocation360_spill] sm:$0xff] }
 0xe60   : > { %20529 = vst [vmem:[#allocation48_spill] sm:$0xff] %v16141_v7  ;;  %v5953_v54 = vrot.slane %v20536_v37, 4  ;;  %v5841_v37 = vrot.slane %v16205_v63, 4 }
 0xe61   : > { %v16152_v21 = vpop.permute.xlu0 %7827  ;;  %v16154_v42 = vpop.permute.xlu1 %7843 }
 0xe62   : > { %20530 = vst [vmem:[#allocation385_spill] sm:$0xff] %v16152_v21  ;;  %v5954_v3 = vsel %vm4013_vm9, %v5953_v54, %v20539_v29  ;;  %v5643_v54 = vrot.slane %v16125_v8, 4  ;;  %v5667_v29 = vrot.slane %v16085_v19, 4  ;;  %v20598_v21 = vld [vmem:[#allocation198_spill] sm:$0xff] }
 0xe63   : > { %20531 = vst [vmem:[#allocation49_spill] sm:$0xff] %v16154_v42 }
 0xe64   : > { %v5644_v19 = vsel %vm4013_vm9, %v16082_v33, %v5643_v54  ;;  %v5668_v8 = vsel %vm4013_vm9, %v16053_v16, %v5667_v29 }
 0xe65   : > { %8037 = vrot.lane.b32.xlu2 %v5686_v44, %s19555_s2  ;;  %v20545_v44 = vld [vmem:[#allocation331_spill] sm:$0xff] }
 0xe67   : > { %8005 = vrot.lane.b32.xlu0 %v5682_v56, %s19554_s26  ;;  %v16171_v15 = vpop.permute.xlu2 %7907  ;;  %8021 = vrot.lane.b32.xlu1 %v5684_v53, %s11115_s27  ;;  %s19560_s26 = smov 60   ;;  %v16210_v56 = vsel %vm3755_vm8, %v20546_v24, %v20545_v44  ;;  %v20547_v53 = vld [vmem:[#allocation134_spill] sm:$0xff]  ;;  %v16235_v44 = vsel %vm3755_vm8, %v20555_v58, %v20554_v14  ;;  %v20561_v14 = vld [vmem:[#allocation107_spill] sm:$0xff] }
 0xe68   : > { %20532 = vst [vmem:[#allocation245_spill] sm:$0xff] %v16171_v15  ;;  %v5929_v20 = vrot.slane %v20547_v53, 4  ;;  %v5805_v11 = vrot.slane %v16210_v56, 4  ;;  %v20557_v53 = vld [vmem:[#allocation160_spill] sm:$0xff]  ;;  %v16253_v58 = vsel %vm3755_vm8, %v20561_v14, %v20560_v50  ;;  %v5829_v54 = vrot.slane %v16235_v44, 4  ;;  %v20565_v50 = vld [vmem:[#allocation298_spill] sm:$0xff] }
 0xe69   : > { %v16174_v25 = vpop.permute.xlu0 %7841  ;;  %v16176_v38 = vpop.permute.xlu1 %7857  ;;  %v5842_v29 = vsel %vm4013_vm9, %v5841_v37, %v16253_v58  ;;  %v5676_v14 = vperm.slane %v5668_v8, %v13098_v43  ;;  %v20569_v37 = vld [vmem:[#allocation297_spill] sm:$0xff]  ;;  %v20575_v15 = vld [vmem:[#allocation275_spill] sm:$0xff] }
 0xe6a   : > { %20533 = vst [vmem:[#allocation369_spill] sm:$0xff] %v16174_v25 }
 0xe6b   : > { %20534 = vst [vmem:[#allocation111_spill] sm:$0xff] %v16176_v38 }
 0xe6d   : > { %8051 = vrot.lane.b32.xlu2 %v5576_v57, %s19556_s17  ;;  %v20551_v57 = vld [vmem:[#allocation131_spill] sm:$0xff] }
 0xe6e   : > { %v5941_v47 = vrot.slane %v20551_v57, 4  ;;  %v20559_v57 = vld [vmem:[#allocation110_spill] sm:$0xff] }
 0xe6f   : > { %8019 = vrot.lane.b32.xlu0 %v5572_v41, %s11115_s27  ;;  %v16185_v46 = vpop.permute.xlu2 %7921  ;;  %8035 = vrot.lane.b32.xlu1 %v5574_v62, %s19555_s2  ;;  %v16221_v41 = vperm.slane %v5954_v3, %v12943_v4  ;;  %v5817_v62 = vrot.slane %v16200_v9, 4  ;;  %v20556_v3 = vld [vmem:[#allocation155_spill] sm:$0xff] }
 0xe70   : > { %20535 = vst [vmem:[#allocation372_spill] sm:$0xff] %v16185_v46  ;;  %v5930_v24 = vsel %vm4013_vm9, %v5929_v20, %v20556_v3  ;;  %v20562_v20 = vld [vmem:[#allocation150_spill] sm:$0xff]  ;;  %v20564_v46 = vld [vmem:[#allocation55_spill] sm:$0xff] }
 0xe71   : > { %v16189_v32 = vpop.permute.xlu0 %7847  ;;  %v16191_v36 = vpop.permute.xlu1 %7863  ;;  %v5917_v3 = vrot.slane %v20562_v20, 4  ;;  %v20566_v20 = vld [vmem:[#allocation127_spill] sm:$0xff] }
 0xe72   : > { %20537 = vst [vmem:[#allocation124_spill] sm:$0xff] %v16189_v32 }
 0xe73   : > { %20538 = vst [vmem:[#allocation203_spill] sm:$0xff] %v16191_v36  ;;  %v20568_v36 = vld [vmem:[#allocation135_spill] sm:$0xff] }
 0xe74   : > { %v16285_v32 = vsel %vm3755_vm8, %v20569_v37, %v20568_v36  ;;  %v5531_v37 = vrot.slane %v16137_v39, 4 }
 0xe75   : > { %8065 = vrot.lane.b32.xlu2 %v20540_v12, %s19560_s26 }
 0xe77   : > { %8033 = vrot.lane.b32.xlu0 %v20548_v5, %s19555_s2  ;;  %v16215_v61 = vpop.permute.xlu2 %7927  ;;  %8049 = vrot.lane.b32.xlu1 %v20550_v51, %s19556_s17  ;;  %v5942_v5 = vsel %vm4013_vm9, %v5941_v47, %v20557_v53  ;;  %v20558_v51 = vld [vmem:[#allocation322_spill] sm:$0xff]  ;;  %v5989_v47 = vrot.slane %v16221_v41, 4  ;;  %v20563_v53 = vld [vmem:[#allocation317_spill] sm:$0xff] }
 0xe78   : > { %20549 = vst [vmem:[#allocation380_spill] sm:$0xff] %v16215_v61  ;;  %v16248_v61 = vsel %vm3755_vm8, %v20559_v57, %v20558_v51  ;;  %v16260_v33 = vsel %vm3755_vm8, %v20564_v46, %v20563_v53  ;;  %v16270_v51 = vperm.slane %v5930_v24, %v12943_v4  ;;  %v16273_v57 = vperm.slane %v5942_v5, %v12943_v4  ;;  %v20570_v5 = vld [vmem:[#allocation312_spill] sm:$0xff] }
 0xe79   : > { %v16227_v12 = vpop.permute.xlu0 %7861  ;;  %v16229_v28 = vpop.permute.xlu1 %7877  ;;  %v5818_v16 = vsel %vm4013_vm9, %v5817_v62, %v16248_v61  ;;  %v5652_v46 = vperm.slane %v5644_v19, %v13098_v43  ;;  %v20567_v62 = vld [vmem:[#allocation98_spill] sm:$0xff]  ;;  %v5806_v24 = vsel %vm4013_vm9, %v5805_v11, %v16260_v33 }
 0xe7a   : > { %20552 = vst [vmem:[#allocation145_spill] sm:$0xff] %v16227_v12  ;;  %v16280_v53 = vsel %vm3755_vm8, %v20567_v62, %v20566_v20  ;;  %v20572_v19 = vld [vmem:[#allocation314_spill] sm:$0xff]  ;;  %v16296_v8 = vperm.slane %v5818_v16, %v12943_v4  ;;  %v16299_v20 = vperm.slane %v5842_v29, %v12943_v4  ;;  %v20573_v62 = vld [vmem:[#allocation33_spill] sm:$0xff]  ;;  %v5990_v11 = vsel %vm4013_vm9, %v5989_v47, %v16273_v57 }
 0xe7b   : > { %20553 = vst [vmem:[#allocation384_spill] sm:$0xff] %v16229_v28  ;;  %v5918_v36 = vsel %vm4013_vm9, %v5917_v3, %v20573_v62  ;;  %v20576_v16 = vld [vmem:[#allocation141_spill] sm:$0xff]  ;;  %v5830_v47 = vsel %vm4013_vm9, %v5829_v54, %v16280_v53  ;;  %v5965_v39 = vrot.slane %v16270_v51, 4  ;;  %v5689_v62 = vrot.slane %v5676_v14, 4 }
 0xe7c   : > { %v16325_v38 = vperm.slane %v5806_v24, %v12943_v4  ;;  %v5853_v24 = vrot.slane %v16296_v8, 4  ;;  %v16341_v25 = vperm.slane %v5830_v47, %v12943_v4  ;;  %v20580_v47 = vld [vmem:[#allocation422_spill] sm:$0xff] }
 0xe7d   : > { %8071 = vrot.lane.b32.xlu2 %v20565_v50, %s19560_s26 }
 0xe7f   : > { %8039 = vrot.lane.b32.xlu0 %v20570_v5, %s19555_s2  ;;  %v16291_v50 = vpop.permute.xlu2 %7941  ;;  %8055 = vrot.lane.b32.xlu1 %v20572_v19, %s19556_s17  ;;  %v5555_v5 = vrot.slane %v16150_v34, 4  ;;  %v16310_v19 = vsel %vm3755_vm8, %v20575_v15, %v20574_v52  ;;  %v5691_v34 = vrot.slane %v5652_v46, 4  ;;  %v16328_v52 = vperm.slane %v5918_v36, %v12943_v4  ;;  %s19557_s2 = smov 62  }
 0xe80   : > { %20571 = vst [vmem:[#allocation47_spill] sm:$0xff] %v16291_v50  ;;  %v20577_v50 = vld [vmem:[#allocation125_spill] sm:$0xff]  ;;  %v5877_v36 = vrot.slane %v16299_v20, 4 }
 0xe81   : > { %v16315_v29 = vsel %vm3755_vm8, %v20577_v50, %v20576_v16  ;;  %v16317_v40 = vpop.permute.xlu0 %7875  ;;  %v16319_v3 = vpop.permute.xlu1 %7891  ;;  %v5556_v15 = vsel %vm4013_vm9, %v16109_v22, %v5555_v5  ;;  %v16333_v50 = vperm.slane %v5990_v11, %v13098_v43  ;;  %v6153_v16 = vrot.slane %v16310_v19, 4 }
 0xe82   : > { %20578 = vst [vmem:[#allocation320_spill] sm:$0xff] %v16317_v40  ;;  %v6177_v54 = vrot.slane %v16315_v29, 4  ;;  %v5532_v22 = vsel %vm4013_vm9, %v16122_v6, %v5531_v37  ;;  %v5688_v11 = vsel %vm4013_vm9, %v16119_v18, %v5687_v55  ;;  %v5966_v2 = vsel %vm4013_vm9, %v5965_v39, %v16328_v52  ;;  %v20584_v6 = vld [vmem:[#allocation303_spill] sm:$0xff]  ;;  %v20585_v37 = vld [vmem:[#allocation304_spill] sm:$0xff] }
 0xe83   : > { %20579 = vst [vmem:[#allocation175_spill] sm:$0xff] %v16319_v3  ;;  %v5692_v3 = vsel %vm4013_vm9, %v5676_v14, %v5691_v34  ;;  %v5690_v14 = vsel %vm4013_vm9, %v5689_v62, %v5652_v46  ;;  %v5564_v5 = vperm.slane %v5556_v15, %v13098_v43  ;;  %v20581_v34 = vld [vmem:[#allocation262_spill] sm:$0xff]  ;;  %v16366_v55 = vsel %vm3755_vm8, %v20585_v37, %v20584_v6 }
 0xe84   : > { %v16356_v40 = vsel %vm3755_vm8, %v20581_v34, %v20580_v47  ;;  %v6178_v39 = vsel %vm4013_vm9, %v6177_v54, %v16285_v32  ;;  %v5540_v62 = vperm.slane %v5532_v22, %v13098_v43  ;;  %v20587_v15 = vld [vmem:[#allocation38_spill] sm:$0xff]  ;;  %v5854_v54 = vsel %vm4013_vm9, %v5853_v24, %v16325_v38 }
 0xe85   : > { %8085 = vrot.lane.b32.xlu2 %v5692_v3, %s19557_s2  ;;  %v20583_v3 = vld [vmem:[#allocation123_spill] sm:$0xff]  ;;  %v6154_v46 = vsel %vm4013_vm9, %v6153_v16, %v16356_v40  ;;  %v20588_v47 = vld [vmem:[#allocation234_spill] sm:$0xff]  ;;  %v5878_v22 = vsel %vm4013_vm9, %v5877_v36, %v16341_v25  ;;  %v16415_v42 = vperm.slane %v6178_v39, %v12943_v4  ;;  %v5860_v39 = vperm.slane %v5854_v54, %v13098_v43 }
 0xe86   : > { %v16361_v7 = vsel %vm3755_vm8, %v20583_v3, %v20582_v13  ;;  %v6013_v13 = vrot.slane %v16333_v50, 4  ;;  %v16381_v34 = vsel %vm3755_vm8, %v20588_v47, %v20587_v15  ;;  %v20590_v3 = vld [vmem:[#allocation240_spill] sm:$0xff]  ;;  %v6165_v15 = vrot.slane %v16366_v55, 4 }
 0xe87   : > { %8053 = vrot.lane.b32.xlu0 %v5688_v11, %s19556_s17  ;;  %v16369_v18 = vpop.permute.xlu2 %7955  ;;  %8069 = vrot.lane.b32.xlu1 %v5690_v14, %s19560_s26  ;;  %v20589_v11 = vld [vmem:[#allocation421_spill] sm:$0xff]  ;;  %v6141_v37 = vrot.slane %v16361_v7, 4  ;;  %v16399_v47 = vperm.slane %v5966_v2, %v13098_v43  ;;  %v16412_v36 = vperm.slane %v6154_v46, %v12943_v4  ;;  %v6053_v2 = vrot.slane %v16381_v34, 4  ;;  %s19559_s17 = smov 66  }
 0xe88   : > { %20586 = vst [vmem:[#allocation345_spill] sm:$0xff] %v16369_v18  ;;  %v16386_v6 = vsel %vm3755_vm8, %v20590_v3, %v20589_v11  ;;  %v5577_v18 = vrot.slane %v5564_v5, 4  ;;  %v20593_v11 = vld [vmem:[#allocation132_spill] sm:$0xff]  ;;  %v20594_v3 = vld [vmem:[#allocation214_spill] sm:$0xff]  ;;  %v5884_v30 = vperm.slane %v5878_v22, %v13098_v43  ;;  %v5903_v48 = vrot.slane %v5860_v39, 4 }
 0xe89   : > { %v16388_v14 = vpop.permute.xlu0 %7889  ;;  %v16390_v16 = vpop.permute.xlu1 %7905  ;;  %v6065_v28 = vrot.slane %v16386_v6, 4  ;;  %v6014_v49 = vsel %vm4013_vm9, %v6013_v13, %v16399_v47  ;;  %v6189_v22 = vrot.slane %v16412_v36, 4 }
 0xe8a   : > { %20591 = vst [vmem:[#allocation96_spill] sm:$0xff] %v16388_v14  ;;  %v16404_v14 = vsel %vm3755_vm8, %v20594_v3, %v20593_v11  ;;  %v5579_v11 = vrot.slane %v5540_v62, 4  ;;  %v20597_v3 = vld [vmem:[#allocation398_spill] sm:$0xff] }
 0xe8b   : > { %20592 = vst [vmem:[#allocation184_spill] sm:$0xff] %v16390_v16  ;;  %v20595_v16 = vld [vmem:[#allocation133_spill] sm:$0xff]  ;;  %v16424_v12 = vsel %vm3755_vm8, %v20598_v21, %v20597_v3  ;;  %v5578_v21 = vsel %vm4013_vm9, %v5577_v18, %v5540_v62  ;;  %v20607_v62 = vld [vmem:[#allocation192_spill] sm:$0xff] }
 0xe8c   : > { %v16409_v24 = vsel %vm3755_vm8, %v20596_v26, %v20595_v16  ;;  %v20599_v26 = vld [vmem:[#allocation432_spill] sm:$0xff]  ;;  %v20600_v16 = vld [vmem:[#allocation282_spill] sm:$0xff]  ;;  %v5580_v3 = vsel %vm4013_vm9, %v5564_v5, %v5579_v11  ;;  %v6029_v5 = vrot.slane %v16424_v12, 4  ;;  %v20606_v18 = vld [vmem:[#allocation197_spill] sm:$0xff] }
 0xe8d   : > { %v16429_v46 = vsel %vm3755_vm8, %v20600_v16, %v20599_v26  ;;  %8099 = vrot.lane.b32.xlu2 %v6014_v49, %s19558_s13  ;;  %v6142_v13 = vsel %vm4013_vm9, %v6141_v37, %v16409_v24  ;;  %v16443_v26 = vsel %vm3755_vm8, %v20602_v0, %v20601_v45  ;;  %v20603_v49 = vld [vmem:[#allocation410_spill] sm:$0xff]  ;;  %v6213_v37 = vrot.slane %v16415_v42, 4 }
 0xe8e   : > { %v6166_v1 = vsel %vm4013_vm9, %v6165_v15, %v16429_v46  ;;  %v20604_v16 = vld [vmem:[#allocation122_spill] sm:$0xff]  ;;  %v6054_v0 = vsel %vm4013_vm9, %v6053_v2, %v16443_v26  ;;  %v16464_v11 = vsel %vm3755_vm8, %v20607_v62, %v20606_v18  ;;  %v6041_v2 = vrot.slane %v16404_v14, 4 }
 0xe8f   : > { %v16448_v54 = vsel %vm3755_vm8, %v20604_v16, %v20603_v49  ;;  %8067 = vrot.lane.b32.xlu0 %v5578_v21, %s19560_s26  ;;  %v16453_v15 = vpop.permute.xlu2 %7969  ;;  %8083 = vrot.lane.b32.xlu1 %v5580_v3, %s19557_s2  ;;  %v16467_v49 = vperm.slane %v6142_v13, %v12943_v4  ;;  %v16470_v21 = vperm.slane %v6166_v1, %v12943_v4  ;;  %v5901_v18 = vrot.slane %v5884_v30, 4  ;;  %s19563_s26 = smov 74  }
 0xe90   : > { %20605 = vst [vmem:[#allocation143_spill] sm:$0xff] %v16453_v15  ;;  %v6066_v45 = vsel %vm4013_vm9, %v6065_v28, %v16448_v54  ;;  %v20610_v15 = vld [vmem:[#allocation391_spill] sm:$0xff]  ;;  %v6060_v62 = vperm.slane %v6054_v0, %v12943_v4 }
 0xe91   : > { %v16472_v3 = vpop.permute.xlu0 %7895  ;;  %v16474_v16 = vpop.permute.xlu1 %7911  ;;  %v16480_v28 = vsel %vm3755_vm8, %v20611_v60, %v20610_v15  ;;  %v6072_v13 = vperm.slane %v6066_v45, %v12943_v4  ;;  %v6190_v1 = vsel %vm4013_vm9, %v6189_v22, %v16467_v49  ;;  %v5904_v60 = vsel %vm4013_vm9, %v5884_v30, %v5903_v48 }
 0xe92   : > { %20608 = vst [vmem:[#allocation158_spill] sm:$0xff] %v16472_v3  ;;  %v6214_v3 = vsel %vm4013_vm9, %v6213_v37, %v16470_v21  ;;  %v6030_v35 = vsel %vm4013_vm9, %v6029_v5, %v16480_v28  ;;  %v5902_v15 = vsel %vm4013_vm9, %v5901_v18, %v5860_v39  ;;  %v6196_v0 = vperm.slane %v6190_v1, %v13098_v43 }
 0xe93   : > { %20609 = vst [vmem:[#allocation350_spill] sm:$0xff] %v16474_v16  ;;  %v6042_v16 = vsel %vm4013_vm9, %v6041_v2, %v16464_v11  ;;  %v6220_v22 = vperm.slane %v6214_v3, %v13098_v43  ;;  %v6036_v37 = vperm.slane %v6030_v35, %v12943_v4  ;;  %v6103_v10 = vrot.slane %v6060_v62, 4 }
 0xe94   : > { %v6048_v45 = vperm.slane %v6042_v16, %v12943_v4  ;;  %v6101_v2 = vrot.slane %v6072_v13, 4  ;;  %v6239_v3 = vrot.slane %v6196_v0, 4  ;;  %v5843_v16 = vrot.slane %v16253_v58, 4 }
 0xe95   : > { %8113 = vrot.lane.b32.xlu2 %v5904_v60, %s19559_s17  ;;  %v6104_v39 = vsel %vm4013_vm9, %v6072_v13, %v6103_v10  ;;  %v6237_v18 = vrot.slane %v6220_v22, 4  ;;  %v6079_v1 = vrot.slane %v6036_v37, 4 }
 0xe96   : > { %v6077_v35 = vrot.slane %v6048_v45, 4  ;;  %v6102_v60 = vsel %vm4013_vm9, %v6101_v2, %v6060_v62  ;;  %v5819_v62 = vrot.slane %v16248_v61, 4 }
 0xe97   : > { %8081 = vrot.lane.b32.xlu0 %v20612_v17, %s19557_s2  ;;  %v16501_v5 = vpop.permute.xlu2 %7975  ;;  %8097 = vrot.lane.b32.xlu1 %v5902_v15, %s19558_s13  ;;  %v6240_v17 = vsel %vm4013_vm9, %v6220_v22, %v6239_v3  ;;  %v5844_v15 = vsel %vm4013_vm9, %v16205_v63, %v5843_v16  ;;  %v6238_v13 = vsel %vm4013_vm9, %v6237_v18, %v6196_v0  ;;  %v20616_v22 = vld [vmem:[#allocation293_spill] sm:$0xff]  ;;  %v5967_v0 = vrot.slane %v16328_v52, 4 }
 0xe98   : > { %20613 = vst [vmem:[#allocation45_spill] sm:$0xff] %v16501_v5  ;;  %v16513_v5 = vperm.slane %v6104_v39, %v13098_v43  ;;  %v6078_v10 = vsel %vm4013_vm9, %v6077_v35, %v6036_v37  ;;  %v6108_v58 = vperm.slane %v6102_v60, %v13098_v43  ;;  %v6080_v63 = vsel %vm4013_vm9, %v6048_v45, %v6079_v1 }
 0xe99   : > { %v16504_v48 = vpop.permute.xlu0 %7909  ;;  %v16506_v30 = vpop.permute.xlu1 %7925  ;;  %v16530_v39 = vperm.slane %v5844_v15, %v12943_v4  ;;  %v5820_v61 = vsel %vm4013_vm9, %v16200_v9, %v5819_v62  ;;  %v5991_v3 = vrot.slane %v16273_v57, 4  ;;  %v16545_v35 = vperm.slane %v6080_v63, %v13098_v43 }
 0xe9a   : > { %20614 = vst [vmem:[#allocation56_spill] sm:$0xff] %v16504_v48  ;;  %v6129_v37 = vrot.slane %v16513_v5, 4  ;;  %v6125_v52 = vrot.slane %v6108_v58, 4  ;;  %v5968_v1 = vsel %vm4013_vm9, %v16270_v51, %v5967_v0  ;;  %v6179_v9 = vrot.slane %v16285_v32, 4 }
 0xe9b   : > { %20615 = vst [vmem:[#allocation306_spill] sm:$0xff] %v16506_v30  ;;  %v5831_v30 = vrot.slane %v16280_v53, 4  ;;  %v6084_v53 = vperm.slane %v6078_v10, %v13098_v43  ;;  %v5992_v60 = vsel %vm4013_vm9, %v16221_v41, %v5991_v3  ;;  %v5889_v57 = vrot.slane %v16530_v39, 4 }
 0xe9c   : > { %v5976_v41 = vperm.slane %v5968_v1, %v13098_v43  ;;  %v6180_v32 = vsel %vm4013_vm9, %v16315_v29, %v6179_v9  ;;  %v5855_v62 = vrot.slane %v16325_v38, 4  ;;  %v6167_v3 = vrot.slane %v16429_v46, 4 }
 0xe9d   : > { %8119 = vrot.lane.b32.xlu2 %v6240_v17, %s19559_s17  ;;  %v5832_v45 = vsel %vm4013_vm9, %v16235_v44, %v5831_v30  ;;  %v6130_v17 = vsel %vm4013_vm9, %v6129_v37, %v16545_v35  ;;  %v6127_v15 = vrot.slane %v6084_v53, 4  ;;  %v5807_v44 = vrot.slane %v16260_v33, 4 }
 0xe9e   : > { %v16557_v30 = vperm.slane %v5820_v61, %v12943_v4  ;;  %v16560_v10 = vperm.slane %v5832_v45, %v12943_v4  ;;  %v6126_v51 = vsel %vm4013_vm9, %v6125_v52, %v6084_v53  ;;  %v6000_v33 = vperm.slane %v5992_v60, %v13098_v43 }
 0xe9f   : > { %8087 = vrot.lane.b32.xlu0 %v20616_v22, %s19557_s2  ;;  %v16525_v2 = vpop.permute.xlu2 %7989  ;;  %8103 = vrot.lane.b32.xlu1 %v6238_v13, %s19558_s13  ;;  %s11121_s2 = smov 68   ;;  %v6128_v13 = vsel %vm4013_vm9, %v6108_v58, %v6127_v15  ;;  %v5879_v22 = vrot.slane %v16341_v25, 4  ;;  %v5808_v0 = vsel %vm4013_vm9, %v16210_v56, %v5807_v44  ;;  %v16581_v37 = vperm.slane %v6180_v32, %v12943_v4 }
 0xea0   : > { %20617 = vst [vmem:[#allocation429_spill] sm:$0xff] %v16525_v2  ;;  %v5890_v29 = vsel %vm4013_vm9, %v5889_v57, %v16560_v10  ;;  %v5865_v58 = vrot.slane %v16557_v30, 4  ;;  %v5856_v53 = vsel %vm4013_vm9, %v16296_v8, %v5855_v62  ;;  %v6155_v56 = vrot.slane %v16356_v40, 4  ;;  %v20696_v2 = vld [vmem:[#allocation291_spill] sm:$0xff] }
 0xea1   : > { %v16538_v18 = vpop.permute.xlu0 %7923  ;;  %v16540_v16 = vpop.permute.xlu1 %7939  ;;  %v5880_v61 = vsel %vm4013_vm9, %v16299_v20, %v5879_v22  ;;  %v6019_v45 = vrot.slane %v5976_v41, 4  ;;  %v6017_v52 = vrot.slane %v6000_v33, 4  ;;  %v16594_v1 = vperm.slane %v5808_v0, %v12943_v4 }
 0xea2   : > { %20618 = vst [vmem:[#allocation272_spill] sm:$0xff] %v16538_v18  ;;  %v16597_v60 = vperm.slane %v5890_v29, %v13098_v43  ;;  %v6156_v9 = vsel %vm4013_vm9, %v16310_v19, %v6155_v56  ;;  %v6168_v8 = vsel %vm4013_vm9, %v16366_v55, %v6167_v3  ;;  %v6015_v40 = vrot.slane %v16399_v47, 4  ;;  %v20705_v18 = vld [vmem:[#allocation39_spill] sm:$0xff] }
 0xea3   : > { %20619 = vst [vmem:[#allocation90_spill] sm:$0xff] %v16540_v16  ;;  %v6020_v20 = vsel %vm4013_vm9, %v6000_v33, %v6019_v45  ;;  %v6225_v46 = vrot.slane %v16581_v37, 4  ;;  %v5866_v57 = vsel %vm4013_vm9, %v5865_v58, %v16594_v1  ;;  %v5888_v15 = vperm.slane %v5880_v61, %v13098_v43  ;;  %v20697_v16 = vld [vmem:[#allocation290_spill] sm:$0xff] }
 0xea4   : > { %v6043_v19 = vrot.slane %v16464_v11, 4  ;;  %v6067_v55 = vrot.slane %v16448_v54, 4  ;;  %v6016_v44 = vsel %vm4013_vm9, %v16333_v50, %v6015_v40  ;;  %v6018_v47 = vsel %vm4013_vm9, %v6017_v52, %v5976_v41 }
 0xea5   : > { %8133 = vrot.lane.b32.xlu2 %v6130_v17, %s11121_s2  ;;  %v5864_v17 = vperm.slane %v5856_v53, %v13098_v43  ;;  %v16617_v32 = vperm.slane %v6156_v9, %v12943_v4  ;;  %v6143_v11 = vrot.slane %v16409_v24, 4  ;;  %v5909_v50 = vrot.slane %v16597_v60, 4 }
 0xea6   : > { %v6068_v54 = vsel %vm4013_vm9, %v16386_v6, %v6067_v55  ;;  %v6215_v41 = vrot.slane %v16470_v21, 4  ;;  %v16636_v22 = vperm.slane %v5866_v57, %v13098_v43  ;;  %v6031_v24 = vrot.slane %v16480_v28, 4 }
 0xea7   : > { %8101 = vrot.lane.b32.xlu0 %v6126_v51, %s19558_s13  ;;  %v16572_v63 = vpop.permute.xlu2 %8003  ;;  %8117 = vrot.lane.b32.xlu1 %v6128_v13, %s19559_s17  ;;  %s19561_s13 = smov 70   ;;  %v16620_v51 = vperm.slane %v6168_v8, %v12943_v4  ;;  %v5907_v0 = vrot.slane %v5864_v17, 4  ;;  %v6044_v6 = vsel %vm4013_vm9, %v16404_v14, %v6043_v19  ;;  %v6144_v58 = vsel %vm4013_vm9, %v16361_v7, %v6143_v11 }
 0xea8   : > { %20620 = vst [vmem:[#allocation287_spill] sm:$0xff] %v16572_v63  ;;  %v5905_v21 = vrot.slane %v5888_v15, 4  ;;  %v16646_v53 = vperm.slane %v6068_v54, %v12943_v4  ;;  %v6191_v61 = vrot.slane %v16467_v49, 4  ;;  %v6201_v56 = vrot.slane %v16617_v32, 4 }
 0xea9   : > { %v16583_v38 = vpop.permute.xlu0 %7937  ;;  %v16585_v25 = vpop.permute.xlu1 %7953  ;;  %v6226_v29 = vsel %vm4013_vm9, %v6225_v46, %v16620_v51  ;;  %v6216_v3 = vsel %vm4013_vm9, %v16415_v42, %v6215_v41  ;;  %v6032_v28 = vsel %vm4013_vm9, %v16424_v12, %v6031_v24  ;;  %v6055_v45 = vrot.slane %v16443_v26, 4 }
 0xeaa   : > { %20621 = vst [vmem:[#allocation73_spill] sm:$0xff] %v16583_v38  ;;  %v5910_v14 = vsel %vm4013_vm9, %v5909_v50, %v16636_v22  ;;  %v16658_v7 = vperm.slane %v6226_v29, %v13098_v43  ;;  %v16661_v52 = vperm.slane %v6044_v6, %v12943_v4  ;;  %v16664_v49 = vperm.slane %v6144_v58, %v12943_v4 }
 0xeab   : > { %20622 = vst [vmem:[#allocation264_spill] sm:$0xff] %v16585_v25  ;;  %v6192_v42 = vsel %vm4013_vm9, %v16412_v36, %v6191_v61  ;;  %v6056_v12 = vsel %vm4013_vm9, %v16381_v34, %v6055_v45  ;;  %v5906_v26 = vsel %vm4013_vm9, %v5905_v21, %v5864_v17  ;;  %v5908_v9 = vsel %vm4013_vm9, %v5888_v15, %v5907_v0 }
 0xeac   : > { %v6224_v8 = vperm.slane %v6216_v3, %v13098_v43  ;;  %v6113_v40 = vrot.slane %v16646_v53, 4  ;;  %v6202_v34 = vsel %vm4013_vm9, %v6201_v56, %v16664_v49  ;;  %v6245_v36 = vrot.slane %v16658_v7, 4 }
 0xead   : > { %8147 = vrot.lane.b32.xlu2 %v6020_v20, %s19561_s13  ;;  %v16675_v20 = vperm.slane %v6032_v28, %v12943_v4  ;;  %v6200_v57 = vperm.slane %v6192_v42, %v13098_v43  ;;  %v6089_v17 = vrot.slane %v16661_v52, 4  ;;  %v16688_v15 = vperm.slane %v6056_v12, %v12943_v4 }
 0xeae   : > { %v6131_v45 = vrot.slane %v16545_v35, 4 }
 0xeaf   : > { %8115 = vrot.lane.b32.xlu0 %v6016_v44, %s19559_s17  ;;  %v16623_v13 = vpop.permute.xlu2 %8017  ;;  %8131 = vrot.lane.b32.xlu1 %v6018_v47, %s11121_s2  ;;  %s19562_s17 = smov 72   ;;  %v16695_v44 = vperm.slane %v6202_v34, %v13098_v43  ;;  %v6241_v47 = vrot.slane %v6224_v8, 4  ;;  %v6090_v11 = vsel %vm4013_vm9, %v6089_v17, %v16675_v20  ;;  %v6114_v54 = vsel %vm4013_vm9, %v6113_v40, %v16688_v15 }
 0xeb0   : > { %20623 = vst [vmem:[#allocation261_spill] sm:$0xff] %v16623_v13  ;;  %v6243_v41 = vrot.slane %v6200_v57, 4  ;;  %v6096_v24 = vperm.slane %v6090_v11, %v13098_v43  ;;  %v6120_v6 = vperm.slane %v6114_v54, %v13098_v43  ;;  %v6132_v42 = vsel %vm4013_vm9, %v16513_v5, %v6131_v45  ;;  %v20639_v11 = vld [vmem:[#allocation130_spill] sm:$0xff] }
 0xeb1   : > { %v16631_v33 = vpop.permute.xlu0 %7943  ;;  %v16633_v62 = vpop.permute.xlu1 %7959  ;;  %v6246_v50 = vsel %vm4013_vm9, %v6245_v36, %v16695_v44  ;;  %v6242_v0 = vsel %vm4013_vm9, %v6241_v47, %v6200_v57  ;;  %v20636_v36 = vld [vmem:[#allocation69_spill] sm:$0xff]  ;;  %v20638_v47 = vld [vmem:[#allocation74_spill] sm:$0xff] }
 0xeb2   : > { %20624 = vst [vmem:[#allocation295_spill] sm:$0xff] %v16631_v33  ;;  %v6244_v29 = vsel %vm4013_vm9, %v6224_v8, %v6243_v41  ;;  %v6135_v56 = vrot.slane %v6096_v24, 4  ;;  %v6133_v3 = vrot.slane %v6120_v6, 4  ;;  %v20641_v41 = vld [vmem:[#allocation239_spill] sm:$0xff]  ;;  %v20678_v33 = vld [vmem:[#allocation377_spill] sm:$0xff] }
 0xeb3   : > { %20625 = vst [vmem:[#allocation420_spill] sm:$0xff] %v16633_v62 }
 0xeb4   : > { %v6136_v28 = vsel %vm4013_vm9, %v6120_v6, %v6135_v56  ;;  %v6134_v12 = vsel %vm4013_vm9, %v6133_v3, %v6096_v24  ;;  %v20642_v24 = vld [vmem:[#allocation77_spill] sm:$0xff]  ;;  %v20644_v3 = vld [vmem:[#allocation319_spill] sm:$0xff] }
 0xeb5   : > { %8161 = vrot.lane.b32.xlu2 %v5910_v14, %s19562_s17  ;;  %v5867_v14 = vrot.slane %v16594_v1, 4  ;;  %v20635_v1 = vld [vmem:[#allocation225_spill] sm:$0xff] }
 0xeb6   : > { %v6513_v34 = vrot.slane %v20635_v1, 4  ;;  %v20643_v6 = vld [vmem:[#allocation165_spill] sm:$0xff] }
 0xeb7   : > { %8129 = vrot.lane.b32.xlu0 %v5906_v26, %s11121_s2  ;;  %v16679_v46 = vpop.permute.xlu2 %8023  ;;  %8145 = vrot.lane.b32.xlu1 %v5908_v9, %s19561_s13  ;;  %v5891_v26 = vrot.slane %v16560_v10, 4  ;;  %v5868_v35 = vsel %vm4013_vm9, %v16557_v30, %v5867_v14  ;;  %v20637_v10 = vld [vmem:[#allocation79_spill] sm:$0xff]  ;;  %v16746_v30 = vsel %vm3755_vm8, %v20639_v11, %v20638_v47  ;;  %v16758_v56 = vsel %vm3755_vm8, %v20643_v6, %v20642_v24 }
 0xeb8   : > { %20626 = vst [vmem:[#allocation53_spill] sm:$0xff] %v16679_v46  ;;  %v16740_v57 = vsel %vm3755_vm8, %v20637_v10, %v20636_v36  ;;  %v5876_v17 = vperm.slane %v5868_v35, %v13098_v43  ;;  %v20649_v35 = vld [vmem:[#allocation128_spill] sm:$0xff]  ;;  %v5911_v10 = vrot.slane %v16636_v22, 4  ;;  %v20652_v11 = vld [vmem:[#allocation395_spill] sm:$0xff]  ;;  %v6203_v6 = vrot.slane %v16664_v49, 4 }
 0xeb9   : > { %v16690_v19 = vpop.permute.xlu0 %7957  ;;  %v16692_v55 = vpop.permute.xlu1 %7973  ;;  %v5892_v5 = vsel %vm4013_vm9, %v16530_v39, %v5891_v26  ;;  %v6253_v39 = vrot.slane %v16740_v57, 4 }
 0xeba   : > { %20627 = vst [vmem:[#allocation118_spill] sm:$0xff] %v16690_v19  ;;  %v5900_v54 = vperm.slane %v5892_v5, %v13098_v43  ;;  %v5915_v26 = vrot.slane %v5876_v17, 4  ;;  %v20650_v5 = vld [vmem:[#allocation154_spill] sm:$0xff] }
 0xebb   : > { %20628 = vst [vmem:[#allocation253_spill] sm:$0xff] %v16692_v55  ;;  %v16774_v1 = vsel %vm3755_vm8, %v20650_v5, %v20649_v35  ;;  %v20657_v5 = vld [vmem:[#allocation342_spill] sm:$0xff] }
 0xebc   : > { %v5913_v47 = vrot.slane %v5900_v54, 4  ;;  %v6377_v46 = vrot.slane %v16774_v1, 4 }
 0xebd   : > { %8167 = vrot.lane.b32.xlu2 %v6246_v50, %s19562_s17  ;;  %v20640_v50 = vld [vmem:[#allocation386_spill] sm:$0xff] }
 0xebf   : > { %v16708_v58 = vpop.permute.xlu2 %8037  ;;  %8135 = vrot.lane.b32.xlu0 %v6242_v0, %s11121_s2  ;;  %8151 = vrot.lane.b32.xlu1 %v6244_v29, %s19561_s13  ;;  %v6514_v0 = vsel %vm4013_vm9, %v6513_v34, %v20641_v41  ;;  %v20651_v34 = vld [vmem:[#allocation81_spill] sm:$0xff]  ;;  %v5916_v29 = vsel %vm4013_vm9, %v5900_v54, %v5915_v26  ;;  %v20665_v26 = vld [vmem:[#allocation383_spill] sm:$0xff] }
 0xec0   : > { %20629 = vst [vmem:[#allocation222_spill] sm:$0xff] %v16708_v58  ;;  %v6489_v36 = vrot.slane %v20651_v34, 4  ;;  %v16784_v24 = vperm.slane %v6514_v0, %v12943_v4  ;;  %v20658_v34 = vld [vmem:[#allocation89_spill] sm:$0xff]  ;;  %v20659_v0 = vld [vmem:[#allocation370_spill] sm:$0xff] }
 0xec1   : > { %v16712_v21 = vpop.permute.xlu0 %7971  ;;  %v16714_v61 = vpop.permute.xlu1 %7987 }
 0xec2   : > { %20630 = vst [vmem:[#allocation356_spill] sm:$0xff] %v16712_v21 }
 0xec3   : > { %20631 = vst [vmem:[#allocation336_spill] sm:$0xff] %v16714_v61 }
 0xec5   : > { %8181 = vrot.lane.b32.xlu2 %v6136_v28, %s19563_s26  ;;  %v20645_v28 = vld [vmem:[#allocation54_spill] sm:$0xff] }
 0xec6   : > { %v16763_v45 = vsel %vm3755_vm8, %v20645_v28, %v20644_v3  ;;  %v6227_v3 = vrot.slane %v16620_v51, 4  ;;  %v6204_v51 = vsel %vm4013_vm9, %v16617_v32, %v6203_v6  ;;  %v20664_v32 = vld [vmem:[#allocation58_spill] sm:$0xff] }
 0xec7   : > { %v16724_v9 = vpop.permute.xlu2 %8051  ;;  %8149 = vrot.lane.b32.xlu0 %v6132_v42, %s19561_s13  ;;  %8165 = vrot.lane.b32.xlu1 %v6134_v12, %s19562_s17  ;;  %s19564_s13 = smov 76   ;;  %v20647_v42 = vld [vmem:[#allocation173_spill] sm:$0xff]  ;;  %v20648_v12 = vld [vmem:[#allocation387_spill] sm:$0xff]  ;;  %v16795_v22 = vsel %vm4013_vm9, %v6253_v39, %v16763_v45  ;;  %v20667_v6 = vld [vmem:[#allocation170_spill] sm:$0xff] }
 0xec8   : > { %20632 = vst [vmem:[#allocation355_spill] sm:$0xff] %v16724_v9  ;;  %v6228_v39 = vsel %vm4013_vm9, %v16581_v37, %v6227_v3  ;;  %v6549_v37 = vrot.slane %v16784_v24, 4  ;;  %v20668_v3 = vld [vmem:[#allocation171_spill] sm:$0xff] }
 0xec9   : > { %v16730_v8 = vpop.permute.xlu0 %7985  ;;  %v16732_v40 = vpop.permute.xlu1 %8001 }
 0xeca   : > { %20633 = vst [vmem:[#allocation335_spill] sm:$0xff] %v16730_v8 }
 0xecb   : > { %20634 = vst [vmem:[#allocation354_spill] sm:$0xff] %v16732_v40 }
 0xecd   : > { %8195 = vrot.lane.b32.xlu2 %v20640_v50, %s19564_s13  ;;  %v20653_v50 = vld [vmem:[#allocation180_spill] sm:$0xff] }
 0xece   : > { %v16781_v41 = vsel %vm3755_vm8, %v20653_v50, %v20652_v11  ;;  %v16800_v11 = vsel %vm3755_vm8, %v20658_v34, %v20657_v5  ;;  %v20660_v50 = vld [vmem:[#allocation117_spill] sm:$0xff]  ;;  %v20661_v34 = vld [vmem:[#allocation206_spill] sm:$0xff] }
 0xecf   : > { %v16765_v14 = vpop.permute.xlu2 %8065  ;;  %8163 = vrot.lane.b32.xlu0 %v20647_v42, %s19562_s17  ;;  %8179 = vrot.lane.b32.xlu1 %v20648_v12, %s19563_s26  ;;  %v20656_v12 = vld [vmem:[#allocation84_spill] sm:$0xff]  ;;  %v16805_v49 = vsel %vm3755_vm8, %v20660_v50, %v20659_v0  ;;  %v6401_v5 = vrot.slane %v16781_v41, 4  ;;  %v20662_v0 = vld [vmem:[#allocation218_spill] sm:$0xff]  ;;  %s19565_s17 = smov 78  }
 0xed0   : > { %20646 = vst [vmem:[#allocation334_spill] sm:$0xff] %v16765_v14  ;;  %v6501_v35 = vrot.slane %v20656_v12, 4  ;;  %v5912_v12 = vsel %vm4013_vm9, %v16597_v60, %v5911_v10  ;;  %v6490_v14 = vsel %vm4013_vm9, %v6489_v36, %v20661_v34  ;;  %v20666_v60 = vld [vmem:[#allocation149_spill] sm:$0xff]  ;;  %v5914_v36 = vsel %vm4013_vm9, %v5913_v47, %v5876_v17  ;;  %v20669_v34 = vld [vmem:[#allocation186_spill] sm:$0xff] }
 0xed1   : > { %v16788_v28 = vpop.permute.xlu0 %7991  ;;  %v16790_v42 = vpop.permute.xlu1 %8007  ;;  %v16828_v10 = vsel %vm3755_vm8, %v20666_v60, %v20665_v26  ;;  %v6265_v26 = vrot.slane %v16800_v11, 4  ;;  %v20670_v60 = vld [vmem:[#allocation34_spill] sm:$0xff]  ;;  %v16848_v17 = vperm.slane %v6490_v14, %v12943_v4 }
 0xed2   : > { %20654 = vst [vmem:[#allocation353_spill] sm:$0xff] %v16788_v28  ;;  %v6502_v50 = vsel %vm4013_vm9, %v6501_v35, %v20662_v0  ;;  %v16836_v35 = vsel %vm3755_vm8, %v20668_v3, %v20667_v6  ;;  %v6212_v0 = vperm.slane %v6204_v51, %v13098_v43  ;;  %v20671_v28 = vld [vmem:[#allocation61_spill] sm:$0xff]  ;;  %v20673_v51 = vld [vmem:[#allocation348_spill] sm:$0xff]  ;;  %v6365_v3 = vrot.slane %v16828_v10, 4 }
 0xed3   : > { %20655 = vst [vmem:[#allocation333_spill] sm:$0xff] %v16790_v42  ;;  %v20663_v42 = vld [vmem:[#allocation381_spill] sm:$0xff]  ;;  %v16845_v13 = vsel %vm3755_vm8, %v20671_v28, %v20670_v60  ;;  %v6277_v28 = vrot.slane %v16805_v49, 4 }
 0xed4   : > { %v16823_v54 = vsel %vm3755_vm8, %v20664_v32, %v20663_v42  ;;  %v6477_v42 = vrot.slane %v20669_v34, 4  ;;  %v6236_v32 = vperm.slane %v6228_v39, %v13098_v43  ;;  %v20674_v39 = vld [vmem:[#allocation57_spill] sm:$0xff]  ;;  %v6091_v34 = vrot.slane %v16675_v20, 4 }
 0xed5   : > { %8209 = vrot.lane.b32.xlu2 %v5916_v29, %s19565_s17  ;;  %v16851_v29 = vperm.slane %v6502_v50, %v12943_v4  ;;  %v16860_v6 = vsel %vm3755_vm8, %v20674_v39, %v20673_v51  ;;  %v6378_v14 = vsel %vm4013_vm9, %v6377_v46, %v16823_v54  ;;  %v6402_v50 = vsel %vm4013_vm9, %v6401_v5, %v16836_v35 }
 0xed6   : > { %v6389_v39 = vrot.slane %v16845_v13, 4  ;;  %v6251_v9 = vrot.slane %v6212_v0, 4  ;;  %v6249_v5 = vrot.slane %v6236_v32, 4  ;;  %v16880_v62 = vperm.slane %v6378_v14, %v12943_v4 }
 0xed7   : > { %v16853_v47 = vpop.permute.xlu2 %8071  ;;  %8177 = vrot.lane.b32.xlu0 %v5912_v12, %s19563_s26  ;;  %8193 = vrot.lane.b32.xlu1 %v5914_v36, %s19564_s13  ;;  %v6115_v12 = vrot.slane %v16688_v15, 4  ;;  %v6550_v51 = vsel %vm4013_vm9, %v6549_v37, %v16851_v29  ;;  %v16883_v20 = vperm.slane %v6402_v50, %v12943_v4  ;;  %v6525_v15 = vrot.slane %v16848_v17, 4  ;;  %v20679_v37 = vld [vmem:[#allocation140_spill] sm:$0xff] }
 0xed8   : > { %20672 = vst [vmem:[#allocation235_spill] sm:$0xff] %v16853_v47  ;;  %v20677_v47 = vld [vmem:[#allocation211_spill] sm:$0xff]  ;;  %v16891_v8 = vsel %vm3755_vm8, %v20679_v37, %v20678_v33  ;;  %v16896_v14 = vperm.slane %v6550_v51, %v13098_v43  ;;  %v6278_v50 = vsel %vm4013_vm9, %v6277_v28, %v16860_v6  ;;  %v6092_v33 = vsel %vm4013_vm9, %v16661_v52, %v6091_v34 }
 0xed9   : > { %v16870_v36 = vpop.permute.xlu0 %8005  ;;  %v16872_v60 = vpop.permute.xlu1 %8021  ;;  %v6478_v46 = vsel %vm4013_vm9, %v6477_v42, %v20677_v47  ;;  %v6116_v40 = vsel %vm4013_vm9, %v16646_v53, %v6115_v12  ;;  %v6252_v42 = vsel %vm4013_vm9, %v6236_v32, %v6251_v9  ;;  %v6247_v47 = vrot.slane %v16695_v44, 4  ;;  %v20680_v12 = vld [vmem:[#allocation343_spill] sm:$0xff] }
 0xeda   : > { %20675 = vst [vmem:[#allocation408_spill] sm:$0xff] %v16870_v36  ;;  %v6366_v63 = vsel %vm4013_vm9, %v6365_v3, %v16891_v8  ;;  %v16903_v53 = vperm.slane %v6478_v46, %v12943_v4  ;;  %v6390_v44 = vsel %vm4013_vm9, %v6389_v39, %v16758_v56  ;;  %v6250_v32 = vsel %vm4013_vm9, %v6249_v5, %v6212_v0  ;;  %v20681_v3 = vld [vmem:[#allocation106_spill] sm:$0xff]  ;;  %v20695_v36 = vld [vmem:[#allocation281_spill] sm:$0xff] }
 0xedb   : > { %20676 = vst [vmem:[#allocation212_spill] sm:$0xff] %v16872_v60  ;;  %v6248_v9 = vsel %vm4013_vm9, %v16658_v7, %v6247_v47  ;;  %v6124_v28 = vperm.slane %v6116_v40, %v13098_v43  ;;  %v16917_v51 = vsel %vm3755_vm8, %v20681_v3, %v20680_v12  ;;  %v6413_v46 = vrot.slane %v16880_v62, 4  ;;  %v20683_v0 = vld [vmem:[#allocation326_spill] sm:$0xff]  ;;  %v20686_v12 = vld [vmem:[#allocation300_spill] sm:$0xff] }
 0xedc   : > { %v6437_v37 = vrot.slane %v16883_v20, 4  ;;  %v6526_v7 = vsel %vm4013_vm9, %v6525_v15, %v16903_v53  ;;  %v20684_v40 = vld [vmem:[#allocation62_spill] sm:$0xff]  ;;  %v6284_v39 = vperm.slane %v6278_v50, %v12943_v4  ;;  %v6573_v5 = vrot.slane %v16896_v14, 4 }
 0xedd   : > { %8215 = vrot.lane.b32.xlu2 %v6252_v42, %s19565_s17  ;;  %v16930_v34 = vsel %vm3755_vm8, %v20684_v40, %v20683_v0  ;;  %v6100_v42 = vperm.slane %v6092_v33, %v13098_v43  ;;  %v16936_v47 = vperm.slane %v6366_v63, %v12943_v4  ;;  %v20687_v3 = vld [vmem:[#allocation138_spill] sm:$0xff]  ;;  %v20691_v33 = vrot.slane %v16746_v30, 4 }
 0xede   : > { %v20688_v0 = vld [vmem:[#allocation310_spill] sm:$0xff]  ;;  %v6266_v63 = vsel %vm4013_vm9, %v6265_v26, %v16930_v34  ;;  %v6327_v61 = vrot.slane %v6284_v39, 4 }
 0xedf   : > { %v16921_v52 = vpop.permute.xlu2 %8085  ;;  %8183 = vrot.lane.b32.xlu0 %v6248_v9, %s19563_s26  ;;  %8199 = vrot.lane.b32.xlu1 %v6250_v32, %s19564_s13  ;;  %v16939_v9 = vperm.slane %v6390_v44, %v12943_v4  ;;  %v20685_v32 = vld [vmem:[#allocation276_spill] sm:$0xff]  ;;  %v16949_v40 = vsel %vm3755_vm8, %v20688_v0, %v20687_v3  ;;  %v6290_v44 = vsel %vm4013_vm9, %v20691_v33, %v16917_v51  ;;  %v6139_v58 = vrot.slane %v6100_v42, 4  ;;  %v20693_v60 = vld [vmem:[#allocation266_spill] sm:$0xff]  ;;  %s19566_s26 = smov 80  }
 0xee0   : > { %20682 = vst [vmem:[#allocation301_spill] sm:$0xff] %v16921_v52  ;;  %v16944_v15 = vsel %vm3755_vm8, %v20686_v12, %v20685_v32  ;;  %v16962_v32 = vperm.slane %v6526_v7, %v13098_v43  ;;  %v6137_v12 = vrot.slane %v6124_v28, 4  ;;  %v6260_v3 = vperm.slane %v16795_v22, %v12943_v4  ;;  %v20692_v22 = vld [vmem:[#allocation427_spill] sm:$0xff] }
 0xee1   : > { %v16951_v50 = vpop.permute.xlu0 %8019  ;;  %v16953_v52 = vpop.permute.xlu1 %8035  ;;  %v6414_v0 = vsel %vm4013_vm9, %v6413_v46, %v16936_v47  ;;  %v6613_v26 = vrot.slane %v16944_v15, 4  ;;  %v6272_v7 = vperm.slane %v6266_v63, %v12943_v4  ;;  %v6296_v25 = vperm.slane %v6290_v44, %v12943_v4  ;;  %v20694_v63 = vld [vmem:[#allocation88_spill] sm:$0xff] }
 0xee2   : > { %20689 = vst [vmem:[#allocation157_spill] sm:$0xff] %v16951_v50  ;;  %v6625_v50 = vrot.slane %v16949_v40, 4  ;;  %v6574_v33 = vsel %vm4013_vm9, %v6573_v5, %v16962_v32  ;;  %v16979_v46 = vsel %vm3755_vm8, %v20693_v60, %v20692_v22  ;;  %v6140_v38 = vsel %vm4013_vm9, %v6124_v28, %v6139_v58  ;;  %v20698_v22 = vld [vmem:[#allocation325_spill] sm:$0xff] }
 0xee3   : > { %20690 = vst [vmem:[#allocation305_spill] sm:$0xff] %v16953_v52  ;;  %v6438_v52 = vsel %vm4013_vm9, %v6437_v37, %v16939_v9  ;;  %v6138_v37 = vsel %vm4013_vm9, %v6137_v12, %v6100_v42  ;;  %v6420_v5 = vperm.slane %v6414_v0, %v13098_v43  ;;  %v16989_v44 = vsel %vm3755_vm8, %v20695_v36, %v20694_v63  ;;  %v20701_v12 = vld [vmem:[#allocation265_spill] sm:$0xff]  ;;  %v20702_v0 = vld [vmem:[#allocation258_spill] sm:$0xff] }
 0xee4   : > { %v6444_v21 = vperm.slane %v6438_v52, %v13098_v43  ;;  %v16994_v60 = vsel %vm3755_vm8, %v20697_v16, %v20696_v2  ;;  %v6589_v28 = vrot.slane %v16979_v46, 4  ;;  %v6301_v16 = vrot.slane %v6272_v7, 4 }
 0xee5   : > { %8229 = vrot.lane.b32.xlu2 %v6574_v33, %s19566_s26  ;;  %v20699_v33 = vld [vmem:[#allocation67_spill] sm:$0xff]  ;;  %v6614_v36 = vsel %vm4013_vm9, %v6613_v26, %v16994_v60  ;;  %v6325_v52 = vrot.slane %v6296_v25, 4  ;;  %v17013_v63 = vsel %vm3755_vm8, %v20702_v0, %v20701_v12  ;;  %v6463_v26 = vrot.slane %v6420_v5, 4 }
 0xee6   : > { %v16999_v42 = vsel %vm3755_vm8, %v20699_v33, %v20698_v22  ;;  %v6601_v33 = vrot.slane %v16989_v44, 4  ;;  %v6461_v55 = vrot.slane %v6444_v21, 4  ;;  %v6620_v48 = vperm.slane %v6614_v36, %v12943_v4 }
 0xee7   : > { %v17001_v58 = vpop.permute.xlu2 %8099  ;;  %8197 = vrot.lane.b32.xlu0 %v6138_v37, %s19564_s13  ;;  %8213 = vrot.lane.b32.xlu1 %v6140_v38, %s19565_s17  ;;  %v6626_v2 = vsel %vm4013_vm9, %v6625_v50, %v16999_v42  ;;  %v6328_v38 = vsel %vm4013_vm9, %v6296_v25, %v6327_v61  ;;  %v20706_v50 = vld [vmem:[#allocation64_spill] sm:$0xff]  ;;  %v6326_v0 = vsel %vm4013_vm9, %v6325_v52, %v6284_v39  ;;  %s19567_s13 = smov 82  }
 0xee8   : > { %20700 = vst [vmem:[#allocation189_spill] sm:$0xff] %v17001_v58  ;;  %v6303_v58 = vrot.slane %v6260_v3, 4  ;;  %v17024_v19 = vsel %vm3755_vm8, %v20706_v50, %v20705_v18  ;;  %v6632_v12 = vperm.slane %v6626_v2, %v12943_v4  ;;  %v6464_v61 = vsel %vm4013_vm9, %v6444_v21, %v6463_v26 }
 0xee9   : > { %v17015_v22 = vpop.permute.xlu0 %8033  ;;  %v17017_v37 = vpop.permute.xlu1 %8049  ;;  %v6590_v25 = vsel %vm4013_vm9, %v6589_v28, %v17024_v19  ;;  %v6302_v18 = vsel %vm4013_vm9, %v6301_v16, %v6260_v3  ;;  %v6462_v36 = vsel %vm4013_vm9, %v6461_v55, %v6420_v5  ;;  %v6332_v2 = vperm.slane %v6326_v0, %v13098_v43 }
 0xeea   : > { %20703 = vst [vmem:[#allocation405_spill] sm:$0xff] %v17015_v22  ;;  %v17035_v22 = vperm.slane %v6328_v38, %v13098_v43  ;;  %v6304_v39 = vsel %vm4013_vm9, %v6272_v7, %v6303_v58  ;;  %v6596_v28 = vperm.slane %v6590_v25, %v12943_v4  ;;  %v6661_v21 = vrot.slane %v6632_v12, 4  ;;  %v20708_v38 = vld [vmem:[#allocation179_spill] sm:$0xff] }
 0xeeb   : > { %20704 = vst [vmem:[#allocation404_spill] sm:$0xff] %v17017_v37  ;;  %v6602_v37 = vsel %vm4013_vm9, %v6601_v33, %v17013_v63  ;;  %v6663_v33 = vrot.slane %v6620_v48, 4  ;;  %v6308_v55 = vperm.slane %v6302_v18, %v13098_v43  ;;  %v17057_v16 = vperm.slane %v6304_v39, %v13098_v43 }
 0xeec   : > { %v6608_v52 = vperm.slane %v6602_v37, %v12943_v4  ;;  %v6353_v3 = vrot.slane %v17035_v22, 4  ;;  %v6349_v37 = vrot.slane %v6332_v2, 4  ;;  %v6639_v0 = vrot.slane %v6596_v28, 4 }
 0xeed   : > { %8243 = vrot.lane.b32.xlu2 %v6464_v61, %s19567_s13  ;;  %v6664_v58 = vsel %vm4013_vm9, %v6632_v12, %v6663_v33  ;;  %v6662_v25 = vsel %vm4013_vm9, %v6661_v21, %v6620_v48  ;;  %v6403_v61 = vrot.slane %v16836_v35, 4  ;;  %v6351_v18 = vrot.slane %v6308_v55, 4 }
 0xeee   : > { %v6637_v50 = vrot.slane %v6608_v52, 4  ;;  %v6350_v33 = vsel %vm4013_vm9, %v6349_v37, %v6308_v55  ;;  %v6668_v35 = vperm.slane %v6662_v25, %v13098_v43  ;;  %v6551_v37 = vrot.slane %v16851_v29, 4 }
 0xeef   : > { %v17044_v26 = vpop.permute.xlu2 %8113  ;;  %8211 = vrot.lane.b32.xlu0 %v20708_v38, %s19565_s17  ;;  %8227 = vrot.lane.b32.xlu1 %v6462_v36, %s19566_s26  ;;  %v6354_v36 = vsel %vm4013_vm9, %v6353_v3, %v17057_v16  ;;  %v17064_v38 = vperm.slane %v6664_v58, %v13098_v43  ;;  %s19568_s17 = smov 84   ;;  %v6404_v39 = vsel %vm4013_vm9, %v16781_v41, %v6403_v61  ;;  %v6267_v41 = vrot.slane %v16930_v34, 4 }
 0xef0   : > { %20707 = vst [vmem:[#allocation401_spill] sm:$0xff] %v17044_v26  ;;  %v6638_v12 = vsel %vm4013_vm9, %v6637_v50, %v6596_v28  ;;  %v6352_v48 = vsel %vm4013_vm9, %v6332_v2, %v6351_v18  ;;  %v6640_v3 = vsel %vm4013_vm9, %v6608_v52, %v6639_v0  ;;  %v17082_v55 = vperm.slane %v6404_v39, %v12943_v4  ;;  %v20757_v26 = vld [vmem:[#allocation362_spill] sm:$0xff] }
 0xef1   : > { %v17051_v7 = vpop.permute.xlu0 %8039  ;;  %v17053_v5 = vpop.permute.xlu1 %8055  ;;  %v6689_v58 = vrot.slane %v17064_v38, 4  ;;  %v6644_v28 = vperm.slane %v6638_v12, %v13098_v43  ;;  %v6527_v2 = vrot.slane %v16903_v53, 4  ;;  %v6391_v61 = vrot.slane %v16758_v56, 4 }
 0xef2   : > { %20709 = vst [vmem:[#allocation207_spill] sm:$0xff] %v17051_v7  ;;  %v6379_v52 = vrot.slane %v16823_v54, 4  ;;  %v17093_v0 = vperm.slane %v6640_v3, %v13098_v43  ;;  %v6268_v34 = vsel %vm4013_vm9, %v16800_v11, %v6267_v41  ;;  %v6552_v29 = vsel %vm4013_vm9, %v16784_v24, %v6551_v37  ;;  %v20787_v7 = vld [vmem:[#allocation82_spill] sm:$0xff] }
 0xef3   : > { %20710 = vst [vmem:[#allocation256_spill] sm:$0xff] %v17053_v5  ;;  %v6528_v53 = vsel %vm4013_vm9, %v16848_v17, %v6527_v2  ;;  %v6392_v56 = vsel %vm4013_vm9, %v16845_v13, %v6391_v61  ;;  %v6687_v12 = vrot.slane %v6644_v28, 4  ;;  %v6291_v39 = vrot.slane %v16917_v51, 4  ;;  %v20783_v5 = vld [vmem:[#allocation243_spill] sm:$0xff] }
 0xef4   : > { %v6380_v18 = vsel %vm4013_vm9, %v16774_v1, %v6379_v52  ;;  %v6690_v54 = vsel %vm4013_vm9, %v6689_v58, %v17093_v0  ;;  %v6449_v11 = vrot.slane %v17082_v55, 4  ;;  %v6560_v1 = vperm.slane %v6552_v29, %v13098_v43 }
 0xef5   : > { %8257 = vrot.lane.b32.xlu2 %v6354_v36, %s19568_s17  ;;  %v6685_v36 = vrot.slane %v6668_v35, 4  ;;  %v6688_v24 = vsel %vm4013_vm9, %v6668_v35, %v6687_v12  ;;  %v6255_v13 = vrot.slane %v16763_v45, 4  ;;  %v17119_v3 = vperm.slane %v6380_v18, %v12943_v4 }
 0xef6   : > { %v17122_v51 = vperm.slane %v6392_v56, %v12943_v4  ;;  %v6367_v35 = vrot.slane %v16891_v8, 4  ;;  %v6279_v45 = vrot.slane %v16860_v6, 4  ;;  %v6292_v41 = vsel %vm4013_vm9, %v16746_v30, %v6291_v39 }
 0xef7   : > { %8225 = vrot.lane.b32.xlu0 %v6350_v33, %s19566_s26  ;;  %v17074_v21 = vpop.permute.xlu2 %8119  ;;  %8241 = vrot.lane.b32.xlu1 %v6352_v48, %s19567_s13  ;;  %v6686_v17 = vsel %vm4013_vm9, %v6685_v36, %v6644_v28  ;;  %v6536_v33 = vperm.slane %v6528_v53, %v13098_v43  ;;  %v17116_v48 = vperm.slane %v6268_v34, %v12943_v4  ;;  %v6439_v28 = vrot.slane %v16939_v9, 4 }
 0xef8   : > { %20711 = vst [vmem:[#allocation193_spill] sm:$0xff] %v17074_v21  ;;  %v6450_v61 = vsel %vm4013_vm9, %v6449_v11, %v17122_v51  ;;  %v6368_v52 = vsel %vm4013_vm9, %v16828_v10, %v6367_v35  ;;  %v6577_v34 = vrot.slane %v6560_v1, 4  ;;  %v6256_v6 = vsel %vm4013_vm9, %v16740_v57, %v6255_v13 }
 0xef9   : > { %v17086_v50 = vpop.permute.xlu0 %8053  ;;  %v17088_v25 = vpop.permute.xlu1 %8069  ;;  %v6579_v36 = vrot.slane %v6536_v33, 4  ;;  %v6440_v8 = vsel %vm4013_vm9, %v16883_v20, %v6439_v28  ;;  %v6313_v30 = vrot.slane %v17116_v48, 4  ;;  %v6415_v9 = vrot.slane %v16936_v47, 4 }
 0xefa   : > { %20712 = vst [vmem:[#allocation308_spill] sm:$0xff] %v17086_v50  ;;  %v6425_v53 = vrot.slane %v17119_v3, 4  ;;  %v6280_v29 = vsel %vm4013_vm9, %v16805_v49, %v6279_v45  ;;  %v6575_v10 = vrot.slane %v16962_v32, 4  ;;  %v17153_v56 = vperm.slane %v6450_v61, %v13098_v43  ;;  %v20720_v61 = vld [vmem:[#allocation100_spill] sm:$0xff] }
 0xefb   : > { %20713 = vst [vmem:[#allocation230_spill] sm:$0xff] %v17088_v25  ;;  %v6580_v18 = vsel %vm4013_vm9, %v6560_v1, %v6579_v36  ;;  %v17156_v20 = vperm.slane %v6292_v41, %v12943_v4  ;;  %v17159_v57 = vperm.slane %v6368_v52, %v12943_v4  ;;  %v6416_v47 = vsel %vm4013_vm9, %v16880_v62, %v6415_v9  ;;  %v20721_v52 = vld [vmem:[#allocation93_spill] sm:$0xff]  ;;  %v20722_v9 = vld [vmem:[#allocation328_spill] sm:$0xff] }
 0xefc   : > { %v6448_v49 = vperm.slane %v6440_v8, %v13098_v43  ;;  %v6627_v32 = vrot.slane %v16999_v42, 4  ;;  %v6576_v12 = vsel %vm4013_vm9, %v16896_v14, %v6575_v10  ;;  %v6578_v39 = vsel %vm4013_vm9, %v6577_v34, %v6536_v33  ;;  %v20725_v10 = vld [vmem:[#allocation78_spill] sm:$0xff] }
 0xefd   : > { %8263 = vrot.lane.b32.xlu2 %v6690_v54, %s19568_s17  ;;  %v6603_v54 = vrot.slane %v17013_v63, 4  ;;  %v17171_v11 = vperm.slane %v6256_v6, %v12943_v4  ;;  %v6426_v42 = vsel %vm4013_vm9, %v6425_v53, %v17159_v57  ;;  %v6469_v63 = vrot.slane %v17153_v56, 4  ;;  %v20723_v53 = vld [vmem:[#allocation65_spill] sm:$0xff] }
 0xefe   : > { %v6628_v14 = vsel %vm4013_vm9, %v16949_v40, %v6627_v32  ;;  %v6337_v33 = vrot.slane %v17156_v20, 4  ;;  %v6591_v28 = vrot.slane %v17024_v19, 4  ;;  %v17197_v40 = vperm.slane %v6426_v42, %v13098_v43 }
 0xeff   : > { %8231 = vrot.lane.b32.xlu0 %v6686_v17, %s19566_s26  ;;  %v17125_v58 = vpop.permute.xlu2 %8133  ;;  %8247 = vrot.lane.b32.xlu1 %v6688_v24, %s19567_s13  ;;  %s19570_s26 = smov 86   ;;  %v17174_v17 = vperm.slane %v6280_v29, %v12943_v4  ;;  %v6424_v24 = vperm.slane %v6416_v47, %v13098_v43  ;;  %v6314_v35 = vsel %vm4013_vm9, %v6313_v30, %v17171_v11  ;;  %v6465_v41 = vrot.slane %v6448_v49, 4 }
 0xf00   : > { %20714 = vst [vmem:[#allocation413_spill] sm:$0xff] %v17125_v58  ;;  %v6604_v45 = vsel %vm4013_vm9, %v16989_v44, %v6603_v54  ;;  %v3787_v36 = vsel %vm3755_vm8, %v20721_v52, %v20720_v61  ;;  %v17203_v34 = vperm.slane %v6628_v14, %v12943_v4  ;;  %v6592_v19 = vsel %vm4013_vm9, %v16979_v46, %v6591_v28  ;;  %v20730_v61 = vld [vmem:[#allocation208_spill] sm:$0xff]  ;;  %v20806_v58 = vld [vmem:[#allocation278_spill] sm:$0xff] }
 0xf01   : > { %v17133_v2 = vpop.permute.xlu0 %8067  ;;  %v17135_v37 = vpop.permute.xlu1 %8083  ;;  %v6338_v8 = vsel %vm4013_vm9, %v6337_v33, %v17174_v17  ;;  %v6615_v6 = vrot.slane %v16994_v60, 4  ;;  %v6470_v44 = vsel %vm4013_vm9, %v6469_v63, %v17197_v40  ;;  %v6467_v30 = vrot.slane %v6424_v24, 4 }
 0xf02   : > { %20715 = vst [vmem:[#allocation289_spill] sm:$0xff] %v17133_v2  ;;  %v3771_v29 = vsel %vm3755_vm8, %v20723_v53, %v20722_v9  ;;  %v17219_v54 = vperm.slane %v6604_v45, %v12943_v4  ;;  %v6320_v46 = vperm.slane %v6314_v35, %v13098_v43  ;;  %v6466_v32 = vsel %vm4013_vm9, %v6465_v41, %v6424_v24  ;;  %v20729_v41 = vld [vmem:[#allocation105_spill] sm:$0xff]  ;;  %v20734_v9 = vld [vmem:[#allocation263_spill] sm:$0xff] }
 0xf03   : > { %20716 = vst [vmem:[#allocation182_spill] sm:$0xff] %v17135_v37  ;;  %v6616_v60 = vsel %vm4013_vm9, %v16944_v15, %v6615_v6  ;;  %v17229_v42 = vperm.slane %v6592_v19, %v12943_v4  ;;  %v6673_v14 = vrot.slane %v17203_v34, 4  ;;  %v7161_v33 = vrot.slane %v3787_v36, 4  ;;  %v20733_v19 = vld [vmem:[#allocation153_spill] sm:$0xff]  ;;  %v20812_v2 = vld [vmem:[#allocation191_spill] sm:$0xff] }
 0xf04   : > { %v7163_v35 = vrot.slane %v3771_v29, 4  ;;  %v6649_v24 = vrot.slane %v17219_v54, 4  ;;  %v17247_v52 = vsel %vm3755_vm8, %v20730_v61, %v20729_v41  ;;  %v20735_v53 = vld [vmem:[#allocation185_spill] sm:$0xff]  ;;  %v20737_v41 = vld [vmem:[#allocation318_spill] sm:$0xff]  ;;  %v20738_v61 = vld [vmem:[#allocation40_spill] sm:$0xff] }
 0xf05   : > { %8277 = vrot.lane.b32.xlu2 %v6580_v18, %s19570_s26  ;;  %v20724_v18 = vld [vmem:[#allocation332_spill] sm:$0xff]  ;;  %20731 = vst [vmem:[#allocation71_spill] sm:$0xff] %v17247_v52 }
 0xf06   : > { %v3779_v47 = vsel %vm3755_vm8, %v20725_v10, %v20724_v18  ;;  %v17257_v18 = vsel %vm3755_vm8, %v20735_v53, %v20734_v9  ;;  %v20736_v10 = vld [vmem:[#allocation339_spill] sm:$0xff]  ;;  %v20741_v53 = vld [vmem:[#allocation224_spill] sm:$0xff] }
 0xf07   : > { %8245 = vrot.lane.b32.xlu0 %v6576_v12, %s19567_s13  ;;  %v17177_v62 = vpop.permute.xlu2 %8147  ;;  %8261 = vrot.lane.b32.xlu1 %v6578_v39, %s19568_s17  ;;  %s19572_s13 = smov 88   ;;  %v6468_v12 = vsel %vm4013_vm9, %v6448_v49, %v6467_v30  ;;  %v6344_v39 = vperm.slane %v6338_v8, %v13098_v43  ;;  %v7149_v15 = vrot.slane %v3779_v47, 4  ;;  %v17238_v49 = vperm.slane %v6616_v60, %v12943_v4  ;;  %v20732_v8 = vld [vmem:[#allocation259_spill] sm:$0xff] }
 0xf08   : > { %20717 = vst [vmem:[#allocation311_spill] sm:$0xff] %v17177_v62  ;;  %v17252_v6 = vsel %vm3755_vm8, %v20733_v19, %v20732_v8  ;;  %v6701_v60 = vrot.slane %v20736_v10, 4  ;;  %v3763_v8 = vsel %vm3755_vm8, %v20738_v61, %v20737_v41  ;;  %v20739_v19 = vld [vmem:[#allocation341_spill] sm:$0xff]  ;;  %v20740_v9 = vld [vmem:[#allocation267_spill] sm:$0xff] }
 0xf09   : > { %v17187_v1 = vpop.permute.xlu0 %8081  ;;  %v17189_v13 = vpop.permute.xlu1 %8097  ;;  %v6357_v30 = vrot.slane %v6344_v39, 4  ;;  %v6713_v21 = vrot.slane %v20739_v19, 4  ;;  %v17273_v10 = vsel %vm3755_vm8, %v20741_v53, %v20740_v9  ;;  %v20749_v53 = vld [vmem:[#allocation364_spill] sm:$0xff] }
 0xf0a   : > { %20718 = vst [vmem:[#allocation271_spill] sm:$0xff] %v17187_v1 }
 0xf0b   : > { %20719 = vst [vmem:[#allocation394_spill] sm:$0xff] %v17189_v13 }
 0xf0d   : > { %8291 = vrot.lane.b32.xlu2 %v6470_v44, %s19572_s13  ;;  %v6359_v44 = vrot.slane %v6320_v46, 4 }
 0xf0f   : > { %8259 = vrot.lane.b32.xlu0 %v6466_v32, %s19568_s17  ;;  %v17233_v63 = vpop.permute.xlu2 %8161  ;;  %8275 = vrot.lane.b32.xlu1 %v6468_v12, %s19570_s26  ;;  %v6650_v32 = vsel %vm4013_vm9, %v6649_v24, %v17229_v42  ;;  %v6674_v12 = vsel %vm4013_vm9, %v6673_v14, %v17238_v49  ;;  %v7162_v24 = vsel %vm4013_vm9, %v7161_v33, %v3771_v29  ;;  %s19573_s17 = smov 90   ;;  %v20742_v33 = vld [vmem:[#allocation337_spill] sm:$0xff] }
 0xf10   : > { %20726 = vst [vmem:[#allocation195_spill] sm:$0xff] %v17233_v63  ;;  %v6360_v63 = vsel %vm4013_vm9, %v6344_v39, %v6359_v44  ;;  %v7150_v14 = vsel %vm4013_vm9, %v7149_v15, %v3763_v8  ;;  %v6358_v39 = vsel %vm4013_vm9, %v6357_v30, %v6320_v46  ;;  %v6680_v44 = vperm.slane %v6674_v12, %v13098_v43  ;;  %v20744_v46 = vld [vmem:[#allocation108_spill] sm:$0xff]  ;;  %v20745_v15 = vld [vmem:[#allocation250_spill] sm:$0xff] }
 0xf11   : > { %v17240_v28 = vpop.permute.xlu0 %8087  ;;  %v17242_v45 = vpop.permute.xlu1 %8103  ;;  %v7151_v30 = vrot.slane %v3763_v8, 4  ;;  %v7168_v19 = vperm.slane %v7162_v24, %v12943_v4  ;;  %v7156_v9 = vperm.slane %v7150_v14, %v12943_v4  ;;  %v20752_v24 = vld [vmem:[#allocation109_spill] sm:$0xff] }
 0xf12   : > { %20727 = vst [vmem:[#allocation397_spill] sm:$0xff] %v17240_v28  ;;  %v7164_v28 = vsel %vm4013_vm9, %v3787_v36, %v7163_v35  ;;  %v6702_v35 = vsel %vm4013_vm9, %v6701_v60, %v20742_v33  ;;  %v6693_v61 = vrot.slane %v6680_v44, 4  ;;  %v6315_v36 = vrot.slane %v17171_v11, 4 }
 0xf13   : > { %20728 = vst [vmem:[#allocation286_spill] sm:$0xff] %v17242_v45  ;;  %v6355_v45 = vrot.slane %v17057_v16, 4  ;;  %v6656_v16 = vperm.slane %v6650_v32, %v13098_v43  ;;  %v20747_v32 = vld [vmem:[#allocation340_spill] sm:$0xff]  ;;  %v17303_v60 = vperm.slane %v7164_v28, %v12943_v4  ;;  %v6708_v8 = vperm.slane %v6702_v35, %v12943_v4 }
 0xf14   : > { %v6714_v12 = vsel %vm4013_vm9, %v6713_v21, %v20747_v32  ;;  %v20753_v32 = vld [vmem:[#allocation292_spill] sm:$0xff]  ;;  %v6691_v35 = vrot.slane %v17093_v0, 4  ;;  %v20758_v0 = vld [vmem:[#allocation358_spill] sm:$0xff] }
 0xf15   : > { %8305 = vrot.lane.b32.xlu2 %v6360_v63, %s19573_s17  ;;  %v6356_v41 = vsel %vm4013_vm9, %v17035_v22, %v6355_v45  ;;  %v17297_v45 = vsel %vm3755_vm8, %v20745_v15, %v20744_v46  ;;  %20748 = vst [vmem:[#allocation147_spill] sm:$0xff] %v17303_v60  ;;  %v7152_v46 = vsel %vm4013_vm9, %v3779_v47, %v7151_v30  ;;  %v6695_v15 = vrot.slane %v6656_v16, 4  ;;  %v20755_v22 = vld [vmem:[#allocation321_spill] sm:$0xff] }
 0xf16   : > { %20746 = vst [vmem:[#allocation382_spill] sm:$0xff] %v17297_v45  ;;  %v17317_v28 = vsel %vm3755_vm8, %v20753_v32, %v20752_v24  ;;  %v6720_v14 = vperm.slane %v6714_v12, %v12943_v4  ;;  %v7197_v30 = vrot.slane %v7168_v19, 4  ;;  %v17326_v21 = vperm.slane %v7152_v46, %v12943_v4 }
 0xf17   : > { %8273 = vrot.lane.b32.xlu0 %v6356_v41, %s19570_s26  ;;  %v17290_v63 = vpop.permute.xlu2 %8167  ;;  %8289 = vrot.lane.b32.xlu1 %v6358_v39, %s19572_s13  ;;  %v6737_v41 = vrot.slane %v20749_v53, 4  ;;  %20754 = vst [vmem:[#allocation393_spill] sm:$0xff] %v17317_v28  ;;  %v6339_v53 = vrot.slane %v17174_v17, 4  ;;  %v6696_v47 = vsel %vm4013_vm9, %v6680_v44, %v6695_v15  ;;  %v7209_v17 = vrot.slane %v17303_v60, 4  ;;  %v20767_v60 = vld [vmem:[#allocation101_spill] sm:$0xff] }
 0xf18   : > { %20743 = vst [vmem:[#allocation237_spill] sm:$0xff] %v17290_v63  ;;  %v7199_v63 = vrot.slane %v7156_v9, 4  ;;  %v6751_v12 = vrot.slane %v6708_v8, 4  ;;  %v6692_v11 = vsel %vm4013_vm9, %v17064_v38, %v6691_v35  ;;  %v6694_v44 = vsel %vm4013_vm9, %v6693_v61, %v6656_v16 }
 0xf19   : > { %v17307_v39 = vpop.permute.xlu0 %8101  ;;  %v17309_v33 = vpop.permute.xlu1 %8117  ;;  %20756 = vst [vmem:[#allocation178_spill] sm:$0xff] %v17326_v21  ;;  %v6738_v24 = vsel %vm4013_vm9, %v6737_v41, %v20757_v26  ;;  %v6749_v15 = vrot.slane %v6720_v14, 4  ;;  %v6725_v32 = vrot.slane %v20758_v0, 4  ;;  %v6427_v46 = vrot.slane %v17159_v57, 4  ;;  %v20760_v41 = vld [vmem:[#allocation371_spill] sm:$0xff] }
 0xf1a   : > { %20750 = vst [vmem:[#allocation112_spill] sm:$0xff] %v17307_v39  ;;  %v6340_v26 = vsel %vm4013_vm9, %v17156_v20, %v6339_v53  ;;  %v17347_v16 = vperm.slane %v6738_v24, %v12943_v4  ;;  %v6451_v61 = vrot.slane %v17122_v51, 4  ;;  %v6316_v57 = vsel %vm4013_vm9, %v17116_v48, %v6315_v36  ;;  %v20764_v0 = vld [vmem:[#allocation327_spill] sm:$0xff] }
 0xf1b   : > { %20751 = vst [vmem:[#allocation172_spill] sm:$0xff] %v17309_v33  ;;  %v6428_v35 = vsel %vm4013_vm9, %v17119_v3, %v6427_v46  ;;  %v7198_v20 = vsel %vm4013_vm9, %v7197_v30, %v7156_v9  ;;  %v17361_v53 = vsel %vm4013_vm9, %v7209_v17, %v17326_v21  ;;  %v7200_v24 = vsel %vm4013_vm9, %v7168_v19, %v7199_v63  ;;  %v20766_v17 = vld [vmem:[#allocation349_spill] sm:$0xff]  ;;  %v20768_v19 = vld [vmem:[#allocation352_spill] sm:$0xff]  ;;  %v20818_v39 = vld [vmem:[#allocation379_spill] sm:$0xff] }
 0xf1c   : > { %v7073_v51 = vrot.slane %v20764_v0, 4  ;;  %v6452_v48 = vsel %vm4013_vm9, %v17082_v55, %v6451_v61  ;;  %v6348_v36 = vperm.slane %v6340_v26, %v13098_v43  ;;  %v6752_v3 = vsel %vm4013_vm9, %v6720_v14, %v6751_v12  ;;  %v20769_v0 = vld [vmem:[#allocation41_spill] sm:$0xff]  ;;  %v20770_v12 = vld [vmem:[#allocation414_spill] sm:$0xff]  ;;  %v20811_v33 = vld [vmem:[#allocation68_spill] sm:$0xff] }
 0xf1d   : > { %8311 = vrot.lane.b32.xlu2 %v6696_v47, %s19573_s17  ;;  %v20761_v47 = vld [vmem:[#allocation121_spill] sm:$0xff]  ;;  %v6750_v9 = vsel %vm4013_vm9, %v6749_v15, %v6708_v8  ;;  %v6324_v30 = vperm.slane %v6316_v57, %v13098_v43  ;;  %v3795_v63 = vsel %vm3755_vm8, %v20767_v60, %v20766_v17  ;;  %v17379_v55 = vsel %vm3755_vm8, %v20769_v0, %v20768_v19  ;;  %v20773_v57 = vld [vmem:[#allocation60_spill] sm:$0xff] }
 0xf1e   : > { %v3811_v38 = vsel %vm3755_vm8, %v20761_v47, %v20760_v41  ;;  %v20765_v41 = vld [vmem:[#allocation357_spill] sm:$0xff]  ;;  %v6773_v26 = vrot.slane %v17347_v16, 4  ;;  %v6436_v14 = vperm.slane %v6428_v35, %v13098_v43  ;;  %v6460_v8 = vperm.slane %v6452_v48, %v13098_v43 }
 0xf1f   : > { %8279 = vrot.lane.b32.xlu0 %v6692_v11, %s19570_s26  ;;  %v17338_v29 = vpop.permute.xlu2 %8181  ;;  %8295 = vrot.lane.b32.xlu1 %v6694_v44, %s19572_s13  ;;  %v7173_v46 = vrot.slane %v3811_v38, 4  ;;  %v6726_v47 = vsel %vm4013_vm9, %v6725_v32, %v20765_v41  ;;  %s19586_s26 = smov 92   ;;  %v17387_v15 = vperm.slane %v6752_v3, %v13098_v43  ;;  %v17390_v60 = vperm.slane %v7198_v20, %v13098_v43  ;;  %v20774_v20 = vld [vmem:[#allocation416_spill] sm:$0xff] }
 0xf20   : > { %20759 = vst [vmem:[#allocation249_spill] sm:$0xff] %v17338_v29  ;;  %v17393_v32 = vperm.slane %v7200_v24, %v13098_v43  ;;  %v17396_v61 = vperm.slane %v6726_v47, %v12943_v4  ;;  %v7074_v35 = vsel %vm4013_vm9, %v7073_v51, %v20773_v57  ;;  %v17401_v41 = vperm.slane %v6750_v9, %v13098_v43  ;;  %v20776_v47 = vld [vmem:[#allocation415_spill] sm:$0xff]  ;;  %v20778_v51 = vld [vmem:[#allocation129_spill] sm:$0xff]  ;;  %v20779_v57 = vld [vmem:[#allocation270_spill] sm:$0xff] }
 0xf21   : > { %v17354_v11 = vpop.permute.xlu0 %8115  ;;  %v17356_v44 = vpop.permute.xlu1 %8131  ;;  %20771 = vst [vmem:[#allocation156_spill] sm:$0xff] %v17390_v60  ;;  %v6361_v17 = vrot.slane %v6348_v36, 4  ;;  %v7175_v48 = vrot.slane %v3795_v63, 4  ;;  %v7187_v3 = vrot.slane %v17379_v55, 4  ;;  %v7174_v19 = vsel %vm4013_vm9, %v7173_v46, %v3795_v63  ;;  %v20780_v46 = vld [vmem:[#allocation402_spill] sm:$0xff] }
 0xf22   : > { %20762 = vst [vmem:[#allocation37_spill] sm:$0xff] %v17354_v11  ;;  %v6363_v0 = vrot.slane %v6324_v30, 4  ;;  %v7049_v21 = vrot.slane %v20779_v57, 4  ;;  %v6475_v62 = vrot.slane %v6436_v14, 4  ;;  %v6774_v29 = vsel %vm4013_vm9, %v6773_v26, %v17396_v61  ;;  %v20781_v63 = vld [vmem:[#allocation210_spill] sm:$0xff] }
 0xf23   : > { %20763 = vst [vmem:[#allocation215_spill] sm:$0xff] %v17356_v44  ;;  %v17428_v13 = vperm.slane %v7074_v35, %v12943_v4  ;;  %v6473_v57 = vrot.slane %v6460_v8, 4  ;;  %v17435_v26 = vsel %vm4013_vm9, %v3811_v38, %v7175_v48  ;;  %v17438_v44 = vperm.slane %v7174_v19, %v12943_v4  ;;  %v20786_v48 = vld [vmem:[#allocation274_spill] sm:$0xff] }
 0xf24   : > { %20772 = vst [vmem:[#allocation163_spill] sm:$0xff] %v17393_v32  ;;  %v6476_v35 = vsel %vm4013_vm9, %v6460_v8, %v6475_v62  ;;  %v7050_v19 = vsel %vm4013_vm9, %v7049_v21, %v20786_v48  ;;  %v20791_v8 = vld [vmem:[#allocation396_spill] sm:$0xff]  ;;  %v20794_v48 = vld [vmem:[#allocation201_spill] sm:$0xff]  ;;  %v20824_v45 = vrot.slane %v17252_v6, 4 }
 0xf25   : > { %8325 = vrot.lane.b32.xlu2 %v20770_v12, %s19586_s26  ;;  %v20777_v12 = vld [vmem:[#allocation374_spill] sm:$0xff]  ;;  %v6474_v21 = vsel %vm4013_vm9, %v6473_v57, %v6436_v14  ;;  %v20799_v14 = vld [vmem:[#allocation247_spill] sm:$0xff] }
 0xf26   : > { %v3819_v9 = vsel %vm3755_vm8, %v20778_v51, %v20777_v12 }
 0xf27   : > { %8293 = vrot.lane.b32.xlu0 %v20774_v20, %s19572_s13  ;;  %v17407_v24 = vpop.permute.xlu2 %8195  ;;  %8309 = vrot.lane.b32.xlu1 %v20776_v47, %s19573_s17  ;;  %v17420_v20 = vsel %vm3755_vm8, %v20781_v63, %v20780_v46  ;;  %v6362_v46 = vsel %vm4013_vm9, %v6361_v17, %v6324_v30  ;;  %v6364_v63 = vsel %vm4013_vm9, %v6348_v36, %v6363_v0  ;;  %v20788_v30 = vrot.slane %v20755_v22, 4  ;;  %v20789_v17 = vld [vmem:[#allocation161_spill] sm:$0xff]  ;;  %s19587_s13 = smov 94   ;;  %v20792_v0 = vld [vmem:[#allocation244_spill] sm:$0xff] }
 0xf28   : > { %20775 = vst [vmem:[#allocation199_spill] sm:$0xff] %v17407_v24  ;;  %v20782_v24 = vld [vmem:[#allocation423_spill] sm:$0xff]  ;;  %v17469_v22 = vsel %vm3755_vm8, %v20792_v0, %v20791_v8  ;;  %v17488_v8 = vperm.slane %v7050_v19, %v12943_v4 }
 0xf29   : > { %v17425_v47 = vsel %vm3755_vm8, %v20783_v5, %v20782_v24  ;;  %v17430_v12 = vpop.permute.xlu0 %8129  ;;  %v17432_v51 = vpop.permute.xlu1 %8145  ;;  %v7188_v5 = vsel %vm4013_vm9, %v3819_v9, %v7187_v3  ;;  %v6471_v24 = vrot.slane %v17197_v40, 4  ;;  %v7062_v36 = vsel %vm4013_vm9, %v20788_v30, %v20787_v7  ;;  %v20790_v3 = vld [vmem:[#allocation174_spill] sm:$0xff]  ;;  %v20793_v7 = vld [vmem:[#allocation399_spill] sm:$0xff] }
 0xf2a   : > { %20784 = vst [vmem:[#allocation283_spill] sm:$0xff] %v17430_v12  ;;  %v17446_v12 = vperm.slane %v6774_v29, %v13098_v43  ;;  %v6961_v38 = vrot.slane %v17425_v47, 4  ;;  %v17459_v62 = vsel %vm3755_vm8, %v20790_v3, %v20789_v17  ;;  %v7109_v40 = vrot.slane %v17428_v13, 4  ;;  %v20795_v17 = vld [vmem:[#allocation411_spill] sm:$0xff]  ;;  %v20796_v3 = vld [vmem:[#allocation233_spill] sm:$0xff] }
 0xf2b   : > { %20785 = vst [vmem:[#allocation378_spill] sm:$0xff] %v17432_v51  ;;  %v6937_v51 = vrot.slane %v17420_v20, 4  ;;  %v6472_v29 = vsel %vm4013_vm9, %v17153_v56, %v6471_v24  ;;  %v17474_v30 = vsel %vm3755_vm8, %v20794_v48, %v20793_v7  ;;  %v17479_v1 = vsel %vm3755_vm8, %v20796_v3, %v20795_v17  ;;  %v20798_v24 = vld [vmem:[#allocation412_spill] sm:$0xff]  ;;  %v20802_v3 = vld [vmem:[#allocation91_spill] sm:$0xff] }
 0xf2c   : > { %v7185_v56 = vrot.slane %v3819_v9, 4  ;;  %v17485_v57 = vsel %vm3755_vm8, %v20799_v14, %v20798_v24  ;;  %v17491_v0 = vperm.slane %v7062_v36, %v12943_v4  ;;  %v17498_v48 = vperm.slane %v7188_v5, %v12943_v4  ;;  %v20803_v36 = vld [vmem:[#allocation159_spill] sm:$0xff] }
 0xf2d   : > { %8339 = vrot.lane.b32.xlu2 %v6476_v35, %s19587_s13  ;;  %v20797_v35 = vld [vmem:[#allocation252_spill] sm:$0xff]  ;;  %v6938_v9 = vsel %vm4013_vm9, %v6937_v51, %v17469_v22  ;;  %v6962_v17 = vsel %vm4013_vm9, %v6961_v38, %v17479_v1  ;;  %v6797_v19 = vrot.slane %v17446_v12, 4  ;;  %v6837_v38 = vrot.slane %v17459_v62, 4 }
 0xf2e   : > { %v7037_v11 = vrot.slane %v20797_v35, 4  ;;  %20801 = vst [vmem:[#allocation376_spill] sm:$0xff] %v17498_v48  ;;  %v17508_v35 = vsel %vm3755_vm8, %v20803_v36, %v20802_v3  ;;  %v7110_v51 = vsel %vm4013_vm9, %v7109_v40, %v17491_v0  ;;  %v6925_v14 = vrot.slane %v17474_v30, 4 }
 0xf2f   : > { %8307 = vrot.lane.b32.xlu0 %v6472_v29, %s19573_s17  ;;  %v17494_v7 = vpop.permute.xlu2 %8209  ;;  %8323 = vrot.lane.b32.xlu1 %v6474_v21, %s19586_s26  ;;  %v6651_v29 = vrot.slane %v17229_v42, 4  ;;  %v6675_v21 = vrot.slane %v17238_v49, 4  ;;  %v17524_v42 = vperm.slane %v6938_v9, %v12943_v4  ;;  %v17527_v49 = vperm.slane %v6962_v17, %v12943_v4  ;;  %v20810_v9 = vld [vmem:[#allocation241_spill] sm:$0xff]  ;;  %s19588_s17 = smov 96  }
 0xf30   : > { %20800 = vst [vmem:[#allocation142_spill] sm:$0xff] %v17494_v7  ;;  %v6949_v7 = vrot.slane %v17485_v57, 4  ;;  %v7038_v3 = vsel %vm4013_vm9, %v7037_v11, %v20806_v58  ;;  %v7085_v36 = vrot.slane %v17488_v8, 4  ;;  %v6798_v37 = vsel %vm4013_vm9, %v6797_v19, %v17401_v41  ;;  %v20809_v11 = vld [vmem:[#allocation44_spill] sm:$0xff] }
 0xf31   : > { %v17512_v24 = vpop.permute.xlu0 %8135  ;;  %v17514_v5 = vpop.permute.xlu1 %8151  ;;  %20807 = vst [vmem:[#allocation166_spill] sm:$0xff] %v17524_v42  ;;  %v6676_v40 = vsel %vm4013_vm9, %v17203_v34, %v6675_v21  ;;  %v17538_v58 = vperm.slane %v7110_v51, %v13098_v43  ;;  %v17543_v17 = vsel %vm3755_vm8, %v20810_v9, %v20809_v11  ;;  %v17548_v34 = vsel %vm3755_vm8, %v20812_v2, %v20811_v33  ;;  %v20813_v33 = vld [vmem:[#allocation148_spill] sm:$0xff] }
 0xf32   : > { %20804 = vst [vmem:[#allocation279_spill] sm:$0xff] %v17512_v24  ;;  %v6825_v24 = vrot.slane %v17508_v35, 4  ;;  %v6838_v19 = vsel %vm4013_vm9, %v6837_v38, %v17543_v17  ;;  %v6926_v21 = vsel %vm4013_vm9, %v6925_v14, %v17548_v34  ;;  %v6950_v51 = vsel %vm4013_vm9, %v6949_v7, %v17273_v10  ;;  %v20816_v14 = vld [vmem:[#allocation375_spill] sm:$0xff] }
 0xf33   : > { %20805 = vst [vmem:[#allocation406_spill] sm:$0xff] %v17514_v5  ;;  %v7186_v5 = vsel %vm4013_vm9, %v7185_v56, %v17379_v55  ;;  %v17551_v55 = vperm.slane %v7038_v3, %v12943_v4  ;;  %v6652_v56 = vsel %vm4013_vm9, %v17219_v54, %v6651_v29  ;;  %v6684_v2 = vperm.slane %v6676_v40, %v13098_v43  ;;  %v20814_v3 = vld [vmem:[#allocation168_spill] sm:$0xff]  ;;  %v20817_v40 = vld [vmem:[#allocation137_spill] sm:$0xff] }
 0xf34   : > { %20808 = vst [vmem:[#allocation177_spill] sm:$0xff] %v17538_v58  ;;  %v17566_v11 = vsel %vm3755_vm8, %v20814_v3, %v20813_v33  ;;  %v6997_v54 = vrot.slane %v17527_v49, 4  ;;  %v7192_v38 = vperm.slane %v7186_v5, %v12943_v4  ;;  %v17580_v9 = vsel %vm3755_vm8, %v20817_v40, %v20816_v14 }
 0xf35   : > { %8353 = vrot.lane.b32.xlu2 %v6798_v37, %s19588_s17  ;;  %v6973_v37 = vrot.slane %v17524_v42, 4  ;;  %v7086_v7 = vsel %vm4013_vm9, %v7085_v36, %v17551_v55  ;;  %v7133_v33 = vrot.slane %v17538_v58, 4  ;;  %v6660_v3 = vperm.slane %v6652_v56, %v13098_v43 }
 0xf36   : > { %v17591_v36 = vperm.slane %v6926_v21, %v12943_v4  ;;  %v17594_v5 = vperm.slane %v6950_v51, %v12943_v4  ;;  %v20822_v40 = vrot.slane %v17257_v18, 4  ;;  %v6697_v21 = vrot.slane %v6684_v2, 4 }
 0xf37   : > { %8321 = vrot.lane.b32.xlu0 %v6362_v46, %s19586_s26  ;;  %v17571_v29 = vpop.permute.xlu2 %8215  ;;  %8337 = vrot.lane.b32.xlu1 %v6364_v63, %s19587_s13  ;;  %v20819_v46 = vld [vmem:[#allocation144_spill] sm:$0xff]  ;;  %v6844_v63 = vperm.slane %v6838_v19, %v12943_v4  ;;  %v17607_v19 = vperm.slane %v7086_v7, %v13098_v43  ;;  %v17611_v51 = vperm.slane %v17435_v26, %v12943_v4  ;;  %v7233_v25 = vrot.slane %v17498_v48, 4 }
 0xf38   : > { %20815 = vst [vmem:[#allocation360_spill] sm:$0xff] %v17571_v29  ;;  %v17587_v29 = vsel %vm3755_vm8, %v20819_v46, %v20818_v39  ;;  %v6850_v39 = vsel %vm4013_vm9, %v20822_v40, %v17566_v11  ;;  %v7223_v46 = vrot.slane %v17438_v44, 4  ;;  %v6699_v40 = vrot.slane %v6660_v3, 4 }
 0xf39   : > { %v17596_v52 = vpop.permute.xlu0 %8149  ;;  %v17598_v14 = vpop.permute.xlu1 %8165  ;;  %v6826_v56 = vsel %vm4013_vm9, %v6825_v24, %v17587_v29  ;;  %20823 = vst [vmem:[#allocation373_spill] sm:$0xff] %v17611_v51  ;;  %v6998_v24 = vsel %vm4013_vm9, %v6997_v54, %v17594_v5  ;;  %v7134_v7 = vsel %vm4013_vm9, %v7133_v33, %v17607_v19  ;;  %v6814_v26 = vsel %vm4013_vm9, %v20824_v45, %v17580_v9 }
 0xf3a   : > { %20820 = vst [vmem:[#allocation338_spill] sm:$0xff] %v17596_v52  ;;  %v7221_v52 = vrot.slane %v7192_v38, 4  ;;  %v6832_v50 = vperm.slane %v6826_v56, %v12943_v4  ;;  %v6856_v28 = vperm.slane %v6850_v39, %v12943_v4  ;;  %v6698_v54 = vsel %vm4013_vm9, %v6697_v21, %v6660_v3  ;;  %v20827_v3 = vld [vmem:[#allocation346_spill] sm:$0xff] }
 0xf3b   : > { %20821 = vst [vmem:[#allocation85_spill] sm:$0xff] %v17598_v14  ;;  %v6974_v14 = vsel %vm4013_vm9, %v6973_v37, %v17591_v36  ;;  %v6887_v37 = vrot.slane %v6844_v63, 4  ;;  %v6700_v48 = vsel %vm4013_vm9, %v6684_v2, %v6699_v40  ;;  %v7004_v33 = vperm.slane %v6998_v24, %v13098_v43 }
 0xf3c   : > { %v6980_v58 = vperm.slane %v6974_v14, %v13098_v43  ;;  %v6803_v45 = vrot.slane %v17387_v15, 4  ;;  %v7247_v56 = vrot.slane %v17390_v60, 4  ;;  %v17640_v39 = vperm.slane %v17361_v53, %v13098_v43 }
 0xf3d   : > { %8359 = vrot.lane.b32.xlu2 %v7134_v7, %s19588_s17  ;;  %v7251_v2 = vrot.slane %v17393_v32, 4  ;;  %v4109_v14 = vrot.slane %v20827_v3, 4  ;;  %v6775_v21 = vrot.slane %v17396_v61, 4  ;;  %v7234_v24 = vsel %vm4013_vm9, %v7233_v25, %v17611_v51  ;;  %v20829_v51 = vld [vmem:[#allocation344_spill] sm:$0xff] }
 0xf3e   : > { %20826 = vst [vmem:[#allocation331_spill] sm:$0xff] %v17640_v39  ;;  %v7224_v7 = vsel %vm4013_vm9, %v7192_v38, %v7223_v46  ;;  %v6861_v40 = vrot.slane %v6832_v50, 4  ;;  %v6888_v53 = vsel %vm4013_vm9, %v6856_v28, %v6887_v37  ;;  %v7023_v32 = vrot.slane %v6980_v58, 4 }
 0xf3f   : > { %8327 = vrot.lane.b32.xlu0 %v6698_v54, %s19586_s26  ;;  %v17633_v42 = vpop.permute.xlu2 %8229  ;;  %8343 = vrot.lane.b32.xlu1 %v6700_v48, %s19587_s13  ;;  %v6820_v48 = vperm.slane %v6814_v26, %v12943_v4  ;;  %v6885_v54 = vrot.slane %v6856_v28, 4  ;;  %v7021_v39 = vrot.slane %v7004_v33, 4  ;;  %v6776_v61 = vsel %vm4013_vm9, %v17347_v16, %v6775_v21  ;;  %s19589_s26 = smov 98  }
 0xf40   : > { %20825 = vst [vmem:[#allocation126_spill] sm:$0xff] %v17633_v42  ;;  %v7222_v25 = vsel %vm4013_vm9, %v7221_v52, %v17438_v44  ;;  %v6799_v46 = vrot.slane %v17401_v41, 4  ;;  %v17661_v26 = vperm.slane %v7234_v24, %v13098_v43  ;;  %v17664_v3 = vperm.slane %v7224_v7, %v13098_v43 }
 0xf41   : > { %v17649_v42 = vpop.permute.xlu0 %8163  ;;  %v17651_v60 = vpop.permute.xlu1 %8179  ;;  %v6886_v38 = vsel %vm4013_vm9, %v6885_v54, %v6844_v63  ;;  %v4110_v28 = vsel %vm4013_vm9, %v4109_v14, %v20829_v51  ;;  %v7024_v37 = vsel %vm4013_vm9, %v7004_v33, %v7023_v32  ;;  %v17670_v16 = vperm.slane %v6888_v53, %v13098_v43  ;;  %v20830_v14 = vld [vmem:[#allocation248_spill] sm:$0xff] }
 0xf42   : > { %20828 = vst [vmem:[#allocation75_spill] sm:$0xff] %v17661_v26  ;;  %v6863_v52 = vrot.slane %v6820_v48, 4  ;;  %v6862_v44 = vsel %vm4013_vm9, %v6861_v40, %v6820_v48  ;;  %v6784_v41 = vperm.slane %v6776_v61, %v13098_v43  ;;  %v17676_v63 = vperm.slane %v7222_v25, %v13098_v43  ;;  %v20887_v48 = vld [vmem:[#allocation46_spill] sm:$0xff] }
 0xf43   : > { %v6815_v21 = vrot.slane %v17580_v9, 4  ;;  %v6827_v51 = vrot.slane %v17587_v29, 4  ;;  %v7022_v32 = vsel %vm4013_vm9, %v7021_v39, %v6980_v58  ;;  %v6892_v33 = vperm.slane %v6886_v38, %v13098_v43 }
 0xf44   : > { %v6864_v7 = vsel %vm4013_vm9, %v6832_v50, %v6863_v52  ;;  %v17692_v29 = vsel %vm4013_vm9, %v17664_v3, %v7251_v2  ;;  %v6851_v9 = vrot.slane %v17566_v11, 4  ;;  %v6913_v39 = vrot.slane %v17670_v16, 4 }
 0xf45   : > { %8373 = vrot.lane.b32.xlu2 %v7024_v37, %s19589_s26  ;;  %20831 = vst [vmem:[#allocation134_spill] sm:$0xff] %v17692_v29  ;;  %v6828_v58 = vsel %vm4013_vm9, %v17508_v35, %v6827_v51  ;;  %v6868_v54 = vperm.slane %v6862_v44, %v13098_v43  ;;  %v6804_v61 = vsel %vm4013_vm9, %v6784_v41, %v6803_v45  ;;  %v6801_v25 = vrot.slane %v6784_v41, 4  ;;  %v20832_v44 = vld [vmem:[#allocation146_spill] sm:$0xff]  ;;  %v20833_v41 = vld [vmem:[#allocation220_spill] sm:$0xff] }
 0xf46   : > { %v17706_v2 = vsel %vm4013_vm9, %v17676_v63, %v7247_v56  ;;  %v7245_v38 = vrot.slane %v17676_v63, 4  ;;  %v6816_v35 = vsel %vm4013_vm9, %v17252_v6, %v6815_v21  ;;  %v17712_v11 = vperm.slane %v6864_v7, %v13098_v43  ;;  %v20992_v29 = vld [vmem:[#allocation158_spill] sm:$0xff] }
 0xf47   : > { %8341 = vrot.lane.b32.xlu0 %v20830_v14, %s19587_s13  ;;  %v17684_v24 = vpop.permute.xlu2 %8243  ;;  %8357 = vrot.lane.b32.xlu1 %v7022_v32, %s19588_s17  ;;  %v6909_v37 = vrot.slane %v6892_v33, 4  ;;  %v6800_v52 = vsel %vm4013_vm9, %v17446_v12, %v6799_v46  ;;  %v7261_v51 = vrot.slane %v20832_v44, 4  ;;  %v17718_v45 = vperm.slane %v6828_v58, %v12943_v4  ;;  %s19592_s13 = smov 100  }
 0xf48   : > { %v6839_v56 = vrot.slane %v17543_v17, 4  ;;  %v4333_v32 = vrot.slane %v20833_v41, 4  ;;  %v6852_v14 = vsel %vm4013_vm9, %v17257_v18, %v6851_v9  ;;  %v6963_v6 = vrot.slane %v17479_v1, 4  ;;  %v20834_v18 = vld [vmem:[#allocation102_spill] sm:$0xff] }
 0xf49   : > { %v17699_v53 = vpop.permute.xlu0 %8177  ;;  %v17701_v50 = vpop.permute.xlu1 %8193  ;;  %v6914_v21 = vsel %vm4013_vm9, %v6913_v39, %v17712_v11  ;;  %v6911_v7 = vrot.slane %v6868_v54, 4  ;;  %v17729_v12 = vsel %vm8605_vm10, %v4110_v28, %v15190_v27  ;;  %v17732_v46 = vperm.slane %v6816_v35, %v12943_v4  ;;  %v20835_v39 = vld [vmem:[#allocation151_spill] sm:$0xff] }
 0xf4a   : > { %v6840_v17 = vsel %vm4013_vm9, %v17459_v62, %v6839_v56  ;;  %v6802_v1 = vsel %vm4013_vm9, %v6801_v25, %v17387_v15  ;;  %v7273_v58 = vrot.slane %v20834_v18, 4  ;;  %v6964_v9 = vsel %vm4013_vm9, %v17425_v47, %v6963_v6  ;;  %v20836_v56 = vld [vmem:[#allocation200_spill] sm:$0xff] }
 0xf4b   : > { %v6910_v27 = vsel %vm4013_vm9, %v6909_v37, %v6868_v54  ;;  %v6912_v28 = vsel %vm4013_vm9, %v6892_v33, %v6911_v7  ;;  %v7262_v35 = vsel %vm4013_vm9, %v7261_v51, %v20835_v39  ;;  %v6873_v62 = vrot.slane %v17718_v45, 4  ;;  %v20841_v7 = vld [vmem:[#allocation242_spill] sm:$0xff] }
 0xf4c   : > { %v17748_v44 = vperm.slane %v6852_v14, %v12943_v4  ;;  %v4334_v15 = vsel %vm4013_vm9, %v4333_v32, %v20836_v56  ;;  %v17757_v47 = vperm.slane %v6840_v17, %v12943_v4  ;;  %v6939_v33 = vrot.slane %v17469_v22, 4 }
 0xf4d   : > { %8387 = vrot.lane.b32.xlu2 %v6914_v21, %s19592_s13  ;;  %v8608_v54 = vsel %vm8605_vm10, %v4334_v15, %v14988_v31  ;;  %v17763_v37 = vperm.slane %v6964_v9, %v12943_v4  ;;  %v7087_v51 = vrot.slane %v17551_v55, 4  ;;  %v7111_v41 = vrot.slane %v17491_v0, 4  ;;  %v20840_v21 = vld [vmem:[#allocation116_spill] sm:$0xff] }
 0xf4e   : > { %v8613_v32 = vsel %vm19590_vm11, %v8608_v54, %v15335_v59  ;;  %v17774_v22 = vperm.slane %v7262_v35, %v12943_v4  ;;  %v17778_v31 = vsel %vm4013_vm9, %v7273_v58, %v20840_v21  ;;  %v4221_v17 = vrot.slane %v20841_v7, 4  ;;  %v20848_v21 = vld [vmem:[#allocation92_spill] sm:$0xff] }
 0xf4f   : > { %8355 = vrot.lane.b32.xlu0 %v6910_v27, %s19588_s17  ;;  %v17753_v25 = vpop.permute.xlu2 %8257  ;;  %8371 = vrot.lane.b32.xlu1 %v6912_v28, %s19589_s26  ;;  %v6940_v55 = vsel %vm4013_vm9, %v17420_v20, %v6939_v33  ;;  %v6897_v0 = vrot.slane %v17748_v44, 4  ;;  %v7088_v59 = vsel %vm4013_vm9, %v17488_v8, %v7087_v51  ;;  %v7112_v18 = vsel %vm4013_vm9, %v17428_v13, %v7111_v41  ;;  %v20843_v28 = vld [vmem:[#allocation35_spill] sm:$0xff]  ;;  %s19596_s17 = smov 102  }
 0xf50   : > { %20837 = vst [vmem:[#allocation363_spill] sm:$0xff] %v17753_v25  ;;  %v20842_v9 = vrot.slane %v17273_v10, 4  ;;  %v8618_v27 = vsel %vm19594_vm12, %v8613_v32, %v15337_v23  ;;  %v17796_v20 = vsel %vm4013_vm9, %v6873_v62, %v17732_v46  ;;  %v7297_v39 = vrot.slane %v20843_v28, 4  ;;  %v20845_v33 = vld [vmem:[#allocation219_spill] sm:$0xff] }
 0xf51   : > { %v17769_v14 = vpop.permute.xlu0 %8183  ;;  %v17771_v6 = vpop.permute.xlu1 %8199  ;;  %v17800_v8 = vperm.slane %v6940_v55, %v12943_v4  ;;  %v7009_v13 = vrot.slane %v17763_v37, 4  ;;  %v17806_v10 = vsel %vm4013_vm9, %v6897_v0, %v17757_v47  ;;  %v6927_v35 = vrot.slane %v17548_v34, 4  ;;  %v20850_v0 = vld [vmem:[#allocation104_spill] sm:$0xff] }
 0xf52   : > { %20838 = vst [vmem:[#allocation361_spill] sm:$0xff] %v17769_v14  ;;  %v6952_v58 = vsel %vm4013_vm9, %v17485_v57, %v20842_v9  ;;  %v20844_v57 = vld [vmem:[#allocation323_spill] sm:$0xff]  ;;  %v7096_v62 = vperm.slane %v7088_v59, %v13098_v43  ;;  %v7120_v56 = vperm.slane %v7112_v18, %v13098_v43  ;;  %v6999_v32 = vrot.slane %v17594_v5, 4  ;;  %v20851_v18 = vld [vmem:[#allocation294_spill] sm:$0xff] }
 0xf53   : > { %20839 = vst [vmem:[#allocation131_spill] sm:$0xff] %v17771_v6  ;;  %v4222_v23 = vsel %vm4013_vm9, %v4221_v17, %v20844_v57  ;;  %v17814_v15 = vperm.slane %v6952_v58, %v12943_v4  ;;  %v6928_v34 = vsel %vm4013_vm9, %v17474_v30, %v6927_v35  ;;  %v20849_v17 = vld [vmem:[#allocation238_spill] sm:$0xff]  ;;  %v7298_v59 = vsel %vm4013_vm9, %v7297_v39, %v20850_v0 }
 0xf54   : > { %v8607_v54 = vsel %vm8605_vm10, %v4222_v23, %v20845_v33  ;;  %v7139_v5 = vrot.slane %v7096_v62, 4  ;;  %v7000_v28 = vsel %vm4013_vm9, %v17527_v49, %v6999_v32  ;;  %v17845_v39 = vperm.slane %v6928_v34, %v12943_v4  ;;  %v20852_v23 = vld [vmem:[#allocation400_spill] sm:$0xff]  ;;  %v20853_v33 = vld [vmem:[#allocation205_spill] sm:$0xff]  ;;  %v20855_v34 = vld [vmem:[#allocation166_spill] sm:$0xff] }
 0xf55   : > { %8401 = vrot.lane.b32.xlu2 %v6804_v61, %s19596_s17  ;;  %v20846_v61 = vld [vmem:[#allocation229_spill] sm:$0xff]  ;;  %v8612_v7 = vsel %vm19590_vm11, %v8607_v54, %v20848_v21  ;;  %v7010_v30 = vsel %vm4013_vm9, %v7009_v13, %v17814_v15  ;;  %v6975_v57 = vrot.slane %v17591_v36, 4  ;;  %v20854_v49 = vld [vmem:[#allocation284_spill] sm:$0xff]  ;;  %v21016_v14 = vld [vmem:[#allocation354_spill] sm:$0xff] }
 0xf56   : > { %v8623_v51 = vsel %vm19591_vm13, %v8618_v27, %v20846_v61  ;;  %v8617_v9 = vsel %vm19594_vm12, %v8612_v7, %v20851_v18  ;;  %v7137_v27 = vrot.slane %v7120_v56, 4  ;;  %v7140_v13 = vsel %vm4013_vm9, %v7120_v56, %v7139_v5 }
 0xf57   : > { %8369 = vrot.lane.b32.xlu0 %v6800_v52, %s19589_s26  ;;  %v17821_v41 = vpop.permute.xlu2 %8263  ;;  %8385 = vrot.lane.b32.xlu1 %v6802_v1, %s19592_s13  ;;  %v8628_v55 = vsel %vm19593_vm14, %v8623_v51, %v20849_v17  ;;  %v6985_v52 = vrot.slane %v17800_v8, 4  ;;  %v8622_v54 = vsel %vm19591_vm13, %v8617_v9, %v20853_v33  ;;  %v7135_v61 = vrot.slane %v17607_v19, 4  ;;  %v20856_v17 = vld [vmem:[#allocation302_spill] sm:$0xff]  ;;  %v20857_v19 = vld [vmem:[#allocation177_spill] sm:$0xff] }
 0xf58   : > { %20847 = vst [vmem:[#allocation42_spill] sm:$0xff] %v17821_v41  ;;  %v8633_v35 = vsel %vm19598_vm15, %v8628_v55, %v20852_v23  ;;  %v17855_v51 = vperm.slane %v7010_v30, %v13098_v43  ;;  %v4445_v32 = vrot.slane %v20854_v49, 4  ;;  %v6976_v21 = vsel %vm4013_vm9, %v20855_v34, %v6975_v57  ;;  %v20858_v9 = vld [vmem:[#allocation209_spill] sm:$0xff]  ;;  %v20859_v30 = vld [vmem:[#allocation260_spill] sm:$0xff]  ;;  %v20955_v41 = vld [vmem:[#allocation47_spill] sm:$0xff] }
 0xf59   : > { %v17836_v1 = vpop.permute.xlu0 %8197  ;;  %v17838_v58 = vpop.permute.xlu1 %8213  ;;  %v6986_v36 = vsel %vm4013_vm9, %v6985_v52, %v17845_v39  ;;  %v7008_v7 = vperm.slane %v7000_v28, %v13098_v43  ;;  %v8638_v56 = vsel %vm19595_vm1, %v8633_v35, %v20856_v17  ;;  %v7136_v55 = vsel %vm4013_vm9, %v20857_v19, %v7135_v61  ;;  %v20860_v57 = vld [vmem:[#allocation392_spill] sm:$0xff]  ;;  %v20861_v35 = vld [vmem:[#allocation285_spill] sm:$0xff] }
 0xf5a   : > { %v7138_v0 = vsel %vm4013_vm9, %v7137_v27, %v7096_v62  ;;  %v6875_v18 = vrot.slane %v17732_v46, 4  ;;  %v8611_v52 = vsel %vm19590_vm11, %v17729_v12, %v20858_v9  ;;  %v8627_v5 = vsel %vm19593_vm14, %v8622_v54, %v20859_v30  ;;  %v20862_v27 = vld [vmem:[#allocation426_spill] sm:$0xff]  ;;  %v20863_v54 = vld [vmem:[#allocation296_spill] sm:$0xff] }
 0xf5b   : > { %v8643_v28 = vsel %vm19597_vm2, %v8638_v56, %v20860_v57  ;;  %v8616_v62 = vsel %vm19594_vm12, %v8611_v52, %v20861_v35  ;;  %v8632_v33 = vsel %vm19598_vm15, %v8627_v5, %v20862_v27  ;;  %v7029_v12 = vrot.slane %v17855_v51, 4  ;;  %v20864_v49 = vld [vmem:[#allocation288_spill] sm:$0xff]  ;;  %v20866_v9 = vld [vmem:[#allocation202_spill] sm:$0xff]  ;;  %v20869_v27 = vld [vmem:[#allocation315_spill] sm:$0xff] }
 0xf5c   : > { %v4446_v61 = vsel %vm4013_vm9, %v4445_v32, %v20863_v54  ;;  %v8621_v34 = vsel %vm19591_vm13, %v8616_v62, %v20864_v49  ;;  %v17896_v19 = vperm.slane %v6986_v36, %v13098_v43  ;;  %v7025_v52 = vrot.slane %v7008_v7, 4  ;;  %v20867_v30 = vld [vmem:[#allocation120_spill] sm:$0xff]  ;;  %v20868_v35 = vld [vmem:[#allocation162_spill] sm:$0xff]  ;;  %v20870_v49 = vld [vmem:[#allocation309_spill] sm:$0xff] }
 0xf5d   : > { %8407 = vrot.lane.b32.xlu2 %v7140_v13, %s19596_s17  ;;  %v6984_v13 = vperm.slane %v6976_v21, %v13098_v43  ;;  %v8648_v21 = vsel %vm19601_vm3, %v8643_v28, %v20866_v9  ;;  %v17904_v32 = vperm.slane %v17778_v31, %v12943_v4  ;;  %v8637_v5 = vsel %vm19595_vm1, %v8632_v33, %v20867_v30  ;;  %v20873_v9 = vld [vmem:[#allocation80_spill] sm:$0xff] }
 0xf5e   : > { %v6880_v57 = vperm.slane %v17796_v20, %v13098_v43  ;;  %v6904_v36 = vperm.slane %v17806_v10, %v13098_v43  ;;  %v7285_v62 = vrot.slane %v20868_v35, 4  ;;  %v8626_v54 = vsel %vm19593_vm14, %v8621_v34, %v20869_v27  ;;  %v20872_v10 = vld [vmem:[#allocation268_spill] sm:$0xff] }
 0xf5f   : > { %v17877_v23 = vpop.permute.xlu2 %8277  ;;  %8375 = vrot.lane.b32.xlu0 %v7136_v55, %s19589_s26  ;;  %8391 = vrot.lane.b32.xlu1 %v7138_v0, %s19592_s13  ;;  %v20865_v55 = vld [vmem:[#allocation307_spill] sm:$0xff]  ;;  %v7030_v28 = vsel %vm4013_vm9, %v7029_v12, %v17896_v19  ;;  %v17918_v31 = vperm.slane %v7298_v59, %v12943_v4  ;;  %s19606_s26 = smov 104   ;;  %v8642_v34 = vsel %vm19597_vm2, %v8637_v5, %v20872_v10  ;;  %v6899_v35 = vrot.slane %v17757_v47, 4 }
 0xf60   : > { %v8609_v0 = vsel %vm8605_vm10, %v4446_v61, %v20865_v55  ;;  %v7027_v61 = vrot.slane %v6984_v13, 4  ;;  %v20871_v55 = vld [vmem:[#allocation204_spill] sm:$0xff]  ;;  %v7026_v30 = vsel %vm4013_vm9, %v7025_v52, %v6984_v13  ;;  %v6919_v5 = vrot.slane %v6880_v57, 4  ;;  %v20878_v52 = vld [vmem:[#allocation425_spill] sm:$0xff] }
 0xf61   : > { %v17891_v17 = vpop.permute.xlu0 %8211  ;;  %v17893_v56 = vpop.permute.xlu1 %8227  ;;  %v8614_v33 = vsel %vm19590_vm11, %v8609_v0, %v20870_v49  ;;  %v8653_v20 = vsel %vm19599_vm4, %v8648_v21, %v20871_v55  ;;  %v20874_v0 = vld [vmem:[#allocation273_spill] sm:$0xff]  ;;  %v20875_v21 = vld [vmem:[#allocation187_spill] sm:$0xff]  ;;  %v6917_v47 = vrot.slane %v6904_v36, 4  ;;  %vm19603_vm11 = vcmask 211968  }
 0xf62   : > { %v8658_v12 = vsel %vm19600_vm6, %v8653_v20, %v20873_v9  ;;  %v7028_v59 = vsel %vm4013_vm9, %v7008_v7, %v7027_v61  ;;  %v8631_v27 = vsel %vm19598_vm15, %v8626_v54, %v20874_v0  ;;  %v8647_v49 = vsel %vm19601_vm3, %v8642_v34, %v20875_v21  ;;  %v20879_v61 = vld [vmem:[#allocation183_spill] sm:$0xff]  ;;  %v20880_v20 = vld [vmem:[#allocation196_spill] sm:$0xff]  ;;  %v20881_v34 = vld [vmem:[#allocation169_spill] sm:$0xff] }
 0xf63   : > { %v8636_v7 = vsel %vm19595_vm1, %v8631_v27, %v20878_v52  ;;  %v7286_v54 = vsel %vm4013_vm9, %v7285_v62, %v20879_v61  ;;  %v8663_v9 = vsel %vm19605_vm7, %v8658_v12, %v20881_v34  ;;  %v7309_v0 = vrot.slane %v17904_v32, 4  ;;  %v20884_v21 = vld [vmem:[#allocation347_spill] sm:$0xff] }
 0xf64   : > { %v7333_v27 = vrot.slane %v17918_v31, 4  ;;  %v8652_v62 = vsel %vm19599_vm4, %v8647_v49, %v20884_v21  ;;  %v6920_v52 = vsel %vm4013_vm9, %v6904_v36, %v6919_v5  ;;  %v6915_v12 = vrot.slane %v17712_v11, 4  ;;  %v20886_v34 = vld [vmem:[#allocation251_spill] sm:$0xff]  ;;  %v20889_v5 = vld [vmem:[#allocation70_spill] sm:$0xff] }
 0xf65   : > { %8421 = vrot.lane.b32.xlu2 %v7030_v28, %s19606_s26  ;;  %v20877_v28 = vld [vmem:[#allocation226_spill] sm:$0xff]  ;;  %v6876_v61 = vsel %vm4013_vm9, %v17718_v45, %v6875_v18  ;;  %v8668_v49 = vsel %vm19603_vm11, %v8663_v9, %v20887_v48  ;;  %v6918_v45 = vsel %vm4013_vm9, %v6917_v47, %v6880_v57  ;;  %v6900_v46 = vsel %vm4013_vm9, %v17748_v44, %v6899_v35  ;;  %v20890_v18 = vld [vmem:[#allocation36_spill] sm:$0xff] }
 0xf66   : > { %v8619_v13 = vsel %vm19594_vm12, %v8614_v33, %v20877_v28  ;;  %v7311_v33 = vrot.slane %v17774_v22, 4  ;;  %v20885_v28 = vld [vmem:[#allocation246_spill] sm:$0xff]  ;;  %v6916_v9 = vsel %vm4013_vm9, %v17670_v16, %v6915_v12  ;;  %v20895_v16 = vld [vmem:[#allocation227_spill] sm:$0xff]  ;;  %vm19607_vm12 = vcmask 261120  }
 0xf67   : > { %v17936_v55 = vpop.permute.xlu2 %8291  ;;  %8389 = vrot.lane.b32.xlu0 %v7026_v30, %s19592_s13  ;;  %8405 = vrot.lane.b32.xlu1 %v7028_v59, %s19596_s17  ;;  %v8624_v10 = vsel %vm19591_vm13, %v8619_v13, %v20880_v20  ;;  %v8641_v13 = vsel %vm19597_vm2, %v8636_v7, %v20885_v28  ;;  %v17968_v20 = vperm.slane %v7286_v54, %v12943_v4  ;;  %vm19604_vm13 = vcmask 228352   ;;  %v20888_v7 = vld [vmem:[#allocation280_spill] sm:$0xff]  ;;  %s19610_s13 = smov 106   ;;  %v20897_v12 = vld [vmem:[#allocation43_spill] sm:$0xff] }
 0xf68   : > { %20876 = vst [vmem:[#allocation114_spill] sm:$0xff] %v17936_v55  ;;  %v8629_v40 = vsel %vm19593_vm14, %v8624_v10, %v20886_v34  ;;  %v8657_v36 = vsel %vm19600_vm6, %v8652_v62, %v20888_v7  ;;  %v8673_v11 = vsel %vm19604_vm13, %v8668_v49, %v20889_v5  ;;  %v8646_v54 = vsel %vm19601_vm3, %v8641_v13, %v20890_v18  ;;  %v20891_v10 = vld [vmem:[#allocation316_spill] sm:$0xff]  ;;  %v20900_v5 = vld [vmem:[#allocation181_spill] sm:$0xff]  ;;  %v20902_v18 = vld [vmem:[#allocation331_spill] sm:$0xff] }
 0xf69   : > { %v17950_v30 = vpop.permute.xlu0 %8225  ;;  %v17952_v59 = vpop.permute.xlu1 %8241  ;;  %v8662_v48 = vsel %vm19605_vm7, %v8657_v36, %v20891_v10  ;;  %v7334_v21 = vsel %vm4013_vm9, %v7333_v27, %v17968_v20  ;;  %v20892_v62 = vld [vmem:[#allocation232_spill] sm:$0xff]  ;;  %vm19609_vm14 = vcmask 244736   ;;  %v7312_v35 = vsel %vm4013_vm9, %v17904_v32, %v7311_v33  ;;  %v20896_v27 = vld [vmem:[#allocation190_spill] sm:$0xff] }
 0xf6a   : > { %20882 = vst [vmem:[#allocation155_spill] sm:$0xff] %v17950_v30  ;;  %v8634_v28 = vsel %vm19598_vm15, %v8629_v40, %v20892_v62  ;;  %v8678_v40 = vsel %vm19609_vm14, %v8673_v11, %v20896_v27  ;;  %v6908_v13 = vperm.slane %v6900_v46, %v13098_v43  ;;  %v8667_v34 = vsel %vm19603_vm11, %v8662_v48, %v20897_v12  ;;  %v20908_v48 = vld [vmem:[#allocation167_spill] sm:$0xff]  ;;  %v20910_v62 = vld [vmem:[#allocation72_spill] sm:$0xff]  ;;  %v20912_v27 = vld [vmem:[#allocation409_spill] sm:$0xff] }
 0xf6b   : > { %20883 = vst [vmem:[#allocation160_spill] sm:$0xff] %v17952_v59  ;;  %v8639_v47 = vsel %vm19595_vm1, %v8634_v28, %v20895_v16  ;;  %v7310_v36 = vsel %vm4013_vm9, %v7309_v0, %v17774_v22  ;;  %v18014_v32 = vperm.slane %v7334_v21, %v13098_v43  ;;  %v6884_v33 = vperm.slane %v6876_v61, %v13098_v43  ;;  %v20905_v22 = vld [vmem:[#allocation163_spill] sm:$0xff]  ;;  %v20913_v12 = vld [vmem:[#allocation385_spill] sm:$0xff]  ;;  %v20962_v55 = vld [vmem:[#allocation52_spill] sm:$0xff] }
 0xf6c   : > { %v20906_v0 = vrot.slane %v17664_v3, 4  ;;  %v20909_v21 = vld [vmem:[#allocation83_spill] sm:$0xff]  ;;  %vm19608_vm1 = vcmask 277504   ;;  %v8672_v28 = vsel %vm19604_vm13, %v8667_v34, %v20910_v62  ;;  %v18049_v3 = vperm.slane %v7310_v36, %v13098_v43 }
 0xf6d   : > { %8435 = vrot.lane.b32.xlu2 %v6920_v52, %s19610_s13  ;;  %v20893_v52 = vld [vmem:[#allocation86_spill] sm:$0xff]  ;;  %v8683_v63 = vsel %vm19607_vm12, %v8678_v40, %v20909_v21  ;;  %v6921_v16 = vrot.slane %v6908_v13, 4  ;;  %v8677_v40 = vsel %vm19609_vm14, %v8672_v28, %v20913_v12  ;;  %v6923_v34 = vrot.slane %v6884_v33, 4 }
 0xf6e   : > { %v8651_v57 = vsel %vm19599_vm4, %v8646_v54, %v20893_v52  ;;  %v20903_v54 = vrot.slane %v17661_v26, 4  ;;  %v18035_v61 = vsel %vm4013_vm9, %v20906_v0, %v20905_v22  ;;  %v20911_v52 = vld [vmem:[#allocation145_spill] sm:$0xff]  ;;  %v20916_v22 = vld [vmem:[#allocation152_spill] sm:$0xff]  ;;  %vm19611_vm15 = vcmask 310272  }
 0xf6f   : > { %v17994_v44 = vpop.permute.xlu2 %8305  ;;  %8403 = vrot.lane.b32.xlu0 %v6916_v9, %s19596_s17  ;;  %8419 = vrot.lane.b32.xlu1 %v6918_v45, %s19606_s26  ;;  %v8656_v11 = vsel %vm19600_vm6, %v8651_v57, %v20900_v5  ;;  %v20901_v45 = vld [vmem:[#allocation156_spill] sm:$0xff]  ;;  %20907 = vst [vmem:[#allocation150_spill] sm:$0xff] %v18035_v61  ;;  %v8644_v9 = vsel %vm19597_vm2, %v8639_v47, %v20908_v48  ;;  %s19614_s17 = smov 108   ;;  %v7357_v5 = vrot.slane %v18014_v32, 4  ;;  %vm19613_vm2 = vcmask 293888  }
 0xf70   : > { %20894 = vst [vmem:[#allocation322_spill] sm:$0xff] %v17994_v44  ;;  %v18023_v46 = vsel %vm4013_vm9, %v7245_v38, %v20901_v45  ;;  %v18029_v10 = vsel %vm4013_vm9, %v20903_v54, %v20902_v18  ;;  %v18042_v38 = vperm.slane %v7312_v35, %v13098_v43  ;;  %v8688_v57 = vsel %vm19608_vm1, %v8683_v63, %v20911_v52  ;;  %v20914_v35 = vld [vmem:[#allocation366_spill] sm:$0xff]  ;;  %v20915_v54 = vld [vmem:[#allocation419_spill] sm:$0xff]  ;;  %v20917_v48 = vld [vmem:[#allocation136_spill] sm:$0xff] }
 0xf71   : > { %v18007_v49 = vpop.permute.xlu0 %8231  ;;  %v18009_v7 = vpop.permute.xlu1 %8247  ;;  %20904 = vst [vmem:[#allocation107_spill] sm:$0xff] %v18029_v10  ;;  %v8661_v47 = vsel %vm19605_vm7, %v8656_v11, %v20912_v27  ;;  %v6987_v45 = vrot.slane %v17845_v39, 4  ;;  %v8649_v36 = vsel %vm19601_vm3, %v8644_v9, %v20915_v54  ;;  %v7335_v11 = vrot.slane %v17968_v20, 4  ;;  %v20918_v63 = vld [vmem:[#allocation384_spill] sm:$0xff]  ;;  %v20921_v9 = vld [vmem:[#allocation367_spill] sm:$0xff]  ;;  %v20922_v27 = vld [vmem:[#allocation49_spill] sm:$0xff] }
 0xf72   : > { %20898 = vst [vmem:[#allocation110_spill] sm:$0xff] %v18007_v49  ;;  %v8666_v0 = vsel %vm19603_vm11, %v8661_v47, %v20916_v22  ;;  %v8654_v21 = vsel %vm19599_vm4, %v8649_v36, %v20917_v48  ;;  %v8693_v62 = vsel %vm19613_vm2, %v8688_v57, %v20918_v63  ;;  %v20920_v39 = vld [vmem:[#allocation368_spill] sm:$0xff]  ;;  %v8682_v20 = vsel %vm19607_vm12, %v8677_v40, %v20922_v27  ;;  %v20923_v57 = vld [vmem:[#allocation403_spill] sm:$0xff]  ;;  %v20953_v18 = vld [vmem:[#allocation313_spill] sm:$0xff] }
 0xf73   : > { %20899 = vst [vmem:[#allocation351_spill] sm:$0xff] %v18009_v7  ;;  %v6988_v52 = vsel %vm4013_vm9, %v17800_v8, %v6987_v45  ;;  %v18079_v47 = vsel %vm4013_vm9, %v6921_v16, %v6884_v33  ;;  %v18082_v12 = vsel %vm4013_vm9, %v6908_v13, %v6923_v34  ;;  %v7011_v36 = vrot.slane %v17814_v15, 4  ;;  %v20925_v22 = vld [vmem:[#allocation164_spill] sm:$0xff]  ;;  %v20926_v13 = vld [vmem:[#allocation87_spill] sm:$0xff]  ;;  %v20960_v7 = vld [vmem:[#allocation66_spill] sm:$0xff] }
 0xf74   : > { %v8671_v48 = vsel %vm19604_vm13, %v8666_v0, %v20925_v22  ;;  %v18098_v33 = vsel %vm4013_vm9, %v17918_v31, %v7335_v11  ;;  %v8659_v16 = vsel %vm19600_vm6, %v8654_v21, %v20926_v13  ;;  %v20927_v40 = vld [vmem:[#allocation48_spill] sm:$0xff]  ;;  %vm19612_vm4 = vcmask 326656   ;;  %v20928_v0 = vld [vmem:[#allocation139_spill] sm:$0xff] }
 0xf75   : > { %8449 = vrot.lane.b32.xlu2 %v20914_v35, %s19614_s17  ;;  %v20924_v35 = vld [vmem:[#allocation217_spill] sm:$0xff]  ;;  %v8698_v34 = vsel %vm19611_vm15, %v8693_v62, %v20927_v40  ;;  %v18106_v15 = vsel %vm4013_vm9, %v7357_v5, %v18049_v3  ;;  %v8687_v63 = vsel %vm19608_vm1, %v8682_v20, %v20928_v0  ;;  %v6996_v31 = vperm.slane %v6988_v52, %v13098_v43  ;;  %v20930_v21 = vld [vmem:[#allocation115_spill] sm:$0xff]  ;;  %v20931_v27 = vld [vmem:[#allocation188_spill] sm:$0xff] }
 0xf76   : > { %v18087_v54 = vsel %vm3755_vm8, %v20924_v35, %v20923_v57  ;;  %v7012_v11 = vsel %vm4013_vm9, %v17763_v37, %v7011_v36  ;;  %v18118_v62 = vsel %vm3755_vm8, %v20931_v27, %v20930_v21  ;;  %v20932_v5 = vld [vmem:[#allocation76_spill] sm:$0xff]  ;;  %v20934_v13 = vld [vmem:[#allocation63_spill] sm:$0xff]  ;;  %v20935_v40 = vld [vmem:[#allocation194_spill] sm:$0xff]  ;;  %vm8705_vm6 = vcmask 343040  }
 0xf77   : > { %v18068_v28 = vpop.permute.xlu2 %8311  ;;  %8417 = vrot.lane.b32.xlu0 %v20920_v39, %s19606_s26  ;;  %8433 = vrot.lane.b32.xlu1 %v20921_v9, %s19610_s13  ;;  %v20929_v39 = vld [vmem:[#allocation56_spill] sm:$0xff]  ;;  %v7385_v57 = vrot.slane %v18087_v54, 4  ;;  %v8676_v35 = vsel %vm19609_vm14, %v8671_v48, %v20932_v5  ;;  %v18128_v52 = vsel %vm3755_vm8, %v20935_v40, %v20934_v13  ;;  %v20937_v36 = vld [vmem:[#allocation369_spill] sm:$0xff]  ;;  %v20940_v27 = vld [vmem:[#allocation306_spill] sm:$0xff]  ;;  %vm19617_vm3 = vcmask 359424  }
 0xf78   : > { %20919 = vst [vmem:[#allocation317_spill] sm:$0xff] %v18068_v28  ;;  %v8703_v9 = vsel %vm19612_vm4, %v8698_v34, %v20929_v39  ;;  %v20933_v22 = vld [vmem:[#allocation320_spill] sm:$0xff]  ;;  %v8681_v0 = vsel %vm19607_vm12, %v8676_v35, %v20937_v36  ;;  %v20938_v39 = vld [vmem:[#allocation213_spill] sm:$0xff]  ;;  %v7020_v5 = vperm.slane %v7012_v11, %v13098_v43  ;;  %v20943_v40 = vld [vmem:[#allocation175_spill] sm:$0xff] }
 0xf79   : > { %v18092_v8 = vpop.permute.xlu0 %8245  ;;  %v18094_v45 = vpop.permute.xlu1 %8261  ;;  %v8692_v20 = vsel %vm19613_vm2, %v8687_v63, %v20933_v22  ;;  %v20936_v34 = vld [vmem:[#allocation176_spill] sm:$0xff]  ;;  %v8708_v63 = vsel %vm8705_vm6, %v8703_v9, %v20940_v27  ;;  %v20941_v22 = vld [vmem:[#allocation431_spill] sm:$0xff]  ;;  %v20942_v13 = vld [vmem:[#allocation277_spill] sm:$0xff]  ;;  %v7035_v9 = vrot.slane %v6996_v31, 4  ;;  %v7386_v11 = vsel %vm4013_vm9, %v7385_v57, %v18128_v52 }
 0xf7a   : > { %v8664_v37 = vsel %vm19605_vm7, %v8659_v16, %v20936_v34  ;;  %v20939_v21 = vld [vmem:[#allocation324_spill] sm:$0xff]  ;;  %v18144_v16 = vsel %vm3755_vm8, %v20942_v13, %v20941_v22  ;;  %v8697_v35 = vsel %vm19611_vm15, %v8692_v20, %v20943_v40  ;;  %v20945_v36 = vld [vmem:[#allocation103_spill] sm:$0xff]  ;;  %v20949_v20 = vld [vmem:[#allocation417_spill] sm:$0xff]  ;;  %vm19619_vm7 = vcmask 408576  }
 0xf7b   : > { %v8669_v48 = vsel %vm19603_vm11, %v8664_v37, %v20939_v21  ;;  %v20946_v37 = vld [vmem:[#allocation216_spill] sm:$0xff]  ;;  %v20947_v21 = vld [vmem:[#allocation407_spill] sm:$0xff]  ;;  %vm19616_vm11 = vcmask 375808  }
 0xf7c   : > { %v20948_v27 = vld [vmem:[#allocation95_spill] sm:$0xff]  ;;  %v20950_v13 = vld [vmem:[#allocation236_spill] sm:$0xff] }
 0xf7d   : > { %8455 = vrot.lane.b32.xlu2 %v20938_v39, %s19614_s17  ;;  %v7031_v39 = vrot.slane %v17896_v19, 4  ;;  %v18160_v22 = vsel %vm3755_vm8, %v20948_v27, %v20947_v21  ;;  %v18165_v40 = vsel %vm3755_vm8, %v20950_v13, %v20949_v20  ;;  %v20954_v28 = vld [vmem:[#allocation59_spill] sm:$0xff]  ;;  %v8713_v21 = vsel %vm19617_vm3, %v8708_v63, %v20955_v41  ;;  %v20958_v13 = vld [vmem:[#allocation245_spill] sm:$0xff] }
 0xf7e   : > { %v8674_v57 = vsel %vm19604_vm13, %v8669_v48, %v20954_v28  ;;  %v7497_v20 = vrot.slane %v18144_v16, 4  ;;  %v20961_v48 = vld [vmem:[#allocation272_spill] sm:$0xff]  ;;  %v7036_v41 = vsel %vm4013_vm9, %v7020_v5, %v7035_v9  ;;  %vm19621_vm13 = vcmask 392192   ;;  %v20967_v9 = vld [vmem:[#allocation253_spill] sm:$0xff] }
 0xf7f   : > { %v18148_v34 = vpop.permute.xlu2 %8325  ;;  %8423 = vrot.lane.b32.xlu0 %v20945_v36, %s19606_s26  ;;  %8439 = vrot.lane.b32.xlu1 %v20946_v37, %s19610_s13  ;;  %v20951_v36 = vld [vmem:[#allocation111_spill] sm:$0xff]  ;;  %v7032_v63 = vsel %vm4013_vm9, %v17855_v51, %v7031_v39  ;;  %s19623_s26 = smov 110   ;;  %v20969_v39 = vld [vmem:[#allocation269_spill] sm:$0xff] }
 0xf80   : > { %20944 = vst [vmem:[#allocation55_spill] sm:$0xff] %v18148_v34  ;;  %v8686_v26 = vsel %vm19608_vm1, %v8681_v0, %v20951_v36  ;;  %v20952_v37 = vld [vmem:[#allocation51_spill] sm:$0xff]  ;;  %v8702_v0 = vsel %vm19612_vm4, %v8697_v35, %v20958_v13  ;;  %v20959_v36 = vld [vmem:[#allocation118_spill] sm:$0xff]  ;;  %v8679_v35 = vsel %vm19609_vm14, %v8674_v57, %v20962_v55  ;;  %v20963_v13 = vld [vmem:[#allocation96_spill] sm:$0xff]  ;;  %vm19622_vm14 = vcmask 457728  }
 0xf81   : > { %v18172_v19 = vsel %vm3755_vm8, %v20953_v18, %v20952_v37  ;;  %v18178_v27 = vpop.permute.xlu0 %8259  ;;  %v18180_v44 = vpop.permute.xlu1 %8275  ;;  %v8718_v18 = vsel %vm19616_vm11, %v8713_v21, %v20959_v36  ;;  %v7033_v37 = vrot.slane %v7020_v5, 4  ;;  %v8691_v28 = vsel %vm19613_vm2, %v8686_v26, %v20960_v7  ;;  %v20964_v36 = vld [vmem:[#allocation424_spill] sm:$0xff]  ;;  %v20965_v34 = vld [vmem:[#allocation97_spill] sm:$0xff] }
 0xf82   : > { %20956 = vst [vmem:[#allocation298_spill] sm:$0xff] %v18178_v27  ;;  %v8707_v49 = vsel %vm8705_vm6, %v8702_v0, %v20961_v48  ;;  %v7521_v25 = vrot.slane %v18172_v19, 4  ;;  %v8696_v21 = vsel %vm19611_vm15, %v8691_v28, %v20963_v13  ;;  %v18202_v26 = vsel %vm3755_vm8, %v20965_v34, %v20964_v36  ;;  %v20966_v7 = vld [vmem:[#allocation124_spill] sm:$0xff]  ;;  %v20970_v34 = vld [vmem:[#allocation90_spill] sm:$0xff]  ;;  %v20973_v36 = vld [vmem:[#allocation299_spill] sm:$0xff] }
 0xf83   : > { %20957 = vst [vmem:[#allocation127_spill] sm:$0xff] %v18180_v44  ;;  %v8684_v5 = vsel %vm19607_vm12, %v8679_v35, %v20966_v7  ;;  %v8723_v51 = vsel %vm19621_vm13, %v8718_v18, %v20967_v9  ;;  %v20968_v55 = vld [vmem:[#allocation428_spill] sm:$0xff]  ;;  %v7498_v0 = vsel %vm4013_vm9, %v7497_v20, %v18202_v26  ;;  %v8712_v28 = vsel %vm19617_vm3, %v8707_v49, %v20970_v34  ;;  %v20971_v35 = vld [vmem:[#allocation393_spill] sm:$0xff]  ;;  %v20972_v18 = vld [vmem:[#allocation254_spill] sm:$0xff] }
 0xf84   : > { %v18212_v57 = vsel %vm3755_vm8, %v20969_v39, %v20968_v55  ;;  %v7034_v48 = vsel %vm4013_vm9, %v7033_v37, %v6996_v31  ;;  %v18223_v7 = vsel %vm3755_vm8, %v20973_v36, %v20972_v18  ;;  %v20975_v9 = vld [vmem:[#allocation99_spill] sm:$0xff]  ;;  %v20976_v39 = vld [vmem:[#allocation184_spill] sm:$0xff]  ;;  %vm19620_vm12 = vcmask 424960   ;;  %v20979_v34 = vld [vmem:[#allocation429_spill] sm:$0xff] }
 0xf85   : > { %8469 = vrot.lane.b32.xlu2 %v7036_v41, %s19623_s26  ;;  %v20974_v41 = vld [vmem:[#allocation329_spill] sm:$0xff]  ;;  %v8701_v20 = vsel %vm19612_vm4, %v8696_v21, %v20976_v39  ;;  %v7522_v49 = vsel %vm4013_vm9, %v7521_v25, %v18223_v7  ;;  %v20978_v31 = vld [vmem:[#allocation203_spill] sm:$0xff]  ;;  %v8728_v18 = vsel %vm19619_vm7, %v8723_v51, %v20979_v34  ;;  %v7397_v36 = vrot.slane %v18165_v40, 4  ;;  %v20985_v51 = vld [vmem:[#allocation372_spill] sm:$0xff] }
 0xf86   : > { %v18228_v55 = vsel %vm3755_vm8, %v20975_v9, %v20974_v41  ;;  %v8689_v37 = vsel %vm19608_vm1, %v8684_v5, %v20978_v31  ;;  %v7485_v21 = vrot.slane %v18212_v57, 4  ;;  %v20980_v41 = vld [vmem:[#allocation345_spill] sm:$0xff]  ;;  %v18253_v5 = vperm.slane %v7498_v0, %v12943_v4  ;;  %v20986_v13 = vld [vmem:[#allocation356_spill] sm:$0xff]  ;;  %v20990_v0 = vld [vmem:[#allocation418_spill] sm:$0xff] }
 0xf87   : > { %v18232_v6 = vpop.permute.xlu2 %8339  ;;  %8437 = vrot.lane.b32.xlu0 %v7032_v63, %s19610_s13  ;;  %8453 = vrot.lane.b32.xlu1 %v7034_v48, %s19614_s17  ;;  %v8717_v9 = vsel %vm19616_vm11, %v8712_v28, %v20980_v41  ;;  %v20981_v63 = vld [vmem:[#allocation408_spill] sm:$0xff]  ;;  %v7509_v31 = vrot.slane %v18228_v55, 4  ;;  %v8706_v34 = vsel %vm8705_vm6, %v8701_v20, %v20985_v51  ;;  %v18261_v28 = vperm.slane %v7522_v49, %v12943_v4  ;;  %v20988_v41 = vld [vmem:[#allocation330_spill] sm:$0xff]  ;;  %s19627_s13 = smov 112   ;;  %v21029_v27 = vld [vmem:[#allocation353_spill] sm:$0xff] }
 0xf88   : > { %20977 = vst [vmem:[#allocation98_spill] sm:$0xff] %v18232_v6  ;;  %v8733_v48 = vsel %vm19620_vm12, %v8728_v18, %v20981_v63  ;;  %v8722_v6 = vsel %vm19621_vm13, %v8717_v9, %v20986_v13  ;;  %v8694_v18 = vsel %vm19613_vm2, %v8689_v37, %v20988_v41  ;;  %v20989_v63 = vld [vmem:[#allocation73_spill] sm:$0xff]  ;;  %vm19625_vm1 = vcmask 441344   ;;  %v20993_v51 = vld [vmem:[#allocation212_spill] sm:$0xff] }
 0xf89   : > { %v18248_v39 = vpop.permute.xlu0 %8273  ;;  %v18250_v25 = vpop.permute.xlu1 %8289  ;;  %20984 = vst [vmem:[#allocation312_spill] sm:$0xff] %v18253_v5  ;;  %v8699_v20 = vsel %vm19611_vm15, %v8694_v18, %v20992_v29  ;;  %v8738_v13 = vsel %vm19625_vm1, %v8733_v48, %v20993_v51  ;;  %v18277_v49 = vperm.slane %v7386_v11, %v12943_v4  ;;  %v7398_v37 = vsel %vm4013_vm9, %v7397_v36, %v18160_v22  ;;  %v20995_v29 = vld [vmem:[#allocation223_spill] sm:$0xff]  ;;  %v20996_v41 = vld [vmem:[#allocation228_spill] sm:$0xff] }
 0xf8a   : > { %20982 = vst [vmem:[#allocation135_spill] sm:$0xff] %v18248_v39  ;;  %v20991_v39 = vld [vmem:[#allocation257_spill] sm:$0xff]  ;;  %v18290_v48 = vsel %vm3755_vm8, %v20996_v41, %v20995_v29  ;;  %v7533_v11 = vrot.slane %v18253_v5, 4  ;;  %v7510_v36 = vsel %vm4013_vm9, %v7509_v31, %v20971_v35  ;;  %v20997_v18 = vld [vmem:[#allocation264_spill] sm:$0xff]  ;;  %vm19624_vm15 = vcmask 474112   ;;  %v21001_v29 = vld [vmem:[#allocation287_spill] sm:$0xff] }
 0xf8b   : > { %20983 = vst [vmem:[#allocation297_spill] sm:$0xff] %v18250_v25  ;;  %v8711_v25 = vsel %vm19617_vm3, %v8706_v34, %v20989_v63  ;;  %v18270_v59 = vsel %vm3755_vm8, %v20991_v39, %v20990_v0  ;;  %v20994_v34 = vld [vmem:[#allocation336_spill] sm:$0xff]  ;;  %v7557_v63 = vrot.slane %v18261_v28, 4  ;;  %v7404_v31 = vperm.slane %v7398_v37, %v12943_v4 }
 0xf8c   : > { %20987 = vst [vmem:[#allocation314_spill] sm:$0xff] %v18261_v28  ;;  %v7486_v9 = vsel %vm4013_vm9, %v7485_v21, %v18270_v59  ;;  %v8727_v39 = vsel %vm19619_vm7, %v8722_v6, %v20994_v34  ;;  %v8716_v21 = vsel %vm19616_vm11, %v8711_v25, %v20997_v18  ;;  %v20998_v6 = vld [vmem:[#allocation350_spill] sm:$0xff]  ;;  %v21002_v41 = vld [vmem:[#allocation308_spill] sm:$0xff]  ;;  %vm19626_vm2 = vcmask 506880  }
 0xf8d   : > { %8483 = vrot.lane.b32.xlu2 %v18106_v15, %s19627_s13  ;;  %v8704_v0 = vsel %vm19612_vm4, %v8699_v20, %v20998_v6  ;;  %v20999_v15 = vld [vmem:[#allocation222_spill] sm:$0xff]  ;;  %v18310_v25 = vperm.slane %v7486_v9, %v12943_v4  ;;  %v8732_v20 = vsel %vm19620_vm12, %v8727_v39, %v21001_v29  ;;  %v21009_v29 = vld [vmem:[#allocation380_spill] sm:$0xff]  ;;  %vm19629_vm4 = vcmask 490496  }
 0xf8e   : > { %v8743_v51 = vsel %vm19622_vm14, %v8738_v13, %v20999_v15  ;;  %v21003_v13 = vld [vmem:[#allocation382_spill] sm:$0xff] }
 0xf8f   : > { %v18302_v34 = vpop.permute.xlu2 %8353  ;;  %8451 = vrot.lane.b32.xlu0 %v18079_v47, %s19614_s17  ;;  %8467 = vrot.lane.b32.xlu1 %v18082_v12, %s19623_s26  ;;  %v8748_v18 = vsel %vm19624_vm15, %v8743_v51, %v21002_v41  ;;  %v21004_v6 = vrot.slane %v21003_v13, 4  ;;  %v18321_v47 = vperm.slane %v7510_v36, %v12943_v4  ;;  %v21005_v12 = vld [vmem:[#allocation143_spill] sm:$0xff]  ;;  %v8709_v51 = vsel %vm8705_vm6, %v8704_v0, %v21009_v29  ;;  %s19632_s17 = smov 114  }
 0xf90   : > { %21000 = vst [vmem:[#allocation33_spill] sm:$0xff] %v18302_v34  ;;  %v8721_v37 = vsel %vm19621_vm13, %v8716_v21, %v21005_v12  ;;  %v21006_v34 = vld [vmem:[#allocation157_spill] sm:$0xff]  ;;  %v21010_v41 = vld [vmem:[#allocation335_spill] sm:$0xff]  ;;  %v7534_v36 = vsel %vm4013_vm9, %v7533_v11, %v18310_v25  ;;  %v21012_v12 = vld [vmem:[#allocation230_spill] sm:$0xff] }
 0xf91   : > { %v7410_v15 = vsel %vm4013_vm9, %v21004_v6, %v18290_v48  ;;  %v8737_v9 = vsel %vm19625_vm1, %v8732_v20, %v21006_v34  ;;  %v18327_v61 = vpop.permute.xlu0 %8279  ;;  %v18329_v39 = vpop.permute.xlu1 %8295  ;;  %v8726_v44 = vsel %vm19619_vm7, %v8721_v37, %v21010_v41  ;;  %v21011_v6 = vld [vmem:[#allocation295_spill] sm:$0xff]  ;;  %v8753_v34 = vsel %vm19629_vm4, %v8748_v18, %v21012_v12  ;;  %v21017_v12 = vld [vmem:[#allocation420_spill] sm:$0xff] }
 0xf92   : > { %21007 = vst [vmem:[#allocation430_spill] sm:$0xff] %v18327_v61  ;;  %v8714_v21 = vsel %vm19617_vm3, %v8709_v51, %v21011_v6  ;;  %v7558_v20 = vsel %vm4013_vm9, %v7557_v63, %v18321_v47  ;;  %v7416_v37 = vperm.slane %v7410_v15, %v12943_v4  ;;  %v7447_v41 = vrot.slane %v7404_v31, 4  ;;  %v21015_v61 = vld [vmem:[#allocation305_spill] sm:$0xff]  ;;  %v21020_v6 = vld [vmem:[#allocation112_spill] sm:$0xff] }
 0xf93   : > { %21008 = vst [vmem:[#allocation275_spill] sm:$0xff] %v18329_v39  ;;  %v21013_v39 = vld [vmem:[#allocation71_spill] sm:$0xff]  ;;  %v8742_v11 = vsel %vm19622_vm14, %v8737_v9, %v21015_v61  ;;  %v8731_v51 = vsel %vm19620_vm12, %v8726_v44, %v21016_v14  ;;  %v7540_v63 = vperm.slane %v7534_v36, %v13098_v43  ;;  %v7363_v18 = vrot.slane %v18042_v38, 4 }
 0xf94   : > { %v21014_v0 = vrot.slane %v21013_v39, 4  ;;  %v8719_v15 = vsel %vm19616_vm11, %v8714_v21, %v21017_v12  ;;  %v7564_v61 = vperm.slane %v7558_v20, %v13098_v43  ;;  %v18364_v14 = vperm.slane %v18098_v33, %v13098_v43  ;;  %v21019_v9 = vld [vmem:[#allocation355_spill] sm:$0xff]  ;;  %v21021_v21 = vld [vmem:[#allocation365_spill] sm:$0xff] }
 0xf95   : > { %8497 = vrot.lane.b32.xlu2 %v17706_v2, %s19632_s17  ;;  %v7421_v44 = vrot.slane %v18277_v49, 4  ;;  %v8747_v36 = vsel %vm19624_vm15, %v8742_v11, %v21019_v9  ;;  %v7445_v33 = vrot.slane %v7416_v37, 4  ;;  %v21023_v20 = vld [vmem:[#allocation261_spill] sm:$0xff]  ;;  %v7448_v11 = vsel %vm4013_vm9, %v7416_v37, %v7447_v41 }
 0xf96   : > { %v7374_v29 = vsel %vm4013_vm9, %v21014_v0, %v18118_v62  ;;  %v21018_v0 = vld [vmem:[#allocation301_spill] sm:$0xff]  ;;  %vm19633_vm11 = vcmask 539648   ;;  %vm19630_vm3 = vcmask 556032   ;;  %v7581_v37 = vrot.slane %v7564_v61, 4 }
 0xf97   : > { %v8758_v5 = vsel %vm19626_vm2, %v8753_v34, %v21018_v0  ;;  %v7380_v2 = vperm.slane %v7374_v29, %v12943_v4  ;;  %8465 = vrot.lane.b32.xlu0 %v21021_v21, %s19623_s26  ;;  %v18374_v34 = vpop.permute.xlu2 %8359  ;;  %8481 = vrot.lane.b32.xlu1 %v18023_v46, %s19627_s13  ;;  %v8736_v29 = vsel %vm19625_vm1, %v8731_v51, %v21023_v20  ;;  %v21024_v12 = vld [vmem:[#allocation289_spill] sm:$0xff]  ;;  %v7583_v46 = vrot.slane %v7540_v63, 4  ;;  %v21030_v20 = vld [vmem:[#allocation172_spill] sm:$0xff] }
 0xf98   : > { %v8762_v10 = vsel %vm19628_vm0, %v8758_v5, %v21020_v6  ;;  %21022 = vst [vmem:[#allocation141_spill] sm:$0xff] %v18374_v34  ;;  %v8752_v0 = vsel %vm19629_vm4, %v8747_v36, %v21024_v12  ;;  %v21025_v9 = vld [vmem:[#allocation45_spill] sm:$0xff]  ;;  %v21031_v12 = vld [vmem:[#allocation182_spill] sm:$0xff] }
 0xf99   : > { %v8724_v5 = vsel %vm19621_vm13, %v8719_v15, %v21025_v9  ;;  %v21026_v6 = vld [vmem:[#allocation405_spill] sm:$0xff]  ;;  %v18387_v34 = vpop.permute.xlu0 %8293  ;;  %v18389_v30 = vpop.permute.xlu1 %8309  ;;  %v8767_v36 = vsel %vm19633_vm11, %v8762_v10, %v21030_v20  ;;  %v7423_v41 = vrot.slane %v7380_v2, 4  ;;  %v8757_v15 = vsel %vm19626_vm2, %v8752_v0, %v21031_v12  ;;  %v21041_v12 = vld [vmem:[#allocation271_spill] sm:$0xff] }
 0xf9a   : > { %v8741_v21 = vsel %vm19622_vm14, %v8736_v29, %v21026_v6  ;;  %21027 = vst [vmem:[#allocation125_spill] sm:$0xff] %v18387_v34  ;;  %v8729_v51 = vsel %vm19619_vm7, %v8724_v5, %v21029_v27  ;;  %v18398_v29 = vperm.slane %v7448_v11, %v13098_v43  ;;  %v7446_v9 = vsel %vm4013_vm9, %v7445_v33, %v7404_v31  ;;  %v21033_v5 = vld [vmem:[#allocation333_spill] sm:$0xff]  ;;  %v21037_v11 = vld [vmem:[#allocation334_spill] sm:$0xff] }
 0xf9b   : > { %21028 = vst [vmem:[#allocation422_spill] sm:$0xff] %v18389_v30  ;;  %v7375_v6 = vrot.slane %v18118_v62, 4  ;;  %v21032_v30 = vld [vmem:[#allocation404_spill] sm:$0xff]  ;;  %v7584_v27 = vsel %vm4013_vm9, %v7564_v61, %v7583_v46  ;;  %v7422_v10 = vsel %vm4013_vm9, %v7421_v44, %v7380_v2  ;;  %v8734_v20 = vsel %vm19620_vm12, %v8729_v51, %v21033_v5  ;;  %v21034_v34 = vld [vmem:[#allocation413_spill] sm:$0xff] }
 0xf9c   : > { %v8746_v28 = vsel %vm19624_vm15, %v8741_v21, %v21032_v30  ;;  %vm19631_vm7 = vcmask 572416   ;;  %v8772_v0 = vsel %vm19630_vm3, %v8767_v36, %v21034_v34  ;;  %v7424_v31 = vsel %vm4013_vm9, %v18277_v49, %v7423_v41  ;;  %v21035_v62 = vld [vmem:[#allocation189_spill] sm:$0xff]  ;;  %v21036_v30 = vld [vmem:[#allocation338_spill] sm:$0xff] }
 0xf9d   : > { %8503 = vrot.lane.b32.xlu2 %v7584_v27, %s19632_s17  ;;  %v8761_v33 = vsel %vm19628_vm0, %v8757_v15, %v21035_v62  ;;  %v8777_v61 = vsel %vm19631_vm7, %v8772_v0, %v21036_v30  ;;  %v7582_v2 = vsel %vm4013_vm9, %v7581_v37, %v7540_v63  ;;  %v7452_v44 = vperm.slane %v7446_v9, %v13098_v43  ;;  %v21038_v46 = vld [vmem:[#allocation37_spill] sm:$0xff]  ;;  %v21042_v9 = vld [vmem:[#allocation207_spill] sm:$0xff] }
 0xf9e   : > { %v8751_v21 = vsel %vm19629_vm4, %v8746_v28, %v21037_v11  ;;  %v8766_v34 = vsel %vm19633_vm11, %v8761_v33, %v21038_v46  ;;  %v21039_v51 = vld [vmem:[#allocation113_spill] sm:$0xff]  ;;  %v7473_v36 = vrot.slane %v18398_v29, 4  ;;  %v7428_v41 = vperm.slane %v7422_v10, %v13098_v43  ;;  %v21044_v33 = vld [vmem:[#allocation215_spill] sm:$0xff]  ;;  %v21046_v46 = vld [vmem:[#allocation394_spill] sm:$0xff] }
 0xf9f   : > { %8471 = vrot.lane.b32.xlu0 %v21039_v51, %s19623_s26  ;;  %v18425_v49 = vpop.permute.xlu2 %8373  ;;  %8487 = vrot.lane.b32.xlu1 %v7582_v2, %s19627_s13  ;;  %v21040_v63 = vld [vmem:[#allocation53_spill] sm:$0xff]  ;;  %v8756_v28 = vsel %vm19626_vm2, %v8751_v21, %v21041_v12  ;;  %vm8779_vm12 = vcmask 588800   ;;  %v18436_v15 = vsel %vm4013_vm9, %v18364_v14, %v7363_v18  ;;  %vm19634_vm13 = vcmask 605184   ;;  %s19636_s26 = smov 116  }
 0xfa0   : > { %v8739_v37 = vsel %vm19625_vm1, %v8734_v20, %v21040_v63  ;;  %v21043_v5 = vld [vmem:[#allocation85_spill] sm:$0xff]  ;;  %v18447_v20 = vperm.slane %v7424_v31, %v13098_v43  ;;  %v8771_v30 = vsel %vm19630_vm3, %v8766_v34, %v21044_v33  ;;  %v7469_v2 = vrot.slane %v7452_v44, 4 }
 0xfa1   : > { %v8744_v27 = vsel %vm19622_vm14, %v8739_v37, %v21042_v9  ;;  %v8782_v0 = vsel %vm8779_vm12, %v8777_v61, %v21043_v5  ;;  %v18442_v62 = vpop.permute.xlu0 %8307  ;;  %v18444_v10 = vpop.permute.xlu1 %8323  ;;  %v21045_v18 = vrot.slane %v18049_v3, 4  ;;  %v7361_v61 = vrot.slane %v18364_v14, 4  ;;  %v21047_v37 = vld [vmem:[#allocation256_spill] sm:$0xff]  ;;  %v21049_v9 = vld [vmem:[#allocation311_spill] sm:$0xff] }
 0xfa2   : > { %v7376_v21 = vsel %vm4013_vm9, %v21013_v39, %v7375_v6  ;;  %v8760_v51 = vsel %vm19628_vm0, %v8756_v28, %v21046_v46  ;;  %v7474_v31 = vsel %vm4013_vm9, %v7473_v36, %v18447_v20  ;;  %v7471_v63 = vrot.slane %v7428_v41, 4  ;;  %v21050_v28 = vld [vmem:[#allocation401_spill] sm:$0xff] }
 0xfa3   : > { %v18455_v11 = vsel %vm4013_vm9, %v18014_v32, %v21045_v18  ;;  %v7523_v34 = vrot.slane %v18223_v7, 4  ;;  %v8749_v3 = vsel %vm19624_vm15, %v8744_v27, %v21047_v37  ;;  %vm8789_vm14 = vcmask 621568   ;;  %v21048_v32 = vld [vmem:[#allocation249_spill] sm:$0xff]  ;;  %v21054_v37 = vld [vmem:[#allocation378_spill] sm:$0xff] }
 0xfa4   : > { %v8787_v12 = vsel %vm19634_vm13, %v8782_v0, %v21048_v32  ;;  %v7387_v14 = vrot.slane %v18128_v52, 4  ;;  %v8776_v39 = vsel %vm19631_vm7, %v8771_v30, %v21049_v9  ;;  %v7472_v7 = vsel %vm4013_vm9, %v7452_v44, %v7471_v63  ;;  %v21052_v30 = vld [vmem:[#allocation283_spill] sm:$0xff]  ;;  %v21053_v18 = vld [vmem:[#allocation397_spill] sm:$0xff]  ;;  %v21055_v32 = vld [vmem:[#allocation286_spill] sm:$0xff] }
 0xfa5   : > { %v8792_v6 = vsel %vm8789_vm14, %v8787_v12, %v17836_v1  ;;  %8517 = vrot.lane.b32.xlu2 %v7474_v31, %s19636_s26  ;;  %v7524_v36 = vsel %vm4013_vm9, %v18172_v19, %v7523_v34  ;;  %v8765_v27 = vsel %vm19633_vm11, %v8760_v51, %v21050_v28  ;;  %v8781_v52 = vsel %vm8779_vm12, %v8776_v39, %v17649_v42  ;;  %v21051_v1 = vld [vmem:[#allocation235_spill] sm:$0xff] }
 0xfa6   : > { %v7470_v5 = vsel %vm4013_vm9, %v7469_v2, %v7428_v41  ;;  %v7388_v0 = vsel %vm4013_vm9, %v18087_v54, %v7387_v14  ;;  %v8754_v33 = vsel %vm19629_vm4, %v8749_v3, %v21051_v1  ;;  %v8770_v44 = vsel %vm19630_vm3, %v8765_v27, %v21052_v30  ;;  %v21056_v14 = vld [vmem:[#allocation126_spill] sm:$0xff]  ;;  %v21058_v9 = vld [vmem:[#allocation199_spill] sm:$0xff] }
 0xfa7   : > { %vm8794_vm15 = vcmask 637952   ;;  %8485 = vrot.lane.b32.xlu0 %v7470_v5, %s19627_s13  ;;  %v18490_v19 = vpop.permute.xlu2 %8387  ;;  %8501 = vrot.lane.b32.xlu1 %v7472_v7, %s19632_s17  ;;  %v7411_v42 = vrot.slane %v18290_v48, 4  ;;  %v8759_v41 = vsel %vm19626_vm2, %v8754_v33, %v21053_v18  ;;  %vm19635_vm1 = vcmask 654336   ;;  %s19638_s13 = smov 118  }
 0xfa8   : > { %v8797_v54 = vsel %vm8794_vm15, %v8792_v6, %v17838_v58  ;;  %v7499_v2 = vrot.slane %v18202_v26, 4  ;;  %v18500_v46 = vperm.slane %v7524_v36, %v12943_v4  ;;  %v8786_v51 = vsel %vm19634_vm13, %v8781_v52, %v17651_v60  ;;  %v21059_v36 = vld [vmem:[#allocation195_spill] sm:$0xff] }
 0xfa9   : > { %v18504_v31 = vpop.permute.xlu0 %8321  ;;  %v18506_v63 = vpop.permute.xlu1 %8337  ;;  %v7362_v48 = vsel %vm4013_vm9, %v7361_v61, %v18042_v38  ;;  %v18511_v34 = vperm.slane %v7376_v21, %v12943_v4  ;;  %v18514_v58 = vperm.slane %v7388_v0, %v12943_v4  ;;  %v7399_v26 = vrot.slane %v18160_v22, 4  ;;  %v21061_v52 = vld [vmem:[#allocation279_spill] sm:$0xff] }
 0xfaa   : > { %v8775_v3 = vsel %vm19631_vm7, %v8770_v44, %v21054_v37  ;;  %v7500_v60 = vsel %vm4013_vm9, %v18144_v16, %v7499_v2  ;;  %v8763_v12 = vsel %vm19628_vm0, %v8759_v41, %v21055_v32  ;;  %vm8804_vm2 = vcmask 670720   ;;  %v21062_v41 = vld [vmem:[#allocation406_spill] sm:$0xff]  ;;  %v21067_v32 = vld [vmem:[#allocation237_spill] sm:$0xff] }
 0xfab   : > { %v8802_v38 = vsel %vm19635_vm1, %v8797_v54, %v21056_v14  ;;  %v7412_v61 = vsel %vm4013_vm9, %v21003_v13, %v7411_v42  ;;  %v21057_v21 = vrot.slane %v20971_v35, 4  ;;  %v8791_v39 = vsel %vm8789_vm14, %v8786_v51, %v21058_v9  ;;  %v21063_v54 = vld [vmem:[#allocation125_spill] sm:$0xff]  ;;  %v21064_v51 = vld [vmem:[#allocation314_spill] sm:$0xff] }
 0xfac   : > { %v8807_v16 = vsel %vm8804_vm2, %v8802_v38, %v18092_v8  ;;  %v7487_v6 = vrot.slane %v18270_v59, 4  ;;  %v7569_v7 = vrot.slane %v18500_v46, 4  ;;  %v8780_v28 = vsel %vm8779_vm12, %v8775_v3, %v21059_v36  ;;  %v21066_v3 = vld [vmem:[#allocation298_spill] sm:$0xff]  ;;  %v21069_v38 = vld [vmem:[#allocation107_spill] sm:$0xff] }
 0xfad   : > { %v7512_v22 = vsel %vm4013_vm9, %v18228_v55, %v21057_v21  ;;  %v8796_v13 = vsel %vm8794_vm15, %v8791_v39, %v17891_v17  ;;  %8531 = vrot.lane.b32.xlu2 %v18436_v15, %s19638_s13  ;;  %v18544_v35 = vperm.slane %v7500_v60, %v12943_v4  ;;  %v21060_v55 = vld [vmem:[#allocation193_spill] sm:$0xff]  ;;  %v8785_v59 = vsel %vm19634_vm13, %v8780_v28, %v17699_v53  ;;  %v21072_v39 = vld [vmem:[#allocation422_spill] sm:$0xff]  ;;  %v21073_v36 = vld [vmem:[#allocation127_spill] sm:$0xff] }
 0xfae   : > { %v8768_v8 = vsel %vm19633_vm11, %v8763_v12, %v21060_v55  ;;  %vm19653_vm0 = vcmask 687104   ;;  %v18551_v27 = vperm.slane %v7512_v22, %v12943_v4  ;;  %vm19637_vm4 = vcmask 703488   ;;  %v21068_v12 = vld [vmem:[#allocation155_spill] sm:$0xff]  ;;  %v21071_v22 = vld [vmem:[#allocation361_spill] sm:$0xff] }
 0xfaf   : > { %v8773_v17 = vsel %vm19630_vm3, %v8768_v8, %v21061_v52  ;;  %v8812_v5 = vsel %vm19653_vm0, %v8807_v16, %v18094_v45  ;;  %8499 = vrot.lane.b32.xlu0 %v18455_v11, %s19632_s17  ;;  %v18559_v15 = vpop.permute.xlu2 %8401  ;;  %8515 = vrot.lane.b32.xlu1 %v7362_v48, %s19636_s26  ;;  %v7433_v53 = vrot.slane %v18514_v58, 4  ;;  %v18564_v0 = vperm.slane %v7412_v61, %v12943_v4  ;;  %s19639_s17 = smov 120   ;;  %v21070_v61 = vld [vmem:[#allocation312_spill] sm:$0xff]  ;;  %v21075_v8 = vld [vmem:[#allocation134_spill] sm:$0xff] }
 0xfb0   : > { %v7400_v1 = vsel %vm4013_vm9, %v18165_v40, %v7399_v26  ;;  %v8801_v33 = vsel %vm19635_vm1, %v8796_v13, %v17893_v56  ;;  %v7488_v45 = vsel %vm4013_vm9, %v18212_v57, %v7487_v6  ;;  %v7559_v11 = vrot.slane %v18321_v47, 4  ;;  %v21065_v26 = vld [vmem:[#allocation142_spill] sm:$0xff]  ;;  %v21076_v52 = vld [vmem:[#allocation160_spill] sm:$0xff] }
 0xfb1   : > { %v8790_v30 = vsel %vm8789_vm14, %v8785_v59, %v17701_v50  ;;  %v18575_v44 = vpop.permute.xlu0 %8327  ;;  %v18577_v42 = vpop.permute.xlu1 %8343  ;;  %v7570_v18 = vsel %vm4013_vm9, %v7569_v7, %v18551_v27  ;;  %v7535_v40 = vrot.slane %v18310_v25, 4  ;;  %v8778_v56 = vsel %vm19631_vm7, %v8773_v17, %v21062_v41  ;;  %v21074_v13 = vld [vmem:[#allocation150_spill] sm:$0xff] }
 0xfb2   : > { %vm19651_vm3 = vcmask 719872   ;;  %v8817_v57 = vsel %vm19637_vm4, %v8812_v5, %v17877_v23  ;;  %v7545_v47 = vrot.slane %v18544_v35, 4  ;;  %v8806_v50 = vsel %vm8804_vm2, %v8801_v33, %v17684_v24 }
 0xfb3   : > { %v8822_v2 = vsel %vm19651_vm3, %v8817_v57, %v21063_v54  ;;  %v7560_v48 = vsel %vm4013_vm9, %v21064_v51, %v7559_v11  ;;  %v18594_v25 = vperm.slane %v7488_v45, %v12943_v4  ;;  %v8795_v37 = vsel %vm8794_vm15, %v8790_v30, %v21065_v26  ;;  %v21077_v11 = vld [vmem:[#allocation131_spill] sm:$0xff]  ;;  %v21079_v57 = vld [vmem:[#allocation114_spill] sm:$0xff] }
 0xfb4   : > { %v8811_v23 = vsel %vm19653_vm0, %v8806_v50, %v21066_v3  ;;  %v18601_v60 = vperm.slane %v7570_v18, %v13098_v43  ;;  %v8783_v24 = vsel %vm8779_vm12, %v8778_v56, %v21067_v32  ;;  %v8800_v14 = vsel %vm19635_vm1, %v8795_v37, %v21068_v12  ;;  %v21081_v37 = vld [vmem:[#allocation360_spill] sm:$0xff] }
 0xfb5   : > { %vm19650_vm7 = vcmask 736256   ;;  %8545 = vrot.lane.b32.xlu2 %v21069_v38, %s19639_s17  ;;  %v7536_v21 = vsel %vm4013_vm9, %v21070_v61, %v7535_v40  ;;  %v8788_v9 = vsel %vm19634_vm13, %v8783_v24, %v21071_v22  ;;  %vm19643_vm11 = vcmask 752640   ;;  %v21078_v40 = vld [vmem:[#allocation55_spill] sm:$0xff] }
 0xfb6   : > { %v8827_v16 = vsel %vm19650_vm7, %v8822_v2, %v21072_v39  ;;  %v7568_v6 = vperm.slane %v7560_v48, %v13098_v43  ;;  %v18617_v7 = vperm.slane %v7400_v1, %v12943_v4  ;;  %v8816_v28 = vsel %vm19637_vm4, %v8811_v23, %v21073_v36  ;;  %v21080_v2 = vld [vmem:[#allocation363_spill] sm:$0xff]  ;;  %v21084_v39 = vld [vmem:[#allocation297_spill] sm:$0xff] }
 0xfb7   : > { %8513 = vrot.lane.b32.xlu0 %v21074_v13, %s19636_s26  ;;  %v18623_v55 = vpop.permute.xlu2 %8407  ;;  %8529 = vrot.lane.b32.xlu1 %v21075_v8, %s19638_s13  ;;  %v7546_v59 = vsel %vm4013_vm9, %v7545_v47, %v18594_v25  ;;  %v8805_v17 = vsel %vm8804_vm2, %v8800_v14, %v21076_v52  ;;  %v7589_v5 = vrot.slane %v18601_v60, 4  ;;  %v7544_v1 = vperm.slane %v7536_v21, %v13098_v43  ;;  %v21082_v23 = vld [vmem:[#allocation135_spill] sm:$0xff]  ;;  %v21083_v14 = vld [vmem:[#allocation110_spill] sm:$0xff] }
 0xfb8   : > { %v7434_v33 = vsel %vm4013_vm9, %v7433_v53, %v18511_v34  ;;  %v7457_v45 = vrot.slane %v18564_v0, 4  ;;  %v8793_v30 = vsel %vm8789_vm14, %v8788_v9, %v21077_v11  ;;  %vm19640_vm13 = vcmask 769024   ;;  %v21086_v8 = vld [vmem:[#allocation98_spill] sm:$0xff] }
 0xfb9   : > { %v8342_v18 = vpop.permute.xlu0 %8341  ;;  %v8832_v41 = vsel %vm19643_vm11, %v8827_v16, %v21078_v40  ;;  %v18640_v56 = vpop.permute.xlu1 %8357  ;;  %v8821_v47 = vsel %vm19651_vm3, %v8816_v28, %v21079_v57  ;;  %v18648_v53 = vperm.slane %v7546_v59, %v13098_v43  ;;  %v7585_v54 = vrot.slane %v7568_v6, 4  ;;  %v21085_v28 = vld [vmem:[#allocation351_spill] sm:$0xff]  ;;  %v21087_v52 = vld [vmem:[#allocation322_spill] sm:$0xff] }
 0xfba   : > { %v18645_v50 = vsel %vm19640_vm13, %v8832_v41, %v8342_v18  ;;  %v8810_v51 = vsel %vm19653_vm0, %v8805_v17, %v21080_v2  ;;  %v8826_v48 = vsel %vm19650_vm7, %v8821_v47, %v18442_v62  ;;  %v7458_v26 = vsel %vm4013_vm9, %v7457_v45, %v18617_v7  ;;  %v21088_v45 = vld [vmem:[#allocation42_spill] sm:$0xff] }
 0xfbb   : > { %v8798_v3 = vsel %vm8794_vm15, %v8793_v30, %v21081_v37  ;;  %v8815_v32 = vsel %vm19637_vm4, %v8810_v51, %v21082_v23  ;;  %v7590_v24 = vsel %vm4013_vm9, %v7589_v5, %v18648_v53  ;;  %v7587_v12 = vrot.slane %v7544_v1, 4  ;;  %v21089_v18 = vld [vmem:[#allocation430_spill] sm:$0xff]  ;;  %v21093_v23 = vld [vmem:[#allocation33_spill] sm:$0xff] }
 0xfbc   : > { %v8803_v38 = vsel %vm19635_vm1, %v8798_v3, %v21083_v14  ;;  %v7440_v62 = vperm.slane %v7434_v33, %v13098_v43  ;;  %v8831_v61 = vsel %vm19643_vm11, %v8826_v48, %v18444_v10  ;;  %v7586_v21 = vsel %vm4013_vm9, %v7585_v54, %v7544_v1  ;;  %v21090_v51 = vld [vmem:[#allocation178_spill] sm:$0xff]  ;;  %v21091_v48 = vld [vmem:[#allocation275_spill] sm:$0xff] }
 0xfbd   : > { %8551 = vrot.lane.b32.xlu2 %v7590_v24, %s19639_s17  ;;  %v7588_v22 = vsel %vm4013_vm9, %v7568_v6, %v7587_v12  ;;  %v7464_v9 = vperm.slane %v7458_v26, %v13098_v43  ;;  %v8820_v16 = vsel %vm19651_vm3, %v8815_v32, %v21084_v39  ;;  %v8808_v13 = vsel %vm8804_vm2, %v8803_v38, %v21085_v28  ;;  %v21094_v24 = vld [vmem:[#allocation317_spill] sm:$0xff] }
 0xfbe   : > { %vm19642_vm1 = vcmask 785408   ;;  %v8836_v59 = vsel %vm19640_vm13, %v8831_v61, %v21086_v8  ;;  %v8825_v17 = vsel %vm19650_vm7, %v8820_v16, %v21087_v52  ;;  %v7479_v1 = vrot.slane %v7440_v62, 4 }
 0xfbf   : > { %8519 = vrot.lane.b32.xlu0 %v7586_v21, %s19636_s26  ;;  %v18674_v36 = vpop.permute.xlu2 %8421  ;;  %8535 = vrot.lane.b32.xlu1 %v7588_v22, %s19638_s13  ;;  %v7477_v33 = vrot.slane %v7464_v9, 4  ;;  %v8813_v11 = vsel %vm19653_vm0, %v8808_v13, %v21088_v45  ;;  %v8830_v30 = vsel %vm19643_vm11, %v8825_v17, %v18504_v31  ;;  %v7475_v57 = vrot.slane %v18447_v20, 4  ;;  %s11148_s26 = smov 122   ;;  %v21092_v20 = vld [vmem:[#allocation373_spill] sm:$0xff]  ;;  %v21096_v21 = vld [vmem:[#allocation376_spill] sm:$0xff]  ;;  %v21098_v13 = vld [vmem:[#allocation390_spill] sm:$0xff] }
 0xfc0   : > { %v8818_v40 = vsel %vm19637_vm4, %v8813_v11, %v21089_v18  ;;  %v7480_v41 = vsel %vm4013_vm9, %v7464_v9, %v7479_v1  ;;  %v8835_v47 = vsel %vm19640_vm13, %v8830_v30, %v18506_v63  ;;  %v7211_v31 = vrot.slane %v21090_v51, 4  ;;  %v21097_v9 = vld [vmem:[#allocation388_spill] sm:$0xff]  ;;  %v21100_v17 = vld [vmem:[#allocation141_spill] sm:$0xff]  ;;  %v21101_v18 = vld [vmem:[#allocation331_spill] sm:$0xff] }
 0xfc1   : > { %v8356_v10 = vpop.permute.xlu0 %8355  ;;  %v18681_v6 = vpop.permute.xlu1 %8371  ;;  %v7476_v54 = vsel %vm4013_vm9, %v18398_v29, %v7475_v57  ;;  %v7478_v2 = vsel %vm4013_vm9, %v7477_v33, %v7440_v62  ;;  %v8823_v26 = vsel %vm19651_vm3, %v8818_v40, %v21091_v48  ;;  %v7235_v3 = vrot.slane %v21092_v20, 4  ;;  %v21095_v62 = vld [vmem:[#allocation147_spill] sm:$0xff] }
 0xfc2   : > { %v18686_v5 = vsel %vm19642_vm1, %v8836_v59, %v8356_v10  ;;  %vm19641_vm4 = vcmask 801792   ;;  %v8840_v29 = vsel %vm19642_vm1, %v8835_v47, %v21093_v23  ;;  %v8828_v12 = vsel %vm19650_vm7, %v8823_v26, %v21094_v24  ;;  %v10816_v51 = vld [vmem:[%s11355_s7 + $0x18] sm:$0xff] }
 0xfc3   : > { %v8833_v38 = vsel %vm19643_vm11, %v8828_v12, %v18575_v44  ;;  %v7212_v61 = vsel %vm4013_vm9, %v21095_v62, %v7211_v31  ;;  %v7236_v22 = vsel %vm4013_vm9, %v21096_v21, %v7235_v3  ;;  %v21099_v44 = vld [vmem:[#allocation389_spill] sm:$0xff]  ;;  %v7547_v8 = vrot.slane %v18594_v25, 4  ;;  %v10817_v12 = vld [vmem:[%s11355_s7] sm:$0xff]  ;;  %s21125_s7 = smov 56  }
 0xfc4   : > { %v8838_v39 = vsel %vm19640_vm13, %v8833_v38, %v18577_v42  ;;  %v7220_v16 = vperm.slane %v7212_v61, %v13098_v43  ;;  %v7244_v28 = vperm.slane %v7236_v22, %v13098_v43  ;;  %v7571_v59 = vrot.slane %v18551_v27, 4 }
 0xfc5   : > { %8565 = vrot.lane.b32.xlu2 %v7480_v41, %s11148_s26  ;;  %v8843_v42 = vsel %vm19642_vm1, %v8838_v39, %v21100_v17  ;;  %v7548_v30 = vsel %vm4013_vm9, %v18544_v35, %v7547_v8  ;;  %v7255_v40 = vrot.slane %v21101_v18, 4  ;;  %v21102_v41 = vld [vmem:[#allocation75_spill] sm:$0xff]  ;;  %v8842_v47 = vsel %vm19642_vm1, %v18645_v50, %v18640_v56 }
 0xfc6   : > { %v7259_v45 = vrot.slane %v7220_v16, 4  ;;  %v7257_v11 = vrot.slane %v7244_v28, 4  ;;  %v7572_v27 = vsel %vm4013_vm9, %v18500_v46, %v7571_v59  ;;  %v7556_v35 = vperm.slane %v7548_v30, %v13098_v43 }
 0xfc7   : > { %8533 = vrot.lane.b32.xlu0 %v7476_v54, %s19638_s13  ;;  %v18706_v37 = vpop.permute.xlu2 %8435  ;;  %8549 = vrot.lane.b32.xlu1 %v7478_v2, %s19639_s17  ;;  %s19646_s13 = smov 124   ;;  %v7256_v57 = vsel %vm4013_vm9, %v21102_v41, %v7255_v40  ;;  %v7580_v2 = vperm.slane %v7572_v27, %v13098_v43  ;;  %v7459_v46 = vrot.slane %v18617_v7, 4  ;;  %v9019_v31 = vrot.slane %v10816_v51, 6 }
 0xfc8   : > { %v7260_v25 = vsel %vm4013_vm9, %v7244_v28, %v7259_v45  ;;  %v7258_v54 = vsel %vm4013_vm9, %v7257_v11, %v7220_v16  ;;  %vm19644_vm13 = vcmask 818176   ;;  %v8847_v56 = vsel %vm19641_vm4, %v8842_v47, %v18425_v49  ;;  %v21104_v11 = vld [vmem:[#allocation94_spill] sm:$0xff] }
 0xfc9   : > { %v8370_v63 = vpop.permute.xlu0 %8369  ;;  %v18712_v32 = vpop.permute.xlu1 %8385  ;;  %v7595_v3 = vrot.slane %v7556_v35, 4  ;;  %v7435_v7 = vrot.slane %v18511_v34, 4  ;;  %v7460_v23 = vsel %vm4013_vm9, %v18564_v0, %v7459_v46  ;;  %v7591_v24 = vrot.slane %v18648_v53, 4  ;;  %v21107_v46 = vld [vmem:[#allocation28_spill] sm:$0xff] }
 0xfca   : > { %v18717_v14 = vsel %vm19641_vm4, %v8840_v29, %v8370_v63  ;;  %v7593_v63 = vrot.slane %v7580_v2, 4  ;;  %v18775_v38 = vsel %vm8965_vm5, %v10817_v12, %v9019_v31  ;;  %v8846_v34 = vsel %vm19641_vm4, %v18686_v5, %v18681_v6 }
 0xfcb   : > { %v7596_v29 = vsel %vm4013_vm9, %v7580_v2, %v7595_v3  ;;  %v7436_v49 = vsel %vm4013_vm9, %v18514_v58, %v7435_v7  ;;  %v7592_v0 = vsel %vm4013_vm9, %v18601_v60, %v7591_v24  ;;  %v7468_v53 = vperm.slane %v7460_v23, %v13098_v43  ;;  %v21106_v2 = vld [vmem:[#allocation32_spill] sm:$0xff]  ;;  %v21109_v7 = vld [vmem:[#allocation27_spill] sm:$0xff] }
 0xfcc   : > { %v7594_v62 = vsel %vm4013_vm9, %v7593_v63, %v7556_v35  ;;  %v7444_v61 = vperm.slane %v7436_v49, %v13098_v43  ;;  %v18791_v21 = vperm.slane %v18775_v38, 0  ;;  %vm19645_vm5 = vcmask 834560   ;;  %v21110_v23 = vld [vmem:[#allocation31_spill] sm:$0xff] }
 0xfcd   : > { %8579 = vrot.lane.b32.xlu2 %v21097_v9, %s19646_s13  ;;  %v8851_v6 = vsel %vm19644_vm13, %v8846_v34, %v18490_v19  ;;  %vm19649_vm1 = vcmask 850944   ;;  %v7481_v22 = vrot.slane %v7468_v53, 4  ;;  %vm19647_vm11 = vcmask 883712   ;;  %v21111_v34 = vld [vmem:[#allocation25_spill] sm:$0xff] }
 0xfce   : > { %v7483_v16 = vrot.slane %v7444_v61, 4  ;;  %vm19657_vm7 = vcmask 982016   ;;  %vm19656_vm3 = vcmask 998400   ;;  %vm19655_vm0 = vcmask 1014784  }
 0xfcf   : > { %8547 = vrot.lane.b32.xlu0 %v21098_v13, %s19639_s17  ;;  %8563 = vrot.lane.b32.xlu1 %v21099_v44, %s11148_s26  ;;  %v18735_v10 = vpop.permute.xlu2 %8449  ;;  %s11150_s17 = smov 126   ;;  %v8850_v13 = vsel %vm19644_vm13, %v18717_v14, %v18712_v32  ;;  %v7482_v19 = vsel %vm4013_vm9, %v7481_v22, %v7444_v61  ;;  %v21103_v14 = vld [vmem:[#allocation29_spill] sm:$0xff] }
 0xfd0   : > { %v7484_v44 = vsel %vm4013_vm9, %v7468_v53, %v7483_v16  ;;  %v8855_v59 = vsel %vm19645_vm5, %v8850_v13, %v18559_v15 }
 0xfd1   : > { %v8376_v52 = vpop.permute.xlu0 %8375  ;;  %v18741_v1 = vpop.permute.xlu1 %8391 }
 0xfd2   : > { %v18744_v33 = vsel %vm19641_vm4, %v8843_v42, %v8376_v52  ;;  %vm19648_vm4 = vcmask 867328  }
 0xfd3   : > { %v8853_v42 = vsel %vm19644_vm13, %v18744_v33, %v18741_v1  ;;  %v21105_v33 = vld [vmem:[#allocation26_spill] sm:$0xff] }
 0xfd4   : > { %v8858_v30 = vsel %vm19645_vm5, %v8853_v42, %v18623_v55 }
 0xfd5   : > { %8593 = vrot.lane.b32.xlu2 %v7260_v25, %s11150_s17 }
 0xfd7   : > { %8561 = vrot.lane.b32.xlu0 %v7256_v57, %s11148_s26  ;;  %8577 = vrot.lane.b32.xlu1 %v7258_v54, %s19646_s13  ;;  %v8456_v26 = vpop.permute.xlu2 %8455 }
 0xfd9   : > { %v8390_v48 = vpop.permute.xlu0 %8389  ;;  %v8406_v50 = vpop.permute.xlu1 %8405 }
 0xfda   : > { %v8852_v20 = vsel %vm19644_vm13, %v8847_v56, %v8390_v48  ;;  %vm19652_vm13 = vcmask 900096  }
 0xfdb   : > { %v8857_v1 = vsel %vm19645_vm5, %v8852_v20, %v8406_v50 }
 0xfdc   : > { %v8862_v55 = vsel %vm19649_vm1, %v8857_v1, %v18674_v36 }
 0xfdd   : > { %8599 = vrot.lane.b32.xlu2 %v7596_v29, %s11150_s17  ;;  %v9071_v29 = vperm.slane %v18775_v38, 1 }
 0xfdf   : > { %8567 = vrot.lane.b32.xlu0 %v7592_v0, %s11148_s26  ;;  %8583 = vrot.lane.b32.xlu1 %v7594_v62, %s19646_s13  ;;  %v8470_v39 = vpop.permute.xlu2 %8469 }
 0xfe1   : > { %v8404_v58 = vpop.permute.xlu0 %8403  ;;  %v8420_v5 = vpop.permute.xlu1 %8419 }
 0xfe2   : > { %v8856_v60 = vsel %vm19645_vm5, %v8851_v6, %v8404_v58  ;;  %vm8879_vm5 = vcmask 916480   ;;  %v9015_v6 = vpop.f32.mrf.mxu3 }
 0xfe3   : > { %v8861_v9 = vsel %vm19649_vm1, %v8856_v60, %v8420_v5  ;;  %v10818_v60 = vld [vmem:[%s19692_s22] ss:$0 sm:$0xff] }
 0xfe4   : > { %v8866_v28 = vsel %vm19648_vm4, %v8861_v9, %v18706_v37  ;;  %v9016_v22 = vadd.f32 %v10818_v60, %v9015_v6 }
 0xfe5   : > { %9039 = vperm.xlu2 %10780, %v18791_v21  }
 0xfe6   : > { %v9018_v9 = vmax.f32 %v9016_v22, 0.0 }
 0xfe7   : > { %8581 = vrot.lane.b32.xlu0 %v7482_v19, %s19646_s13  ;;  %8597 = vrot.lane.b32.xlu1 %v7484_v44, %s11150_s17  ;;  %v8484_v45 = vpop.permute.xlu2 %8483  ;;  %s18917_s13 = scalar_lea.vmem [#allocation11], %s10143_s29  ;;  %s21112_s29 = smov 24  }
 0xfe8   : > { %v18882_v13 = vperm.slane %v9018_v9, 0 }
 0xfe9   : > { %v8418_v8 = vpop.permute.xlu0 %8417  ;;  %v8434_v52 = vpop.permute.xlu1 %8433 }
 0xfea   : > { %v8860_v37 = vsel %vm19649_vm1, %v8855_v59, %v8418_v8 }
 0xfeb   : > { %v8865_v17 = vsel %vm19648_vm4, %v8860_v37, %v8434_v52 }
 0xfec   : > { %v18813_v32 = vsel %vm19647_vm11, %v8865_v17, %v18735_v10 }
 0xfed   : > { %10782 = vset.pattern.permute.xlu2 %v21103_v14 }
 0xfef   : > { %8595 = vrot.lane.b32.xlu0 %v21104_v11, %s11150_s17  ;;  %9033 = vperm.xlu1 %10779, %v18791_v21   ;;  %v18833_v25 = vpop.permute.xlu2 %8497  ;;  %v18898_v11 = vperm.slane %v9018_v9, 1 }
 0xff1   : > { %v8424_v15 = vpop.permute.xlu0 %8423  ;;  %v8440_v18 = vpop.permute.xlu1 %8439 }
 0xff2   : > { %v8863_v10 = vsel %vm19649_vm1, %v8858_v30, %v8424_v15  ;;  %vm19658_vm1 = vcmask 965632  }
 0xff3   : > { %v8868_v40 = vsel %vm19648_vm4, %v8863_v10, %v8440_v18 }
 0xff4   : > { %v18827_v27 = vsel %vm19647_vm11, %v8868_v40, %v8456_v26  ;;  %v21108_v26 = vld [vmem:[#allocation30_spill] sm:$0xff] }
 0xff5   : > { %9051 = vperm.xlu2 %10782, %v18791_v21  }
 0xff7   : > { %9027 = vperm.xlu0 %10774, %v18791_v21   ;;  %10781 = vset.pattern.permute.xlu1 %v21105_v33  ;;  %v18845_v48 = vpop.permute.xlu2 %8503 }
 0xff9   : > { %v8438_v41 = vpop.permute.xlu0 %8437  ;;  %v8454_v57 = vpop.permute.xlu1 %8453 }
 0xffa   : > { %v8867_v47 = vsel %vm19648_vm4, %v8862_v55, %v8438_v41  ;;  %vm8889_vm4 = vcmask 949248  }
 0xffb   : > { %v8872_v54 = vsel %vm19647_vm11, %v8867_v47, %v8454_v57 }
 0xffc   : > { %v18840_v35 = vsel %vm19652_vm13, %v8872_v54, %v8470_v39 }
 0xffd   : > { %10785 = vset.pattern.permute.xlu2 %v21106_v2 }
 0xfff   : > { %10783 = vset.pattern.permute.xlu0 %v21107_v46  ;;  %9045 = vperm.xlu1 %10781, %v18791_v21   ;;  %v18855_v63 = vpop.permute.xlu2 %8517 }
0x1001   : > { %v8452_v51 = vpop.permute.xlu0 %8451  ;;  %v8468_v31 = vpop.permute.xlu1 %8467 }
0x1002   : > { %v8871_v36 = vsel %vm19647_vm11, %v8866_v28, %v8452_v51  ;;  %vm8884_vm11 = vcmask 932864  }
0x1003   : > { %v8876_v56 = vsel %vm19652_vm13, %v8871_v36, %v8468_v31 }
0x1004   : > { %v18850_v50 = vsel %vm8879_vm5, %v8876_v56, %v8484_v45 }
0x1005   : > { %9069 = vperm.xlu2 %10785, %v18791_v21  }
0x1007   : > { %9057 = vperm.xlu0 %10783, %v18791_v21   ;;  %10784 = vset.pattern.permute.xlu1 %v21108_v26  ;;  %v18861_v49 = vpop.permute.xlu2 %8531 }
0x1009   : > { %v8466_v20 = vpop.permute.xlu0 %8465  ;;  %v8482_v3 = vpop.permute.xlu1 %8481 }
0x100a   : > { %v8875_v8 = vsel %vm19652_vm13, %v18813_v32, %v8466_v20 }
0x100b   : > { %v8880_v52 = vsel %vm8879_vm5, %v8875_v8, %v8482_v3 }
0x100c   : > { %v8885_v42 = vsel %vm8884_vm11, %v8880_v52, %v18833_v25 }
0x100d   : > { %10787 = vset.pattern.permute.xlu2 %v21109_v7 }
0x100f   : > { %10788 = vset.pattern.permute.xlu0 %v21110_v23  ;;  %9063 = vperm.xlu1 %10784, %v18791_v21   ;;  %v8546_v53 = vpop.permute.xlu2 %8545 }
0x1011   : > { %v8472_v24 = vpop.permute.xlu0 %8471  ;;  %v8488_v12 = vpop.permute.xlu1 %8487 }
0x1012   : > { %v8878_v32 = vsel %vm19652_vm13, %v18827_v27, %v8472_v24  ;;  %vm19654_vm13 = vcmask 1031168  }
0x1013   : > { %v8883_v30 = vsel %vm8879_vm5, %v8878_v32, %v8488_v12 }
0x1014   : > { %v8888_v1 = vsel %vm8884_vm11, %v8883_v30, %v18845_v48 }
0x1015   : > { %9082 = vperm.xlu2 %10787, %v9071_v29  }
0x1017   : > { %9088 = vperm.xlu0 %10788, %v9071_v29   ;;  %10786 = vset.pattern.permute.xlu1 %v21111_v34  ;;  %v8552_v5 = vpop.permute.xlu2 %8551 }
0x1019   : > { %v18864_v0 = vpop.permute.xlu0 %8485  ;;  %v18866_v62 = vpop.permute.xlu1 %8501 }
0x101a   : > { %v8882_v57 = vsel %vm8879_vm5, %v18840_v35, %v18864_v0 }
0x101b   : > { %v8887_v51 = vsel %vm8884_vm11, %v8882_v57, %v18866_v62 }
0x101c   : > { %v8892_v36 = vsel %vm8889_vm4, %v8887_v51, %v18855_v63 }
0x101d   : > { %10790 = vset.pattern.permute.xlu2 %v21103_v14 }
0x101f   : > { %10793 = vset.pattern.permute.xlu0 %v21106_v2  ;;  %9076 = vperm.xlu1 %10786, %v9071_v29   ;;  %v18880_v28 = vpop.permute.xlu2 %8565 }
0x1021   : > { %v18870_v61 = vpop.permute.xlu0 %8499  ;;  %v18872_v38 = vpop.permute.xlu1 %8515 }
0x1025   : > { %9100 = vperm.xlu2 %10790, %v9071_v29  }
0x1027   : > { %9118 = vperm.xlu0 %10793, %v9071_v29   ;;  %10789 = vset.pattern.permute.xlu1 %v21105_v33  ;;  %v18889_v59 = vpop.permute.xlu2 %8579 }
0x1029   : > { %v8514_v21 = vpop.permute.xlu0 %8513  ;;  %v8530_v58 = vpop.permute.xlu1 %8529 }
0x102a   : > { %v8890_v45 = vsel %vm8889_vm4, %v8885_v42, %v8514_v21 }
0x102b   : > { %v8895_v15 = vsel %vm19658_vm1, %v8890_v45, %v8530_v58 }
0x102c   : > { %v8900_v40 = vsel %vm19657_vm7, %v8895_v15, %v8546_v53 }
0x102d   : > { %10792 = vset.pattern.permute.xlu2 %v21108_v26 }
0x102f   : > { %10798 = vset.pattern.permute.xlu0 %v21103_v14  ;;  %9094 = vperm.xlu1 %10789, %v9071_v29   ;;  %v8594_v18 = vpop.permute.xlu2 %8593 }
0x1031   : > { %v8520_v39 = vpop.permute.xlu0 %8519  ;;  %v8536_v16 = vpop.permute.xlu1 %8535 }
0x1032   : > { %v8893_v41 = vsel %vm8889_vm4, %v8888_v1, %v8520_v39 }
0x1033   : > { %v8898_v54 = vsel %vm19658_vm1, %v8893_v41, %v8536_v16 }
0x1034   : > { %v8903_v31 = vsel %vm19657_vm7, %v8898_v54, %v8552_v5 }
0x1035   : > { %9112 = vperm.xlu2 %10792, %v9071_v29  }
0x1037   : > { %9149 = vperm.xlu0 %10798, %v18882_v13   ;;  %10791 = vset.pattern.permute.xlu1 %v21107_v46  ;;  %v8600_v20 = vpop.permute.xlu2 %8599 }
0x1039   : > { %v8534_v19 = vpop.permute.xlu0 %8533  ;;  %v8550_v44 = vpop.permute.xlu1 %8549 }
0x103a   : > { %v8897_v3 = vsel %vm19658_vm1, %v8892_v36, %v8534_v19 }
0x103b   : > { %v8902_v12 = vsel %vm19657_vm7, %v8897_v3, %v8550_v44 }
0x103c   : > { %v8907_v62 = vsel %vm19656_vm3, %v8902_v12, %v18880_v28 }
0x103d   : > { %10795 = vset.pattern.permute.xlu2 %v21109_v7 }
0x103f   : > { %10803 = vset.pattern.permute.xlu0 %v21109_v7  ;;  %9106 = vperm.xlu1 %10791, %v9071_v29   ;;  %v8886_v29 = vsel %vm8884_vm11, %v18850_v50, %v18870_v61 }
0x1040   : > { %v8891_v63 = vsel %vm8889_vm4, %v8886_v29, %v18872_v38 }
0x1041   : > { %v8548_v37 = vpop.permute.xlu0 %8547  ;;  %v8564_v17 = vpop.permute.xlu1 %8563  ;;  %v8896_v53 = vsel %vm19658_vm1, %v8891_v63, %v18861_v49  ;;  %vm21190_vm1 = vcmask 572416  }
0x1042   : > { %v8901_v21 = vsel %vm19657_vm7, %v8896_v53, %v8548_v37  ;;  %vm21187_vm7 = vcmask 523264  }
0x1043   : > { %v8906_v38 = vsel %vm19656_vm3, %v8901_v21, %v8564_v17 }
0x1044   : > { %v8911_v5 = vsel %vm19655_vm0, %v8906_v38, %v18889_v59 }
0x1045   : > { %9131 = vperm.xlu2 %10795, %v18882_v13  }
0x1047   : > { %9180 = vperm.xlu0 %10803, %v18898_v11   ;;  %10794 = vset.pattern.permute.xlu1 %v21111_v34 }
0x1049   : > { %v8562_v10 = vpop.permute.xlu0 %8561  ;;  %v8578_v27 = vpop.permute.xlu1 %8577 }
0x104a   : > { %v8905_v25 = vsel %vm19656_vm3, %v8900_v40, %v8562_v10 }
0x104b   : > { %v8910_v55 = vsel %vm19655_vm0, %v8905_v25, %v8578_v27 }
0x104c   : > { %v8915_v47 = vsel %vm19654_vm13, %v8910_v55, %v8594_v18 }
0x104d   : > { %8919 = vst [vmem:[%s18917_s13] sm:$0xff] %v8915_v47  ;;  %10797 = vset.pattern.permute.xlu2 %v21105_v33 }
0x104f   : > { %10808 = vset.pattern.permute.xlu0 %v21108_v26  ;;  %9125 = vperm.xlu1 %10794, %v18882_v13  }
0x1051   : > { %v8568_v35 = vpop.permute.xlu0 %8567  ;;  %v8584_v48 = vpop.permute.xlu1 %8583 }
0x1052   : > { %v8908_v56 = vsel %vm19656_vm3, %v8903_v31, %v8568_v35  ;;  %vm21186_vm3 = vcmask 506880  }
0x1053   : > { %v8913_v7 = vsel %vm19655_vm0, %v8908_v56, %v8584_v48 }
0x1054   : > { %v8918_v24 = vsel %vm19654_vm13, %v8913_v7, %v8600_v20 }
0x1055   : > { %8922 = vst [vmem:[%s18917_s13 + $0x18] sm:$0xff] %v8918_v24  ;;  %9143 = vperm.xlu2 %10797, %v18882_v13  }
0x1057   : > { %9210 = vperm.xlu0 %10808, %v18898_v11   ;;  %10796 = vset.pattern.permute.xlu1 %v21110_v23 }
0x1059   : > { %v8582_v0 = vpop.permute.xlu0 %8581  ;;  %v8598_v50 = vpop.permute.xlu1 %8597 }
0x105a   : > { %v8912_v61 = vsel %vm19655_vm0, %v8907_v62, %v8582_v0  ;;  %vm21137_vm0 = vcmask 48128  }
0x105b   : > { %v8917_v58 = vsel %vm19654_vm13, %v8912_v61, %v8598_v50 }
0x105c   : > { %8921 = vst [vmem:[%s18917_s13 + $0x10] sm:$0xff] %v8917_v58 }
0x105d   : > { %10800 = vset.pattern.permute.xlu2 %v21108_v26  ;;  %v18963_v26 = vpop.permute.xlu2 %9039 }
0x105f   : > { %9137 = vperm.xlu1 %10796, %v18882_v13   ;;  %10810 = vset.pattern.permute.xlu0 %v21106_v2 }
0x1061   : > { %v8596_v6 = vpop.permute.xlu0 %8595  ;;  %v18979_v16 = vpop.permute.xlu1 %9033 }
0x1062   : > { %v8916_v49 = vsel %vm19654_vm13, %v8911_v5, %v8596_v6  ;;  %vm21136_vm13 = vcmask 31744  }
0x1063   : > { %8920 = vst [vmem:[%s18917_s13 + $0x8] sm:$0xff] %v8916_v49 }
0x1065   : > { %9161 = vperm.xlu2 %10800, %v18882_v13   ;;  %v18967_v60 = vpop.permute.xlu2 %9051 }
0x1067   : > { %10799 = vset.pattern.permute.xlu1 %v21107_v46 }
0x1069   : > { %v9028_v9 = vpop.permute.xlu0 %9027 }
0x106d   : > { %10802 = vset.pattern.permute.xlu2 %v21111_v34  ;;  %v18971_v22 = vpop.permute.xlu2 %9069 }
0x106f   : > { %9155 = vperm.xlu1 %10799, %v18882_v13  }
0x1071   : > { %v9046_v28 = vpop.permute.xlu1 %9045 }
0x1075   : > { %9174 = vperm.xlu2 %10802, %v18898_v11   ;;  %v9083_v34 = vpop.permute.xlu2 %9082 }
0x1077   : > { %10801 = vset.pattern.permute.xlu1 %v21106_v2 }
0x107d   : > { %10805 = vset.pattern.permute.xlu2 %v21105_v33  ;;  %v18983_v33 = vpop.permute.xlu0 %9057 }
0x107f   : > { %9167 = vperm.xlu1 %10801, %v18882_v13   ;;  %v18977_v39 = vpop.permute.xlu2 %9100 }
0x1085   : > { %9192 = vperm.xlu2 %10805, %v18898_v11  }
0x1087   : > { %10804 = vset.pattern.permute.xlu1 %v21110_v23  ;;  %v9064_v23 = vpop.permute.xlu1 %9063 }
0x1089   : > { %v18986_v19 = vpop.permute.xlu0 %9088 }
0x108d   : > { %10807 = vset.pattern.permute.xlu2 %v21107_v46 }
0x108f   : > { %9186 = vperm.xlu1 %10804, %v18898_v11   ;;  %v9113_v13 = vpop.permute.xlu2 %9112 }
0x1091   : > { %v9077_v44 = vpop.permute.xlu1 %9076 }
0x1095   : > { %9204 = vperm.xlu2 %10807, %v18898_v11  }
0x1097   : > { %10806 = vset.pattern.permute.xlu1 %v21103_v14 }
0x1099   : > { %v18989_v8 = vpop.permute.xlu0 %9118 }
0x109f   : > { %9198 = vperm.xlu1 %10806, %v18898_v11   ;;  %v9132_v46 = vpop.permute.xlu2 %9131 }
0x10a1   : > { %v18995_v52 = vpop.permute.xlu1 %9094 }
0x10a7   : > { %10809 = vset.pattern.permute.xlu1 %v21106_v2 }
0x10a9   : > { %v18997_v37 = vpop.permute.xlu0 %9149 }
0x10af   : > { %v9144_v59 = vpop.permute.xlu2 %9143  ;;  %9216 = vperm.xlu1 %10809, %v18898_v11  }
0x10b0   : > { %v18993_v14 = vsel %vm3755_vm8, %v9046_v28, %v9144_v59 }
0x10b1   : > { %v18999_v17 = vpop.permute.xlu1 %9106 }
0x10b9   : > { %v9181_v32 = vpop.permute.xlu0 %9180 }
0x10ba   : > { %v9227_v58 = vsel %vm3755_vm8, %v9083_v34, %v9181_v32 }
0x10bb   : > { %v9296_v28 = vrot.slane %v9227_v58, 4  ;;  %v9301_v34 = vperm.slane %v9227_v58, %v12943_v4 }
0x10bf   : > { %v9162_v42 = vpop.permute.xlu2 %9161 }
0x10c0   : > { %v9224_v45 = vsel %vm3755_vm8, %v9064_v23, %v9162_v42  ;;  %v9390_v42 = vrot.slane %v18993_v14, 4 }
0x10c1   : > { %v9546_v2 = vrot.slane %v9224_v45, 4  ;;  %v9126_v15 = vpop.permute.xlu1 %9125  ;;  %v9551_v30 = vperm.slane %v9224_v45, %v12943_v4 }
0x10c2   : > { %v9218_v18 = vsel %vm3755_vm8, %v9028_v9, %v9126_v15 }
0x10c3   : > { %v9547_v11 = vsel %vm4013_vm9, 0.0, %v9546_v2  ;;  %v9234_v40 = vrot.slane %v9218_v18, 4  ;;  %v9568_v25 = vrot.slane %v9551_v30, 4  ;;  %v9239_v57 = vperm.slane %v9218_v18, %v12943_v4 }
0x10c4   : > { %v9555_v1 = vperm.slane %v9547_v11, %v12943_v4  ;;  %v9306_v18 = vrot.slane %v9301_v34, 4 }
0x10c5   : > { %v9235_v35 = vsel %vm4013_vm9, 0.0, %v9234_v40  ;;  %v9256_v20 = vrot.slane %v9239_v57, 4  ;;  %v9391_v40 = vsel %vm4013_vm9, 0.0, %v9390_v42 }
0x10c6   : > { %v9580_v48 = vrot.slane %v9555_v1, 4  ;;  %v9243_v29 = vperm.slane %v9235_v35, %v12943_v4 }
0x10c8   : > { %v9268_v38 = vrot.slane %v9243_v29, 4 }
0x10c9   : > { %v9211_v10 = vpop.permute.xlu0 %9210 }
0x10ca   : > { %v9232_v27 = vsel %vm3755_vm8, %v9113_v13, %v9211_v10 }
0x10cb   : > { %v9556_v41 = vrot.slane %v9232_v27, 4  ;;  %v9561_v55 = vperm.slane %v9232_v27, %v12943_v4 }
0x10cd   : > { %v9557_v47 = vsel %vm4013_vm9, 0.0, %v9556_v41  ;;  %v9566_v54 = vrot.slane %v9561_v55, 4  ;;  %v19011_v51 = vsel %vm4013_vm9, %v9561_v55, %v9568_v25 }
0x10ce   : > { %v9565_v31 = vperm.slane %v9557_v47, %v12943_v4  ;;  %v9399_v47 = vperm.slane %v9391_v40, %v12943_v4 }
0x10cf   : > { %v9175_v36 = vpop.permute.xlu2 %9174  ;;  %v19016_v56 = vsel %vm4013_vm9, %v9566_v54, %v9551_v30 }
0x10d0   : > { %v9578_v3 = vrot.slane %v9565_v31, 4  ;;  %v9226_v7 = vsel %vm3755_vm8, %v9077_v44, %v9175_v36  ;;  %v19022_v63 = vsel %vm4013_vm9, %v9565_v31, %v9580_v48  ;;  %v9219_v44 = vsel %vm3755_vm8, %v18979_v16, %v9132_v46 }
0x10d1   : > { %v9244_v24 = vrot.slane %v9226_v7, 4  ;;  %v9249_v12 = vperm.slane %v9226_v7, %v12943_v4  ;;  %v9291_v15 = vperm.slane %v9219_v44, %v12943_v4  ;;  %v9395_v16 = vperm.slane %v18993_v14, %v12943_v4  ;;  %v19053_v30 = vpop.permute.xlu1 %9137 }
0x10d2   : > { %v19025_v0 = vsel %vm4013_vm9, %v9578_v3, %v9555_v1  ;;  %v9297_v46 = vsel %vm4013_vm9, 0.0, %v9296_v28  ;;  %v9286_v10 = vrot.slane %v9219_v44, 4 }
0x10d3   : > { %v9245_v62 = vsel %vm4013_vm9, 0.0, %v9244_v24  ;;  %v9254_v50 = vrot.slane %v9249_v12, 4  ;;  %v9257_v53 = vsel %vm4013_vm9, %v9249_v12, %v9256_v20  ;;  %v9305_v25 = vperm.slane %v9297_v46, %v12943_v4 }
0x10d4   : > { %v9253_v61 = vperm.slane %v9245_v62, %v12943_v4  ;;  %v9265_v21 = vperm.slane %v9257_v53, %v13098_v43  ;;  %v9308_v55 = vrot.slane %v9291_v15, 4  ;;  %v9307_v31 = vsel %vm4013_vm9, %v9306_v18, %v9291_v15 }
0x10d5   : > { %v9255_v6 = vsel %vm4013_vm9, %v9254_v50, %v9239_v57  ;;  %v9412_v57 = vrot.slane %v9395_v16, 4  ;;  %v9287_v48 = vsel %vm4013_vm9, 0.0, %v9286_v10  ;;  %v9318_v7 = vrot.slane %v9305_v25, 4 }
0x10d6   : > { %v9266_v5 = vrot.slane %v9253_v61, 4  ;;  %9655 = vrot.lane.b32.xlu1 %v9265_v21, %s11090_s4  ;;  %v19035_v49 = vperm.slane %v9255_v6, %v13098_v43  ;;  %v9269_v9 = vsel %vm4013_vm9, %v9253_v61, %v9268_v38  ;;  %v9280_v27 = vrot.slane %v9265_v21, 4  ;;  %s21114_s4 = smov 32  }
0x10d7   : > { %v9277_v32 = vperm.slane %v9269_v9, %v13098_v43  ;;  %v9309_v36 = vsel %vm4013_vm9, %v9301_v34, %v9308_v55  ;;  %v9313_v50 = vperm.slane %v9307_v31, %v13098_v43  ;;  %v9295_v53 = vperm.slane %v9287_v48, %v12943_v4 }
0x10d8   : > { %v9278_v13 = vrot.slane %v19035_v49, 4  ;;  %v9267_v23 = vsel %vm4013_vm9, %v9266_v5, %v9243_v29  ;;  %v9281_v20 = vsel %vm4013_vm9, 0.0, %v9280_v27  ;;  %v9424_v61 = vrot.slane %v9399_v47, 4 }
0x10d9   : > { %v9273_v59 = vperm.slane %v9267_v23, %v13098_v43  ;;  %v9284_v1 = vrot.slane %v9277_v32, 4  ;;  %v9317_v21 = vperm.slane %v9309_v36, %v13098_v43  ;;  %v9319_v5 = vsel %vm4013_vm9, %v9318_v7, %v9295_v53 }
0x10da   : > { %v9279_v45 = vsel %vm4013_vm9, 0.0, %v9278_v13  ;;  %v9325_v44 = vperm.slane %v9319_v5, %v13098_v43  ;;  %v9220_v48 = vsel %vm3755_vm8, %v18963_v26, %v19053_v30 }
0x10db   : > { %9651 = vrot.lane.b32.xlu2 %v9279_v45, %s11089_s23  ;;  %9663 = vrot.lane.b32.xlu0 %v9273_v59, %s11092_s16  ;;  %v9282_v2 = vrot.slane %v9273_v59, 4  ;;  %v9285_v3 = vsel %vm4013_vm9, 0.0, %v9284_v1  ;;  %v9332_v13 = vrot.slane %v9317_v21, 4  ;;  %v9320_v59 = vrot.slane %v9295_v53, 4  ;;  %s21113_s23 = smov 30  }
0x10dc   : > { %v9330_v45 = vrot.slane %v9313_v50, 4 }
0x10dd   : > { %v9283_v11 = vsel %vm4013_vm9, 0.0, %v9282_v2  ;;  %v9334_v2 = vrot.slane %v9325_v44, 4  ;;  %v9321_v46 = vsel %vm4013_vm9, %v9305_v25, %v9320_v59 }
0x10de   : > { %9667 = vrot.lane.b32.xlu1 %v9283_v11, %s11093_s8  ;;  %v9331_v40 = vsel %vm4013_vm9, 0.0, %v9330_v45  ;;  %v9329_v25 = vperm.slane %v9321_v46, %v13098_v43  ;;  %s21116_s8 = smov 34  }
0x10df   : > { %v9193_v41 = vpop.permute.xlu2 %9192  ;;  %v9335_v27 = vsel %vm4013_vm9, 0.0, %v9334_v2 }
0x10e0   : > { %v9229_v14 = vsel %vm3755_vm8, %v18995_v52, %v9193_v41  ;;  %v9336_v36 = vrot.slane %v9329_v25, 4 }
0x10e1   : > { %v9400_v54 = vrot.slane %v9229_v14, 4  ;;  %v9405_v35 = vperm.slane %v9229_v14, %v12943_v4  ;;  %v9156_v62 = vpop.permute.xlu1 %9155 }
0x10e2   : > { %v9223_v6 = vsel %vm3755_vm8, %v18983_v33, %v9156_v62  ;;  %v9333_v33 = vsel %vm4013_vm9, 0.0, %v9332_v13 }
0x10e3   : > { %v9401_v29 = vsel %vm4013_vm9, 0.0, %v9400_v54  ;;  %v9410_v24 = vrot.slane %v9405_v35, 4  ;;  %v19070_v52 = vsel %vm4013_vm9, %v9405_v35, %v9412_v57  ;;  %9659 = vrot.lane.b32.xlu2 %v9281_v20, %s11091_s21  ;;  %9675 = vrot.lane.b32.xlu0 %v9285_v3, %s11095_s20  ;;  %v9494_v23 = vrot.slane %v9223_v6, 4  ;;  %s21115_s21 = smov 36   ;;  %s21118_s20 = smov 42  }
0x10e4   : > { %v9409_v12 = vperm.slane %v9401_v29, %v12943_v4  ;;  %v9499_v34 = vperm.slane %v9223_v6, %v12943_v4  ;;  %v9343_v20 = vperm.slane %v9220_v48, %v12943_v4  ;;  %v9338_v3 = vrot.slane %v9220_v48, 4 }
0x10e5   : > { %v19079_v58 = vsel %vm4013_vm9, %v9410_v24, %v9395_v16  ;;  %v9495_v42 = vsel %vm4013_vm9, 0.0, %v9494_v23  ;;  %v9337_v24 = vsel %vm4013_vm9, 0.0, %v9336_v36 }
0x10e6   : > { %v9422_v38 = vrot.slane %v9409_v12, 4  ;;  %9679 = vrot.lane.b32.xlu1 %v9313_v50, %s11096_s19  ;;  %v19086_v9 = vsel %vm4013_vm9, %v9409_v12, %v9424_v61  ;;  %v9516_v18 = vrot.slane %v9499_v34, 4  ;;  %v9360_v50 = vrot.slane %v9343_v20, 4  ;;  %s21119_s19 = smov 40  }
0x10e7   : > { %v9339_v53 = vsel %vm4013_vm9, 0.0, %v9338_v3 }
0x10e8   : > { %v19089_v28 = vsel %vm4013_vm9, %v9422_v38, %v9399_v47 }
0x10eb   : > { %9671 = vrot.lane.b32.xlu2 %v9277_v32, %s11094_s9  ;;  %9687 = vrot.lane.b32.xlu0 %v9317_v21, %s11098_s24  ;;  %v9503_v32 = vperm.slane %v9495_v42, %v12943_v4  ;;  %s21117_s9 = smov 38   ;;  %s21121_s24 = smov 48  }
0x10ed   : > { %v9528_v57 = vrot.slane %v9503_v32, 4 }
0x10ee   : > { %9691 = vrot.lane.b32.xlu1 %v9333_v33, %s11099_s25  ;;  %s21122_s25 = smov 46  }
0x10ef   : > { %v9205_v15 = vpop.permute.xlu2 %9204 }
0x10f0   : > { %v9231_v16 = vsel %vm3755_vm8, %v18999_v17, %v9205_v15 }
0x10f1   : > { %v9504_v11 = vrot.slane %v9231_v16, 4  ;;  %v9509_v10 = vperm.slane %v9231_v16, %v12943_v4  ;;  %v19123_v31 = vpop.permute.xlu1 %9167 }
0x10f3   : > { %v9505_v1 = vsel %vm4013_vm9, 0.0, %v9504_v11  ;;  %v9514_v41 = vrot.slane %v9509_v10, 4  ;;  %v19107_v55 = vsel %vm4013_vm9, %v9509_v10, %v9516_v18  ;;  %9683 = vrot.lane.b32.xlu2 %v9331_v40, %s11097_s15  ;;  %9699 = vrot.lane.b32.xlu0 %v9335_v27, %s11101_s14  ;;  %v9417_v11 = vperm.slane %v19079_v58, %v13098_v43  ;;  %s21120_s15 = smov 44   ;;  %s21123_s14 = smov 50  }
0x10f4   : > { %v9513_v17 = vperm.slane %v9505_v1, %v12943_v4  ;;  %v9421_v10 = vperm.slane %v19070_v52, %v13098_v43 }
0x10f5   : > { %v19114_v14 = vsel %vm4013_vm9, %v9514_v41, %v9499_v34  ;;  %v9434_v1 = vrot.slane %v9417_v11, 4 }
0x10f6   : > { %v9526_v47 = vrot.slane %v9513_v17, 4  ;;  %9703 = vrot.lane.b32.xlu1 %v9329_v25, %s11102_s18  ;;  %v19118_v54 = vsel %vm4013_vm9, %v9513_v17, %v9528_v57  ;;  %v9436_v41 = vrot.slane %v9421_v10, 4  ;;  %v9222_v25 = vsel %vm3755_vm8, %v18967_v60, %v18997_v37  ;;  %s21124_s18 = smov 52  }
0x10f7   : > { %v9435_v58 = vsel %vm4013_vm9, 0.0, %v9434_v1  ;;  %v9433_v60 = vperm.slane %v19086_v9, %v13098_v43  ;;  %v9442_v37 = vrot.slane %v9222_v25, 4 }
0x10f8   : > { %v19121_v35 = vsel %vm4013_vm9, %v9526_v47, %v9503_v32  ;;  %v9437_v52 = vsel %vm4013_vm9, 0.0, %v9436_v41  ;;  %v9447_v47 = vperm.slane %v9222_v25, %v12943_v4 }
0x10fa   : > { %v9464_v9 = vrot.slane %v9447_v47, 4 }
0x10fb   : > { %9695 = vrot.lane.b32.xlu2 %v9325_v44, %s21112_s29  ;;  %s21127_s29 = smov 58  }
0x1101   : > { %v9187_v7 = vpop.permute.xlu1 %9186 }
0x1102   : > { %v9228_v29 = vsel %vm3755_vm8, %v18986_v19, %v9187_v7  ;;  %v9347_v19 = vperm.slane %v9339_v53, %v12943_v4 }
0x1103   : > { %v9348_v12 = vrot.slane %v9228_v29, 4  ;;  %v9353_v62 = vperm.slane %v9228_v29, %v12943_v4  ;;  %9707 = vrot.lane.b32.xlu2 %v9337_v24, %s21113_s23  ;;  %v9440_v29 = vrot.slane %v9433_v60, 4  ;;  %v9443_v24 = vsel %vm4013_vm9, 0.0, %v9442_v37  ;;  %s21128_s23 = smov 62  }
0x1104   : > { %v9372_v45 = vrot.slane %v9347_v19, 4 }
0x1105   : > { %v9349_v26 = vsel %vm4013_vm9, 0.0, %v9348_v12  ;;  %v9358_v30 = vrot.slane %v9353_v62, 4  ;;  %v9361_v21 = vsel %vm4013_vm9, %v9353_v62, %v9360_v50  ;;  %v9451_v50 = vperm.slane %v9443_v24, %v12943_v4 }
0x1106   : > { %v9357_v61 = vperm.slane %v9349_v26, %v12943_v4  ;;  %v9369_v13 = vperm.slane %v9361_v21, %v13098_v43  ;;  %v9441_v26 = vsel %vm4013_vm9, 0.0, %v9440_v29 }
0x1107   : > { %v9359_v38 = vsel %vm4013_vm9, %v9358_v30, %v9343_v20 }
0x1108   : > { %v9370_v6 = vrot.slane %v9357_v61, 4  ;;  %v9365_v5 = vperm.slane %v9359_v38, %v13098_v43  ;;  %v9384_v59 = vrot.slane %v9369_v13, 4  ;;  %v9373_v15 = vsel %vm4013_vm9, %v9357_v61, %v9372_v45 }
0x1109   : > { %v9381_v46 = vperm.slane %v9373_v15, %v13098_v43  ;;  %v9476_v38 = vrot.slane %v9451_v50, 4 }
0x110a   : > { %9711 = vrot.lane.b32.xlu0 %v9365_v5, %s21114_s4  ;;  %v9382_v23 = vrot.slane %v9365_v5, 4  ;;  %v9371_v44 = vsel %vm4013_vm9, %v9370_v6, %v9347_v19  ;;  %v9385_v2 = vsel %vm4013_vm9, 0.0, %v9384_v59  ;;  %s21129_s4 = smov 66  }
0x110b   : > { %9719 = vrot.lane.b32.xlu2 %v9369_v13, %s21115_s21  ;;  %v9377_v34 = vperm.slane %v9371_v44, %v13098_v43  ;;  %v9388_v32 = vrot.slane %v9381_v46, 4  ;;  %s21130_s21 = smov 64  }
0x110c   : > { %v9383_v33 = vsel %vm4013_vm9, 0.0, %v9382_v23 }
0x110d   : > { %9715 = vrot.lane.b32.xlu1 %v9383_v33, %s21116_s8  ;;  %v9386_v42 = vrot.slane %v9377_v34, 4  ;;  %v9389_v27 = vsel %vm4013_vm9, 0.0, %v9388_v32  ;;  %s21131_s8 = smov 72  }
0x110f   : > { %v9387_v16 = vsel %vm4013_vm9, 0.0, %v9386_v42 }
0x1111   : > { %v9199_v18 = vpop.permute.xlu1 %9198 }
0x1112   : > { %9723 = vrot.lane.b32.xlu0 %v9385_v2, %s21117_s9  ;;  %v9230_v40 = vsel %vm3755_vm8, %v18977_v39, %v9199_v18  ;;  %v9429_v39 = vperm.slane %v19089_v28, %v13098_v43  ;;  %s21132_s9 = smov 70  }
0x1113   : > { %9731 = vrot.lane.b32.xlu2 %v9387_v16, %s21118_s20  ;;  %v9457_v17 = vperm.slane %v9230_v40, %v12943_v4  ;;  %v9452_v48 = vrot.slane %v9230_v40, 4  ;;  %s21133_s20 = smov 74   ;;  %v9521_v16 = vperm.slane %v19114_v14, %v13098_v43  ;;  %v9525_v40 = vperm.slane %v19107_v55, %v13098_v43 }
0x1114   : > { %v9438_v20 = vrot.slane %v9429_v39, 4  ;;  %v9533_v14 = vperm.slane %v19121_v35, %v13098_v43 }
0x1115   : > { %9727 = vrot.lane.b32.xlu1 %v9377_v34, %s21119_s19  ;;  %v9462_v57 = vrot.slane %v9457_v17, 4  ;;  %v9453_v7 = vsel %vm4013_vm9, 0.0, %v9452_v48  ;;  %v9465_v53 = vsel %vm4013_vm9, %v9457_v17, %v9464_v9  ;;  %s21134_s19 = smov 78   ;;  %v9540_v17 = vrot.slane %v9525_v40, 4 }
0x1116   : > { %v9439_v28 = vsel %vm4013_vm9, 0.0, %v9438_v20  ;;  %v9461_v12 = vperm.slane %v9453_v7, %v12943_v4  ;;  %v9473_v21 = vperm.slane %v9465_v53, %v13098_v43  ;;  %v9542_v25 = vrot.slane %v9533_v14, 4 }
0x1117   : > { %v9463_v36 = vsel %vm4013_vm9, %v9462_v57, %v9447_v47  ;;  %v9541_v57 = vsel %vm4013_vm9, 0.0, %v9540_v17  ;;  %v9537_v47 = vperm.slane %v19118_v54, %v13098_v43  ;;  %v9573_v7 = vperm.slane %v19016_v56, %v13098_v43 }
0x1118   : > { %v9469_v3 = vperm.slane %v9463_v36, %v13098_v43  ;;  %v9474_v30 = vrot.slane %v9461_v12, 4  ;;  %v9477_v5 = vsel %vm4013_vm9, %v9461_v12, %v9476_v38  ;;  %v9488_v13 = vrot.slane %v9473_v21, 4 }
0x1119   : > { %v9485_v44 = vperm.slane %v9477_v5, %v13098_v43  ;;  %v9543_v35 = vsel %vm4013_vm9, 0.0, %v9542_v25  ;;  %v9544_v37 = vrot.slane %v9537_v47, 4  ;;  %v9577_v54 = vperm.slane %v19011_v51, %v13098_v43 }
0x111a   : > { %9735 = vrot.lane.b32.xlu0 %v9381_v46, %s21120_s15  ;;  %v9486_v62 = vrot.slane %v9469_v3, 4  ;;  %v9475_v6 = vsel %vm4013_vm9, %v9474_v30, %v9451_v50  ;;  %v9489_v34 = vsel %vm4013_vm9, 0.0, %v9488_v13  ;;  %s21138_s15 = smov 80   ;;  %v9590_v9 = vrot.slane %v9573_v7, 4 }
0x111b   : > { %9743 = vrot.lane.b32.xlu2 %v9417_v11, %s21121_s24  ;;  %v9481_v23 = vperm.slane %v9475_v6, %v13098_v43  ;;  %v9492_v42 = vrot.slane %v9485_v44, 4  ;;  %v9538_v11 = vrot.slane %v9521_v16, 4  ;;  %s21139_s24 = smov 84   ;;  %v9545_v24 = vsel %vm4013_vm9, 0.0, %v9544_v37 }
0x111c   : > { %v9487_v61 = vsel %vm4013_vm9, 0.0, %v9486_v62  ;;  %v9592_v50 = vrot.slane %v9577_v54, 4  ;;  %v9591_v30 = vsel %vm4013_vm9, 0.0, %v9590_v9 }
0x111d   : > { %9739 = vrot.lane.b32.xlu1 %v9389_v27, %s21122_s25  ;;  %v9490_v59 = vrot.slane %v9481_v23, 4  ;;  %v9493_v15 = vsel %vm4013_vm9, 0.0, %v9492_v42  ;;  %v9539_v1 = vsel %vm4013_vm9, 0.0, %v9538_v11  ;;  %s21140_s25 = smov 82  }
0x111f   : > { %v9491_v2 = vsel %vm4013_vm9, 0.0, %v9490_v59  ;;  %v9589_v59 = vperm.slane %v19022_v63, %v13098_v43 }
0x1121   : > { %v9217_v45 = vpop.permute.xlu1 %9216 }
0x1122   : > { %9747 = vrot.lane.b32.xlu0 %v9435_v58, %s21123_s14  ;;  %s21144_s14 = smov 86   ;;  %v9233_v29 = vsel %vm3755_vm8, %v18989_v8, %v9217_v45  ;;  %v9225_v8 = vsel %vm3755_vm8, %v18971_v22, %v19123_v31  ;;  %vm21160_vm8 = vcmask 228352  }
0x1123   : > { %9755 = vrot.lane.b32.xlu2 %v9437_v52, %s11115_s27  ;;  %s21126_s27 = smov 60   ;;  %v9613_v53 = vperm.slane %v9233_v29, %v12943_v4  ;;  %v9603_v6 = vperm.slane %v9225_v8, %v12943_v4  ;;  %v9608_v31 = vrot.slane %v9233_v29, 4  ;;  %v9598_v42 = vrot.slane %v9225_v8, 4 }
0x1125   : > { %9751 = vrot.lane.b32.xlu1 %v9421_v10, %s21124_s18  ;;  %s21145_s18 = smov 90   ;;  %v9618_v38 = vrot.slane %v9613_v53, 4  ;;  %v9620_v11 = vrot.slane %v9603_v6, 4 }
0x112a   : > { %9759 = vrot.lane.b32.xlu0 %v9429_v39, %s21125_s7  ;;  %s21146_s7 = smov 88  }
0x112b   : > { %9767 = vrot.lane.b32.xlu2 %v9433_v60, %s21126_s27  ;;  %s21150_s27 = smov 92  }
0x112d   : > { %9763 = vrot.lane.b32.xlu1 %v9439_v28, %s21127_s29  ;;  %s21151_s29 = smov 96  }
0x1132   : > { %9771 = vrot.lane.b32.xlu0 %v9441_v26, %s21128_s23  ;;  %s21152_s23 = smov 94  }
0x1133   : > { %9779 = vrot.lane.b32.xlu2 %v9487_v61, %s21129_s4  ;;  %s21156_s4 = smov 98  }
0x1135   : > { %v9652_v19 = vpop.permute.xlu2 %9651  ;;  %9775 = vrot.lane.b32.xlu1 %v9469_v3, %s21130_s21  ;;  %s21157_s21 = smov 102  }
0x1136   : > { %v9902_v32 = vsel %vm8605_vm10, %v19035_v49, %v9652_v19  ;;  %vm21141_vm10 = vcmask 64512   ;;  %v9585_v19 = vperm.slane %v19025_v0, %v13098_v43 }
0x113a   : > { %9783 = vrot.lane.b32.xlu0 %v9473_v21, %s11121_s2  ;;  %s21135_s2 = smov 76   ;;  %v9593_v21 = vsel %vm4013_vm9, 0.0, %v9592_v50 }
0x113b   : > { %9791 = vrot.lane.b32.xlu2 %v9481_v23, %s21131_s8  ;;  %s21158_s8 = smov 100   ;;  %v9619_v23 = vsel %vm4013_vm9, %v9618_v38, %v9603_v6 }
0x113c   : > { %v9625_v45 = vperm.slane %v9619_v23, %v13098_v43 }
0x113d   : > { %v9660_v33 = vpop.permute.xlu2 %9659  ;;  %9787 = vrot.lane.b32.xlu1 %v9489_v34, %s21132_s9  ;;  %v9594_v34 = vrot.slane %v9585_v19, 4  ;;  %s21162_s9 = smov 104  }
0x1142   : > { %9795 = vrot.lane.b32.xlu0 %v9491_v2, %s21133_s20  ;;  %v9609_v2 = vsel %vm4013_vm9, 0.0, %v9608_v31  ;;  %s21163_s20 = smov 108  }
0x1143   : > { %9803 = vrot.lane.b32.xlu2 %v9493_v15, %s21134_s19  ;;  %v9595_v15 = vsel %vm4013_vm9, 0.0, %v9594_v34  ;;  %s21164_s19 = smov 106   ;;  %v9617_v63 = vperm.slane %v9609_v2, %v12943_v4 }
0x1145   : > { %v9672_v46 = vpop.permute.xlu2 %9671  ;;  %9799 = vrot.lane.b32.xlu1 %v9485_v44, %s21135_s2  ;;  %s21165_s2 = smov 110  }
0x1148   : > { %v9656_v18 = vpop.permute.xlu1 %9655 }
0x1149   : > { %v9903_v10 = vsel %vm21136_vm13, %v9902_v32, %v9656_v18  ;;  %vm21142_vm13 = vcmask 80896   ;;  %v9599_v32 = vsel %vm4013_vm9, 0.0, %v9598_v42  ;;  %v9642_v18 = vrot.slane %v9625_v45, 4 }
0x114a   : > { %v9904_v27 = vsel %vm21137_vm0, %v9903_v10, %v9660_v33  ;;  %9807 = vrot.lane.b32.xlu0 %v9521_v16, %s21138_s15  ;;  %vm21143_vm0 = vcmask 97280   ;;  %v9607_v10 = vperm.slane %v9599_v32, %v12943_v4  ;;  %s21166_s15 = smov 114  }
0x114b   : > { %9815 = vrot.lane.b32.xlu2 %v9525_v40, %s21139_s24  ;;  %v9621_v40 = vsel %vm4013_vm9, %v9613_v53, %v9620_v11  ;;  %s21167_s24 = smov 112  }
0x114d   : > { %v9684_v41 = vpop.permute.xlu2 %9683  ;;  %v9664_v49 = vpop.permute.xlu0 %9663  ;;  %9811 = vrot.lane.b32.xlu1 %v9539_v1, %s21140_s25  ;;  %v9643_v1 = vsel %vm4013_vm9, 0.0, %v9642_v18  ;;  %s21168_s25 = smov 116  }
0x114e   : > { %v9905_v58 = vsel %vm21141_vm10, %v9904_v27, %v9664_v49  ;;  %vm21147_vm10 = vcmask 113664   ;;  %v9632_v49 = vrot.slane %v9607_v10, 4 }
0x1150   : > { %v9668_v55 = vpop.permute.xlu1 %9667  ;;  %v9633_v4 = vsel %vm4013_vm9, %v9617_v63, %v9632_v49 }
0x1151   : > { %v9906_v52 = vsel %vm21142_vm13, %v9905_v58, %v9668_v55  ;;  %vm21148_vm13 = vcmask 130048  }
0x1152   : > { %v9907_v39 = vsel %vm21143_vm0, %v9906_v52, %v9672_v46  ;;  %9819 = vrot.lane.b32.xlu0 %v9541_v57, %s21144_s14  ;;  %vm21149_vm0 = vcmask 146432   ;;  %v9596_v46 = vrot.slane %v9589_v59, 4  ;;  %v9641_v52 = vperm.slane %v9633_v4, %v13098_v43  ;;  %s21169_s14 = smov 120  }
0x1153   : > { %9827 = vrot.lane.b32.xlu2 %v9543_v35, %s21145_s18  ;;  %s21171_s18 = smov 118  }
0x1154   : > { %v9597_v27 = vsel %vm4013_vm9, 0.0, %v9596_v46 }
0x1155   : > { %v9696_v48 = vpop.permute.xlu2 %9695  ;;  %v9676_v36 = vpop.permute.xlu0 %9675  ;;  %9823 = vrot.lane.b32.xlu1 %v9533_v14, %s21146_s7  ;;  %v9630_v14 = vrot.slane %v9617_v63, 4  ;;  %s21175_s7 = smov 124  }
0x1156   : > { %v9908_v20 = vsel %vm21147_vm10, %v9907_v39, %v9676_v36  ;;  %vm21153_vm10 = vcmask 162816  }
0x1157   : > { %v9631_v58 = vsel %vm4013_vm9, %v9630_v14, %v9607_v10 }
0x1158   : > { %v9680_v60 = vpop.permute.xlu1 %9679  ;;  %v9637_v55 = vperm.slane %v9631_v58, %v13098_v43 }
0x1159   : > { %v9909_v3 = vsel %vm21148_vm13, %v9908_v20, %v9680_v60  ;;  %vm21154_vm13 = vcmask 179200  }
0x115a   : > { %v9910_v28 = vsel %vm21149_vm0, %v9909_v3, %v9684_v41  ;;  %9831 = vrot.lane.b32.xlu0 %v9537_v47, %s21150_s27  ;;  %vm21155_vm0 = vcmask 195584   ;;  %v9629_v41 = vperm.slane %v9621_v40, %v13098_v43  ;;  %v9646_v47 = vrot.slane %v9637_v55, 4 }
0x115b   : > { %9839 = vrot.lane.b32.xlu2 %v9573_v7, %s21151_s29 }
0x115c   : > { %v9644_v25 = vrot.slane %v9629_v41, 4  ;;  %v9647_v3 = vsel %vm4013_vm9, 0.0, %v9646_v47 }
0x115d   : > { %v9708_v12 = vpop.permute.xlu2 %9707  ;;  %v9688_v62 = vpop.permute.xlu0 %9687  ;;  %9835 = vrot.lane.b32.xlu1 %v9545_v24, %s21152_s23 }
0x115e   : > { %v9911_v56 = vsel %vm21153_vm10, %v9910_v28, %v9688_v62  ;;  %vm21159_vm10 = vcmask 211968   ;;  %v9645_v39 = vsel %vm4013_vm9, 0.0, %v9644_v25 }
0x1160   : > { %v9692_v26 = vpop.permute.xlu1 %9691 }
0x1161   : > { %v9912_v51 = vsel %vm21154_vm13, %v9911_v56, %v9692_v26  ;;  %vm21161_vm13 = vcmask 244736  }
0x1162   : > { %v9913_v61 = vsel %vm21155_vm0, %v9912_v51, %v9696_v48  ;;  %9843 = vrot.lane.b32.xlu0 %v9591_v30, %s21156_s4  ;;  %vm21170_vm0 = vcmask 261120   ;;  %v9648_v48 = vrot.slane %v9641_v52, 4 }
0x1163   : > { %9851 = vrot.lane.b32.xlu2 %v9593_v21, %s21157_s21  ;;  %s21209_s21 = sld [smem:[#allocation437_spill]] }
0x1164   : > { %v9649_v43 = vsel %vm4013_vm9, 0.0, %v9648_v48  ;;  %vm21179_vm9 = vcmask 392192  }
0x1165   : > { %v9700_v5 = vpop.permute.xlu0 %9699  ;;  %v9720_v13 = vpop.permute.xlu2 %9719  ;;  %9847 = vrot.lane.b32.xlu1 %v9577_v54, %s21158_s8 }
0x1166   : > { %v9914_v22 = vsel %vm21159_vm10, %v9913_v61, %v9700_v5  ;;  %vm21172_vm10 = vcmask 277504  }
0x1168   : > { %v9704_v44 = vpop.permute.xlu1 %9703 }
0x1169   : > { %v9915_v33 = vsel %vm21160_vm8, %v9914_v22, %v9704_v44  ;;  %vm21173_vm8 = vcmask 293888  }
0x116a   : > { %v9916_v0 = vsel %vm21161_vm13, %v9915_v33, %v9708_v12  ;;  %9855 = vrot.lane.b32.xlu0 %v9585_v19, %s21162_s9  ;;  %vm21174_vm13 = vcmask 310272   ;;  %s9982_s9 = sshll.u32 %s18917_s13, 4  ;;  %s9983_s9 = int_to_ptr.vmem [resolvable:$true] %s9982_s9 }
0x116b   : > { %9863 = vrot.lane.b32.xlu2 %v9589_v59, %s21163_s20 }
0x116d   : > { %v9732_v16 = vpop.permute.xlu2 %9731  ;;  %9859 = vrot.lane.b32.xlu1 %v9595_v15, %s21164_s19 }
0x1172   : > { %9867 = vrot.lane.b32.xlu0 %v9597_v27, %s21165_s2  ;;  %s9968_s2 = scalar_lea.sflag [#allocation4], %s11349_s6 }
0x1173   : > { %9875 = vrot.lane.b32.xlu2 %v9643_v1, %s21166_s15 }
0x1175   : > { %9871 = vrot.lane.b32.xlu1 %v9625_v45, %s21167_s24  ;;  %v9744_v17 = vpop.permute.xlu2 %9743 }
0x117a   : > { %9879 = vrot.lane.b32.xlu0 %v9629_v41, %s21168_s25 }
0x117b   : > { %9887 = vrot.lane.b32.xlu2 %v9637_v55, %s21169_s14 }
0x117c   : > { %v9712_v57 = vpop.permute.xlu0 %9711 }
0x117d   : > { %v9917_v35 = vsel %vm21170_vm0, %v9916_v0, %v9712_v57  ;;  %9883 = vrot.lane.b32.xlu1 %v9645_v39, %s21171_s18  ;;  %v9756_v20 = vpop.permute.xlu2 %9755  ;;  %vm21176_vm0 = vcmask 326656   ;;  %s10989_s18 = scalar_lea.hbm %s21209_s21, 128 }
0x117f   : > { %v9716_v36 = vpop.permute.xlu1 %9715 }
0x1180   : > { %v9918_v60 = vsel %vm21172_vm10, %v9917_v35, %v9716_v36  ;;  %vm21177_vm10 = vcmask 359424  }
0x1181   : > { %v9919_v37 = vsel %vm21173_vm8, %v9918_v60, %v9720_v13  ;;  %vm21178_vm8 = vcmask 375808  }
0x1182   : > { %9891 = vrot.lane.b32.xlu0 %v9647_v3, %s11148_s26  ;;  %s10162_s26 = sshll.u32 %s11063_s30, 2 }
0x1183   : > { %9899 = vrot.lane.b32.xlu2 %v9649_v43, %s11150_s17  ;;  %s21196_s17 = sld [smem:[#allocation19_spill]] }
0x1184   : > { %v9724_v7 = vpop.permute.xlu0 %9723 }
0x1185   : > { %v9920_v28 = vsel %vm21174_vm13, %v9919_v37, %v9724_v7  ;;  %9895 = vrot.lane.b32.xlu1 %v9641_v52, %s21175_s7  ;;  %v9768_v12 = vpop.permute.xlu2 %9767  ;;  %vm21181_vm13 = vcmask 424960  }
0x1187   : > { %v9728_v54 = vpop.permute.xlu1 %9727 }
0x1188   : > { %v9921_v29 = vsel %vm21176_vm0, %v9920_v28, %v9728_v54  ;;  %vm21182_vm0 = vcmask 441344  }
0x1189   : > { %v9922_v24 = vsel %vm8705_vm6, %v9921_v29, %v9732_v16  ;;  %vm21180_vm6 = vcmask 408576   ;;  %s10163_s27 = sshll.u32 %s21196_s17, 3 }
0x118a   : > { %s9979_s29 = sadd.s32 %s10163_s27, %s10162_s26 }
0x118b   : > { %s10164_s23 = sshll.u32 %s9979_s29, 3 }
0x118c   : > { %v9736_v62 = vpop.permute.xlu0 %9735  ;;  %s9981_s8 = scalar_lea.hbm %s21209_s21, %s10164_s23 }
0x118d   : > { %v9923_v9 = vsel %vm21177_vm10, %v9922_v24, %v9736_v62  ;;  %v9780_v26 = vpop.permute.xlu2 %9779  ;;  %vm21183_vm10 = vcmask 457728   ;;  %s9984_s19 = sshll.u32 %s9981_s8, 4  ;;  %s9985_s19 = int_to_ptr.hbm [resolvable:$true] %s9984_s19 }
0x118e   : > { %s10983_s15 = sshra.s32 %s9985_s19, 4  ;;  %s10984_s15 = int_to_ptr.hbm [resolvable:$true] %s10983_s15 }
0x118f   : > { %v9740_v56 = vpop.permute.xlu1 %9739  ;;  %s10985_s24 = scalar_lea.hbm %s10984_s15, 32  ;;  %p10990_p10 = scmp.lt.s32.totalorder %s10984_s15, %s21209_s21 }
0x1190   : > { %v9924_v50 = vsel %vm21178_vm8, %v9923_v9, %v9740_v56  ;;  %vm21184_vm8 = vcmask 474112   ;;  %p10986_p1 = scmp.ne.s32.totalorder %s10984_s15, %s10985_s24  ;;  %p10991_p11 = scmp.lt.s32.totalorder %s10989_s18, %s10985_s24 }
0x1191   : > { %v9925_v53 = vsel %vm21179_vm9, %v9924_v50, %v9744_v17  ;;  %vm21185_vm9 = vcmask 490496  }
0x1192   : > { %p10987_p4 = pnand %p10986_p1, %p11303_p3  ;;  %p10992_p12 = por %p10991_p11, %p10990_p10 }
0x1194   : > { %v9748_v51 = vpop.permute.xlu0 %9747  ;;  %p10988_p8 = pneg %p10987_p4 }
0x1195   : > { %v9792_v61 = vpop.permute.xlu2 %9791  ;;  %v9926_v44 = vsel %vm21180_vm6, %v9925_v53, %v9748_v51  ;;  %vm21188_vm6 = vcmask 539648  }
0x1196   : > { %p10993_p13 = pnand %p10992_p12, %p10988_p8 }
0x1197   : > { %v9752_v30 = vpop.permute.xlu1 %9751 }
0x1198   : > { %v9927_v34 = vsel %vm21181_vm13, %v9926_v44, %v9752_v30  ;;  %vm21189_vm13 = vcmask 556032  }
0x1199   : > { %v9928_v42 = vsel %vm21182_vm0, %v9927_v34, %v9756_v20  ;;  %vm21191_vm0 = vcmask 605184  }
0x119c   : > { %v9760_v8 = vpop.permute.xlu0 %9759 }
0x119d   : > { %v9804_v6 = vpop.permute.xlu2 %9803  ;;  %v9929_v45 = vsel %vm21183_vm10, %v9928_v42, %v9760_v8  ;;  %vm21198_vm10 = vcmask 752640  }
0x119f   : > { %v9764_v21 = vpop.permute.xlu1 %9763 }
0x11a0   : > { %v9930_v2 = vsel %vm21184_vm8, %v9929_v45, %v9764_v21  ;;  %vm21200_vm8 = vcmask 785408  }
0x11a1   : > { %v9931_v15 = vsel %vm21185_vm9, %v9930_v2, %v9768_v12  ;;  %vm21202_vm9 = vcmask 818176  }
0x11a4   : > { %v9772_v38 = vpop.permute.xlu0 %9771 }
0x11a5   : > { %v9816_v22 = vpop.permute.xlu2 %9815  ;;  %v9932_v46 = vsel %vm21186_vm3, %v9931_v15, %v9772_v38  ;;  %vm21192_vm3 = vcmask 654336  }
0x11a7   : > { %v9776_v19 = vpop.permute.xlu1 %9775 }
0x11a8   : > { %v9933_v32 = vsel %vm21187_vm7, %v9932_v46, %v9776_v19  ;;  %vm21193_vm7 = vcmask 687104  }
0x11a9   : > { %v9934_v11 = vsel %vm21188_vm6, %v9933_v32, %v9780_v26  ;;  %vm21203_vm6 = vcmask 834560  }
0x11ac   : > { %v9784_v5 = vpop.permute.xlu0 %9783 }
0x11ad   : > { %v9828_v33 = vpop.permute.xlu2 %9827  ;;  %v9935_v10 = vsel %vm21189_vm13, %v9934_v11, %v9784_v5  ;;  %vm21204_vm13 = vcmask 850944  }
0x11af   : > { %v9788_v13 = vpop.permute.xlu1 %9787 }
0x11b0   : > { %v9936_v40 = vsel %vm21190_vm1, %v9935_v10, %v9788_v13  ;;  %vm21194_vm1 = vcmask 703488  }
0x11b1   : > { %v9937_v14 = vsel %vm8779_vm12, %v9936_v40, %v9792_v61  ;;  %vm21195_vm12 = vcmask 719872  }
0x11b4   : > { %v9796_v31 = vpop.permute.xlu0 %9795 }
0x11b5   : > { %v9840_v63 = vpop.permute.xlu2 %9839  ;;  %v9938_v1 = vsel %vm21191_vm0, %v9937_v14, %v9796_v31  ;;  %vm21205_vm0 = vcmask 867328  }
0x11b7   : > { %v9800_v23 = vpop.permute.xlu1 %9799 }
0x11b8   : > { %v9939_v49 = vsel %vm8789_vm14, %v9938_v1, %v9800_v23  ;;  %vm21197_vm14 = vcmask 736256  }
0x11b9   : > { %v9940_v58 = vsel %vm8794_vm15, %v9939_v49, %v9804_v6  ;;  %vm21199_vm15 = vcmask 769024  }
0x11bc   : > { %v9808_v59 = vpop.permute.xlu0 %9807 }
0x11bd   : > { %v9852_v17 = vpop.permute.xlu2 %9851  ;;  %v9941_v4 = vsel %vm21192_vm3, %v9940_v58, %v9808_v59  ;;  %vm21206_vm3 = vcmask 883712  }
0x11bf   : > { %v9812_v0 = vpop.permute.xlu1 %9811 }
0x11c0   : > { %v9942_v55 = vsel %vm8804_vm2, %v9941_v4, %v9812_v0  ;;  %vm21201_vm2 = vcmask 801792  }
0x11c1   : > { %v9943_v57 = vsel %vm21193_vm7, %v9942_v55, %v9816_v22  ;;  %vm21207_vm7 = vcmask 900096  }
0x11c4   : > { %v9820_v16 = vpop.permute.xlu0 %9819 }
0x11c5   : > { %v9944_v39 = vsel %vm21194_vm1, %v9943_v57, %v9820_v16  ;;  %v9864_v35 = vpop.permute.xlu2 %9863  ;;  %vm21208_vm1 = vcmask 965632  }
0x11c7   : > { %v9824_v18 = vpop.permute.xlu1 %9823 }
0x11c8   : > { %v9945_v47 = vsel %vm21195_vm12, %v9944_v39, %v9824_v18  ;;  %vm21210_vm12 = vcmask 982016  }
0x11c9   : > { %v9946_v36 = vsel %vm21197_vm14, %v9945_v47, %v9828_v33 }
0x11cc   : > { %v9832_v27 = vpop.permute.xlu0 %9831 }
0x11cd   : > { %v9947_v20 = vsel %vm21198_vm10, %v9946_v36, %v9832_v27  ;;  %v9876_v7 = vpop.permute.xlu2 %9875 }
0x11cf   : > { %v9836_v41 = vpop.permute.xlu1 %9835 }
0x11d0   : > { %v9948_v60 = vsel %vm21199_vm15, %v9947_v20, %v9836_v41 }
0x11d1   : > { %v9949_v3 = vsel %vm21200_vm8, %v9948_v60, %v9840_v63 }
0x11d4   : > { %v9844_v25 = vpop.permute.xlu0 %9843 }
0x11d5   : > { %v9950_v43 = vsel %vm21201_vm2, %v9949_v3, %v9844_v25  ;;  %v9888_v53 = vpop.permute.xlu2 %9887 }
0x11d7   : > { %v9848_v52 = vpop.permute.xlu1 %9847 }
0x11d8   : > { %v9951_v28 = vsel %vm21202_vm9, %v9950_v43, %v9848_v52 }
0x11d9   : > { %v9952_v29 = vsel %vm21203_vm6, %v9951_v28, %v9852_v17 }
0x11dc   : > { %v9856_v48 = vpop.permute.xlu0 %9855 }
0x11dd   : > { %v9953_v12 = vsel %vm21204_vm13, %v9952_v29, %v9856_v48  ;;  %v9900_v5 = vpop.permute.xlu2 %9899 }
0x11df   : > { %v9860_v37 = vpop.permute.xlu1 %9859 }
0x11e0   : > { %v9954_v62 = vsel %vm21205_vm0, %v9953_v12, %v9860_v37 }
0x11e1   : > { %v9955_v9 = vsel %vm21206_vm3, %v9954_v62, %v9864_v35 }
0x11e4   : > { %v9868_v54 = vpop.permute.xlu0 %9867 }
0x11e5   : > { %v9956_v50 = vsel %vm21207_vm7, %v9955_v9, %v9868_v54 }
0x11e7   : > { %v9872_v24 = vpop.permute.xlu1 %9871 }
0x11e8   : > { %v9957_v26 = vsel %vm8879_vm5, %v9956_v50, %v9872_v24  ;;  %vm21212_vm5 = vcmask 998400  }
0x11e9   : > { %v9958_v30 = vsel %vm8884_vm11, %v9957_v26, %v9876_v7  ;;  %vm21213_vm11 = vcmask 1014784  }
0x11ec   : > { %v9880_v56 = vpop.permute.xlu0 %9879 }
0x11ed   : > { %v9959_v8 = vsel %vm8889_vm4, %v9958_v30, %v9880_v56  ;;  %vm21214_vm4 = vcmask 1031168  }
0x11ef   : > { %v9884_v51 = vpop.permute.xlu1 %9883 }
0x11f0   : > { %v9960_v61 = vsel %vm21208_vm1, %v9959_v8, %v9884_v51 }
0x11f1   : > { %v9961_v38 = vsel %vm21210_vm12, %v9960_v61, %v9888_v53 }
0x11f4   : > { %v9892_v21 = vpop.permute.xlu0 %9891 }
0x11f5   : > { %v9962_v19 = vsel %vm21212_vm5, %v9961_v38, %v9892_v21 }
0x11f7   : > { %v9896_v6 = vpop.permute.xlu1 %9895 }
0x11f8   : > { %v9963_v13 = vsel %vm21213_vm11, %v9962_v19, %v9896_v6 }
0x11f9   : > { %v9964_v22 = vsel %vm21214_vm4, %v9963_v13, %v9900_v5 }
0x11fa   : > { %9965 = vst [vmem:[%s18917_s13] sm:$0x1] %v9964_v22 }
0x11fb   : > { %9966 = vst [vmem:[%s18917_s13 + $0x1e] sm:$0x2] %v9964_v22 }
0x11fc   : > { %10996 = shalt.err (!%p10993_p13)
}
0x11fd   : > { %s11151_s6 = smov 128  }
0x11fe   : > { %10183 = dma.vmem_to_hbm [thread:$0]  (%p11303_p3), %s9983_s9, 512, %s9985_s19, %s9968_s2, %s11151_s6, %s11151_s6, %s11092_s16  }
0x11ff PF: > { %s21215_s13 = sld [smem:[#allocation17_spill]]  ;;  %p10213_p0 = scmp.ge.s32.totalorder %s11079_s12, 2 }
0x1201   : > { %p10203_p5 = pnand %p10213_p0, %p11252_p6 }
0x1203   : > { %p10204_p7 = pneg %p10203_p5 }
0x1205   : > { %s9999_s27 = sand.u32 1, %s21215_s13  }
0x1206   : > { %s10000_s29 = scalar_lea.sflag [#allocation4], %s9999_s27 }
0x1207   : > { %11046 = dma.done.wait (%p10204_p7), %s10000_s29, 512  }
0x1208   : > { %11048 = vsyncadd (%p10204_p7), %s10000_s29, 4294966784  ;;  %s28_s12 = sadd.s32 1, %s11079_s12   ;;  %s21217_s23 = sld [smem:[#allocation18_spill]] }
0x1209   : > { %p25_p2 = scmp.ge.s32.totalorder %s28_s12, 6   ;;  %s21218_s29 = sld [smem:[#allocation24_spill]] }
0x120a   : > { %s21219_s16 = sld [smem:[#allocation21_spill]]  ;;  %s21221_s27 = smov %s11055_s28 }
0x120b   : > { %s21220_s4 = sld [smem:[#allocation23_spill]]  ;;  %s21223_s30 = smov %s11071_s10 }
0x120c   : > { %s21224_s9 = smov %s11075_s11 }
0x120d   :  { %27 = sbr.rel (!%p25_p2) target bundleno = 16 (0x10), region = 122 }
0x120e   : > { %s21222_s28 = smov %s21217_s23 }
0x1210   : > { %s21225_s10 = smov %s21219_s16 }
0x1211   : > { %s21226_s11 = smov %s21220_s4 }
0x1212   :  { %10006 = vsyncpa [#allocation3], 1 }
0x1213   :  { %10008 = vsyncpa [#allocation3 + $0x1], 1 }
0x1214   :  { %10009 = vsyncpa [#allocation6], 1 }
0x1215   :  { %10011 = vsyncpa [#allocation6 + $0x1], 1 }
0x1216   :  { %10012 = vsyncpa [#allocation9], 1 }
0x1217   :  { %10013 = vsyncpa [#allocation4], 1 }
0x1218   :  { %10015 = vsyncpa [#allocation4 + $0x1], 1 }

</bundles_post_ra>
